<compile_context>
chip_gen: v6e
topology: v6e:2x2x1
jax: 0.10.0
libtpu: 0.0.40
codegen_flags: <defaults>
</compile_context>

<pallas_src>
import functools

import jax
import jax.numpy as jnp
from jax.experimental import pallas as pl
from jax.experimental.pallas import tpu as pltpu

PW = 2  # zero columns appended to W in the wrapper (spatial 3x3 halo columns)


# --------------------------------------------------------------------------
# Fused kernel: one grid step == one (n, Tb-frame block).
# --------------------------------------------------------------------------
def _bottleneck_kernel(x_ref, xp_ref, xn_ref, mask_ref,
                       w1_ref, b1_ref, w2_ref, b2_ref, w3_ref, b3_ref,
                       o_ref, acc_ref, y1p_ref, *, H, W, Tb):
    # Blocks:
    #   x    : (1, Tb, H*Wp, Cin)  bf16   main activation block (read once)
    #   xp/xn: (1, 1,  H*Wp, Cin)  bf16   temporal halo frames (clamped)
    #   mask : (H*Wp, 1)           f32    1.0 on real pixels, 0.0 on pad cols
    #   w1   : (3, Cin, Cmid)      bf16   temporal taps (BN scale folded)
    #   w2   : (9, Cmid, Cmid)     bf16   3x3 spatial taps
    #   w3   : (Cmid, Cout)        bf16
    #   b*   : (1, C)              f32    folded BN biases
    #   o    : (1, Tb, H*Wp, Cout) bf16
    # Scratch:
    #   acc  : (H*Wp, Cmid)        f32    shared conv1 / conv2 accumulator
    #   y1p  : ((H+2)*Wp + 2, Cmid) bf16  flat zero-bordered conv1 output
    Wp = W + PW
    HWp = H * Wp
    OFF = Wp + 1                       # interior offset inside y1p
    NP = y1p_ref.shape[0]              # (H+2)*Wp + 2
    cmid = w1_ref.shape[2]
    cdt = w2_ref.dtype                 # bf16 compute dtype
    tb = pl.program_id(1)
    n_tb = pl.num_programs(1)

    # Zero only the top/bottom halo rows of the padded scratch.  The interior
    # (including the right-pad columns, zeroed via `mask`) is fully rewritten
    # for every frame, so this is all the zeroing conv2 correctness needs.
    y1p_ref[pl.ds(0, OFF), :] = jnp.zeros((OFF, cmid), cdt)
    y1p_ref[pl.ds(OFF + HWp, NP - OFF - HWp), :] = jnp.zeros(
        (NP - OFF - HWp, cmid), cdt)

    mask = mask_ref[...]               # (HWp, 1) f32

    for i in range(Tb):                # unrolled; Tb is small and static
        xc = x_ref[0, i]               # (HWp, Cin) bf16

        # ---- conv1: 3x1x1 temporal conv (+folded BN), f32 scratch accum ----
        acc_ref[...] = jnp.dot(xc, w1_ref[1],
                               preferred_element_type=jnp.float32)
        if i > 0:                                      # t-1 inside this block
            acc_ref[...] += jnp.dot(x_ref[0, i - 1], w1_ref[0],
                                    preferred_element_type=jnp.float32)
        else:                                          # t-1 from halo, mask t==0
            @pl.when(tb > 0)
            def _():
                acc_ref[...] += jnp.dot(xp_ref[0, 0], w1_ref[0],
                                        preferred_element_type=jnp.float32)
        if i < Tb - 1:                                 # t+1 inside this block
            acc_ref[...] += jnp.dot(x_ref[0, i + 1], w1_ref[2],
                                    preferred_element_type=jnp.float32)
        else:                                          # t+1 from halo, mask t==T-1
            @pl.when(tb < n_tb - 1)
            def _():
                acc_ref[...] += jnp.dot(xn_ref[0, 0], w1_ref[2],
                                        preferred_element_type=jnp.float32)

        # bias + ReLU + pad-column zeroing + bf16 downcast fused into one write.
        y1 = (jnp.maximum(acc_ref[...] + b1_ref[...], 0.0) * mask).astype(cdt)
        y1p_ref[pl.ds(OFF, HWp), :] = y1               # one contiguous store

        # ---- conv2: 1x3x3 spatial conv as 9 contiguous-window matmuls ------
        for dh in range(3):
            for dw in range(3):
                start = OFF + (dh - 1) * Wp + (dw - 1)     # static, >= 0
                tap = y1p_ref[pl.ds(start, HWp), :]        # contiguous bf16 slice
                contrib = jnp.dot(tap, w2_ref[dh * 3 + dw],
                                  preferred_element_type=jnp.float32)
                if dh == 0 and dw == 0:
                    acc_ref[...] = contrib
                else:
                    acc_ref[...] += contrib
        y2 = jnp.maximum(acc_ref[...] + b2_ref[...], 0.0).astype(cdt)

        # ---- conv3 (1x1x1 + folded BN) + residual add + final ReLU ----------
        y3 = jnp.dot(y2, w3_ref[...], preferred_element_type=jnp.float32)
        out = y3 + b3_ref[...] + xc.astype(jnp.float32)    # identity (Cin==Cout)
        o_ref[0, i] = jnp.maximum(out, 0.0).astype(o_ref.dtype)


# --------------------------------------------------------------------------
# Wrapper: one boundary layout change (NCDHW -> padded channels-last bf16).
# --------------------------------------------------------------------------
def bottleneck3d_forward(x, params, compute_dtype=jnp.bfloat16):
    # x: (N, C, T, H, W) -- PyTorch NCDHW.
    N, Cin, T, H, W = x.shape
    Cmid = params["w1"].shape[-1]
    Cout = params["w3"].shape[-1]
    # TODO(synk): downsample branch not implemented (downsample=None default).
    assert Cin == Cout, "downsample=None requires inplanes == planes * expansion"

    Wp = W + PW
    HWp = H * Wp
    NP = (H + 2) * Wp + 2

    # Frames per grid step (divisor of T).  Tb~4 suits v5e/v6e; Tb~2 on v7x.
    Tb = 1
    for cand in (4, 3, 2):
        if T % cand == 0:
            Tb = cand
            break
    n_tb = T // Tb

    # Boundary layout change: NCDHW -> (N, T, H*Wp, C) bf16, W right-padded
    # with 2 zero columns (these double as the 3x3 spatial halo in flat space).
    x_cl = jnp.transpose(x, (0, 2, 3, 4, 1))                    # (N,T,H,W,C)
    x_cl = jnp.pad(x_cl, ((0, 0), (0, 0), (0, 0), (0, PW), (0, 0)))
    x_cl = x_cl.reshape(N, T, HWp, Cin).astype(compute_dtype)

    # Spatial validity mask over the flat padded row space.
    mask = (jnp.arange(HWp) % Wp < W).astype(jnp.float32).reshape(HWp, 1)

    w1 = params["w1"].astype(compute_dtype)       # (3, Cin, Cmid)
    w2 = params["w2"].astype(compute_dtype)       # (9, Cmid, Cmid)
    w3 = params["w3"].astype(compute_dtype)       # (Cmid, Cout)
    b1, b2, b3 = params["b1"], params["b2"], params["b3"]

    kernel = functools.partial(_bottleneck_kernel, H=H, W=W, Tb=Tb)

    out = pl.pallas_call(
        kernel,
        out_shape=jax.ShapeDtypeStruct((N, T, HWp, Cout), compute_dtype),
        grid=(N, n_tb),
        in_specs=[
            # Main Tb-frame activation block (read once per frame).
            pl.BlockSpec((1, Tb, HWp, Cin), lambda n, t: (n, t, 0, 0)),
            # 1-frame temporal halos (clamped; boundary taps masked in-kernel).
            pl.BlockSpec((1, 1, HWp, Cin),
                         lambda n, t: (n, jnp.maximum(t * Tb - 1, 0), 0, 0)),
            pl.BlockSpec((1, 1, HWp, Cin),
                         lambda n, t: (n, jnp.minimum(t * Tb + Tb, T - 1), 0, 0)),
            # Constant-index blocks (weights/masks stay resident across steps).
            pl.BlockSpec((HWp, 1), lambda n, t: (0, 0)),
            pl.BlockSpec((3, Cin, Cmid), lambda n, t: (0, 0, 0)),
            pl.BlockSpec((1, Cmid), lambda n, t: (0, 0)),
            pl.BlockSpec((9, Cmid, Cmid), lambda n, t: (0, 0, 0)),
            pl.BlockSpec((1, Cmid), lambda n, t: (0, 0)),
            pl.BlockSpec((Cmid, Cout), lambda n, t: (0, 0)),
            pl.BlockSpec((1, Cout), lambda n, t: (0, 0)),
        ],
        out_specs=pl.BlockSpec((1, Tb, HWp, Cout), lambda n, t: (n, t, 0, 0)),
        scratch_shapes=[
            pltpu.VMEM((HWp, Cmid), jnp.float32),      # shared conv1/conv2 acc
            pltpu.VMEM((NP, Cmid), compute_dtype),     # flat zero-bordered y1
        ],
        compiler_params=pltpu.CompilerParams(
            dimension_semantics=("parallel", "parallel"),
            # ~48 MiB is safe on all generations (v7x has 64 MiB physical);
            # raise towards 64-96 MiB on v5e/v6e for larger Tb at late stages.
            vmem_limit_bytes=48 * 1024 * 1024),
    )(x_cl, x_cl, x_cl, mask, w1, b1, w2, b2, w3, b3)

    # Drop the two garbage pad columns and restore NCDHW (f32 for comparison).
    out = out.reshape(N, T, H, Wp, Cout)[:, :, :, :W, :]
    return jnp.transpose(out, (0, 4, 1, 2, 3)).astype(jnp.float32)


# --------------------------------------------------------------------------
# Deterministic parameter init + BN folding + pure-JAX reference
# --------------------------------------------------------------------------
def init_params(key, inplanes, planes, expansion=4, eps=1e-5):
    Cout = planes * expansion
    ks = jax.random.split(key, 16)
    # PyTorch-layout conv weights (O, I, kT, kH, kW)
    w1 = 0.1 * jax.random.normal(ks[0], (planes, inplanes, 3, 1, 1), jnp.float32)
    w2 = 0.1 * jax.random.normal(ks[1], (planes, planes, 1, 3, 3), jnp.float32)
    w3 = 0.1 * jax.random.normal(ks[2], (Cout, planes, 1, 1, 1), jnp.float32)

    def bn(k0, k1, k2, k3, C):
        gamma = 1.0 + 0.1 * jax.random.normal(k0, (C,), jnp.float32)
        beta = 0.1 * jax.random.normal(k1, (C,), jnp.float32)
        mean = 0.1 * jax.random.normal(k2, (C,), jnp.float32)
        var = 1.0 + 0.1 * jax.random.uniform(k3, (C,), jnp.float32)
        return gamma, beta, mean, var

    bn1 = bn(ks[3], ks[4], ks[5], ks[6], planes)
    bn2 = bn(ks[7], ks[8], ks[9], ks[10], planes)
    bn3 = bn(ks[11], ks[12], ks[13], ks[14], Cout)

    def fold(bnp):
        gamma, beta, mean, var = bnp
        scale = gamma / jnp.sqrt(var + eps)
        return scale, beta - mean * scale

    s1, b1 = fold(bn1)
    s2, b2 = fold(bn2)
    s3, b3 = fold(bn3)

    params = {
        # (kT, Cin, Cmid), BN scale folded into the output channel
        "w1": jnp.transpose(w1[:, :, :, 0, 0], (2, 1, 0)) * s1[None, None, :],
        "b1": b1.reshape(1, -1),
        # (kH*kW, Cmid, Cmid)
        "w2": (jnp.transpose(w2[:, :, 0, :, :], (2, 3, 1, 0))
               * s2[None, None, None, :]).reshape(9, planes, planes),
        "b2": b2.reshape(1, -1),
        # (Cmid, Cout)
        "w3": jnp.transpose(w3[:, :, 0, 0, 0], (1, 0)) * s3[None, :],
        "b3": b3.reshape(1, -1),
    }
    torch_params = (w1, w2, w3, bn1, bn2, bn3)
    return params, torch_params


def reference_forward(x, w1, w2, w3, bn1, bn2, bn3, eps=1e-5):
    dn = ("NCDHW", "OIDHW", "NCDHW")

    def bn_apply(y, bnp):
        gamma, beta, mean, var = bnp
        s = gamma / jnp.sqrt(var + eps)
        return (y * s[None, :, None, None, None]
                + (beta - mean * s)[None, :, None, None, None])

    y = jax.lax.conv_general_dilated(x, w1, (1, 1, 1),
                                     ((1, 1), (0, 0), (0, 0)),
                                     dimension_numbers=dn)
    y = jnp.maximum(bn_apply(y, bn1), 0.0)
    y = jax.lax.conv_general_dilated(y, w2, (1, 1, 1),
                                     ((0, 0), (1, 1), (1, 1)),
                                     dimension_numbers=dn)
    y = jnp.maximum(bn_apply(y, bn2), 0.0)
    y = jax.lax.conv_general_dilated(y, w3, (1, 1, 1),
                                     ((0, 0), (0, 0), (0, 0)),
                                     dimension_numbers=dn)
    y = bn_apply(y, bn3)
    return jnp.maximum(y + x, 0.0)


if __name__ == "__main__":
    # Small shapes; inplanes == planes * expansion since downsample=None.
    N, inplanes, planes, T, H, W = 2, 32, 8, 8, 8, 8
    key = jax.random.PRNGKey(0)
    kx, kp = jax.random.split(key)
    x = jax.random.normal(kx, (N, inplanes, T, H, W), jnp.float32)
    params, torch_params = init_params(kp, inplanes, planes)

    out = jax.jit(bottleneck3d_forward)(x, params)
    out = jax.block_until_ready(out)

    ref = reference_forward(x, *torch_params)
    assert out.shape == ref.shape == (N, planes * 4, T, H, W)
    # bf16 activations/weights/output with f32 accumulation -> loose tolerance.
    max_err = float(jnp.max(jnp.abs(out - ref)))
    assert bool(jnp.allclose(out, ref, atol=1e-1, rtol=1e-1)), max_err
    # TODO(synk): downsample / non_local / with_cp branches are not active under
    # the module's default config and are omitted.
    print("KERNEL_OK")
</pallas_src>

<mosaic_0001>
module attributes {stable_mosaic.version = 11 : i64} {
  func.func @_bottleneck_kernel(%arg0: i32, %arg1: i32, %arg2: memref<1x4x80x32xbf16, #tpu.memory_space<vmem>>, %arg3: memref<1x1x80x32xbf16, #tpu.memory_space<vmem>>, %arg4: memref<1x1x80x32xbf16, #tpu.memory_space<vmem>>, %arg5: memref<80x1xf32, #tpu.memory_space<vmem>>, %arg6: memref<3x32x8xbf16, #tpu.memory_space<vmem>>, %arg7: memref<1x8xf32, #tpu.memory_space<vmem>>, %arg8: memref<9x8x8xbf16, #tpu.memory_space<vmem>>, %arg9: memref<1x8xf32, #tpu.memory_space<vmem>>, %arg10: memref<8x32xbf16, #tpu.memory_space<vmem>>, %arg11: memref<1x32xf32, #tpu.memory_space<vmem>>, %arg12: memref<1x4x80x32xbf16, #tpu.memory_space<vmem>>, %arg13: memref<80x8xf32, #tpu.memory_space<vmem>>, %arg14: memref<102x8xbf16, #tpu.memory_space<vmem>>) attributes {dimension_semantics = [#tpu.dimension_semantics<parallel>, #tpu.dimension_semantics<parallel>], iteration_bounds = array<i64: 2, 2>, scalar_prefetch = 0 : i64, scratch_operands = 2 : i64, tpu.core_type = #tpu.core_type<tc>, window_params = [{transform_indices = @transform_0, window_bounds = array<i64: 1, 4, 80, 32>}, {transform_indices = @transform_1, window_bounds = array<i64: 1, 1, 80, 32>}, {transform_indices = @transform_2, window_bounds = array<i64: 1, 1, 80, 32>}, {pipeline_mode = #tpu.pipeline_mode<synchronous>, transform_indices = @transform_3, window_bounds = array<i64: 80, 1>}, {pipeline_mode = #tpu.pipeline_mode<synchronous>, transform_indices = @transform_4, window_bounds = array<i64: 3, 32, 8>}, {pipeline_mode = #tpu.pipeline_mode<synchronous>, transform_indices = @transform_5, window_bounds = array<i64: 1, 8>}, {pipeline_mode = #tpu.pipeline_mode<synchronous>, transform_indices = @transform_6, window_bounds = array<i64: 9, 8, 8>}, {pipeline_mode = #tpu.pipeline_mode<synchronous>, transform_indices = @transform_7, window_bounds = array<i64: 1, 8>}, {pipeline_mode = #tpu.pipeline_mode<synchronous>, transform_indices = @transform_8, window_bounds = array<i64: 8, 32>}, {pipeline_mode = #tpu.pipeline_mode<synchronous>, transform_indices = @transform_9, window_bounds = array<i64: 1, 32>}, {transform_indices = @transform_10, window_bounds = array<i64: 1, 4, 80, 32>}]} {
    %cst = arith.constant 0.000000e+00 : bf16
    %0 = vector.broadcast %cst : bf16 to vector<11x8xbf16>
    %c0 = arith.constant 0 : index
    %c0_0 = arith.constant 0 : index
    %1 = vector.load %arg14[%c0, %c0_0] : memref<102x8xbf16, #tpu.memory_space<vmem>>, vector<11x8xbf16>
    tpu.vector_store %arg14[%c0, %c0_0], %0 {strides = array<i32>} : memref<102x8xbf16, #tpu.memory_space<vmem>>, vector<11x8xbf16>,
    %cst_1 = arith.constant 0.000000e+00 : bf16
    %2 = vector.broadcast %cst_1 : bf16 to vector<11x8xbf16>
    %c91 = arith.constant 91 : index
    %c0_2 = arith.constant 0 : index
    %3 = vector.load %arg14[%c91, %c0_2] : memref<102x8xbf16, #tpu.memory_space<vmem>>, vector<11x8xbf16>
    tpu.vector_store %arg14[%c91, %c0_2], %2 {strides = array<i32>} : memref<102x8xbf16, #tpu.memory_space<vmem>>, vector<11x8xbf16>,
    %c0_3 = arith.constant 0 : index
    %c0_4 = arith.constant 0 : index
    %4 = vector.load %arg5[%c0_3, %c0_4] : memref<80x1xf32, #tpu.memory_space<vmem>>, vector<80x1xf32>
    %c0_5 = arith.constant 0 : index
    %c0_6 = arith.constant 0 : index
    %c0_7 = arith.constant 0 : index
    %c0_8 = arith.constant 0 : index
    %5 = vector.load %arg2[%c0_5, %c0_6, %c0_7, %c0_8] : memref<1x4x80x32xbf16, #tpu.memory_space<vmem>>, vector<1x1x80x32xbf16>
    %6 = vector.shape_cast %5 : vector<1x1x80x32xbf16> to vector<80x32xbf16>
    %c1 = arith.constant 1 : index
    %c0_9 = arith.constant 0 : index
    %c0_10 = arith.constant 0 : index
    %7 = vector.load %arg6[%c1, %c0_9, %c0_10] : memref<3x32x8xbf16, #tpu.memory_space<vmem>>, vector<1x32x8xbf16>
    %8 = vector.shape_cast %7 : vector<1x32x8xbf16> to vector<32x8xbf16>
    %cst_11 = arith.constant dense<0.000000e+00> : vector<80x8xf32>
    %9 = tpu.matmul %6, %8, %cst_11 {dimension_numbers = #tpu.dot_dimension_numbers<[1], [0], [0], [1], [0, 0, 1, 1], [], []>} : vector<80x32xbf16>, vector<32x8xbf16>, vector<80x8xf32> -> vector<80x8xf32>
    %c0_12 = arith.constant 0 : index
    %c0_13 = arith.constant 0 : index
    %10 = vector.load %arg13[%c0_12, %c0_13] : memref<80x8xf32, #tpu.memory_space<vmem>>, vector<80x8xf32>
    tpu.vector_store %arg13[%c0_12, %c0_13], %9 {strides = array<i32>} : memref<80x8xf32, #tpu.memory_space<vmem>>, vector<80x8xf32>,
    %c0_i32 = arith.constant 0 : i32
    %11 = arith.cmpi sgt, %arg1, %c0_i32 : i32
    %12 = arith.extui %11 : i1 to i32
    %c0_i32_14 = arith.constant 0 : i32
    %13 = arith.cmpi ne, %12, %c0_i32_14 : i32
    scf.if %13 {
      %c0_545 = arith.constant 0 : index
      %c0_546 = arith.constant 0 : index
      %447 = vector.load %arg13[%c0_545, %c0_546] : memref<80x8xf32, #tpu.memory_space<vmem>>, vector<80x8xf32>
      %c0_547 = arith.constant 0 : index
      %c0_548 = arith.constant 0 : index
      %c0_549 = arith.constant 0 : index
      %c0_550 = arith.constant 0 : index
      %448 = vector.load %arg3[%c0_547, %c0_548, %c0_549, %c0_550] : memref<1x1x80x32xbf16, #tpu.memory_space<vmem>>, vector<1x1x80x32xbf16>
      %449 = vector.shape_cast %448 : vector<1x1x80x32xbf16> to vector<80x32xbf16>
      %c0_551 = arith.constant 0 : index
      %c0_552 = arith.constant 0 : index
      %c0_553 = arith.constant 0 : index
      %450 = vector.load %arg6[%c0_551, %c0_552, %c0_553] : memref<3x32x8xbf16, #tpu.memory_space<vmem>>, vector<1x32x8xbf16>
      %451 = vector.shape_cast %450 : vector<1x32x8xbf16> to vector<32x8xbf16>
      %cst_554 = arith.constant dense<0.000000e+00> : vector<80x8xf32>
      %452 = tpu.matmul %449, %451, %cst_554 {dimension_numbers = #tpu.dot_dimension_numbers<[1], [0], [0], [1], [0, 0, 1, 1], [], []>} : vector<80x32xbf16>, vector<32x8xbf16>, vector<80x8xf32> -> vector<80x8xf32>
      %453 = arith.addf %447, %452 : vector<80x8xf32>
      %c0_555 = arith.constant 0 : index
      %c0_556 = arith.constant 0 : index
      %454 = vector.load %arg13[%c0_555, %c0_556] : memref<80x8xf32, #tpu.memory_space<vmem>>, vector<80x8xf32>
      tpu.vector_store %arg13[%c0_555, %c0_556], %453 {strides = array<i32>} : memref<80x8xf32, #tpu.memory_space<vmem>>, vector<80x8xf32>,
    } else {
    }
    %c0_15 = arith.constant 0 : index
    %c0_16 = arith.constant 0 : index
    %14 = vector.load %arg13[%c0_15, %c0_16] : memref<80x8xf32, #tpu.memory_space<vmem>>, vector<80x8xf32>
    %c0_17 = arith.constant 0 : index
    %c1_18 = arith.constant 1 : index
    %c0_19 = arith.constant 0 : index
    %c0_20 = arith.constant 0 : index
    %15 = vector.load %arg2[%c0_17, %c1_18, %c0_19, %c0_20] : memref<1x4x80x32xbf16, #tpu.memory_space<vmem>>, vector<1x1x80x32xbf16>
    %16 = vector.shape_cast %15 : vector<1x1x80x32xbf16> to vector<80x32xbf16>
    %c2 = arith.constant 2 : index
    %c0_21 = arith.constant 0 : index
    %c0_22 = arith.constant 0 : index
    %17 = vector.load %arg6[%c2, %c0_21, %c0_22] : memref<3x32x8xbf16, #tpu.memory_space<vmem>>, vector<1x32x8xbf16>
    %18 = vector.shape_cast %17 : vector<1x32x8xbf16> to vector<32x8xbf16>
    %cst_23 = arith.constant dense<0.000000e+00> : vector<80x8xf32>
    %19 = tpu.matmul %16, %18, %cst_23 {dimension_numbers = #tpu.dot_dimension_numbers<[1], [0], [0], [1], [0, 0, 1, 1], [], []>} : vector<80x32xbf16>, vector<32x8xbf16>, vector<80x8xf32> -> vector<80x8xf32>
    %20 = arith.addf %14, %19 : vector<80x8xf32>
    %c0_24 = arith.constant 0 : index
    %c0_25 = arith.constant 0 : index
    %21 = vector.load %arg13[%c0_24, %c0_25] : memref<80x8xf32, #tpu.memory_space<vmem>>, vector<80x8xf32>
    tpu.vector_store %arg13[%c0_24, %c0_25], %20 {strides = array<i32>} : memref<80x8xf32, #tpu.memory_space<vmem>>, vector<80x8xf32>,
    %c0_26 = arith.constant 0 : index
    %c0_27 = arith.constant 0 : index
    %22 = vector.load %arg13[%c0_26, %c0_27] : memref<80x8xf32, #tpu.memory_space<vmem>>, vector<80x8xf32>
    %c0_28 = arith.constant 0 : index
    %c0_29 = arith.constant 0 : index
    %23 = vector.load %arg7[%c0_28, %c0_29] : memref<1x8xf32, #tpu.memory_space<vmem>>, vector<1x8xf32>
    %24 = vector.broadcast %23 : vector<1x8xf32> to vector<80x8xf32>
    %25 = arith.addf %22, %24 : vector<80x8xf32>
    %cst_30 = arith.constant 0.000000e+00 : f32
    %26 = vector.broadcast %cst_30 : f32 to vector<80x8xf32>
    %27 = arith.maximumf %25, %26 : vector<80x8xf32>
    %28 = vector.broadcast %4 : vector<80x1xf32> to vector<80x8xf32>
    %29 = arith.mulf %27, %28 : vector<80x8xf32>
    %30 = arith.truncf %29 : vector<80x8xf32> to vector<80x8xbf16>
    %c11 = arith.constant 11 : index
    %c0_31 = arith.constant 0 : index
    %31 = vector.load %arg14[%c11, %c0_31] : memref<102x8xbf16, #tpu.memory_space<vmem>>, vector<80x8xbf16>
    tpu.vector_store %arg14[%c11, %c0_31], %30 {strides = array<i32>} : memref<102x8xbf16, #tpu.memory_space<vmem>>, vector<80x8xbf16>,
    %c0_32 = arith.constant 0 : index
    %c0_33 = arith.constant 0 : index
    %32 = vector.load %arg14[%c0_32, %c0_33] : memref<102x8xbf16, #tpu.memory_space<vmem>>, vector<80x8xbf16>
    %c0_34 = arith.constant 0 : index
    %c0_35 = arith.constant 0 : index
    %c0_36 = arith.constant 0 : index
    %33 = vector.load %arg8[%c0_34, %c0_35, %c0_36] : memref<9x8x8xbf16, #tpu.memory_space<vmem>>, vector<1x8x8xbf16>
    %34 = vector.shape_cast %33 : vector<1x8x8xbf16> to vector<8x8xbf16>
    %cst_37 = arith.constant dense<0.000000e+00> : vector<80x8xf32>
    %35 = tpu.matmul %32, %34, %cst_37 {dimension_numbers = #tpu.dot_dimension_numbers<[1], [0], [0], [1], [0, 0, 1, 1], [], []>} : vector<80x8xbf16>, vector<8x8xbf16>, vector<80x8xf32> -> vector<80x8xf32>
    %c0_38 = arith.constant 0 : index
    %c0_39 = arith.constant 0 : index
    %36 = vector.load %arg13[%c0_38, %c0_39] : memref<80x8xf32, #tpu.memory_space<vmem>>, vector<80x8xf32>
    tpu.vector_store %arg13[%c0_38, %c0_39], %35 {strides = array<i32>} : memref<80x8xf32, #tpu.memory_space<vmem>>, vector<80x8xf32>,
    %c1_40 = arith.constant 1 : index
    %c0_41 = arith.constant 0 : index
    %37 = vector.load %arg14[%c1_40, %c0_41] : memref<102x8xbf16, #tpu.memory_space<vmem>>, vector<80x8xbf16>
    %c1_42 = arith.constant 1 : index
    %c0_43 = arith.constant 0 : index
    %c0_44 = arith.constant 0 : index
    %38 = vector.load %arg8[%c1_42, %c0_43, %c0_44] : memref<9x8x8xbf16, #tpu.memory_space<vmem>>, vector<1x8x8xbf16>
    %39 = vector.shape_cast %38 : vector<1x8x8xbf16> to vector<8x8xbf16>
    %cst_45 = arith.constant dense<0.000000e+00> : vector<80x8xf32>
    %40 = tpu.matmul %37, %39, %cst_45 {dimension_numbers = #tpu.dot_dimension_numbers<[1], [0], [0], [1], [0, 0, 1, 1], [], []>} : vector<80x8xbf16>, vector<8x8xbf16>, vector<80x8xf32> -> vector<80x8xf32>
    %c0_46 = arith.constant 0 : index
    %c0_47 = arith.constant 0 : index
    %41 = vector.load %arg13[%c0_46, %c0_47] : memref<80x8xf32, #tpu.memory_space<vmem>>, vector<80x8xf32>
    %42 = arith.addf %41, %40 : vector<80x8xf32>
    %c0_48 = arith.constant 0 : index
    %c0_49 = arith.constant 0 : index
    %43 = vector.load %arg13[%c0_48, %c0_49] : memref<80x8xf32, #tpu.memory_space<vmem>>, vector<80x8xf32>
    tpu.vector_store %arg13[%c0_48, %c0_49], %42 {strides = array<i32>} : memref<80x8xf32, #tpu.memory_space<vmem>>, vector<80x8xf32>,
    %c2_50 = arith.constant 2 : index
    %c0_51 = arith.constant 0 : index
    %44 = vector.load %arg14[%c2_50, %c0_51] : memref<102x8xbf16, #tpu.memory_space<vmem>>, vector<80x8xbf16>
    %c2_52 = arith.constant 2 : index
    %c0_53 = arith.constant 0 : index
    %c0_54 = arith.constant 0 : index
    %45 = vector.load %arg8[%c2_52, %c0_53, %c0_54] : memref<9x8x8xbf16, #tpu.memory_space<vmem>>, vector<1x8x8xbf16>
    %46 = vector.shape_cast %45 : vector<1x8x8xbf16> to vector<8x8xbf16>
    %cst_55 = arith.constant dense<0.000000e+00> : vector<80x8xf32>
    %47 = tpu.matmul %44, %46, %cst_55 {dimension_numbers = #tpu.dot_dimension_numbers<[1], [0], [0], [1], [0, 0, 1, 1], [], []>} : vector<80x8xbf16>, vector<8x8xbf16>, vector<80x8xf32> -> vector<80x8xf32>
    %c0_56 = arith.constant 0 : index
    %c0_57 = arith.constant 0 : index
    %48 = vector.load %arg13[%c0_56, %c0_57] : memref<80x8xf32, #tpu.memory_space<vmem>>, vector<80x8xf32>
    %49 = arith.addf %48, %47 : vector<80x8xf32>
    %c0_58 = arith.constant 0 : index
    %c0_59 = arith.constant 0 : index
    %50 = vector.load %arg13[%c0_58, %c0_59] : memref<80x8xf32, #tpu.memory_space<vmem>>, vector<80x8xf32>
    tpu.vector_store %arg13[%c0_58, %c0_59], %49 {strides = array<i32>} : memref<80x8xf32, #tpu.memory_space<vmem>>, vector<80x8xf32>,
    %c10 = arith.constant 10 : index
    %c0_60 = arith.constant 0 : index
    %51 = vector.load %arg14[%c10, %c0_60] : memref<102x8xbf16, #tpu.memory_space<vmem>>, vector<80x8xbf16>
    %c3 = arith.constant 3 : index
    %c0_61 = arith.constant 0 : index
    %c0_62 = arith.constant 0 : index
    %52 = vector.load %arg8[%c3, %c0_61, %c0_62] : memref<9x8x8xbf16, #tpu.memory_space<vmem>>, vector<1x8x8xbf16>
    %53 = vector.shape_cast %52 : vector<1x8x8xbf16> to vector<8x8xbf16>
    %cst_63 = arith.constant dense<0.000000e+00> : vector<80x8xf32>
    %54 = tpu.matmul %51, %53, %cst_63 {dimension_numbers = #tpu.dot_dimension_numbers<[1], [0], [0], [1], [0, 0, 1, 1], [], []>} : vector<80x8xbf16>, vector<8x8xbf16>, vector<80x8xf32> -> vector<80x8xf32>
    %c0_64 = arith.constant 0 : index
    %c0_65 = arith.constant 0 : index
    %55 = vector.load %arg13[%c0_64, %c0_65] : memref<80x8xf32, #tpu.memory_space<vmem>>, vector<80x8xf32>
    %56 = arith.addf %55, %54 : vector<80x8xf32>
    %c0_66 = arith.constant 0 : index
    %c0_67 = arith.constant 0 : index
    %57 = vector.load %arg13[%c0_66, %c0_67] : memref<80x8xf32, #tpu.memory_space<vmem>>, vector<80x8xf32>
    tpu.vector_store %arg13[%c0_66, %c0_67], %56 {strides = array<i32>} : memref<80x8xf32, #tpu.memory_space<vmem>>, vector<80x8xf32>,
    %c11_68 = arith.constant 11 : index
    %c0_69 = arith.constant 0 : index
    %58 = vector.load %arg14[%c11_68, %c0_69] : memref<102x8xbf16, #tpu.memory_space<vmem>>, vector<80x8xbf16>
    %c4 = arith.constant 4 : index
    %c0_70 = arith.constant 0 : index
    %c0_71 = arith.constant 0 : index
    %59 = vector.load %arg8[%c4, %c0_70, %c0_71] : memref<9x8x8xbf16, #tpu.memory_space<vmem>>, vector<1x8x8xbf16>
    %60 = vector.shape_cast %59 : vector<1x8x8xbf16> to vector<8x8xbf16>
    %cst_72 = arith.constant dense<0.000000e+00> : vector<80x8xf32>
    %61 = tpu.matmul %58, %60, %cst_72 {dimension_numbers = #tpu.dot_dimension_numbers<[1], [0], [0], [1], [0, 0, 1, 1], [], []>} : vector<80x8xbf16>, vector<8x8xbf16>, vector<80x8xf32> -> vector<80x8xf32>
    %c0_73 = arith.constant 0 : index
    %c0_74 = arith.constant 0 : index
    %62 = vector.load %arg13[%c0_73, %c0_74] : memref<80x8xf32, #tpu.memory_space<vmem>>, vector<80x8xf32>
    %63 = arith.addf %62, %61 : vector<80x8xf32>
    %c0_75 = arith.constant 0 : index
    %c0_76 = arith.constant 0 : index
    %64 = vector.load %arg13[%c0_75, %c0_76] : memref<80x8xf32, #tpu.memory_space<vmem>>, vector<80x8xf32>
    tpu.vector_store %arg13[%c0_75, %c0_76], %63 {strides = array<i32>} : memref<80x8xf32, #tpu.memory_space<vmem>>, vector<80x8xf32>,
    %c12 = arith.constant 12 : index
    %c0_77 = arith.constant 0 : index
    %65 = vector.load %arg14[%c12, %c0_77] : memref<102x8xbf16, #tpu.memory_space<vmem>>, vector<80x8xbf16>
    %c5 = arith.constant 5 : index
    %c0_78 = arith.constant 0 : index
    %c0_79 = arith.constant 0 : index
    %66 = vector.load %arg8[%c5, %c0_78, %c0_79] : memref<9x8x8xbf16, #tpu.memory_space<vmem>>, vector<1x8x8xbf16>
    %67 = vector.shape_cast %66 : vector<1x8x8xbf16> to vector<8x8xbf16>
    %cst_80 = arith.constant dense<0.000000e+00> : vector<80x8xf32>
    %68 = tpu.matmul %65, %67, %cst_80 {dimension_numbers = #tpu.dot_dimension_numbers<[1], [0], [0], [1], [0, 0, 1, 1], [], []>} : vector<80x8xbf16>, vector<8x8xbf16>, vector<80x8xf32> -> vector<80x8xf32>
    %c0_81 = arith.constant 0 : index
    %c0_82 = arith.constant 0 : index
    %69 = vector.load %arg13[%c0_81, %c0_82] : memref<80x8xf32, #tpu.memory_space<vmem>>, vector<80x8xf32>
    %70 = arith.addf %69, %68 : vector<80x8xf32>
    %c0_83 = arith.constant 0 : index
    %c0_84 = arith.constant 0 : index
    %71 = vector.load %arg13[%c0_83, %c0_84] : memref<80x8xf32, #tpu.memory_space<vmem>>, vector<80x8xf32>
    tpu.vector_store %arg13[%c0_83, %c0_84], %70 {strides = array<i32>} : memref<80x8xf32, #tpu.memory_space<vmem>>, vector<80x8xf32>,
    %c20 = arith.constant 20 : index
    %c0_85 = arith.constant 0 : index
    %72 = vector.load %arg14[%c20, %c0_85] : memref<102x8xbf16, #tpu.memory_space<vmem>>, vector<80x8xbf16>
    %c6 = arith.constant 6 : index
    %c0_86 = arith.constant 0 : index
    %c0_87 = arith.constant 0 : index
    %73 = vector.load %arg8[%c6, %c0_86, %c0_87] : memref<9x8x8xbf16, #tpu.memory_space<vmem>>, vector<1x8x8xbf16>
    %74 = vector.shape_cast %73 : vector<1x8x8xbf16> to vector<8x8xbf16>
    %cst_88 = arith.constant dense<0.000000e+00> : vector<80x8xf32>
    %75 = tpu.matmul %72, %74, %cst_88 {dimension_numbers = #tpu.dot_dimension_numbers<[1], [0], [0], [1], [0, 0, 1, 1], [], []>} : vector<80x8xbf16>, vector<8x8xbf16>, vector<80x8xf32> -> vector<80x8xf32>
    %c0_89 = arith.constant 0 : index
    %c0_90 = arith.constant 0 : index
    %76 = vector.load %arg13[%c0_89, %c0_90] : memref<80x8xf32, #tpu.memory_space<vmem>>, vector<80x8xf32>
    %77 = arith.addf %76, %75 : vector<80x8xf32>
    %c0_91 = arith.constant 0 : index
    %c0_92 = arith.constant 0 : index
    %78 = vector.load %arg13[%c0_91, %c0_92] : memref<80x8xf32, #tpu.memory_space<vmem>>, vector<80x8xf32>
    tpu.vector_store %arg13[%c0_91, %c0_92], %77 {strides = array<i32>} : memref<80x8xf32, #tpu.memory_space<vmem>>, vector<80x8xf32>,
    %c21 = arith.constant 21 : index
    %c0_93 = arith.constant 0 : index
    %79 = vector.load %arg14[%c21, %c0_93] : memref<102x8xbf16, #tpu.memory_space<vmem>>, vector<80x8xbf16>
    %c7 = arith.constant 7 : index
    %c0_94 = arith.constant 0 : index
    %c0_95 = arith.constant 0 : index
    %80 = vector.load %arg8[%c7, %c0_94, %c0_95] : memref<9x8x8xbf16, #tpu.memory_space<vmem>>, vector<1x8x8xbf16>
    %81 = vector.shape_cast %80 : vector<1x8x8xbf16> to vector<8x8xbf16>
    %cst_96 = arith.constant dense<0.000000e+00> : vector<80x8xf32>
    %82 = tpu.matmul %79, %81, %cst_96 {dimension_numbers = #tpu.dot_dimension_numbers<[1], [0], [0], [1], [0, 0, 1, 1], [], []>} : vector<80x8xbf16>, vector<8x8xbf16>, vector<80x8xf32> -> vector<80x8xf32>
    %c0_97 = arith.constant 0 : index
    %c0_98 = arith.constant 0 : index
    %83 = vector.load %arg13[%c0_97, %c0_98] : memref<80x8xf32, #tpu.memory_space<vmem>>, vector<80x8xf32>
    %84 = arith.addf %83, %82 : vector<80x8xf32>
    %c0_99 = arith.constant 0 : index
    %c0_100 = arith.constant 0 : index
    %85 = vector.load %arg13[%c0_99, %c0_100] : memref<80x8xf32, #tpu.memory_space<vmem>>, vector<80x8xf32>
    tpu.vector_store %arg13[%c0_99, %c0_100], %84 {strides = array<i32>} : memref<80x8xf32, #tpu.memory_space<vmem>>, vector<80x8xf32>,
    %c22 = arith.constant 22 : index
    %c0_101 = arith.constant 0 : index
    %86 = vector.load %arg14[%c22, %c0_101] : memref<102x8xbf16, #tpu.memory_space<vmem>>, vector<80x8xbf16>
    %c8 = arith.constant 8 : index
    %c0_102 = arith.constant 0 : index
    %c0_103 = arith.constant 0 : index
    %87 = vector.load %arg8[%c8, %c0_102, %c0_103] : memref<9x8x8xbf16, #tpu.memory_space<vmem>>, vector<1x8x8xbf16>
    %88 = vector.shape_cast %87 : vector<1x8x8xbf16> to vector<8x8xbf16>
    %cst_104 = arith.constant dense<0.000000e+00> : vector<80x8xf32>
    %89 = tpu.matmul %86, %88, %cst_104 {dimension_numbers = #tpu.dot_dimension_numbers<[1], [0], [0], [1], [0, 0, 1, 1], [], []>} : vector<80x8xbf16>, vector<8x8xbf16>, vector<80x8xf32> -> vector<80x8xf32>
    %c0_105 = arith.constant 0 : index
    %c0_106 = arith.constant 0 : index
    %90 = vector.load %arg13[%c0_105, %c0_106] : memref<80x8xf32, #tpu.memory_space<vmem>>, vector<80x8xf32>
    %91 = arith.addf %90, %89 : vector<80x8xf32>
    %c0_107 = arith.constant 0 : index
    %c0_108 = arith.constant 0 : index
    %92 = vector.load %arg13[%c0_107, %c0_108] : memref<80x8xf32, #tpu.memory_space<vmem>>, vector<80x8xf32>
    tpu.vector_store %arg13[%c0_107, %c0_108], %91 {strides = array<i32>} : memref<80x8xf32, #tpu.memory_space<vmem>>, vector<80x8xf32>,
    %c0_109 = arith.constant 0 : index
    %c0_110 = arith.constant 0 : index
    %93 = vector.load %arg13[%c0_109, %c0_110] : memref<80x8xf32, #tpu.memory_space<vmem>>, vector<80x8xf32>
    %c0_111 = arith.constant 0 : index
    %c0_112 = arith.constant 0 : index
    %94 = vector.load %arg9[%c0_111, %c0_112] : memref<1x8xf32, #tpu.memory_space<vmem>>, vector<1x8xf32>
    %95 = vector.broadcast %94 : vector<1x8xf32> to vector<80x8xf32>
    %96 = arith.addf %93, %95 : vector<80x8xf32>
    %cst_113 = arith.constant 0.000000e+00 : f32
    %97 = vector.broadcast %cst_113 : f32 to vector<80x8xf32>
    %98 = arith.maximumf %96, %97 : vector<80x8xf32>
    %99 = arith.truncf %98 : vector<80x8xf32> to vector<80x8xbf16>
    %c0_114 = arith.constant 0 : index
    %c0_115 = arith.constant 0 : index
    %100 = vector.load %arg10[%c0_114, %c0_115] : memref<8x32xbf16, #tpu.memory_space<vmem>>, vector<8x32xbf16>
    %cst_116 = arith.constant dense<0.000000e+00> : vector<80x32xf32>
    %101 = tpu.matmul %99, %100, %cst_116 {dimension_numbers = #tpu.dot_dimension_numbers<[1], [0], [0], [1], [0, 0, 1, 1], [], []>} : vector<80x8xbf16>, vector<8x32xbf16>, vector<80x32xf32> -> vector<80x32xf32>
    %c0_117 = arith.constant 0 : index
    %c0_118 = arith.constant 0 : index
    %102 = vector.load %arg11[%c0_117, %c0_118] : memref<1x32xf32, #tpu.memory_space<vmem>>, vector<1x32xf32>
    %103 = vector.broadcast %102 : vector<1x32xf32> to vector<80x32xf32>
    %104 = arith.addf %101, %103 : vector<80x32xf32>
    %105 = arith.extf %6 : vector<80x32xbf16> to vector<80x32xf32>
    %106 = arith.addf %104, %105 : vector<80x32xf32>
    %cst_119 = arith.constant 0.000000e+00 : f32
    %107 = vector.broadcast %cst_119 : f32 to vector<80x32xf32>
    %108 = arith.maximumf %106, %107 : vector<80x32xf32>
    %109 = arith.truncf %108 : vector<80x32xf32> to vector<80x32xbf16>
    %c0_120 = arith.constant 0 : index
    %c0_121 = arith.constant 0 : index
    %c0_122 = arith.constant 0 : index
    %c0_123 = arith.constant 0 : index
    %110 = vector.load %arg12[%c0_120, %c0_121, %c0_122, %c0_123] : memref<1x4x80x32xbf16, #tpu.memory_space<vmem>>, vector<1x1x80x32xbf16>
    %111 = vector.shape_cast %110 : vector<1x1x80x32xbf16> to vector<80x32xbf16>
    %112 = vector.shape_cast %109 : vector<80x32xbf16> to vector<1x1x80x32xbf16>
    tpu.vector_store %arg12[%c0_120, %c0_121, %c0_122, %c0_123], %112 {strides = array<i32>} : memref<1x4x80x32xbf16, #tpu.memory_space<vmem>>, vector<1x1x80x32xbf16>,
    %c0_124 = arith.constant 0 : index
    %c1_125 = arith.constant 1 : index
    %c0_126 = arith.constant 0 : index
    %c0_127 = arith.constant 0 : index
    %113 = vector.load %arg2[%c0_124, %c1_125, %c0_126, %c0_127] : memref<1x4x80x32xbf16, #tpu.memory_space<vmem>>, vector<1x1x80x32xbf16>
    %114 = vector.shape_cast %113 : vector<1x1x80x32xbf16> to vector<80x32xbf16>
    %c1_128 = arith.constant 1 : index
    %c0_129 = arith.constant 0 : index
    %c0_130 = arith.constant 0 : index
    %115 = vector.load %arg6[%c1_128, %c0_129, %c0_130] : memref<3x32x8xbf16, #tpu.memory_space<vmem>>, vector<1x32x8xbf16>
    %116 = vector.shape_cast %115 : vector<1x32x8xbf16> to vector<32x8xbf16>
    %cst_131 = arith.constant dense<0.000000e+00> : vector<80x8xf32>
    %117 = tpu.matmul %114, %116, %cst_131 {dimension_numbers = #tpu.dot_dimension_numbers<[1], [0], [0], [1], [0, 0, 1, 1], [], []>} : vector<80x32xbf16>, vector<32x8xbf16>, vector<80x8xf32> -> vector<80x8xf32>
    %c0_132 = arith.constant 0 : index
    %c0_133 = arith.constant 0 : index
    %118 = vector.load %arg13[%c0_132, %c0_133] : memref<80x8xf32, #tpu.memory_space<vmem>>, vector<80x8xf32>
    tpu.vector_store %arg13[%c0_132, %c0_133], %117 {strides = array<i32>} : memref<80x8xf32, #tpu.memory_space<vmem>>, vector<80x8xf32>,
    %c0_134 = arith.constant 0 : index
    %c0_135 = arith.constant 0 : index
    %119 = vector.load %arg13[%c0_134, %c0_135] : memref<80x8xf32, #tpu.memory_space<vmem>>, vector<80x8xf32>
    %c0_136 = arith.constant 0 : index
    %c0_137 = arith.constant 0 : index
    %c0_138 = arith.constant 0 : index
    %c0_139 = arith.constant 0 : index
    %120 = vector.load %arg2[%c0_136, %c0_137, %c0_138, %c0_139] : memref<1x4x80x32xbf16, #tpu.memory_space<vmem>>, vector<1x1x80x32xbf16>
    %121 = vector.shape_cast %120 : vector<1x1x80x32xbf16> to vector<80x32xbf16>
    %c0_140 = arith.constant 0 : index
    %c0_141 = arith.constant 0 : index
    %c0_142 = arith.constant 0 : index
    %122 = vector.load %arg6[%c0_140, %c0_141, %c0_142] : memref<3x32x8xbf16, #tpu.memory_space<vmem>>, vector<1x32x8xbf16>
    %123 = vector.shape_cast %122 : vector<1x32x8xbf16> to vector<32x8xbf16>
    %cst_143 = arith.constant dense<0.000000e+00> : vector<80x8xf32>
    %124 = tpu.matmul %121, %123, %cst_143 {dimension_numbers = #tpu.dot_dimension_numbers<[1], [0], [0], [1], [0, 0, 1, 1], [], []>} : vector<80x32xbf16>, vector<32x8xbf16>, vector<80x8xf32> -> vector<80x8xf32>
    %125 = arith.addf %119, %124 : vector<80x8xf32>
    %c0_144 = arith.constant 0 : index
    %c0_145 = arith.constant 0 : index
    %126 = vector.load %arg13[%c0_144, %c0_145] : memref<80x8xf32, #tpu.memory_space<vmem>>, vector<80x8xf32>
    tpu.vector_store %arg13[%c0_144, %c0_145], %125 {strides = array<i32>} : memref<80x8xf32, #tpu.memory_space<vmem>>, vector<80x8xf32>,
    %c0_146 = arith.constant 0 : index
    %c0_147 = arith.constant 0 : index
    %127 = vector.load %arg13[%c0_146, %c0_147] : memref<80x8xf32, #tpu.memory_space<vmem>>, vector<80x8xf32>
    %c0_148 = arith.constant 0 : index
    %c2_149 = arith.constant 2 : index
    %c0_150 = arith.constant 0 : index
    %c0_151 = arith.constant 0 : index
    %128 = vector.load %arg2[%c0_148, %c2_149, %c0_150, %c0_151] : memref<1x4x80x32xbf16, #tpu.memory_space<vmem>>, vector<1x1x80x32xbf16>
    %129 = vector.shape_cast %128 : vector<1x1x80x32xbf16> to vector<80x32xbf16>
    %c2_152 = arith.constant 2 : index
    %c0_153 = arith.constant 0 : index
    %c0_154 = arith.constant 0 : index
    %130 = vector.load %arg6[%c2_152, %c0_153, %c0_154] : memref<3x32x8xbf16, #tpu.memory_space<vmem>>, vector<1x32x8xbf16>
    %131 = vector.shape_cast %130 : vector<1x32x8xbf16> to vector<32x8xbf16>
    %cst_155 = arith.constant dense<0.000000e+00> : vector<80x8xf32>
    %132 = tpu.matmul %129, %131, %cst_155 {dimension_numbers = #tpu.dot_dimension_numbers<[1], [0], [0], [1], [0, 0, 1, 1], [], []>} : vector<80x32xbf16>, vector<32x8xbf16>, vector<80x8xf32> -> vector<80x8xf32>
    %133 = arith.addf %127, %132 : vector<80x8xf32>
    %c0_156 = arith.constant 0 : index
    %c0_157 = arith.constant 0 : index
    %134 = vector.load %arg13[%c0_156, %c0_157] : memref<80x8xf32, #tpu.memory_space<vmem>>, vector<80x8xf32>
    tpu.vector_store %arg13[%c0_156, %c0_157], %133 {strides = array<i32>} : memref<80x8xf32, #tpu.memory_space<vmem>>, vector<80x8xf32>,
    %c0_158 = arith.constant 0 : index
    %c0_159 = arith.constant 0 : index
    %135 = vector.load %arg13[%c0_158, %c0_159] : memref<80x8xf32, #tpu.memory_space<vmem>>, vector<80x8xf32>
    %c0_160 = arith.constant 0 : index
    %c0_161 = arith.constant 0 : index
    %136 = vector.load %arg7[%c0_160, %c0_161] : memref<1x8xf32, #tpu.memory_space<vmem>>, vector<1x8xf32>
    %137 = vector.broadcast %136 : vector<1x8xf32> to vector<80x8xf32>
    %138 = arith.addf %135, %137 : vector<80x8xf32>
    %cst_162 = arith.constant 0.000000e+00 : f32
    %139 = vector.broadcast %cst_162 : f32 to vector<80x8xf32>
    %140 = arith.maximumf %138, %139 : vector<80x8xf32>
    %141 = vector.broadcast %4 : vector<80x1xf32> to vector<80x8xf32>
    %142 = arith.mulf %140, %141 : vector<80x8xf32>
    %143 = arith.truncf %142 : vector<80x8xf32> to vector<80x8xbf16>
    %c11_163 = arith.constant 11 : index
    %c0_164 = arith.constant 0 : index
    %144 = vector.load %arg14[%c11_163, %c0_164] : memref<102x8xbf16, #tpu.memory_space<vmem>>, vector<80x8xbf16>
    tpu.vector_store %arg14[%c11_163, %c0_164], %143 {strides = array<i32>} : memref<102x8xbf16, #tpu.memory_space<vmem>>, vector<80x8xbf16>,
    %c0_165 = arith.constant 0 : index
    %c0_166 = arith.constant 0 : index
    %145 = vector.load %arg14[%c0_165, %c0_166] : memref<102x8xbf16, #tpu.memory_space<vmem>>, vector<80x8xbf16>
    %c0_167 = arith.constant 0 : index
    %c0_168 = arith.constant 0 : index
    %c0_169 = arith.constant 0 : index
    %146 = vector.load %arg8[%c0_167, %c0_168, %c0_169] : memref<9x8x8xbf16, #tpu.memory_space<vmem>>, vector<1x8x8xbf16>
    %147 = vector.shape_cast %146 : vector<1x8x8xbf16> to vector<8x8xbf16>
    %cst_170 = arith.constant dense<0.000000e+00> : vector<80x8xf32>
    %148 = tpu.matmul %145, %147, %cst_170 {dimension_numbers = #tpu.dot_dimension_numbers<[1], [0], [0], [1], [0, 0, 1, 1], [], []>} : vector<80x8xbf16>, vector<8x8xbf16>, vector<80x8xf32> -> vector<80x8xf32>
    %c0_171 = arith.constant 0 : index
    %c0_172 = arith.constant 0 : index
    %149 = vector.load %arg13[%c0_171, %c0_172] : memref<80x8xf32, #tpu.memory_space<vmem>>, vector<80x8xf32>
    tpu.vector_store %arg13[%c0_171, %c0_172], %148 {strides = array<i32>} : memref<80x8xf32, #tpu.memory_space<vmem>>, vector<80x8xf32>,
    %c1_173 = arith.constant 1 : index
    %c0_174 = arith.constant 0 : index
    %150 = vector.load %arg14[%c1_173, %c0_174] : memref<102x8xbf16, #tpu.memory_space<vmem>>, vector<80x8xbf16>
    %c1_175 = arith.constant 1 : index
    %c0_176 = arith.constant 0 : index
    %c0_177 = arith.constant 0 : index
    %151 = vector.load %arg8[%c1_175, %c0_176, %c0_177] : memref<9x8x8xbf16, #tpu.memory_space<vmem>>, vector<1x8x8xbf16>
    %152 = vector.shape_cast %151 : vector<1x8x8xbf16> to vector<8x8xbf16>
    %cst_178 = arith.constant dense<0.000000e+00> : vector<80x8xf32>
    %153 = tpu.matmul %150, %152, %cst_178 {dimension_numbers = #tpu.dot_dimension_numbers<[1], [0], [0], [1], [0, 0, 1, 1], [], []>} : vector<80x8xbf16>, vector<8x8xbf16>, vector<80x8xf32> -> vector<80x8xf32>
    %c0_179 = arith.constant 0 : index
    %c0_180 = arith.constant 0 : index
    %154 = vector.load %arg13[%c0_179, %c0_180] : memref<80x8xf32, #tpu.memory_space<vmem>>, vector<80x8xf32>
    %155 = arith.addf %154, %153 : vector<80x8xf32>
    %c0_181 = arith.constant 0 : index
    %c0_182 = arith.constant 0 : index
    %156 = vector.load %arg13[%c0_181, %c0_182] : memref<80x8xf32, #tpu.memory_space<vmem>>, vector<80x8xf32>
    tpu.vector_store %arg13[%c0_181, %c0_182], %155 {strides = array<i32>} : memref<80x8xf32, #tpu.memory_space<vmem>>, vector<80x8xf32>,
    %c2_183 = arith.constant 2 : index
    %c0_184 = arith.constant 0 : index
    %157 = vector.load %arg14[%c2_183, %c0_184] : memref<102x8xbf16, #tpu.memory_space<vmem>>, vector<80x8xbf16>
    %c2_185 = arith.constant 2 : index
    %c0_186 = arith.constant 0 : index
    %c0_187 = arith.constant 0 : index
    %158 = vector.load %arg8[%c2_185, %c0_186, %c0_187] : memref<9x8x8xbf16, #tpu.memory_space<vmem>>, vector<1x8x8xbf16>
    %159 = vector.shape_cast %158 : vector<1x8x8xbf16> to vector<8x8xbf16>
    %cst_188 = arith.constant dense<0.000000e+00> : vector<80x8xf32>
    %160 = tpu.matmul %157, %159, %cst_188 {dimension_numbers = #tpu.dot_dimension_numbers<[1], [0], [0], [1], [0, 0, 1, 1], [], []>} : vector<80x8xbf16>, vector<8x8xbf16>, vector<80x8xf32> -> vector<80x8xf32>
    %c0_189 = arith.constant 0 : index
    %c0_190 = arith.constant 0 : index
    %161 = vector.load %arg13[%c0_189, %c0_190] : memref<80x8xf32, #tpu.memory_space<vmem>>, vector<80x8xf32>
    %162 = arith.addf %161, %160 : vector<80x8xf32>
    %c0_191 = arith.constant 0 : index
    %c0_192 = arith.constant 0 : index
    %163 = vector.load %arg13[%c0_191, %c0_192] : memref<80x8xf32, #tpu.memory_space<vmem>>, vector<80x8xf32>
    tpu.vector_store %arg13[%c0_191, %c0_192], %162 {strides = array<i32>} : memref<80x8xf32, #tpu.memory_space<vmem>>, vector<80x8xf32>,
    %c10_193 = arith.constant 10 : index
    %c0_194 = arith.constant 0 : index
    %164 = vector.load %arg14[%c10_193, %c0_194] : memref<102x8xbf16, #tpu.memory_space<vmem>>, vector<80x8xbf16>
    %c3_195 = arith.constant 3 : index
    %c0_196 = arith.constant 0 : index
    %c0_197 = arith.constant 0 : index
    %165 = vector.load %arg8[%c3_195, %c0_196, %c0_197] : memref<9x8x8xbf16, #tpu.memory_space<vmem>>, vector<1x8x8xbf16>
    %166 = vector.shape_cast %165 : vector<1x8x8xbf16> to vector<8x8xbf16>
    %cst_198 = arith.constant dense<0.000000e+00> : vector<80x8xf32>
    %167 = tpu.matmul %164, %166, %cst_198 {dimension_numbers = #tpu.dot_dimension_numbers<[1], [0], [0], [1], [0, 0, 1, 1], [], []>} : vector<80x8xbf16>, vector<8x8xbf16>, vector<80x8xf32> -> vector<80x8xf32>
    %c0_199 = arith.constant 0 : index
    %c0_200 = arith.constant 0 : index
    %168 = vector.load %arg13[%c0_199, %c0_200] : memref<80x8xf32, #tpu.memory_space<vmem>>, vector<80x8xf32>
    %169 = arith.addf %168, %167 : vector<80x8xf32>
    %c0_201 = arith.constant 0 : index
    %c0_202 = arith.constant 0 : index
    %170 = vector.load %arg13[%c0_201, %c0_202] : memref<80x8xf32, #tpu.memory_space<vmem>>, vector<80x8xf32>
    tpu.vector_store %arg13[%c0_201, %c0_202], %169 {strides = array<i32>} : memref<80x8xf32, #tpu.memory_space<vmem>>, vector<80x8xf32>,
    %c11_203 = arith.constant 11 : index
    %c0_204 = arith.constant 0 : index
    %171 = vector.load %arg14[%c11_203, %c0_204] : memref<102x8xbf16, #tpu.memory_space<vmem>>, vector<80x8xbf16>
    %c4_205 = arith.constant 4 : index
    %c0_206 = arith.constant 0 : index
    %c0_207 = arith.constant 0 : index
    %172 = vector.load %arg8[%c4_205, %c0_206, %c0_207] : memref<9x8x8xbf16, #tpu.memory_space<vmem>>, vector<1x8x8xbf16>
    %173 = vector.shape_cast %172 : vector<1x8x8xbf16> to vector<8x8xbf16>
    %cst_208 = arith.constant dense<0.000000e+00> : vector<80x8xf32>
    %174 = tpu.matmul %171, %173, %cst_208 {dimension_numbers = #tpu.dot_dimension_numbers<[1], [0], [0], [1], [0, 0, 1, 1], [], []>} : vector<80x8xbf16>, vector<8x8xbf16>, vector<80x8xf32> -> vector<80x8xf32>
    %c0_209 = arith.constant 0 : index
    %c0_210 = arith.constant 0 : index
    %175 = vector.load %arg13[%c0_209, %c0_210] : memref<80x8xf32, #tpu.memory_space<vmem>>, vector<80x8xf32>
    %176 = arith.addf %175, %174 : vector<80x8xf32>
    %c0_211 = arith.constant 0 : index
    %c0_212 = arith.constant 0 : index
    %177 = vector.load %arg13[%c0_211, %c0_212] : memref<80x8xf32, #tpu.memory_space<vmem>>, vector<80x8xf32>
    tpu.vector_store %arg13[%c0_211, %c0_212], %176 {strides = array<i32>} : memref<80x8xf32, #tpu.memory_space<vmem>>, vector<80x8xf32>,
    %c12_213 = arith.constant 12 : index
    %c0_214 = arith.constant 0 : index
    %178 = vector.load %arg14[%c12_213, %c0_214] : memref<102x8xbf16, #tpu.memory_space<vmem>>, vector<80x8xbf16>
    %c5_215 = arith.constant 5 : index
    %c0_216 = arith.constant 0 : index
    %c0_217 = arith.constant 0 : index
    %179 = vector.load %arg8[%c5_215, %c0_216, %c0_217] : memref<9x8x8xbf16, #tpu.memory_space<vmem>>, vector<1x8x8xbf16>
    %180 = vector.shape_cast %179 : vector<1x8x8xbf16> to vector<8x8xbf16>
    %cst_218 = arith.constant dense<0.000000e+00> : vector<80x8xf32>
    %181 = tpu.matmul %178, %180, %cst_218 {dimension_numbers = #tpu.dot_dimension_numbers<[1], [0], [0], [1], [0, 0, 1, 1], [], []>} : vector<80x8xbf16>, vector<8x8xbf16>, vector<80x8xf32> -> vector<80x8xf32>
    %c0_219 = arith.constant 0 : index
    %c0_220 = arith.constant 0 : index
    %182 = vector.load %arg13[%c0_219, %c0_220] : memref<80x8xf32, #tpu.memory_space<vmem>>, vector<80x8xf32>
    %183 = arith.addf %182, %181 : vector<80x8xf32>
    %c0_221 = arith.constant 0 : index
    %c0_222 = arith.constant 0 : index
    %184 = vector.load %arg13[%c0_221, %c0_222] : memref<80x8xf32, #tpu.memory_space<vmem>>, vector<80x8xf32>
    tpu.vector_store %arg13[%c0_221, %c0_222], %183 {strides = array<i32>} : memref<80x8xf32, #tpu.memory_space<vmem>>, vector<80x8xf32>,
    %c20_223 = arith.constant 20 : index
    %c0_224 = arith.constant 0 : index
    %185 = vector.load %arg14[%c20_223, %c0_224] : memref<102x8xbf16, #tpu.memory_space<vmem>>, vector<80x8xbf16>
    %c6_225 = arith.constant 6 : index
    %c0_226 = arith.constant 0 : index
    %c0_227 = arith.constant 0 : index
    %186 = vector.load %arg8[%c6_225, %c0_226, %c0_227] : memref<9x8x8xbf16, #tpu.memory_space<vmem>>, vector<1x8x8xbf16>
    %187 = vector.shape_cast %186 : vector<1x8x8xbf16> to vector<8x8xbf16>
    %cst_228 = arith.constant dense<0.000000e+00> : vector<80x8xf32>
    %188 = tpu.matmul %185, %187, %cst_228 {dimension_numbers = #tpu.dot_dimension_numbers<[1], [0], [0], [1], [0, 0, 1, 1], [], []>} : vector<80x8xbf16>, vector<8x8xbf16>, vector<80x8xf32> -> vector<80x8xf32>
    %c0_229 = arith.constant 0 : index
    %c0_230 = arith.constant 0 : index
    %189 = vector.load %arg13[%c0_229, %c0_230] : memref<80x8xf32, #tpu.memory_space<vmem>>, vector<80x8xf32>
    %190 = arith.addf %189, %188 : vector<80x8xf32>
    %c0_231 = arith.constant 0 : index
    %c0_232 = arith.constant 0 : index
    %191 = vector.load %arg13[%c0_231, %c0_232] : memref<80x8xf32, #tpu.memory_space<vmem>>, vector<80x8xf32>
    tpu.vector_store %arg13[%c0_231, %c0_232], %190 {strides = array<i32>} : memref<80x8xf32, #tpu.memory_space<vmem>>, vector<80x8xf32>,
    %c21_233 = arith.constant 21 : index
    %c0_234 = arith.constant 0 : index
    %192 = vector.load %arg14[%c21_233, %c0_234] : memref<102x8xbf16, #tpu.memory_space<vmem>>, vector<80x8xbf16>
    %c7_235 = arith.constant 7 : index
    %c0_236 = arith.constant 0 : index
    %c0_237 = arith.constant 0 : index
    %193 = vector.load %arg8[%c7_235, %c0_236, %c0_237] : memref<9x8x8xbf16, #tpu.memory_space<vmem>>, vector<1x8x8xbf16>
    %194 = vector.shape_cast %193 : vector<1x8x8xbf16> to vector<8x8xbf16>
    %cst_238 = arith.constant dense<0.000000e+00> : vector<80x8xf32>
    %195 = tpu.matmul %192, %194, %cst_238 {dimension_numbers = #tpu.dot_dimension_numbers<[1], [0], [0], [1], [0, 0, 1, 1], [], []>} : vector<80x8xbf16>, vector<8x8xbf16>, vector<80x8xf32> -> vector<80x8xf32>
    %c0_239 = arith.constant 0 : index
    %c0_240 = arith.constant 0 : index
    %196 = vector.load %arg13[%c0_239, %c0_240] : memref<80x8xf32, #tpu.memory_space<vmem>>, vector<80x8xf32>
    %197 = arith.addf %196, %195 : vector<80x8xf32>
    %c0_241 = arith.constant 0 : index
    %c0_242 = arith.constant 0 : index
    %198 = vector.load %arg13[%c0_241, %c0_242] : memref<80x8xf32, #tpu.memory_space<vmem>>, vector<80x8xf32>
    tpu.vector_store %arg13[%c0_241, %c0_242], %197 {strides = array<i32>} : memref<80x8xf32, #tpu.memory_space<vmem>>, vector<80x8xf32>,
    %c22_243 = arith.constant 22 : index
    %c0_244 = arith.constant 0 : index
    %199 = vector.load %arg14[%c22_243, %c0_244] : memref<102x8xbf16, #tpu.memory_space<vmem>>, vector<80x8xbf16>
    %c8_245 = arith.constant 8 : index
    %c0_246 = arith.constant 0 : index
    %c0_247 = arith.constant 0 : index
    %200 = vector.load %arg8[%c8_245, %c0_246, %c0_247] : memref<9x8x8xbf16, #tpu.memory_space<vmem>>, vector<1x8x8xbf16>
    %201 = vector.shape_cast %200 : vector<1x8x8xbf16> to vector<8x8xbf16>
    %cst_248 = arith.constant dense<0.000000e+00> : vector<80x8xf32>
    %202 = tpu.matmul %199, %201, %cst_248 {dimension_numbers = #tpu.dot_dimension_numbers<[1], [0], [0], [1], [0, 0, 1, 1], [], []>} : vector<80x8xbf16>, vector<8x8xbf16>, vector<80x8xf32> -> vector<80x8xf32>
    %c0_249 = arith.constant 0 : index
    %c0_250 = arith.constant 0 : index
    %203 = vector.load %arg13[%c0_249, %c0_250] : memref<80x8xf32, #tpu.memory_space<vmem>>, vector<80x8xf32>
    %204 = arith.addf %203, %202 : vector<80x8xf32>
    %c0_251 = arith.constant 0 : index
    %c0_252 = arith.constant 0 : index
    %205 = vector.load %arg13[%c0_251, %c0_252] : memref<80x8xf32, #tpu.memory_space<vmem>>, vector<80x8xf32>
    tpu.vector_store %arg13[%c0_251, %c0_252], %204 {strides = array<i32>} : memref<80x8xf32, #tpu.memory_space<vmem>>, vector<80x8xf32>,
    %c0_253 = arith.constant 0 : index
    %c0_254 = arith.constant 0 : index
    %206 = vector.load %arg13[%c0_253, %c0_254] : memref<80x8xf32, #tpu.memory_space<vmem>>, vector<80x8xf32>
    %c0_255 = arith.constant 0 : index
    %c0_256 = arith.constant 0 : index
    %207 = vector.load %arg9[%c0_255, %c0_256] : memref<1x8xf32, #tpu.memory_space<vmem>>, vector<1x8xf32>
    %208 = vector.broadcast %207 : vector<1x8xf32> to vector<80x8xf32>
    %209 = arith.addf %206, %208 : vector<80x8xf32>
    %cst_257 = arith.constant 0.000000e+00 : f32
    %210 = vector.broadcast %cst_257 : f32 to vector<80x8xf32>
    %211 = arith.maximumf %209, %210 : vector<80x8xf32>
    %212 = arith.truncf %211 : vector<80x8xf32> to vector<80x8xbf16>
    %c0_258 = arith.constant 0 : index
    %c0_259 = arith.constant 0 : index
    %213 = vector.load %arg10[%c0_258, %c0_259] : memref<8x32xbf16, #tpu.memory_space<vmem>>, vector<8x32xbf16>
    %cst_260 = arith.constant dense<0.000000e+00> : vector<80x32xf32>
    %214 = tpu.matmul %212, %213, %cst_260 {dimension_numbers = #tpu.dot_dimension_numbers<[1], [0], [0], [1], [0, 0, 1, 1], [], []>} : vector<80x8xbf16>, vector<8x32xbf16>, vector<80x32xf32> -> vector<80x32xf32>
    %c0_261 = arith.constant 0 : index
    %c0_262 = arith.constant 0 : index
    %215 = vector.load %arg11[%c0_261, %c0_262] : memref<1x32xf32, #tpu.memory_space<vmem>>, vector<1x32xf32>
    %216 = vector.broadcast %215 : vector<1x32xf32> to vector<80x32xf32>
    %217 = arith.addf %214, %216 : vector<80x32xf32>
    %218 = arith.extf %114 : vector<80x32xbf16> to vector<80x32xf32>
    %219 = arith.addf %217, %218 : vector<80x32xf32>
    %cst_263 = arith.constant 0.000000e+00 : f32
    %220 = vector.broadcast %cst_263 : f32 to vector<80x32xf32>
    %221 = arith.maximumf %219, %220 : vector<80x32xf32>
    %222 = arith.truncf %221 : vector<80x32xf32> to vector<80x32xbf16>
    %c0_264 = arith.constant 0 : index
    %c1_265 = arith.constant 1 : index
    %c0_266 = arith.constant 0 : index
    %c0_267 = arith.constant 0 : index
    %223 = vector.load %arg12[%c0_264, %c1_265, %c0_266, %c0_267] : memref<1x4x80x32xbf16, #tpu.memory_space<vmem>>, vector<1x1x80x32xbf16>
    %224 = vector.shape_cast %223 : vector<1x1x80x32xbf16> to vector<80x32xbf16>
    %225 = vector.shape_cast %222 : vector<80x32xbf16> to vector<1x1x80x32xbf16>
    tpu.vector_store %arg12[%c0_264, %c1_265, %c0_266, %c0_267], %225 {strides = array<i32>} : memref<1x4x80x32xbf16, #tpu.memory_space<vmem>>, vector<1x1x80x32xbf16>,
    %c0_268 = arith.constant 0 : index
    %c2_269 = arith.constant 2 : index
    %c0_270 = arith.constant 0 : index
    %c0_271 = arith.constant 0 : index
    %226 = vector.load %arg2[%c0_268, %c2_269, %c0_270, %c0_271] : memref<1x4x80x32xbf16, #tpu.memory_space<vmem>>, vector<1x1x80x32xbf16>
    %227 = vector.shape_cast %226 : vector<1x1x80x32xbf16> to vector<80x32xbf16>
    %c1_272 = arith.constant 1 : index
    %c0_273 = arith.constant 0 : index
    %c0_274 = arith.constant 0 : index
    %228 = vector.load %arg6[%c1_272, %c0_273, %c0_274] : memref<3x32x8xbf16, #tpu.memory_space<vmem>>, vector<1x32x8xbf16>
    %229 = vector.shape_cast %228 : vector<1x32x8xbf16> to vector<32x8xbf16>
    %cst_275 = arith.constant dense<0.000000e+00> : vector<80x8xf32>
    %230 = tpu.matmul %227, %229, %cst_275 {dimension_numbers = #tpu.dot_dimension_numbers<[1], [0], [0], [1], [0, 0, 1, 1], [], []>} : vector<80x32xbf16>, vector<32x8xbf16>, vector<80x8xf32> -> vector<80x8xf32>
    %c0_276 = arith.constant 0 : index
    %c0_277 = arith.constant 0 : index
    %231 = vector.load %arg13[%c0_276, %c0_277] : memref<80x8xf32, #tpu.memory_space<vmem>>, vector<80x8xf32>
    tpu.vector_store %arg13[%c0_276, %c0_277], %230 {strides = array<i32>} : memref<80x8xf32, #tpu.memory_space<vmem>>, vector<80x8xf32>,
    %c0_278 = arith.constant 0 : index
    %c0_279 = arith.constant 0 : index
    %232 = vector.load %arg13[%c0_278, %c0_279] : memref<80x8xf32, #tpu.memory_space<vmem>>, vector<80x8xf32>
    %c0_280 = arith.constant 0 : index
    %c1_281 = arith.constant 1 : index
    %c0_282 = arith.constant 0 : index
    %c0_283 = arith.constant 0 : index
    %233 = vector.load %arg2[%c0_280, %c1_281, %c0_282, %c0_283] : memref<1x4x80x32xbf16, #tpu.memory_space<vmem>>, vector<1x1x80x32xbf16>
    %234 = vector.shape_cast %233 : vector<1x1x80x32xbf16> to vector<80x32xbf16>
    %c0_284 = arith.constant 0 : index
    %c0_285 = arith.constant 0 : index
    %c0_286 = arith.constant 0 : index
    %235 = vector.load %arg6[%c0_284, %c0_285, %c0_286] : memref<3x32x8xbf16, #tpu.memory_space<vmem>>, vector<1x32x8xbf16>
    %236 = vector.shape_cast %235 : vector<1x32x8xbf16> to vector<32x8xbf16>
    %cst_287 = arith.constant dense<0.000000e+00> : vector<80x8xf32>
    %237 = tpu.matmul %234, %236, %cst_287 {dimension_numbers = #tpu.dot_dimension_numbers<[1], [0], [0], [1], [0, 0, 1, 1], [], []>} : vector<80x32xbf16>, vector<32x8xbf16>, vector<80x8xf32> -> vector<80x8xf32>
    %238 = arith.addf %232, %237 : vector<80x8xf32>
    %c0_288 = arith.constant 0 : index
    %c0_289 = arith.constant 0 : index
    %239 = vector.load %arg13[%c0_288, %c0_289] : memref<80x8xf32, #tpu.memory_space<vmem>>, vector<80x8xf32>
    tpu.vector_store %arg13[%c0_288, %c0_289], %238 {strides = array<i32>} : memref<80x8xf32, #tpu.memory_space<vmem>>, vector<80x8xf32>,
    %c0_290 = arith.constant 0 : index
    %c0_291 = arith.constant 0 : index
    %240 = vector.load %arg13[%c0_290, %c0_291] : memref<80x8xf32, #tpu.memory_space<vmem>>, vector<80x8xf32>
    %c0_292 = arith.constant 0 : index
    %c3_293 = arith.constant 3 : index
    %c0_294 = arith.constant 0 : index
    %c0_295 = arith.constant 0 : index
    %241 = vector.load %arg2[%c0_292, %c3_293, %c0_294, %c0_295] : memref<1x4x80x32xbf16, #tpu.memory_space<vmem>>, vector<1x1x80x32xbf16>
    %242 = vector.shape_cast %241 : vector<1x1x80x32xbf16> to vector<80x32xbf16>
    %c2_296 = arith.constant 2 : index
    %c0_297 = arith.constant 0 : index
    %c0_298 = arith.constant 0 : index
    %243 = vector.load %arg6[%c2_296, %c0_297, %c0_298] : memref<3x32x8xbf16, #tpu.memory_space<vmem>>, vector<1x32x8xbf16>
    %244 = vector.shape_cast %243 : vector<1x32x8xbf16> to vector<32x8xbf16>
    %cst_299 = arith.constant dense<0.000000e+00> : vector<80x8xf32>
    %245 = tpu.matmul %242, %244, %cst_299 {dimension_numbers = #tpu.dot_dimension_numbers<[1], [0], [0], [1], [0, 0, 1, 1], [], []>} : vector<80x32xbf16>, vector<32x8xbf16>, vector<80x8xf32> -> vector<80x8xf32>
    %246 = arith.addf %240, %245 : vector<80x8xf32>
    %c0_300 = arith.constant 0 : index
    %c0_301 = arith.constant 0 : index
    %247 = vector.load %arg13[%c0_300, %c0_301] : memref<80x8xf32, #tpu.memory_space<vmem>>, vector<80x8xf32>
    tpu.vector_store %arg13[%c0_300, %c0_301], %246 {strides = array<i32>} : memref<80x8xf32, #tpu.memory_space<vmem>>, vector<80x8xf32>,
    %c0_302 = arith.constant 0 : index
    %c0_303 = arith.constant 0 : index
    %248 = vector.load %arg13[%c0_302, %c0_303] : memref<80x8xf32, #tpu.memory_space<vmem>>, vector<80x8xf32>
    %c0_304 = arith.constant 0 : index
    %c0_305 = arith.constant 0 : index
    %249 = vector.load %arg7[%c0_304, %c0_305] : memref<1x8xf32, #tpu.memory_space<vmem>>, vector<1x8xf32>
    %250 = vector.broadcast %249 : vector<1x8xf32> to vector<80x8xf32>
    %251 = arith.addf %248, %250 : vector<80x8xf32>
    %cst_306 = arith.constant 0.000000e+00 : f32
    %252 = vector.broadcast %cst_306 : f32 to vector<80x8xf32>
    %253 = arith.maximumf %251, %252 : vector<80x8xf32>
    %254 = vector.broadcast %4 : vector<80x1xf32> to vector<80x8xf32>
    %255 = arith.mulf %253, %254 : vector<80x8xf32>
    %256 = arith.truncf %255 : vector<80x8xf32> to vector<80x8xbf16>
    %c11_307 = arith.constant 11 : index
    %c0_308 = arith.constant 0 : index
    %257 = vector.load %arg14[%c11_307, %c0_308] : memref<102x8xbf16, #tpu.memory_space<vmem>>, vector<80x8xbf16>
    tpu.vector_store %arg14[%c11_307, %c0_308], %256 {strides = array<i32>} : memref<102x8xbf16, #tpu.memory_space<vmem>>, vector<80x8xbf16>,
    %c0_309 = arith.constant 0 : index
    %c0_310 = arith.constant 0 : index
    %258 = vector.load %arg14[%c0_309, %c0_310] : memref<102x8xbf16, #tpu.memory_space<vmem>>, vector<80x8xbf16>
    %c0_311 = arith.constant 0 : index
    %c0_312 = arith.constant 0 : index
    %c0_313 = arith.constant 0 : index
    %259 = vector.load %arg8[%c0_311, %c0_312, %c0_313] : memref<9x8x8xbf16, #tpu.memory_space<vmem>>, vector<1x8x8xbf16>
    %260 = vector.shape_cast %259 : vector<1x8x8xbf16> to vector<8x8xbf16>
    %cst_314 = arith.constant dense<0.000000e+00> : vector<80x8xf32>
    %261 = tpu.matmul %258, %260, %cst_314 {dimension_numbers = #tpu.dot_dimension_numbers<[1], [0], [0], [1], [0, 0, 1, 1], [], []>} : vector<80x8xbf16>, vector<8x8xbf16>, vector<80x8xf32> -> vector<80x8xf32>
    %c0_315 = arith.constant 0 : index
    %c0_316 = arith.constant 0 : index
    %262 = vector.load %arg13[%c0_315, %c0_316] : memref<80x8xf32, #tpu.memory_space<vmem>>, vector<80x8xf32>
    tpu.vector_store %arg13[%c0_315, %c0_316], %261 {strides = array<i32>} : memref<80x8xf32, #tpu.memory_space<vmem>>, vector<80x8xf32>,
    %c1_317 = arith.constant 1 : index
    %c0_318 = arith.constant 0 : index
    %263 = vector.load %arg14[%c1_317, %c0_318] : memref<102x8xbf16, #tpu.memory_space<vmem>>, vector<80x8xbf16>
    %c1_319 = arith.constant 1 : index
    %c0_320 = arith.constant 0 : index
    %c0_321 = arith.constant 0 : index
    %264 = vector.load %arg8[%c1_319, %c0_320, %c0_321] : memref<9x8x8xbf16, #tpu.memory_space<vmem>>, vector<1x8x8xbf16>
    %265 = vector.shape_cast %264 : vector<1x8x8xbf16> to vector<8x8xbf16>
    %cst_322 = arith.constant dense<0.000000e+00> : vector<80x8xf32>
    %266 = tpu.matmul %263, %265, %cst_322 {dimension_numbers = #tpu.dot_dimension_numbers<[1], [0], [0], [1], [0, 0, 1, 1], [], []>} : vector<80x8xbf16>, vector<8x8xbf16>, vector<80x8xf32> -> vector<80x8xf32>
    %c0_323 = arith.constant 0 : index
    %c0_324 = arith.constant 0 : index
    %267 = vector.load %arg13[%c0_323, %c0_324] : memref<80x8xf32, #tpu.memory_space<vmem>>, vector<80x8xf32>
    %268 = arith.addf %267, %266 : vector<80x8xf32>
    %c0_325 = arith.constant 0 : index
    %c0_326 = arith.constant 0 : index
    %269 = vector.load %arg13[%c0_325, %c0_326] : memref<80x8xf32, #tpu.memory_space<vmem>>, vector<80x8xf32>
    tpu.vector_store %arg13[%c0_325, %c0_326], %268 {strides = array<i32>} : memref<80x8xf32, #tpu.memory_space<vmem>>, vector<80x8xf32>,
    %c2_327 = arith.constant 2 : index
    %c0_328 = arith.constant 0 : index
    %270 = vector.load %arg14[%c2_327, %c0_328] : memref<102x8xbf16, #tpu.memory_space<vmem>>, vector<80x8xbf16>
    %c2_329 = arith.constant 2 : index
    %c0_330 = arith.constant 0 : index
    %c0_331 = arith.constant 0 : index
    %271 = vector.load %arg8[%c2_329, %c0_330, %c0_331] : memref<9x8x8xbf16, #tpu.memory_space<vmem>>, vector<1x8x8xbf16>
    %272 = vector.shape_cast %271 : vector<1x8x8xbf16> to vector<8x8xbf16>
    %cst_332 = arith.constant dense<0.000000e+00> : vector<80x8xf32>
    %273 = tpu.matmul %270, %272, %cst_332 {dimension_numbers = #tpu.dot_dimension_numbers<[1], [0], [0], [1], [0, 0, 1, 1], [], []>} : vector<80x8xbf16>, vector<8x8xbf16>, vector<80x8xf32> -> vector<80x8xf32>
    %c0_333 = arith.constant 0 : index
    %c0_334 = arith.constant 0 : index
    %274 = vector.load %arg13[%c0_333, %c0_334] : memref<80x8xf32, #tpu.memory_space<vmem>>, vector<80x8xf32>
    %275 = arith.addf %274, %273 : vector<80x8xf32>
    %c0_335 = arith.constant 0 : index
    %c0_336 = arith.constant 0 : index
    %276 = vector.load %arg13[%c0_335, %c0_336] : memref<80x8xf32, #tpu.memory_space<vmem>>, vector<80x8xf32>
    tpu.vector_store %arg13[%c0_335, %c0_336], %275 {strides = array<i32>} : memref<80x8xf32, #tpu.memory_space<vmem>>, vector<80x8xf32>,
    %c10_337 = arith.constant 10 : index
    %c0_338 = arith.constant 0 : index
    %277 = vector.load %arg14[%c10_337, %c0_338] : memref<102x8xbf16, #tpu.memory_space<vmem>>, vector<80x8xbf16>
    %c3_339 = arith.constant 3 : index
    %c0_340 = arith.constant 0 : index
    %c0_341 = arith.constant 0 : index
    %278 = vector.load %arg8[%c3_339, %c0_340, %c0_341] : memref<9x8x8xbf16, #tpu.memory_space<vmem>>, vector<1x8x8xbf16>
    %279 = vector.shape_cast %278 : vector<1x8x8xbf16> to vector<8x8xbf16>
    %cst_342 = arith.constant dense<0.000000e+00> : vector<80x8xf32>
    %280 = tpu.matmul %277, %279, %cst_342 {dimension_numbers = #tpu.dot_dimension_numbers<[1], [0], [0], [1], [0, 0, 1, 1], [], []>} : vector<80x8xbf16>, vector<8x8xbf16>, vector<80x8xf32> -> vector<80x8xf32>
    %c0_343 = arith.constant 0 : index
    %c0_344 = arith.constant 0 : index
    %281 = vector.load %arg13[%c0_343, %c0_344] : memref<80x8xf32, #tpu.memory_space<vmem>>, vector<80x8xf32>
    %282 = arith.addf %281, %280 : vector<80x8xf32>
    %c0_345 = arith.constant 0 : index
    %c0_346 = arith.constant 0 : index
    %283 = vector.load %arg13[%c0_345, %c0_346] : memref<80x8xf32, #tpu.memory_space<vmem>>, vector<80x8xf32>
    tpu.vector_store %arg13[%c0_345, %c0_346], %282 {strides = array<i32>} : memref<80x8xf32, #tpu.memory_space<vmem>>, vector<80x8xf32>,
    %c11_347 = arith.constant 11 : index
    %c0_348 = arith.constant 0 : index
    %284 = vector.load %arg14[%c11_347, %c0_348] : memref<102x8xbf16, #tpu.memory_space<vmem>>, vector<80x8xbf16>
    %c4_349 = arith.constant 4 : index
    %c0_350 = arith.constant 0 : index
    %c0_351 = arith.constant 0 : index
    %285 = vector.load %arg8[%c4_349, %c0_350, %c0_351] : memref<9x8x8xbf16, #tpu.memory_space<vmem>>, vector<1x8x8xbf16>
    %286 = vector.shape_cast %285 : vector<1x8x8xbf16> to vector<8x8xbf16>
    %cst_352 = arith.constant dense<0.000000e+00> : vector<80x8xf32>
    %287 = tpu.matmul %284, %286, %cst_352 {dimension_numbers = #tpu.dot_dimension_numbers<[1], [0], [0], [1], [0, 0, 1, 1], [], []>} : vector<80x8xbf16>, vector<8x8xbf16>, vector<80x8xf32> -> vector<80x8xf32>
    %c0_353 = arith.constant 0 : index
    %c0_354 = arith.constant 0 : index
    %288 = vector.load %arg13[%c0_353, %c0_354] : memref<80x8xf32, #tpu.memory_space<vmem>>, vector<80x8xf32>
    %289 = arith.addf %288, %287 : vector<80x8xf32>
    %c0_355 = arith.constant 0 : index
    %c0_356 = arith.constant 0 : index
    %290 = vector.load %arg13[%c0_355, %c0_356] : memref<80x8xf32, #tpu.memory_space<vmem>>, vector<80x8xf32>
    tpu.vector_store %arg13[%c0_355, %c0_356], %289 {strides = array<i32>} : memref<80x8xf32, #tpu.memory_space<vmem>>, vector<80x8xf32>,
    %c12_357 = arith.constant 12 : index
    %c0_358 = arith.constant 0 : index
    %291 = vector.load %arg14[%c12_357, %c0_358] : memref<102x8xbf16, #tpu.memory_space<vmem>>, vector<80x8xbf16>
    %c5_359 = arith.constant 5 : index
    %c0_360 = arith.constant 0 : index
    %c0_361 = arith.constant 0 : index
    %292 = vector.load %arg8[%c5_359, %c0_360, %c0_361] : memref<9x8x8xbf16, #tpu.memory_space<vmem>>, vector<1x8x8xbf16>
    %293 = vector.shape_cast %292 : vector<1x8x8xbf16> to vector<8x8xbf16>
    %cst_362 = arith.constant dense<0.000000e+00> : vector<80x8xf32>
    %294 = tpu.matmul %291, %293, %cst_362 {dimension_numbers = #tpu.dot_dimension_numbers<[1], [0], [0], [1], [0, 0, 1, 1], [], []>} : vector<80x8xbf16>, vector<8x8xbf16>, vector<80x8xf32> -> vector<80x8xf32>
    %c0_363 = arith.constant 0 : index
    %c0_364 = arith.constant 0 : index
    %295 = vector.load %arg13[%c0_363, %c0_364] : memref<80x8xf32, #tpu.memory_space<vmem>>, vector<80x8xf32>
    %296 = arith.addf %295, %294 : vector<80x8xf32>
    %c0_365 = arith.constant 0 : index
    %c0_366 = arith.constant 0 : index
    %297 = vector.load %arg13[%c0_365, %c0_366] : memref<80x8xf32, #tpu.memory_space<vmem>>, vector<80x8xf32>
    tpu.vector_store %arg13[%c0_365, %c0_366], %296 {strides = array<i32>} : memref<80x8xf32, #tpu.memory_space<vmem>>, vector<80x8xf32>,
    %c20_367 = arith.constant 20 : index
    %c0_368 = arith.constant 0 : index
    %298 = vector.load %arg14[%c20_367, %c0_368] : memref<102x8xbf16, #tpu.memory_space<vmem>>, vector<80x8xbf16>
    %c6_369 = arith.constant 6 : index
    %c0_370 = arith.constant 0 : index
    %c0_371 = arith.constant 0 : index
    %299 = vector.load %arg8[%c6_369, %c0_370, %c0_371] : memref<9x8x8xbf16, #tpu.memory_space<vmem>>, vector<1x8x8xbf16>
    %300 = vector.shape_cast %299 : vector<1x8x8xbf16> to vector<8x8xbf16>
    %cst_372 = arith.constant dense<0.000000e+00> : vector<80x8xf32>
    %301 = tpu.matmul %298, %300, %cst_372 {dimension_numbers = #tpu.dot_dimension_numbers<[1], [0], [0], [1], [0, 0, 1, 1], [], []>} : vector<80x8xbf16>, vector<8x8xbf16>, vector<80x8xf32> -> vector<80x8xf32>
    %c0_373 = arith.constant 0 : index
    %c0_374 = arith.constant 0 : index
    %302 = vector.load %arg13[%c0_373, %c0_374] : memref<80x8xf32, #tpu.memory_space<vmem>>, vector<80x8xf32>
    %303 = arith.addf %302, %301 : vector<80x8xf32>
    %c0_375 = arith.constant 0 : index
    %c0_376 = arith.constant 0 : index
    %304 = vector.load %arg13[%c0_375, %c0_376] : memref<80x8xf32, #tpu.memory_space<vmem>>, vector<80x8xf32>
    tpu.vector_store %arg13[%c0_375, %c0_376], %303 {strides = array<i32>} : memref<80x8xf32, #tpu.memory_space<vmem>>, vector<80x8xf32>,
    %c21_377 = arith.constant 21 : index
    %c0_378 = arith.constant 0 : index
    %305 = vector.load %arg14[%c21_377, %c0_378] : memref<102x8xbf16, #tpu.memory_space<vmem>>, vector<80x8xbf16>
    %c7_379 = arith.constant 7 : index
    %c0_380 = arith.constant 0 : index
    %c0_381 = arith.constant 0 : index
    %306 = vector.load %arg8[%c7_379, %c0_380, %c0_381] : memref<9x8x8xbf16, #tpu.memory_space<vmem>>, vector<1x8x8xbf16>
    %307 = vector.shape_cast %306 : vector<1x8x8xbf16> to vector<8x8xbf16>
    %cst_382 = arith.constant dense<0.000000e+00> : vector<80x8xf32>
    %308 = tpu.matmul %305, %307, %cst_382 {dimension_numbers = #tpu.dot_dimension_numbers<[1], [0], [0], [1], [0, 0, 1, 1], [], []>} : vector<80x8xbf16>, vector<8x8xbf16>, vector<80x8xf32> -> vector<80x8xf32>
    %c0_383 = arith.constant 0 : index
    %c0_384 = arith.constant 0 : index
    %309 = vector.load %arg13[%c0_383, %c0_384] : memref<80x8xf32, #tpu.memory_space<vmem>>, vector<80x8xf32>
    %310 = arith.addf %309, %308 : vector<80x8xf32>
    %c0_385 = arith.constant 0 : index
    %c0_386 = arith.constant 0 : index
    %311 = vector.load %arg13[%c0_385, %c0_386] : memref<80x8xf32, #tpu.memory_space<vmem>>, vector<80x8xf32>
    tpu.vector_store %arg13[%c0_385, %c0_386], %310 {strides = array<i32>} : memref<80x8xf32, #tpu.memory_space<vmem>>, vector<80x8xf32>,
    %c22_387 = arith.constant 22 : index
    %c0_388 = arith.constant 0 : index
    %312 = vector.load %arg14[%c22_387, %c0_388] : memref<102x8xbf16, #tpu.memory_space<vmem>>, vector<80x8xbf16>
    %c8_389 = arith.constant 8 : index
    %c0_390 = arith.constant 0 : index
    %c0_391 = arith.constant 0 : index
    %313 = vector.load %arg8[%c8_389, %c0_390, %c0_391] : memref<9x8x8xbf16, #tpu.memory_space<vmem>>, vector<1x8x8xbf16>
    %314 = vector.shape_cast %313 : vector<1x8x8xbf16> to vector<8x8xbf16>
    %cst_392 = arith.constant dense<0.000000e+00> : vector<80x8xf32>
    %315 = tpu.matmul %312, %314, %cst_392 {dimension_numbers = #tpu.dot_dimension_numbers<[1], [0], [0], [1], [0, 0, 1, 1], [], []>} : vector<80x8xbf16>, vector<8x8xbf16>, vector<80x8xf32> -> vector<80x8xf32>
    %c0_393 = arith.constant 0 : index
    %c0_394 = arith.constant 0 : index
    %316 = vector.load %arg13[%c0_393, %c0_394] : memref<80x8xf32, #tpu.memory_space<vmem>>, vector<80x8xf32>
    %317 = arith.addf %316, %315 : vector<80x8xf32>
    %c0_395 = arith.constant 0 : index
    %c0_396 = arith.constant 0 : index
    %318 = vector.load %arg13[%c0_395, %c0_396] : memref<80x8xf32, #tpu.memory_space<vmem>>, vector<80x8xf32>
    tpu.vector_store %arg13[%c0_395, %c0_396], %317 {strides = array<i32>} : memref<80x8xf32, #tpu.memory_space<vmem>>, vector<80x8xf32>,
    %c0_397 = arith.constant 0 : index
    %c0_398 = arith.constant 0 : index
    %319 = vector.load %arg13[%c0_397, %c0_398] : memref<80x8xf32, #tpu.memory_space<vmem>>, vector<80x8xf32>
    %c0_399 = arith.constant 0 : index
    %c0_400 = arith.constant 0 : index
    %320 = vector.load %arg9[%c0_399, %c0_400] : memref<1x8xf32, #tpu.memory_space<vmem>>, vector<1x8xf32>
    %321 = vector.broadcast %320 : vector<1x8xf32> to vector<80x8xf32>
    %322 = arith.addf %319, %321 : vector<80x8xf32>
    %cst_401 = arith.constant 0.000000e+00 : f32
    %323 = vector.broadcast %cst_401 : f32 to vector<80x8xf32>
    %324 = arith.maximumf %322, %323 : vector<80x8xf32>
    %325 = arith.truncf %324 : vector<80x8xf32> to vector<80x8xbf16>
    %c0_402 = arith.constant 0 : index
    %c0_403 = arith.constant 0 : index
    %326 = vector.load %arg10[%c0_402, %c0_403] : memref<8x32xbf16, #tpu.memory_space<vmem>>, vector<8x32xbf16>
    %cst_404 = arith.constant dense<0.000000e+00> : vector<80x32xf32>
    %327 = tpu.matmul %325, %326, %cst_404 {dimension_numbers = #tpu.dot_dimension_numbers<[1], [0], [0], [1], [0, 0, 1, 1], [], []>} : vector<80x8xbf16>, vector<8x32xbf16>, vector<80x32xf32> -> vector<80x32xf32>
    %c0_405 = arith.constant 0 : index
    %c0_406 = arith.constant 0 : index
    %328 = vector.load %arg11[%c0_405, %c0_406] : memref<1x32xf32, #tpu.memory_space<vmem>>, vector<1x32xf32>
    %329 = vector.broadcast %328 : vector<1x32xf32> to vector<80x32xf32>
    %330 = arith.addf %327, %329 : vector<80x32xf32>
    %331 = arith.extf %227 : vector<80x32xbf16> to vector<80x32xf32>
    %332 = arith.addf %330, %331 : vector<80x32xf32>
    %cst_407 = arith.constant 0.000000e+00 : f32
    %333 = vector.broadcast %cst_407 : f32 to vector<80x32xf32>
    %334 = arith.maximumf %332, %333 : vector<80x32xf32>
    %335 = arith.truncf %334 : vector<80x32xf32> to vector<80x32xbf16>
    %c0_408 = arith.constant 0 : index
    %c2_409 = arith.constant 2 : index
    %c0_410 = arith.constant 0 : index
    %c0_411 = arith.constant 0 : index
    %336 = vector.load %arg12[%c0_408, %c2_409, %c0_410, %c0_411] : memref<1x4x80x32xbf16, #tpu.memory_space<vmem>>, vector<1x1x80x32xbf16>
    %337 = vector.shape_cast %336 : vector<1x1x80x32xbf16> to vector<80x32xbf16>
    %338 = vector.shape_cast %335 : vector<80x32xbf16> to vector<1x1x80x32xbf16>
    tpu.vector_store %arg12[%c0_408, %c2_409, %c0_410, %c0_411], %338 {strides = array<i32>} : memref<1x4x80x32xbf16, #tpu.memory_space<vmem>>, vector<1x1x80x32xbf16>,
    %c0_412 = arith.constant 0 : index
    %c3_413 = arith.constant 3 : index
    %c0_414 = arith.constant 0 : index
    %c0_415 = arith.constant 0 : index
    %339 = vector.load %arg2[%c0_412, %c3_413, %c0_414, %c0_415] : memref<1x4x80x32xbf16, #tpu.memory_space<vmem>>, vector<1x1x80x32xbf16>
    %340 = vector.shape_cast %339 : vector<1x1x80x32xbf16> to vector<80x32xbf16>
    %c1_416 = arith.constant 1 : index
    %c0_417 = arith.constant 0 : index
    %c0_418 = arith.constant 0 : index
    %341 = vector.load %arg6[%c1_416, %c0_417, %c0_418] : memref<3x32x8xbf16, #tpu.memory_space<vmem>>, vector<1x32x8xbf16>
    %342 = vector.shape_cast %341 : vector<1x32x8xbf16> to vector<32x8xbf16>
    %cst_419 = arith.constant dense<0.000000e+00> : vector<80x8xf32>
    %343 = tpu.matmul %340, %342, %cst_419 {dimension_numbers = #tpu.dot_dimension_numbers<[1], [0], [0], [1], [0, 0, 1, 1], [], []>} : vector<80x32xbf16>, vector<32x8xbf16>, vector<80x8xf32> -> vector<80x8xf32>
    %c0_420 = arith.constant 0 : index
    %c0_421 = arith.constant 0 : index
    %344 = vector.load %arg13[%c0_420, %c0_421] : memref<80x8xf32, #tpu.memory_space<vmem>>, vector<80x8xf32>
    tpu.vector_store %arg13[%c0_420, %c0_421], %343 {strides = array<i32>} : memref<80x8xf32, #tpu.memory_space<vmem>>, vector<80x8xf32>,
    %c0_422 = arith.constant 0 : index
    %c0_423 = arith.constant 0 : index
    %345 = vector.load %arg13[%c0_422, %c0_423] : memref<80x8xf32, #tpu.memory_space<vmem>>, vector<80x8xf32>
    %c0_424 = arith.constant 0 : index
    %c2_425 = arith.constant 2 : index
    %c0_426 = arith.constant 0 : index
    %c0_427 = arith.constant 0 : index
    %346 = vector.load %arg2[%c0_424, %c2_425, %c0_426, %c0_427] : memref<1x4x80x32xbf16, #tpu.memory_space<vmem>>, vector<1x1x80x32xbf16>
    %347 = vector.shape_cast %346 : vector<1x1x80x32xbf16> to vector<80x32xbf16>
    %c0_428 = arith.constant 0 : index
    %c0_429 = arith.constant 0 : index
    %c0_430 = arith.constant 0 : index
    %348 = vector.load %arg6[%c0_428, %c0_429, %c0_430] : memref<3x32x8xbf16, #tpu.memory_space<vmem>>, vector<1x32x8xbf16>
    %349 = vector.shape_cast %348 : vector<1x32x8xbf16> to vector<32x8xbf16>
    %cst_431 = arith.constant dense<0.000000e+00> : vector<80x8xf32>
    %350 = tpu.matmul %347, %349, %cst_431 {dimension_numbers = #tpu.dot_dimension_numbers<[1], [0], [0], [1], [0, 0, 1, 1], [], []>} : vector<80x32xbf16>, vector<32x8xbf16>, vector<80x8xf32> -> vector<80x8xf32>
    %351 = arith.addf %345, %350 : vector<80x8xf32>
    %c0_432 = arith.constant 0 : index
    %c0_433 = arith.constant 0 : index
    %352 = vector.load %arg13[%c0_432, %c0_433] : memref<80x8xf32, #tpu.memory_space<vmem>>, vector<80x8xf32>
    tpu.vector_store %arg13[%c0_432, %c0_433], %351 {strides = array<i32>} : memref<80x8xf32, #tpu.memory_space<vmem>>, vector<80x8xf32>,
    %c1_i32 = arith.constant 1 : i32
    %353 = arith.cmpi slt, %arg1, %c1_i32 : i32
    %354 = arith.extui %353 : i1 to i32
    %c0_i32_434 = arith.constant 0 : i32
    %355 = arith.cmpi ne, %354, %c0_i32_434 : i32
    scf.if %355 {
      %c0_545 = arith.constant 0 : index
      %c0_546 = arith.constant 0 : index
      %447 = vector.load %arg13[%c0_545, %c0_546] : memref<80x8xf32, #tpu.memory_space<vmem>>, vector<80x8xf32>
      %c0_547 = arith.constant 0 : index
      %c0_548 = arith.constant 0 : index
      %c0_549 = arith.constant 0 : index
      %c0_550 = arith.constant 0 : index
      %448 = vector.load %arg4[%c0_547, %c0_548, %c0_549, %c0_550] : memref<1x1x80x32xbf16, #tpu.memory_space<vmem>>, vector<1x1x80x32xbf16>
      %449 = vector.shape_cast %448 : vector<1x1x80x32xbf16> to vector<80x32xbf16>
      %c2_551 = arith.constant 2 : index
      %c0_552 = arith.constant 0 : index
      %c0_553 = arith.constant 0 : index
      %450 = vector.load %arg6[%c2_551, %c0_552, %c0_553] : memref<3x32x8xbf16, #tpu.memory_space<vmem>>, vector<1x32x8xbf16>
      %451 = vector.shape_cast %450 : vector<1x32x8xbf16> to vector<32x8xbf16>
      %cst_554 = arith.constant dense<0.000000e+00> : vector<80x8xf32>
      %452 = tpu.matmul %449, %451, %cst_554 {dimension_numbers = #tpu.dot_dimension_numbers<[1], [0], [0], [1], [0, 0, 1, 1], [], []>} : vector<80x32xbf16>, vector<32x8xbf16>, vector<80x8xf32> -> vector<80x8xf32>
      %453 = arith.addf %447, %452 : vector<80x8xf32>
      %c0_555 = arith.constant 0 : index
      %c0_556 = arith.constant 0 : index
      %454 = vector.load %arg13[%c0_555, %c0_556] : memref<80x8xf32, #tpu.memory_space<vmem>>, vector<80x8xf32>
      tpu.vector_store %arg13[%c0_555, %c0_556], %453 {strides = array<i32>} : memref<80x8xf32, #tpu.memory_space<vmem>>, vector<80x8xf32>,
    } else {
    }
    %c0_435 = arith.constant 0 : index
    %c0_436 = arith.constant 0 : index
    %356 = vector.load %arg13[%c0_435, %c0_436] : memref<80x8xf32, #tpu.memory_space<vmem>>, vector<80x8xf32>
    %c0_437 = arith.constant 0 : index
    %c0_438 = arith.constant 0 : index
    %357 = vector.load %arg7[%c0_437, %c0_438] : memref<1x8xf32, #tpu.memory_space<vmem>>, vector<1x8xf32>
    %358 = vector.broadcast %357 : vector<1x8xf32> to vector<80x8xf32>
    %359 = arith.addf %356, %358 : vector<80x8xf32>
    %cst_439 = arith.constant 0.000000e+00 : f32
    %360 = vector.broadcast %cst_439 : f32 to vector<80x8xf32>
    %361 = arith.maximumf %359, %360 : vector<80x8xf32>
    %362 = vector.broadcast %4 : vector<80x1xf32> to vector<80x8xf32>
    %363 = arith.mulf %361, %362 : vector<80x8xf32>
    %364 = arith.truncf %363 : vector<80x8xf32> to vector<80x8xbf16>
    %c11_440 = arith.constant 11 : index
    %c0_441 = arith.constant 0 : index
    %365 = vector.load %arg14[%c11_440, %c0_441] : memref<102x8xbf16, #tpu.memory_space<vmem>>, vector<80x8xbf16>
    tpu.vector_store %arg14[%c11_440, %c0_441], %364 {strides = array<i32>} : memref<102x8xbf16, #tpu.memory_space<vmem>>, vector<80x8xbf16>,
    %c0_442 = arith.constant 0 : index
    %c0_443 = arith.constant 0 : index
    %366 = vector.load %arg14[%c0_442, %c0_443] : memref<102x8xbf16, #tpu.memory_space<vmem>>, vector<80x8xbf16>
    %c0_444 = arith.constant 0 : index
    %c0_445 = arith.constant 0 : index
    %c0_446 = arith.constant 0 : index
    %367 = vector.load %arg8[%c0_444, %c0_445, %c0_446] : memref<9x8x8xbf16, #tpu.memory_space<vmem>>, vector<1x8x8xbf16>
    %368 = vector.shape_cast %367 : vector<1x8x8xbf16> to vector<8x8xbf16>
    %cst_447 = arith.constant dense<0.000000e+00> : vector<80x8xf32>
    %369 = tpu.matmul %366, %368, %cst_447 {dimension_numbers = #tpu.dot_dimension_numbers<[1], [0], [0], [1], [0, 0, 1, 1], [], []>} : vector<80x8xbf16>, vector<8x8xbf16>, vector<80x8xf32> -> vector<80x8xf32>
    %c0_448 = arith.constant 0 : index
    %c0_449 = arith.constant 0 : index
    %370 = vector.load %arg13[%c0_448, %c0_449] : memref<80x8xf32, #tpu.memory_space<vmem>>, vector<80x8xf32>
    tpu.vector_store %arg13[%c0_448, %c0_449], %369 {strides = array<i32>} : memref<80x8xf32, #tpu.memory_space<vmem>>, vector<80x8xf32>,
    %c1_450 = arith.constant 1 : index
    %c0_451 = arith.constant 0 : index
    %371 = vector.load %arg14[%c1_450, %c0_451] : memref<102x8xbf16, #tpu.memory_space<vmem>>, vector<80x8xbf16>
    %c1_452 = arith.constant 1 : index
    %c0_453 = arith.constant 0 : index
    %c0_454 = arith.constant 0 : index
    %372 = vector.load %arg8[%c1_452, %c0_453, %c0_454] : memref<9x8x8xbf16, #tpu.memory_space<vmem>>, vector<1x8x8xbf16>
    %373 = vector.shape_cast %372 : vector<1x8x8xbf16> to vector<8x8xbf16>
    %cst_455 = arith.constant dense<0.000000e+00> : vector<80x8xf32>
    %374 = tpu.matmul %371, %373, %cst_455 {dimension_numbers = #tpu.dot_dimension_numbers<[1], [0], [0], [1], [0, 0, 1, 1], [], []>} : vector<80x8xbf16>, vector<8x8xbf16>, vector<80x8xf32> -> vector<80x8xf32>
    %c0_456 = arith.constant 0 : index
    %c0_457 = arith.constant 0 : index
    %375 = vector.load %arg13[%c0_456, %c0_457] : memref<80x8xf32, #tpu.memory_space<vmem>>, vector<80x8xf32>
    %376 = arith.addf %375, %374 : vector<80x8xf32>
    %c0_458 = arith.constant 0 : index
    %c0_459 = arith.constant 0 : index
    %377 = vector.load %arg13[%c0_458, %c0_459] : memref<80x8xf32, #tpu.memory_space<vmem>>, vector<80x8xf32>
    tpu.vector_store %arg13[%c0_458, %c0_459], %376 {strides = array<i32>} : memref<80x8xf32, #tpu.memory_space<vmem>>, vector<80x8xf32>,
    %c2_460 = arith.constant 2 : index
    %c0_461 = arith.constant 0 : index
    %378 = vector.load %arg14[%c2_460, %c0_461] : memref<102x8xbf16, #tpu.memory_space<vmem>>, vector<80x8xbf16>
    %c2_462 = arith.constant 2 : index
    %c0_463 = arith.constant 0 : index
    %c0_464 = arith.constant 0 : index
    %379 = vector.load %arg8[%c2_462, %c0_463, %c0_464] : memref<9x8x8xbf16, #tpu.memory_space<vmem>>, vector<1x8x8xbf16>
    %380 = vector.shape_cast %379 : vector<1x8x8xbf16> to vector<8x8xbf16>
    %cst_465 = arith.constant dense<0.000000e+00> : vector<80x8xf32>
    %381 = tpu.matmul %378, %380, %cst_465 {dimension_numbers = #tpu.dot_dimension_numbers<[1], [0], [0], [1], [0, 0, 1, 1], [], []>} : vector<80x8xbf16>, vector<8x8xbf16>, vector<80x8xf32> -> vector<80x8xf32>
    %c0_466 = arith.constant 0 : index
    %c0_467 = arith.constant 0 : index
    %382 = vector.load %arg13[%c0_466, %c0_467] : memref<80x8xf32, #tpu.memory_space<vmem>>, vector<80x8xf32>
    %383 = arith.addf %382, %381 : vector<80x8xf32>
    %c0_468 = arith.constant 0 : index
    %c0_469 = arith.constant 0 : index
    %384 = vector.load %arg13[%c0_468, %c0_469] : memref<80x8xf32, #tpu.memory_space<vmem>>, vector<80x8xf32>
    tpu.vector_store %arg13[%c0_468, %c0_469], %383 {strides = array<i32>} : memref<80x8xf32, #tpu.memory_space<vmem>>, vector<80x8xf32>,
    %c10_470 = arith.constant 10 : index
    %c0_471 = arith.constant 0 : index
    %385 = vector.load %arg14[%c10_470, %c0_471] : memref<102x8xbf16, #tpu.memory_space<vmem>>, vector<80x8xbf16>
    %c3_472 = arith.constant 3 : index
    %c0_473 = arith.constant 0 : index
    %c0_474 = arith.constant 0 : index
    %386 = vector.load %arg8[%c3_472, %c0_473, %c0_474] : memref<9x8x8xbf16, #tpu.memory_space<vmem>>, vector<1x8x8xbf16>
    %387 = vector.shape_cast %386 : vector<1x8x8xbf16> to vector<8x8xbf16>
    %cst_475 = arith.constant dense<0.000000e+00> : vector<80x8xf32>
    %388 = tpu.matmul %385, %387, %cst_475 {dimension_numbers = #tpu.dot_dimension_numbers<[1], [0], [0], [1], [0, 0, 1, 1], [], []>} : vector<80x8xbf16>, vector<8x8xbf16>, vector<80x8xf32> -> vector<80x8xf32>
    %c0_476 = arith.constant 0 : index
    %c0_477 = arith.constant 0 : index
    %389 = vector.load %arg13[%c0_476, %c0_477] : memref<80x8xf32, #tpu.memory_space<vmem>>, vector<80x8xf32>
    %390 = arith.addf %389, %388 : vector<80x8xf32>
    %c0_478 = arith.constant 0 : index
    %c0_479 = arith.constant 0 : index
    %391 = vector.load %arg13[%c0_478, %c0_479] : memref<80x8xf32, #tpu.memory_space<vmem>>, vector<80x8xf32>
    tpu.vector_store %arg13[%c0_478, %c0_479], %390 {strides = array<i32>} : memref<80x8xf32, #tpu.memory_space<vmem>>, vector<80x8xf32>,
    %c11_480 = arith.constant 11 : index
    %c0_481 = arith.constant 0 : index
    %392 = vector.load %arg14[%c11_480, %c0_481] : memref<102x8xbf16, #tpu.memory_space<vmem>>, vector<80x8xbf16>
    %c4_482 = arith.constant 4 : index
    %c0_483 = arith.constant 0 : index
    %c0_484 = arith.constant 0 : index
    %393 = vector.load %arg8[%c4_482, %c0_483, %c0_484] : memref<9x8x8xbf16, #tpu.memory_space<vmem>>, vector<1x8x8xbf16>
    %394 = vector.shape_cast %393 : vector<1x8x8xbf16> to vector<8x8xbf16>
    %cst_485 = arith.constant dense<0.000000e+00> : vector<80x8xf32>
    %395 = tpu.matmul %392, %394, %cst_485 {dimension_numbers = #tpu.dot_dimension_numbers<[1], [0], [0], [1], [0, 0, 1, 1], [], []>} : vector<80x8xbf16>, vector<8x8xbf16>, vector<80x8xf32> -> vector<80x8xf32>
    %c0_486 = arith.constant 0 : index
    %c0_487 = arith.constant 0 : index
    %396 = vector.load %arg13[%c0_486, %c0_487] : memref<80x8xf32, #tpu.memory_space<vmem>>, vector<80x8xf32>
    %397 = arith.addf %396, %395 : vector<80x8xf32>
    %c0_488 = arith.constant 0 : index
    %c0_489 = arith.constant 0 : index
    %398 = vector.load %arg13[%c0_488, %c0_489] : memref<80x8xf32, #tpu.memory_space<vmem>>, vector<80x8xf32>
    tpu.vector_store %arg13[%c0_488, %c0_489], %397 {strides = array<i32>} : memref<80x8xf32, #tpu.memory_space<vmem>>, vector<80x8xf32>,
    %c12_490 = arith.constant 12 : index
    %c0_491 = arith.constant 0 : index
    %399 = vector.load %arg14[%c12_490, %c0_491] : memref<102x8xbf16, #tpu.memory_space<vmem>>, vector<80x8xbf16>
    %c5_492 = arith.constant 5 : index
    %c0_493 = arith.constant 0 : index
    %c0_494 = arith.constant 0 : index
    %400 = vector.load %arg8[%c5_492, %c0_493, %c0_494] : memref<9x8x8xbf16, #tpu.memory_space<vmem>>, vector<1x8x8xbf16>
    %401 = vector.shape_cast %400 : vector<1x8x8xbf16> to vector<8x8xbf16>
    %cst_495 = arith.constant dense<0.000000e+00> : vector<80x8xf32>
    %402 = tpu.matmul %399, %401, %cst_495 {dimension_numbers = #tpu.dot_dimension_numbers<[1], [0], [0], [1], [0, 0, 1, 1], [], []>} : vector<80x8xbf16>, vector<8x8xbf16>, vector<80x8xf32> -> vector<80x8xf32>
    %c0_496 = arith.constant 0 : index
    %c0_497 = arith.constant 0 : index
    %403 = vector.load %arg13[%c0_496, %c0_497] : memref<80x8xf32, #tpu.memory_space<vmem>>, vector<80x8xf32>
    %404 = arith.addf %403, %402 : vector<80x8xf32>
    %c0_498 = arith.constant 0 : index
    %c0_499 = arith.constant 0 : index
    %405 = vector.load %arg13[%c0_498, %c0_499] : memref<80x8xf32, #tpu.memory_space<vmem>>, vector<80x8xf32>
    tpu.vector_store %arg13[%c0_498, %c0_499], %404 {strides = array<i32>} : memref<80x8xf32, #tpu.memory_space<vmem>>, vector<80x8xf32>,
    %c20_500 = arith.constant 20 : index
    %c0_501 = arith.constant 0 : index
    %406 = vector.load %arg14[%c20_500, %c0_501] : memref<102x8xbf16, #tpu.memory_space<vmem>>, vector<80x8xbf16>
    %c6_502 = arith.constant 6 : index
    %c0_503 = arith.constant 0 : index
    %c0_504 = arith.constant 0 : index
    %407 = vector.load %arg8[%c6_502, %c0_503, %c0_504] : memref<9x8x8xbf16, #tpu.memory_space<vmem>>, vector<1x8x8xbf16>
    %408 = vector.shape_cast %407 : vector<1x8x8xbf16> to vector<8x8xbf16>
    %cst_505 = arith.constant dense<0.000000e+00> : vector<80x8xf32>
    %409 = tpu.matmul %406, %408, %cst_505 {dimension_numbers = #tpu.dot_dimension_numbers<[1], [0], [0], [1], [0, 0, 1, 1], [], []>} : vector<80x8xbf16>, vector<8x8xbf16>, vector<80x8xf32> -> vector<80x8xf32>
    %c0_506 = arith.constant 0 : index
    %c0_507 = arith.constant 0 : index
    %410 = vector.load %arg13[%c0_506, %c0_507] : memref<80x8xf32, #tpu.memory_space<vmem>>, vector<80x8xf32>
    %411 = arith.addf %410, %409 : vector<80x8xf32>
    %c0_508 = arith.constant 0 : index
    %c0_509 = arith.constant 0 : index
    %412 = vector.load %arg13[%c0_508, %c0_509] : memref<80x8xf32, #tpu.memory_space<vmem>>, vector<80x8xf32>
    tpu.vector_store %arg13[%c0_508, %c0_509], %411 {strides = array<i32>} : memref<80x8xf32, #tpu.memory_space<vmem>>, vector<80x8xf32>,
    %c21_510 = arith.constant 21 : index
    %c0_511 = arith.constant 0 : index
    %413 = vector.load %arg14[%c21_510, %c0_511] : memref<102x8xbf16, #tpu.memory_space<vmem>>, vector<80x8xbf16>
    %c7_512 = arith.constant 7 : index
    %c0_513 = arith.constant 0 : index
    %c0_514 = arith.constant 0 : index
    %414 = vector.load %arg8[%c7_512, %c0_513, %c0_514] : memref<9x8x8xbf16, #tpu.memory_space<vmem>>, vector<1x8x8xbf16>
    %415 = vector.shape_cast %414 : vector<1x8x8xbf16> to vector<8x8xbf16>
    %cst_515 = arith.constant dense<0.000000e+00> : vector<80x8xf32>
    %416 = tpu.matmul %413, %415, %cst_515 {dimension_numbers = #tpu.dot_dimension_numbers<[1], [0], [0], [1], [0, 0, 1, 1], [], []>} : vector<80x8xbf16>, vector<8x8xbf16>, vector<80x8xf32> -> vector<80x8xf32>
    %c0_516 = arith.constant 0 : index
    %c0_517 = arith.constant 0 : index
    %417 = vector.load %arg13[%c0_516, %c0_517] : memref<80x8xf32, #tpu.memory_space<vmem>>, vector<80x8xf32>
    %418 = arith.addf %417, %416 : vector<80x8xf32>
    %c0_518 = arith.constant 0 : index
    %c0_519 = arith.constant 0 : index
    %419 = vector.load %arg13[%c0_518, %c0_519] : memref<80x8xf32, #tpu.memory_space<vmem>>, vector<80x8xf32>
    tpu.vector_store %arg13[%c0_518, %c0_519], %418 {strides = array<i32>} : memref<80x8xf32, #tpu.memory_space<vmem>>, vector<80x8xf32>,
    %c22_520 = arith.constant 22 : index
    %c0_521 = arith.constant 0 : index
    %420 = vector.load %arg14[%c22_520, %c0_521] : memref<102x8xbf16, #tpu.memory_space<vmem>>, vector<80x8xbf16>
    %c8_522 = arith.constant 8 : index
    %c0_523 = arith.constant 0 : index
    %c0_524 = arith.constant 0 : index
    %421 = vector.load %arg8[%c8_522, %c0_523, %c0_524] : memref<9x8x8xbf16, #tpu.memory_space<vmem>>, vector<1x8x8xbf16>
    %422 = vector.shape_cast %421 : vector<1x8x8xbf16> to vector<8x8xbf16>
    %cst_525 = arith.constant dense<0.000000e+00> : vector<80x8xf32>
    %423 = tpu.matmul %420, %422, %cst_525 {dimension_numbers = #tpu.dot_dimension_numbers<[1], [0], [0], [1], [0, 0, 1, 1], [], []>} : vector<80x8xbf16>, vector<8x8xbf16>, vector<80x8xf32> -> vector<80x8xf32>
    %c0_526 = arith.constant 0 : index
    %c0_527 = arith.constant 0 : index
    %424 = vector.load %arg13[%c0_526, %c0_527] : memref<80x8xf32, #tpu.memory_space<vmem>>, vector<80x8xf32>
    %425 = arith.addf %424, %423 : vector<80x8xf32>
    %c0_528 = arith.constant 0 : index
    %c0_529 = arith.constant 0 : index
    %426 = vector.load %arg13[%c0_528, %c0_529] : memref<80x8xf32, #tpu.memory_space<vmem>>, vector<80x8xf32>
    tpu.vector_store %arg13[%c0_528, %c0_529], %425 {strides = array<i32>} : memref<80x8xf32, #tpu.memory_space<vmem>>, vector<80x8xf32>,
    %c0_530 = arith.constant 0 : index
    %c0_531 = arith.constant 0 : index
    %427 = vector.load %arg13[%c0_530, %c0_531] : memref<80x8xf32, #tpu.memory_space<vmem>>, vector<80x8xf32>
    %c0_532 = arith.constant 0 : index
    %c0_533 = arith.constant 0 : index
    %428 = vector.load %arg9[%c0_532, %c0_533] : memref<1x8xf32, #tpu.memory_space<vmem>>, vector<1x8xf32>
    %429 = vector.broadcast %428 : vector<1x8xf32> to vector<80x8xf32>
    %430 = arith.addf %427, %429 : vector<80x8xf32>
    %cst_534 = arith.constant 0.000000e+00 : f32
    %431 = vector.broadcast %cst_534 : f32 to vector<80x8xf32>
    %432 = arith.maximumf %430, %431 : vector<80x8xf32>
    %433 = arith.truncf %432 : vector<80x8xf32> to vector<80x8xbf16>
    %c0_535 = arith.constant 0 : index
    %c0_536 = arith.constant 0 : index
    %434 = vector.load %arg10[%c0_535, %c0_536] : memref<8x32xbf16, #tpu.memory_space<vmem>>, vector<8x32xbf16>
    %cst_537 = arith.constant dense<0.000000e+00> : vector<80x32xf32>
    %435 = tpu.matmul %433, %434, %cst_537 {dimension_numbers = #tpu.dot_dimension_numbers<[1], [0], [0], [1], [0, 0, 1, 1], [], []>} : vector<80x8xbf16>, vector<8x32xbf16>, vector<80x32xf32> -> vector<80x32xf32>
    %c0_538 = arith.constant 0 : index
    %c0_539 = arith.constant 0 : index
    %436 = vector.load %arg11[%c0_538, %c0_539] : memref<1x32xf32, #tpu.memory_space<vmem>>, vector<1x32xf32>
    %437 = vector.broadcast %436 : vector<1x32xf32> to vector<80x32xf32>
    %438 = arith.addf %435, %437 : vector<80x32xf32>
    %439 = arith.extf %340 : vector<80x32xbf16> to vector<80x32xf32>
    %440 = arith.addf %438, %439 : vector<80x32xf32>
    %cst_540 = arith.constant 0.000000e+00 : f32
    %441 = vector.broadcast %cst_540 : f32 to vector<80x32xf32>
    %442 = arith.maximumf %440, %441 : vector<80x32xf32>
    %443 = arith.truncf %442 : vector<80x32xf32> to vector<80x32xbf16>
    %c0_541 = arith.constant 0 : index
    %c3_542 = arith.constant 3 : index
    %c0_543 = arith.constant 0 : index
    %c0_544 = arith.constant 0 : index
    %444 = vector.load %arg12[%c0_541, %c3_542, %c0_543, %c0_544] : memref<1x4x80x32xbf16, #tpu.memory_space<vmem>>, vector<1x1x80x32xbf16>
    %445 = vector.shape_cast %444 : vector<1x1x80x32xbf16> to vector<80x32xbf16>
    %446 = vector.shape_cast %443 : vector<80x32xbf16> to vector<1x1x80x32xbf16>
    tpu.vector_store %arg12[%c0_541, %c3_542, %c0_543, %c0_544], %446 {strides = array<i32>} : memref<1x4x80x32xbf16, #tpu.memory_space<vmem>>, vector<1x1x80x32xbf16>,
    return
  }
  func.func @transform_0(%arg0: i32, %arg1: i32) -> (i32, i32, i32, i32) {
    %c0_i32 = arith.constant 0 : i32
    %c0_i32_0 = arith.constant 0 : i32
    %c0_i32_1 = arith.constant 0 : i32
    return %arg0, %arg1, %c0_i32, %c0_i32_0 : i32, i32, i32, i32
  }
  func.func @transform_1(%arg0: i32, %arg1: i32) -> (i32, i32, i32, i32) {
    %c4_i32 = arith.constant 4 : i32
    %0 = arith.muli %arg1, %c4_i32 : i32
    %c1_i32 = arith.constant 1 : i32
    %1 = arith.subi %0, %c1_i32 : i32
    %c0_i32 = arith.constant 0 : i32
    %2 = arith.maxsi %1, %c0_i32 : i32
    %c0_i32_0 = arith.constant 0 : i32
    %c0_i32_1 = arith.constant 0 : i32
    %c0_i32_2 = arith.constant 0 : i32
    return %arg0, %2, %c0_i32_0, %c0_i32_1 : i32, i32, i32, i32
  }
  func.func @transform_2(%arg0: i32, %arg1: i32) -> (i32, i32, i32, i32) {
    %c4_i32 = arith.constant 4 : i32
    %0 = arith.muli %arg1, %c4_i32 : i32
    %c4_i32_0 = arith.constant 4 : i32
    %1 = arith.addi %0, %c4_i32_0 : i32
    %c7_i32 = arith.constant 7 : i32
    %2 = arith.minsi %1, %c7_i32 : i32
    %c0_i32 = arith.constant 0 : i32
    %c0_i32_1 = arith.constant 0 : i32
    %c0_i32_2 = arith.constant 0 : i32
    return %arg0, %2, %c0_i32, %c0_i32_1 : i32, i32, i32, i32
  }
  func.func @transform_3(%arg0: i32, %arg1: i32) -> (i32, i32) {
    %c0_i32 = arith.constant 0 : i32
    %c0_i32_0 = arith.constant 0 : i32
    %c0_i32_1 = arith.constant 0 : i32
    return %c0_i32, %c0_i32_0 : i32, i32
  }
  func.func @transform_4(%arg0: i32, %arg1: i32) -> (i32, i32, i32) {
    %c0_i32 = arith.constant 0 : i32
    %c0_i32_0 = arith.constant 0 : i32
    %c0_i32_1 = arith.constant 0 : i32
    %c0_i32_2 = arith.constant 0 : i32
    return %c0_i32, %c0_i32_0, %c0_i32_1 : i32, i32, i32
  }
  func.func @transform_5(%arg0: i32, %arg1: i32) -> (i32, i32) {
    %c0_i32 = arith.constant 0 : i32
    %c0_i32_0 = arith.constant 0 : i32
    %c0_i32_1 = arith.constant 0 : i32
    return %c0_i32, %c0_i32_0 : i32, i32
  }
  func.func @transform_6(%arg0: i32, %arg1: i32) -> (i32, i32, i32) {
    %c0_i32 = arith.constant 0 : i32
    %c0_i32_0 = arith.constant 0 : i32
    %c0_i32_1 = arith.constant 0 : i32
    %c0_i32_2 = arith.constant 0 : i32
    return %c0_i32, %c0_i32_0, %c0_i32_1 : i32, i32, i32
  }
  func.func @transform_7(%arg0: i32, %arg1: i32) -> (i32, i32) {
    %c0_i32 = arith.constant 0 : i32
    %c0_i32_0 = arith.constant 0 : i32
    %c0_i32_1 = arith.constant 0 : i32
    return %c0_i32, %c0_i32_0 : i32, i32
  }
  func.func @transform_8(%arg0: i32, %arg1: i32) -> (i32, i32) {
    %c0_i32 = arith.constant 0 : i32
    %c0_i32_0 = arith.constant 0 : i32
    %c0_i32_1 = arith.constant 0 : i32
    return %c0_i32, %c0_i32_0 : i32, i32
  }
  func.func @transform_9(%arg0: i32, %arg1: i32) -> (i32, i32) {
    %c0_i32 = arith.constant 0 : i32
    %c0_i32_0 = arith.constant 0 : i32
    %c0_i32_1 = arith.constant 0 : i32
    return %c0_i32, %c0_i32_0 : i32, i32
  }
  func.func @transform_10(%arg0: i32, %arg1: i32) -> (i32, i32, i32, i32) {
    %c0_i32 = arith.constant 0 : i32
    %c0_i32_0 = arith.constant 0 : i32
    %c0_i32_1 = arith.constant 0 : i32
    return %arg0, %arg1, %c0_i32, %c0_i32_0 : i32, i32, i32, i32
  }
}

</mosaic_0001>

<bundles_post_ra>
// kernel: bottleneck3d_forward.1
= control target key start
LH: loop header
LB: loop body
LE: loop exit
PB: predicated region body
PF: predicated region fallthrough
CT: control target
= control target key end

     0   :  { %s13865_s13 = smov 0   ;;  %s13867_s14 = smov 0   ;;  %s16481_s0 = inlined_call_operand.vmem [shape: bf16[2,8,80,32], index: 0, kind: input, shape index: {}, may-alias: {0,1,2}]   ;;  %s16482_s1 = inlined_call_operand.vmem [shape: bf16[2,8,80,32], index: 1, kind: input, shape index: {}, may-alias: {0,1,2}]   ;;  %s16483_s2 = inlined_call_operand.vmem [shape: bf16[2,8,80,32], index: 2, kind: input, shape index: {}, may-alias: {0,1,2}]   ;;  %s16484_s3 = inlined_call_operand.vmem [shape: f32[80,1], index: 3, kind: input, shape index: {}]   ;;  %s16485_s4 = inlined_call_operand.vmem [shape: bf16[3,32,8], index: 4, kind: input, shape index: {}]   ;;  %s16486_s5 = inlined_call_operand.vmem [shape: f32[1,8], index: 5, kind: input, shape index: {}]   ;;  %s16487_s6 = inlined_call_operand.vmem [shape: bf16[9,8,8], index: 6, kind: input, shape index: {}]   ;;  %s16488_s7 = inlined_call_operand.vmem [shape: f32[1,8], index: 7, kind: input, shape index: {}]   ;;  %s16489_s8 = inlined_call_operand.vmem [shape: bf16[8,32], index: 8, kind: input, shape index: {}]   ;;  %s16490_s9 = inlined_call_operand.vmem [shape: f32[1,32], index: 9, kind: input, shape index: {}]   ;;  %s16491_s10 = inlined_call_operand.vmem [shape: bf16[2,8,80,32], index: 10, kind: output, shape index: {}]  }
   0x1   :  { %16492 = sst [smem:[#allocation4_spill]] %s16481_s0  ;;  %s13869_s15 = smov 0  }
   0x2   :  { %s13871_s16 = smov 0   ;;  %s13873_s17 = smov 0  }
   0x3 LB: > { %s29_s18 = sadd.s32 1, %s13793_s15  ;;  %s32_s19 = sadd.s32 1, %s13797_s16  ;;  %s13801_s17 = sphi %s13873_s17, %s20_s17   ;;  %s13797_s16 = sphi %s13871_s16, %s16504_s16   ;;  %s13793_s15 = sphi %s13869_s15, %s16503_s15   ;;  %s13789_s14 = sphi %s13867_s14, %s16502_s14   ;;  %s13785_s13 = sphi %s13865_s13, %s16501_s13  }
   0x4   : > { %p30_p0 = scmp.ge.s32.totalorder %s29_s18, 2  ;;  %p10952_p1 = scmp.ge.s32.totalorder %s13801_s17, 1 }
   0x5   : > { %p398_p2 = scmp.lt.s32.totalorder %s13801_s17, 5 }
   0x6   : > { %s16506_s18 = smov (%p30_p0, %s29_s18), 0  ;;  %s16508_s19 = smov (!%p30_p0, %s32_s19), %s13797_s16 }
   0x7   : > { %p399_p3 = pnand %p10952_p1, %p398_p2  ;;  %p34_p4 = scmp.ge.s32.totalorder %s16508_s19, 2 }
   0x8   : > { %s13943_s30 = sshll.u32 (!%p399_p3), %s13785_s13, 2  ;;  %p473_p5 = scmp.lt.s32.totalorder (!%p399_p3), %s13789_s14, 1 }
   0x9   : > { %s16510_s19 = smov (%p34_p4, %s16508_s19), 0  ;;  %402 = sbr.rel (%p399_p3) target bundleno = 3523 (0xdc3), region = 60 }
   0xa   : > { %p475_p6 = scmp.lt.s32.totalorder (!%p399_p3), %s13943_s30, 7  ;;  %s10956_s24 = sadd.s32 (!%p399_p3), 4294967295, %s13943_s30 }
   0xb   : > { %p485_p7 = scmp.gt.s32.totalorder (!%p399_p3), %s10956_s24, 0  ;;  %p10957_p8 = scmp.lt.s32.totalorder (!%p399_p3), %s10956_s24, 7 }
   0xc   : > { %s501_s26 = sadd.s32 (!%p399_p3), 4, %s13943_s30  ;;  %s16498_s0 = sld [smem:[#allocation4_spill]] (!%p399_p3) }
   0xd   : > { %p13991_p9 = scmp.lt.s32.totalorder (!%p399_p3), %s501_s26, 7  ;;  %p10986_p10 = scmp.le.s32.totalorder (!%p399_p3), %s13785_s13, 0 }
   0xe   : > { %vm529_vm0 = vcmask 60416   ;;  %vm531_vm1 = vcmask 58368   ;;  %vm532_vm2 = vsmask.f32 1280  ;;  %v13902_v0 = vld [vmem:[%s16484_s3] sm:$0xff]  ;;  %v13803_v1 = vmov 0  }
   0xf   : > { %530 = vst.msk [vmem:[#allocation3] sm:$0xf] %vm529_vm0, %v13803_v1  ;;  %vm13907_vm3 = vmand %vm531_vm1, %vm532_vm2  ;;  %v534_v3 = vld [vmem:[#allocation3 + $0x4] sm:$0x3]  ;;  %vm537_vm4 = vcmask 60417   ;;  %vm543_vm6 = vcmask 59392  }
  0x10   : > { %vm538_vm5 = vsmask.f32 7942  ;;  %v535_v4 = vsel %vm13907_vm3, 0, %v534_v3  ;;  %v540_v6 = vld [vmem:[#allocation3 + $0x2c] sm:$0xe]  ;;  %v13921_v7 = vld [vmem:[%s16484_s3 + $0x8] sm:$0xff] }
  0x11   : > { %vm13913_vm7 = vmand %vm537_vm4, %vm538_vm5  ;;  %544 = vst.msk [vmem:[#allocation3 + $0x30] sm:$0x7] %vm543_vm6, %v13803_v1  ;;  %v13928_v9 = vld [vmem:[%s16484_s3 + $0x10] sm:$0xff]  ;;  %v13933_v10 = vld [vmem:[%s16484_s3 + $0x18] sm:$0xff]  ;;  %v13804_v12 = vmov 0.0   ;;  %vm13805_vm8 = vmmov 0  }
  0x12   : > { %536 = vst [vmem:[#allocation3 + $0x4] sm:$0x3] %v535_v4  ;;  %v541_v8 = vsel %vm13913_vm7, 0, %v540_v6  ;;  %v13938_v11 = vld [vmem:[%s16484_s3 + $0x20] sm:$0xff]  ;;  %12202 = vmatprep.subr.bf16.mxu0 %v13804_v12  ;;  %13370 = vmatprep.subr.bf16.mxu1 %v13804_v12  ;;  %v13949_v13 = vld [vmem:[%s16484_s3 + $0x28] sm:$0xff]  ;;  %v13954_v14 = vld [vmem:[%s16484_s3 + $0x30] sm:$0xff] }
  0x13   : > { %542 = vst [vmem:[#allocation3 + $0x2c] sm:$0xe] %v541_v8  ;;  %v13959_v15 = vld [vmem:[%s16484_s3 + $0x38] sm:$0xff]  ;;  %12206 = vmatprep.mubr.msk.bf16.mxu0 %vm13805_vm8, %v13804_v12  ;;  %12218 = vmatprep.mubr.msk.bf16.mxu1 %vm13805_vm8, %v13804_v12  ;;  %v13970_v16 = vld [vmem:[%s16484_s3 + $0x40] sm:$0xff]  ;;  %v13975_v17 = vld [vmem:[%s16484_s3 + $0x48] sm:$0xff]  ;;  %s16512_s14 = smov (!%p473_p5, %s13789_s14), 1 }
  0x14   : > { %v13435_v18 = vld [vmem:[%s16485_s4 + $0x18] sm:$0xff]   ;;  %s476_s12 = scalar_select %p475_p6, %s13943_s30, 7  ;;  %v13436_v19 = vld [vmem:[%s16485_s4 + $0x10] sm:$0xff]   ;;  %vm607_vm9 = vcmask 261120   ;;  %vm696_vm10 = vcmask 64512  }
  0x15   : > { %s13982_s20 = smul.u32 80, %s16512_s14  ;;  %12203 = vmatpush3.bf16.msra.mxu0 %v13435_v18  ;;  %13372 = vmatpush3.bf16.msra.mxu1 %v13435_v18  ;;  %s16514_s24 = smov (!%p485_p7, %s10956_s24), 0 }
  0x16   : > { %s13384_s23 = smul.u32 10, %s476_s12  ;;  %12204 = vmatprep.subr.bf16.mxu0 %v13804_v12  ;;  %13371 = vmatprep.subr.bf16.mxu1 %v13804_v12  ;;  %s16516_s24 = smov (!%p10957_p8, %s16514_s24), 7 }
  0x17   : > { %s16518_s26 = smov (!%p13991_p9, %s501_s26), 7  ;;  %s13386_s22 = smul.u32 10, %s16516_s24 }
  0x18   : > { %s479_s25 = sadd.s32 %s13982_s20, %s13384_s23  ;;  %s16520_s26 = smov (!%p13991_p9, %s16518_s26), 7 }
  0x19   : > { %s10954_s14 = sshll.u32 %s479_s25, 2  ;;  %12205 = vmatpush3.bf16.msra.mxu0 %v13436_v19  ;;  %13373 = vmatpush3.bf16.msra.mxu1 %v13436_v19  ;;  %s493_s23 = sadd.s32 %s13386_s22, %s13982_s20 }
  0x1a   : > { %s13998_s11 = scalar_lea.vmem %s16498_s0, %s10954_s14  ;;  %s14003_s30 = scalar_lea.vmem %s16491_s10, %s10954_s14 }
  0x1b   : > { %v14006_v20 = vld [vmem:[%s13998_s11] sm:$0xff]   ;;  %v14009_v21 = vld [vmem:[%s13998_s11 + $0x18] sm:$0xff]   ;;  %v14023_v22 = vld [vmem:[%s13998_s11 + $0x8] sm:$0xff]   ;;  %s10962_s24 = sshll.u32 %s493_s23, 2  ;;  %s13387_s25 = smul.u32 10, %s16520_s26 }
  0x1c   : > { %12207 = vmatmul.mubr.msk.bf16.vlgmr.msra.gmra.mxu0 %vm607_vm9, %v14006_v20  ;;  %12219 = vmatmul.mubr.msk.bf16.vlgmr.msra.gmra.mxu1 %vm607_vm9, %v14009_v21  ;;  %v14028_v23 = vld [vmem:[%s13998_s11 + $0x20] sm:$0xff]   ;;  %s14033_s28 = scalar_lea.vmem %s16482_s1, %s10962_s24  ;;  %v14048_v24 = vld [vmem:[%s13998_s11 + $0x10] sm:$0xff]  }
  0x1d   : > { %12210 = vmatprep.mubr.msk.bf16.mxu0 %vm13805_vm8, %v13804_v12  ;;  %12222 = vmatprep.mubr.msk.bf16.mxu1 %vm13805_vm8, %v13804_v12  ;;  %s510_s29 = sadd.s32 %s13387_s25, %s13982_s20 }
  0x1e   : > { %s10967_s12 = sshll.u32 %s510_s29, 2 }
  0x1f   : > { %s14039_s0 = scalar_lea.vmem %s16483_s2, %s10967_s12 }
  0x24   : > { %12211 = vmatmul.mubr.msk.bf16.gmra.mxu0 %vm607_vm9, %v14023_v22  ;;  %12223 = vmatmul.mubr.msk.bf16.gmra.mxu1 %vm607_vm9, %v14028_v23 }
  0x25   : > { %12214 = vmatprep.mubr.msk.bf16.mxu0 %vm13805_vm8, %v13804_v12 }
  0x2c   : > { %12215 = vmatmul.mubr.msk.bf16.gmra.mxu0 %vm607_vm9, %v14048_v24 }
  0xdc   : > { %v657_v25 = vpop.f32.mrf.mxu0  ;;  %v681_v26 = vpop.f32.mrf.mxu1 }
  0xdd   : > { %697 = vst.msk [vmem:[#allocation2] sm:$0xff] %vm696_vm10, %v657_v25  ;;  %703 = vst.msk [vmem:[#allocation2 + $0x30] sm:$0xff] %vm696_vm10, %v681_v26 }
  0xde   : > { %v12208_v27 = vpop.f32.mrf.mxu0  ;;  %v12220_v28 = vpop.f32.mrf.mxu1 }
  0xe0   : > { %v660_v29 = vpop.f32.mrf.mxu0  ;;  %v684_v30 = vpop.f32.mrf.mxu1 }
  0xe1   : > { %698 = vst.msk [vmem:[#allocation2 + $0x8] sm:$0xff] %vm696_vm10, %v660_v29  ;;  %704 = vst.msk [vmem:[#allocation2 + $0x38] sm:$0xff] %vm696_vm10, %v684_v30 }
  0xe2   : > { %v12209_v31 = vpop.f32.mrf.mxu0  ;;  %v12221_v32 = vpop.f32.mrf.mxu1 }
  0xe4   : > { %v665_v33 = vpop.f32.mrf.mxu0  ;;  %v689_v34 = vpop.f32.mrf.mxu1 }
  0xe5   : > { %699 = vst.msk [vmem:[#allocation2 + $0x10] sm:$0xff] %vm696_vm10, %v665_v33  ;;  %705 = vst.msk [vmem:[#allocation2 + $0x40] sm:$0xff] %vm696_vm10, %v689_v34 }
  0xe6   : > { %v12212_v35 = vpop.f32.mrf.mxu0  ;;  %v12224_v36 = vpop.f32.mrf.mxu1 }
  0xe8   : > { %v668_v37 = vpop.f32.mrf.mxu0  ;;  %v692_v38 = vpop.f32.mrf.mxu1 }
  0xe9   : > { %700 = vst.msk [vmem:[#allocation2 + $0x18] sm:$0xff] %vm696_vm10, %v668_v37  ;;  %706 = vst.msk [vmem:[#allocation2 + $0x48] sm:$0xff] %vm696_vm10, %v692_v38 }
  0xea   : > { %v12213_v39 = vpop.f32.mrf.mxu0  ;;  %v12225_v40 = vpop.f32.mrf.mxu1 }
  0xec   : > { %v673_v41 = vpop.f32.mrf.mxu0 }
  0xed   : > { %701 = vst.msk [vmem:[#allocation2 + $0x20] sm:$0xff] %vm696_vm10, %v673_v41 }
  0xee   : > { %v12216_v42 = vpop.f32.mrf.mxu0  ;;  %710 = sbr.rel (%p10986_p10) target bundleno = 468 (0x1d4), region = 64 }
  0xf0   : > { %v676_v43 = vpop.f32.mrf.mxu0 }
  0xf1   : > { %702 = vst.msk [vmem:[#allocation2 + $0x28] sm:$0xff] %vm696_vm10, %v676_v43 }
  0xf2   : > { %v12217_v44 = vpop.f32.mrf.mxu0 }
  0xf3   : > { %v13447_v45 = vld [vmem:[%s16485_s4 + $0x8] sm:$0xff]   ;;  %v13806_v46 = vmov 0.0   ;;  %v13448_v47 = vld [vmem:[%s16485_s4] sm:$0xff]   ;;  %vm13807_vm11 = vmmov 0   ;;  %v13450_v49 = vld [vmem:[%s14033_s28 + $0x18] sm:$0xff]  }
  0xf4   : > { %12226 = vmatprep.subr.bf16.mxu0 %v13806_v46  ;;  %13374 = vmatprep.subr.bf16.mxu1 %v13806_v46  ;;  %v13449_v48 = vld [vmem:[%s14033_s28] sm:$0xff]   ;;  %v13451_v50 = vld [vmem:[%s14033_s28 + $0x8] sm:$0xff]   ;;  %v13453_v52 = vld [vmem:[%s14033_s28 + $0x10] sm:$0xff]  }
  0xf5   : > { %12227 = vmatpush3.bf16.msra.mxu0 %v13447_v45  ;;  %13376 = vmatpush3.bf16.msra.mxu1 %v13447_v45  ;;  %v13452_v51 = vld [vmem:[%s14033_s28 + $0x20] sm:$0xff]   ;;  %v717_v54 = vld [vmem:[#allocation2 + $0x30] sm:$0xff]  ;;  %v712_v60 = vld [vmem:[#allocation2 + $0x8] sm:$0xff] }
  0xf6   : > { %12228 = vmatprep.subr.bf16.mxu0 %v13806_v46  ;;  %13375 = vmatprep.subr.bf16.mxu1 %v13806_v46  ;;  %v711_v53 = vld [vmem:[#allocation2] sm:$0xff]  ;;  %v718_v62 = vld [vmem:[#allocation2 + $0x38] sm:$0xff]  ;;  %v713_v18 = vld [vmem:[#allocation2 + $0x10] sm:$0xff] }
  0xf7   : > { %12230 = vmatprep.mubr.msk.bf16.mxu0 %vm13807_vm11, %v13806_v46  ;;  %12242 = vmatprep.mubr.msk.bf16.mxu1 %vm13807_vm11, %v13806_v46  ;;  %v719_v25 = vld [vmem:[#allocation2 + $0x40] sm:$0xff]  ;;  %v714_v31 = vld [vmem:[#allocation2 + $0x18] sm:$0xff]  ;;  %v720_v33 = vld [vmem:[#allocation2 + $0x48] sm:$0xff] }
  0xf8   : > { %v715_v39 = vld [vmem:[#allocation2 + $0x20] sm:$0xff]  ;;  %v716_v44 = vld [vmem:[#allocation2 + $0x28] sm:$0xff] }
  0xf9   : > { %12229 = vmatpush3.bf16.msra.mxu0 %v13448_v47  ;;  %13377 = vmatpush3.bf16.msra.mxu1 %v13448_v47 }
  0xfc   : > { %12231 = vmatmul.mubr.msk.bf16.vlgmr.msra.gmra.mxu0 %vm607_vm9, %v13449_v48  ;;  %12243 = vmatmul.mubr.msk.bf16.vlgmr.msra.gmra.mxu1 %vm607_vm9, %v13450_v49 }
  0xfd   : > { %12234 = vmatprep.mubr.msk.bf16.mxu0 %vm13807_vm11, %v13806_v46  ;;  %12246 = vmatprep.mubr.msk.bf16.mxu1 %vm13807_vm11, %v13806_v46 }
 0x104   : > { %12235 = vmatmul.mubr.msk.bf16.gmra.mxu0 %vm607_vm9, %v13451_v50  ;;  %12247 = vmatmul.mubr.msk.bf16.gmra.mxu1 %vm607_vm9, %v13452_v51 }
 0x105   : > { %12238 = vmatprep.mubr.msk.bf16.mxu0 %vm13807_vm11, %v13806_v46 }
 0x10c   : > { %12239 = vmatmul.mubr.msk.bf16.gmra.mxu0 %vm607_vm9, %v13453_v52 }
 0x1bc   : > { %v821_v55 = vpop.f32.mrf.mxu0  ;;  %v845_v56 = vpop.f32.mrf.mxu1 }
 0x1bd   : > { %v860_v57 = vadd.f32 %v821_v55, %v711_v53  ;;  %v866_v58 = vadd.f32 %v845_v56, %v717_v54 }
 0x1be   : > { %v12232_v59 = vpop.f32.mrf.mxu0  ;;  %v12244_v61 = vpop.f32.mrf.mxu1 }
 0x1bf   : > { %870 = vst.msk [vmem:[#allocation2] sm:$0xff] %vm696_vm10, %v860_v57  ;;  %876 = vst.msk [vmem:[#allocation2 + $0x30] sm:$0xff] %vm696_vm10, %v866_v58 }
 0x1c0   : > { %v824_v63 = vpop.f32.mrf.mxu0  ;;  %v848_v3 = vpop.f32.mrf.mxu1 }
 0x1c1   : > { %v861_v4 = vadd.f32 %v824_v63, %v712_v60  ;;  %v867_v6 = vadd.f32 %v848_v3, %v718_v62 }
 0x1c2   : > { %v12233_v8 = vpop.f32.mrf.mxu0  ;;  %v12245_v19 = vpop.f32.mrf.mxu1 }
 0x1c3   : > { %871 = vst.msk [vmem:[#allocation2 + $0x8] sm:$0xff] %vm696_vm10, %v861_v4  ;;  %877 = vst.msk [vmem:[#allocation2 + $0x38] sm:$0xff] %vm696_vm10, %v867_v6 }
 0x1c4   : > { %v829_v26 = vpop.f32.mrf.mxu0  ;;  %v853_v27 = vpop.f32.mrf.mxu1 }
 0x1c5   : > { %v862_v28 = vadd.f32 %v829_v26, %v713_v18  ;;  %v868_v29 = vadd.f32 %v853_v27, %v719_v25 }
 0x1c6   : > { %v12236_v30 = vpop.f32.mrf.mxu0  ;;  %v12248_v32 = vpop.f32.mrf.mxu1 }
 0x1c7   : > { %872 = vst.msk [vmem:[#allocation2 + $0x10] sm:$0xff] %vm696_vm10, %v862_v28  ;;  %878 = vst.msk [vmem:[#allocation2 + $0x40] sm:$0xff] %vm696_vm10, %v868_v29 }
 0x1c8   : > { %v832_v34 = vpop.f32.mrf.mxu0  ;;  %v856_v35 = vpop.f32.mrf.mxu1 }
 0x1c9   : > { %v863_v36 = vadd.f32 %v832_v34, %v714_v31  ;;  %v869_v37 = vadd.f32 %v856_v35, %v720_v33 }
 0x1ca   : > { %v12237_v38 = vpop.f32.mrf.mxu0  ;;  %v12249_v40 = vpop.f32.mrf.mxu1 }
 0x1cb   : > { %873 = vst.msk [vmem:[#allocation2 + $0x18] sm:$0xff] %vm696_vm10, %v863_v36  ;;  %879 = vst.msk [vmem:[#allocation2 + $0x48] sm:$0xff] %vm696_vm10, %v869_v37 }
 0x1cc   : > { %v837_v41 = vpop.f32.mrf.mxu0 }
 0x1cd   : > { %v864_v42 = vadd.f32 %v837_v41, %v715_v39 }
 0x1ce   : > { %v12240_v43 = vpop.f32.mrf.mxu0 }
 0x1cf   : > { %874 = vst.msk [vmem:[#allocation2 + $0x20] sm:$0xff] %vm696_vm10, %v864_v42 }
 0x1d0   : > { %v840_v45 = vpop.f32.mrf.mxu0 }
 0x1d1   : > { %v865_v46 = vadd.f32 %v840_v45, %v716_v44 }
 0x1d2   : > { %v12241_v47 = vpop.f32.mrf.mxu0 }
 0x1d3   : > { %875 = vst.msk [vmem:[#allocation2 + $0x28] sm:$0xff] %vm696_vm10, %v865_v46 }
 0x1d4 PF: > { %12250 = vmatprep.subr.bf16.mxu0 %v13804_v12  ;;  %v13456_v48 = vld [vmem:[%s16485_s4 + $0x28] sm:$0xff]   ;;  %12254 = vmatprep.mubr.msk.bf16.mxu0 %vm13805_vm8, %v13804_v12  ;;  %v13457_v49 = vld [vmem:[%s16485_s4 + $0x20] sm:$0xff]   ;;  %vm1356_vm12 = vcmask 1043456   ;;  %v882_v59 = vld [vmem:[#allocation2 + $0x10] sm:$0xff]  ;;  %vm1178_vm13 = vsmask.f32 5392 }
 0x1d5   : > { %13455 = vset.pattern.permute.xlu1 %v13803_v1  ;;  %13454 = vset.pattern.permute.xlu0 %v13803_v1  ;;  %v13458_v50 = vld [vmem:[%s13998_s11 + $0x28] sm:$0xff]   ;;  %v13459_v1 = vld [vmem:[%s13998_s11 + $0x30] sm:$0xff]   ;;  %v14158_v62 = vld [vmem:[%s16486_s5] ss:$0 sm:$0xff]  ;;  %vm1691_vm15 = vcmask 1046528   ;;  %vm2254_vm4 = vcmask 1045504  }
 0x1d6   : > { %12251 = vmatpush3.bf16.msra.mxu0 %v13456_v48  ;;  %1110 = vperm.xlu1 %13455, %v13938_v11   ;;  %v881_v54 = vld [vmem:[#allocation2 + $0x8] sm:$0xff]  ;;  %v883_v4 = vld [vmem:[#allocation2 + $0x18] sm:$0xff]  ;;  %v884_v29 = vld [vmem:[#allocation2 + $0x20] sm:$0xff]  ;;  %vm1484_vm1 = vsmask.f32 7424  ;;  %vm2817_vm5 = vcmask 1044480  }
 0x1d7   : > { %12252 = vmatprep.subr.bf16.mxu0 %v13804_v12  ;;  %1100 = vperm.xlu0 %13454, %v13928_v9   ;;  %v13460_v9 = vld [vmem:[%s13998_s11 + $0x38] sm:$0xff]   ;;  %vm14183_vm14 = vmor %vm532_vm2, %vm1178_vm13  ;;  %vm2038_vm2 = vsmask.f32 6400  ;;  %vm2601_vm6 = vsmask.f32 5376  ;;  %vm3161_vm11 = vcmask 257024  }
 0x1d8   : > { %13378 = vmatprep.subr.bf16.mxu1 %v13804_v12  ;;  %12284 = vmatprep.mubr.msk.bf16.mxu1 %vm13805_vm8, %v13804_v12  ;;  %p11633_p11 = scmp.ge.s32.totalorder %s13785_s13, 1 }
 0x1da   : > { %12253 = vmatpush3.bf16.msra.mxu0 %v13457_v49  ;;  %1115 = vperm.xlu1 %13455, %v13949_v13   ;;  %v885_v44 = vld [vmem:[#allocation2 + $0x28] sm:$0xff] }
 0x1db   : > { %1105 = vperm.xlu0 %13454, %v13933_v10   ;;  %12274 = vmatprep.subr.bf16.mxu0 %v13804_v12  ;;  %v13461_v10 = vld [vmem:[%s13998_s11 + $0x40] sm:$0xff]  }
 0x1dd   : > { %12255 = vmatmul.mubr.msk.bf16.vlgmr.msra.gmra.mxu0 %vm607_vm9, %v13458_v50 }
 0x1de   : > { %12258 = vmatprep.mubr.msk.bf16.mxu0 %vm13805_vm8, %v13804_v12  ;;  %1125 = vperm.xlu1 %13455, %v13959_v15   ;;  %v880_v15 = vld [vmem:[#allocation2] sm:$0xff] }
 0x1df   : > { %1120 = vperm.xlu0 %13454, %v13954_v14  }
 0x1e2   : > { %1090 = vperm.xlu1 %13455, %v13902_v0   ;;  %v13462_v0 = vld [vmem:[%s13998_s11 + $0x48] sm:$0xff]  }
 0x1e3   : > { %1130 = vperm.xlu0 %13454, %v13970_v16  }
 0x1e5   : > { %12259 = vmatmul.mubr.msk.bf16.gmra.mxu0 %vm607_vm9, %v13459_v1  ;;  %v1290_v1 = vld [vmem:[#allocation3 + $0x4] sm:$0xe] }
 0x1e6   : > { %12262 = vmatprep.mubr.msk.bf16.mxu0 %vm13805_vm8, %v13804_v12  ;;  %1135 = vperm.xlu1 %13455, %v13975_v17  }
 0x1e7   : > { %1095 = vperm.xlu0 %13454, %v13921_v7   ;;  %v1315_v7 = vld [vmem:[%s16487_s6] sm:$0xf] }
 0x1e8   : > { %v1358_v11 = vsel %vm1356_vm12, %v1315_v7, 0 }
 0x1e9   : > { %12275 = vmatpush3.bf16.msra.mxu0 %v1358_v11  ;;  %13379 = vmatpush3.bf16.msra.mxu1 %v1358_v11 }
 0x1ea   : > { %12318 = vmatprep.subr.bf16.mxu0 %v13804_v12  ;;  %12296 = vmatprep.subr.bf16.mxu1 %v13804_v12 }
 0x1ed   : > { %12263 = vmatmul.mubr.msk.bf16.gmra.mxu0 %vm607_vm9, %v13460_v9 }
 0x1ee   : > { %12266 = vmatprep.mubr.msk.bf16.mxu0 %vm13805_vm8, %v13804_v12 }
 0x1f5   : > { %12267 = vmatmul.mubr.msk.bf16.gmra.mxu0 %vm607_vm9, %v13461_v10 }
 0x1f6   : > { %12270 = vmatprep.mubr.msk.bf16.mxu0 %vm13805_vm8, %v13804_v12 }
 0x1fd   : > { %12271 = vmatmul.mubr.msk.bf16.gmra.mxu0 %vm607_vm9, %v13462_v0 }
 0x1fe   : > { %12276 = vmatprep.mubr.msk.bf16.mxu0 %vm13805_vm8, %v13804_v12 }
 0x251   : > { %v14143_v14 = vpop.permute.xlu1 %1110 }
 0x252   : > { %v14141_v13 = vpop.permute.xlu0 %1100 }
 0x255   : > { %v14147_v51 = vpop.permute.xlu1 %1115 }
 0x256   : > { %v14145_v16 = vpop.permute.xlu0 %1105 }
 0x259   : > { %v14152_v60 = vpop.permute.xlu1 %1125 }
 0x25a   : > { %v14150_v56 = vpop.permute.xlu0 %1120 }
 0x25d   : > { %v14164_v25 = vpop.permute.xlu1 %1090 }
 0x25e   : > { %v14160_v8 = vpop.permute.xlu0 %1130 }
 0x262   : > { %v14169_v34 = vpop.permute.xlu0 %1095 }
 0x29d   : > { %v992_v17 = vpop.f32.mrf.mxu0 }
 0x29e   : > { %v1031_v52 = vadd.f32 %v992_v17, %v880_v15  ;;  %v886_v17 = vld [vmem:[#allocation2 + $0x30] sm:$0xff] }
 0x29f   : > { %v12256_v53 = vpop.f32.mrf.mxu0 }
 0x2a0   : > { %1041 = vst.msk [vmem:[#allocation2] sm:$0xff] %vm696_vm10, %v1031_v52 }
 0x2a1   : > { %v995_v55 = vpop.f32.mrf.mxu0 }
 0x2a2   : > { %v1032_v57 = vadd.f32 %v995_v55, %v881_v54 }
 0x2a3   : > { %v12257_v58 = vpop.f32.mrf.mxu0 }
 0x2a4   : > { %1042 = vst.msk [vmem:[#allocation2 + $0x8] sm:$0xff] %vm696_vm10, %v1032_v57 }
 0x2a5   : > { %v1000_v61 = vpop.f32.mrf.mxu0 }
 0x2a6   : > { %v1033_v63 = vadd.f32 %v1000_v61, %v882_v59 }
 0x2a7   : > { %v12260_v3 = vpop.f32.mrf.mxu0  ;;  %v1051_v6 = vld [vmem:[#allocation2] sm:$0xff] }
 0x2a8   : > { %1043 = vst.msk [vmem:[#allocation2 + $0x10] sm:$0xff] %vm696_vm10, %v1033_v63  ;;  %v1068_v18 = vadd.f32 %v14158_v62, %v1051_v6 }
 0x2a9   : > { %v1003_v19 = vpop.f32.mrf.mxu0 }
 0x2aa   : > { %v1034_v26 = vadd.f32 %v1003_v19, %v883_v4  ;;  %v1078_v27 = vmax.f32 %v1068_v18, 0.0 }
 0x2ab   : > { %v12261_v28 = vpop.f32.mrf.mxu0  ;;  %v1052_v30 = vld [vmem:[#allocation2 + $0x8] sm:$0xff] }
 0x2ac   : > { %1044 = vst.msk [vmem:[#allocation2 + $0x18] sm:$0xff] %vm696_vm10, %v1034_v26  ;;  %v1138_v31 = vmul.f32 %v14164_v25, %v1078_v27  ;;  %v1069_v32 = vadd.f32 %v14158_v62, %v1052_v30  ;;  %v887_v27 = vld [vmem:[#allocation2 + $0x38] sm:$0xff] }
 0x2ad   : > { %v1008_v33 = vpop.f32.mrf.mxu0 }
 0x2ae   : > { %v11798_v35 = vpack.c.bf16 %v1138_v31, %v1138_v31  ;;  %v1035_v36 = vadd.f32 %v1008_v33, %v884_v29  ;;  %v1079_v37 = vmax.f32 %v1069_v32, 0.0 }
 0x2af   : > { %v1053_v38 = vld [vmem:[#allocation2 + $0x10] sm:$0xff]  ;;  %v12264_v39 = vpop.f32.mrf.mxu0 }
 0x2b0   : > { %v1181_v40 = vshrl.u32 %v11798_v35, 16  ;;  %v1184_v41 = vshll.u32 %v11798_v35, 16  ;;  %1045 = vst.msk [vmem:[#allocation2 + $0x20] sm:$0xff] %vm696_vm10, %v1035_v36  ;;  %v1070_v42 = vadd.f32 %v14158_v62, %v1053_v38  ;;  %v1139_v43 = vmul.f32 %v14169_v34, %v1079_v37 }
 0x2b1   : > { %v1011_v45 = vpop.f32.mrf.mxu0 }
 0x2b2   : > { %v1183_v46 = vrot.slane %v1181_v40, 6  ;;  %v1186_v47 = vrot.slane %v1184_v41, 7  ;;  %v1080_v48 = vmax.f32 %v1070_v42, 0.0  ;;  %v11799_v49 = vpack.c.bf16 %v1139_v43, %v1139_v43 }
 0x2b3   : > { %v1054_v50 = vld [vmem:[#allocation2 + $0x18] sm:$0xff]  ;;  %v1036_v9 = vadd.f32 %v1011_v45, %v885_v44  ;;  %v12265_v10 = vpop.f32.mrf.mxu0  ;;  %v888_v45 = vld [vmem:[#allocation2 + $0x40] sm:$0xff] }
 0x2b4   : > { %v1187_v0 = vor.u32 %v1186_v47, %v1183_v46  ;;  %v1071_v7 = vadd.f32 %v14158_v62, %v1054_v50  ;;  %v1140_v11 = vmul.f32 %v14141_v13, %v1080_v48  ;;  %v1190_v15 = vshrl.u32 %v11799_v49, 16  ;;  %v11058_v46 = vld [vmem:[%s16487_s6 + $0x8] sm:$0xf] }
 0x2b5   : > { %v1193_v52 = vshll.u32 %v11799_v49, 16  ;;  %1046 = vst.msk [vmem:[#allocation2 + $0x28] sm:$0xff] %vm696_vm10, %v1036_v9  ;;  %v1016_v53 = vpop.f32.mrf.mxu0  ;;  %v889_v9 = vld [vmem:[#allocation2 + $0x48] sm:$0xff] }
 0x2b6   : > { %v1291_v54 = vsel %vm13913_vm7, %v1187_v0, %v1290_v1  ;;  %v1081_v55 = vmax.f32 %v1071_v7, 0.0  ;;  %v11800_v57 = vpack.c.bf16 %v1140_v11, %v1140_v11  ;;  %v1192_v59 = vrot.slane %v1190_v15, 6 }
 0x2b7   : > { %1292 = vst [vmem:[#allocation3 + $0x4] sm:$0xe] %v1291_v54  ;;  %v1055_v58 = vld [vmem:[#allocation2 + $0x20] sm:$0xff]  ;;  %v1195_v61 = vrot.slane %v1193_v52, 7  ;;  %v1037_v63 = vadd.f32 %v1016_v53, %v886_v17  ;;  %v12268_v3 = vpop.f32.mrf.mxu0  ;;  %v1188_v28 = vrot.slane %v1187_v0, 4  ;;  %v1719_v17 = vsel %vm1356_vm12, %v11058_v46, 0 }
 0x2b8   : > { %v1072_v4 = vadd.f32 %v14158_v62, %v1055_v58  ;;  %v1141_v6 = vmul.f32 %v14145_v16, %v1081_v55  ;;  %v1200_v19 = vshrl.u32 %v11800_v57, 16  ;;  %v1203_v26 = vshll.u32 %v11800_v57, 16 }
 0x2b9   : > { %v1196_v29 = vor.u32 %v1195_v61, %v1192_v59  ;;  %1047 = vst.msk [vmem:[#allocation2 + $0x30] sm:$0xff] %vm696_vm10, %v1037_v63  ;;  %v1019_v30 = vpop.f32.mrf.mxu0 }
 0x2ba   : > { %v1082_v31 = vmax.f32 %v1072_v4, 0.0  ;;  %v11801_v32 = vpack.c.bf16 %v1141_v6, %v1141_v6  ;;  %v1202_v33 = vrot.slane %v1200_v19, 6  ;;  %v1205_v35 = vrot.slane %v1203_v26, 7 }
 0x2bb   : > { %v1197_v36 = vsel %vm14183_vm14, %v1188_v28, %v1196_v29  ;;  %v1198_v37 = vrot.slane %v1196_v29, 4  ;;  %v1038_v38 = vadd.f32 %v1019_v30, %v887_v27  ;;  %v12269_v39 = vpop.f32.mrf.mxu0  ;;  %v11046_v28 = vld [vmem:[%s16487_s6 + $0x4] sm:$0xf] }
 0x2bc   : > { %v1142_v40 = vmul.f32 %v14143_v14, %v1082_v31  ;;  %v1206_v41 = vor.u32 %v1205_v35, %v1202_v33  ;;  %v1210_v42 = vshrl.u32 %v11801_v32, 16  ;;  %v1213_v43 = vshll.u32 %v11801_v32, 16  ;;  %1293 = vst.msk [vmem:[#allocation3 + $0x8] sm:$0xf] %vm529_vm0, %v1197_v36  ;;  %v1056_v44 = vld [vmem:[#allocation2 + $0x28] sm:$0xff] }
 0x2bd   : > { %v1073_v47 = vadd.f32 %v14158_v62, %v1056_v44  ;;  %1048 = vst.msk [vmem:[#allocation2 + $0x38] sm:$0xff] %vm696_vm10, %v1038_v38  ;;  %v1024_v48 = vpop.f32.mrf.mxu0 }
 0x2be   : > { %v11802_v49 = vpack.c.bf16 %v1142_v40, %v1142_v40  ;;  %v1207_v50 = vsel %vm14183_vm14, %v1198_v37, %v1206_v41  ;;  %v1212_v1 = vrot.slane %v1210_v42, 6  ;;  %v1215_v10 = vrot.slane %v1213_v43, 7  ;;  %v13463_v15 = vld [vmem:[#allocation3] sm:$0xff]  }
 0x2bf   : > { %1294 = vst.msk [vmem:[#allocation3 + $0xc] sm:$0xf] %vm529_vm0, %v1207_v50  ;;  %v1083_v0 = vmax.f32 %v1073_v47, 0.0  ;;  %v1039_v7 = vadd.f32 %v1024_v48, %v888_v45  ;;  %v12272_v11 = vpop.f32.mrf.mxu0  ;;  %v1208_v55 = vrot.slane %v1206_v41, 4  ;;  %12277 = vmatmul.mubr.msk.bf16.vlgmr.msra.gmra.mxu0 %vm696_vm10, %v13463_v15  ;;  %v13466_v37 = vld [vmem:[#allocation3] sm:$0xfe]  }
 0x2c0   : > { %v1220_v52 = vshrl.u32 %v11802_v49, 16  ;;  %v1223_v53 = vshll.u32 %v11802_v49, 16  ;;  %v1057_v54 = vld [vmem:[#allocation2 + $0x30] sm:$0xff]  ;;  %v1216_v57 = vor.u32 %v1215_v10, %v1212_v1  ;;  %12280 = vmatprep.mubr.msk.bf16.mxu0 %vm13805_vm8, %v13804_v12  ;;  %12319 = vmatpush3.bf16.msra.mxu0 %v1719_v17  ;;  %v1545_v45 = vsel %vm1356_vm12, %v11046_v28, 0 }
 0x2c1   : > { %v1143_v58 = vmul.f32 %v14147_v51, %v1083_v0  ;;  %v1074_v59 = vadd.f32 %v14158_v62, %v1057_v54  ;;  %1049 = vst.msk [vmem:[#allocation2 + $0x40] sm:$0xff] %vm696_vm10, %v1039_v7  ;;  %v1027_v61 = vpop.f32.mrf.mxu0  ;;  %12362 = vmatprep.subr.bf16.mxu0 %v13804_v12 }
 0x2c2   : > { %v1222_v63 = vrot.slane %v1220_v52, 6  ;;  %v1225_v3 = vrot.slane %v1223_v53, 7  ;;  %v1040_v4 = vadd.f32 %v1027_v61, %v889_v9  ;;  %v1217_v6 = vsel %vm14183_vm14, %v1208_v55, %v1216_v57  ;;  %v11082_v52 = vld [vmem:[%s16487_s6 + $0x10] sm:$0xf] }
 0x2c3   : > { %v11803_v19 = vpack.c.bf16 %v1143_v58, %v1143_v58  ;;  %v1084_v26 = vmax.f32 %v1074_v59, 0.0  ;;  %v12273_v27 = vpop.f32.mrf.mxu0  ;;  %v1218_v29 = vrot.slane %v1216_v57, 4  ;;  %1295 = vst.msk [vmem:[#allocation3 + $0x10] sm:$0xf] %vm529_vm0, %v1217_v6  ;;  %v1692_v9 = vrot.slane %v13466_v37, 1 }
 0x2c4   : > { %v1226_v30 = vor.u32 %v1225_v3, %v1222_v63  ;;  %v1058_v31 = vld [vmem:[#allocation2 + $0x38] sm:$0xff]  ;;  %1050 = vst.msk [vmem:[#allocation2 + $0x48] sm:$0xff] %vm696_vm10, %v1040_v4 }
 0x2c5   : > { %v1230_v32 = vshrl.u32 %v11803_v19, 16  ;;  %v1233_v33 = vshll.u32 %v11803_v19, 16  ;;  %v1144_v35 = vmul.f32 %v14150_v56, %v1084_v26  ;;  %v1075_v36 = vadd.f32 %v14158_v62, %v1058_v31  ;;  %v14237_v26 = vpop.permute.xlu1 %1135 }
 0x2c6   : > { %v1227_v38 = vsel %vm14183_vm14, %v1218_v29, %v1226_v30  ;;  %v13464_v39 = vld [vmem:[#allocation3 + $0x8] sm:$0xff]   ;;  %v1228_v1 = vrot.slane %v1226_v30, 4  ;;  %v2108_v31 = vsel %vm1356_vm12, %v11082_v52, 0 }
 0x2c7   : > { %1296 = vst.msk [vmem:[#allocation3 + $0x14] sm:$0xf] %vm529_vm0, %v1227_v38  ;;  %v1232_v40 = vrot.slane %v1230_v32, 6  ;;  %v1235_v41 = vrot.slane %v1233_v33, 7  ;;  %v11804_v42 = vpack.c.bf16 %v1144_v35, %v1144_v35  ;;  %v1085_v43 = vmax.f32 %v1075_v36, 0.0  ;;  %v14221_v46 = vld [vmem:[#allocation3 + $0x8] sm:$0xff]   ;;  %12281 = vmatmul.mubr.msk.bf16.gmra.mxu0 %vm696_vm10, %v13464_v39 }
 0x2c8   : > { %v1059_v44 = vld [vmem:[#allocation2 + $0x40] sm:$0xff]  ;;  %12320 = vmatprep.mubr.msk.bf16.mxu0 %vm13805_vm8, %v13804_v12  ;;  %v1693_v54 = vrot.slane %v14221_v46, 1  ;;  %v1302_v52 = vld [vmem:[#allocation3 + $0x2c] sm:$0x3] }
 0x2c9   : > { %v1240_v47 = vshrl.u32 %v11804_v42, 16  ;;  %v1243_v48 = vshll.u32 %v11804_v42, 16  ;;  %v1145_v49 = vmul.f32 %v14152_v60, %v1085_v43  ;;  %v1076_v50 = vadd.f32 %v14158_v62, %v1059_v44 }
 0x2ca   : > { %v1236_v10 = vor.u32 %v1235_v41, %v1232_v40  ;;  %v1694_v29 = vsel %vm1691_vm15, %v1692_v9, %v1693_v54 }
 0x2cb   : > { %v1242_v0 = vrot.slane %v1240_v47, 6  ;;  %v1245_v7 = vrot.slane %v1243_v48, 7  ;;  %v11805_v11 = vpack.c.bf16 %v1145_v49, %v1145_v49  ;;  %v1086_v15 = vmax.f32 %v1076_v50, 0.0  ;;  %v1060_v17 = vld [vmem:[#allocation2 + $0x48] sm:$0xff] }
 0x2cc   : > { %v1077_v53 = vadd.f32 %v14158_v62, %v1060_v17  ;;  %v1237_v55 = vsel %vm14183_vm14, %v1228_v1, %v1236_v10  ;;  %v1238_v57 = vrot.slane %v1236_v10, 4  ;;  %v13473_v17 = vld [vmem:[#allocation3 + $0x8] sm:$0xff]  }
 0x2cd   : > { %v1250_v58 = vshrl.u32 %v11805_v11, 16  ;;  %v1253_v59 = vshll.u32 %v11805_v11, 16  ;;  %v1146_v61 = vmul.f32 %v14160_v8, %v1086_v15  ;;  %v1246_v63 = vor.u32 %v1245_v7, %v1242_v0  ;;  %1297 = vst.msk [vmem:[#allocation3 + $0x18] sm:$0xf] %vm529_vm0, %v1237_v55  ;;  %v13472_v0 = vld [vmem:[#allocation3] sm:$0xff]  }
 0x2ce   : > { %v1087_v3 = vmax.f32 %v1077_v53, 0.0  ;;  %v13465_v4 = vld [vmem:[#allocation3 + $0x10] sm:$0xff]   ;;  %v1488_v53 = vshll.u32 %v13472_v0, 16 }
 0x2cf   : > { %v1252_v6 = vrot.slane %v1250_v58, 6  ;;  %v1255_v19 = vrot.slane %v1253_v59, 7  ;;  %v11806_v62 = vpack.c.bf16 %v1146_v61, %v1146_v61  ;;  %v1247_v27 = vsel %vm14183_vm14, %v1238_v57, %v1246_v63  ;;  %12285 = vmatmul.mubr.msk.bf16.vlgmr.msra.gmra.mxu1 %vm696_vm10, %v13465_v4  ;;  %v13469_v30 = vld [vmem:[#allocation3 + $0x10] sm:$0xff]   ;;  %12321 = vmatmul.mubr.msk.bf16.vlgmr.msra.gmra.mxu0 %vm696_vm10, %v1694_v29 }
 0x2d0   : > { %v1147_v28 = vmul.f32 %v14237_v26, %v1087_v3  ;;  %1298 = vst.msk [vmem:[#allocation3 + $0x1c] sm:$0xf] %vm529_vm0, %v1247_v27  ;;  %12297 = vmatpush3.bf16.msra.mxu1 %v1545_v45  ;;  %v1248_v35 = vrot.slane %v1246_v63, 4  ;;  %12288 = vmatprep.mubr.msk.bf16.mxu1 %vm13805_vm8, %v13804_v12  ;;  %v1695_v43 = vrot.slane %v13469_v30, 1  ;;  %v1493_v57 = vshll.u32 %v13473_v17, 16  ;;  %v13475_v3 = vld [vmem:[#allocation3 + $0x10] sm:$0xff]  }
 0x2d1   : > { %v1260_v32 = vshrl.u32 %v11806_v62, 16  ;;  %v1263_v33 = vshll.u32 %v11806_v62, 16  ;;  %v1256_v36 = vor.u32 %v1255_v19, %v1252_v6  ;;  %12324 = vmatprep.mubr.msk.bf16.mxu0 %vm13805_vm8, %v13804_v12  ;;  %12340 = vmatprep.subr.bf16.mxu1 %v13804_v12  ;;  %v1490_v61 = vrot.slane %v1488_v53, 1  ;;  %v11070_v63 = vld [vmem:[%s16487_s6 + $0xc] sm:$0xf]  ;;  %v13479_v30 = vld [vmem:[#allocation3 + $0xc] sm:$0xff]  }
 0x2d2   : > { %v11807_v37 = vpack.c.bf16 %v1147_v28, %v1147_v28  ;;  %12363 = vmatpush3.bf16.msra.mxu0 %v2108_v31  ;;  %v1696_v1 = vsel %vm1691_vm15, %v1693_v54, %v1695_v43  ;;  %v1486_v4 = vshrl.u32 %v13472_v0, 16  ;;  %v1495_v6 = vrot.slane %v1493_v57, 1 }
 0x2d3   : > { %v1262_v38 = vrot.slane %v1260_v32, 6  ;;  %v1265_v39 = vrot.slane %v1263_v33, 7  ;;  %v1257_v40 = vsel %vm14183_vm14, %v1248_v35, %v1256_v36  ;;  %12406 = vmatprep.subr.bf16.mxu0 %v13804_v12  ;;  %v1258_v44 = vrot.slane %v1256_v36, 4  ;;  %v13478_v33 = vld [vmem:[#allocation3 + $0x4] sm:$0xfe]  }
 0x2d4   : > { %v1270_v41 = vshrl.u32 %v11807_v37, 16  ;;  %v1273_v42 = vshll.u32 %v11807_v37, 16  ;;  %1299 = vst.msk [vmem:[#allocation3 + $0x20] sm:$0xf] %vm529_vm0, %v1257_v40  ;;  %v1491_v62 = vor.u32 %v1490_v61, %v1486_v4  ;;  %v1892_v27 = vsel %vm1356_vm12, %v11070_v63, 0 }
 0x2d5   : > { %v1266_v45 = vor.u32 %v1265_v39, %v1262_v38  ;;  %v1501_v29 = vshll.u32 %v13475_v3, 16  ;;  %v1497_v35 = vshrl.u32 %v13473_v17, 16  ;;  %v2048_v38 = vshrl.u32 %v13479_v30, 16 }
 0x2d6   : > { %v1272_v46 = vrot.slane %v1270_v41, 6  ;;  %v1275_v47 = vrot.slane %v1273_v42, 7  ;;  %v1496_v31 = vsel %vm1484_vm1, %v1491_v62, %v1495_v6  ;;  %v2051_v40 = vshll.u32 %v13479_v30, 16 }
 0x2d7   : > { %v13468_v48 = vld [vmem:[#allocation3 + $0x18] sm:$0xff]   ;;  %v1267_v49 = vsel %vm14183_vm14, %v1258_v44, %v1266_v45  ;;  %v1268_v9 = vrot.slane %v1266_v45, 4  ;;  %12325 = vmatmul.mubr.msk.bf16.gmra.mxu0 %vm696_vm10, %v1696_v1  ;;  %v1503_v36 = vrot.slane %v1501_v29, 1  ;;  %v2040_v41 = vshrl.u32 %v13478_v33, 16 }
 0x2d8   : > { %v1276_v50 = vor.u32 %v1275_v47, %v1272_v46  ;;  %1300 = vst.msk [vmem:[#allocation3 + $0x24] sm:$0xf] %vm529_vm0, %v1267_v49  ;;  %v13471_v10 = vld [vmem:[#allocation3 + $0x18] sm:$0xff]   ;;  %12289 = vmatmul.mubr.msk.bf16.gmra.mxu1 %vm696_vm10, %v13468_v48  ;;  %12328 = vmatprep.mubr.msk.bf16.mxu0 %vm13805_vm8, %v13804_v12  ;;  %v1499_v42 = vor.u32 %v1497_v35, %v1495_v6  ;;  %v2050_v48 = vrot.slane %v2048_v38, 1  ;;  %v2053_v49 = vrot.slane %v2051_v40, 2 }
 0x2d9   : > { %12292 = vmatprep.mubr.msk.bf16.mxu1 %vm13805_vm8, %v13804_v12  ;;  %v1697_v15 = vrot.slane %v13471_v10, 1  ;;  %v13477_v37 = vld [vmem:[#allocation3 + $0x18] sm:$0xff]   ;;  %v2042_v1 = vrot.slane %v2040_v41, 1  ;;  %v1505_v0 = vshrl.u32 %v13475_v3, 16 }
 0x2da   : > { %v1277_v7 = vsel %vm14183_vm14, %v1268_v9, %v1276_v50  ;;  %v1278_v11 = vrot.slane %v1276_v50, 4  ;;  %v13481_v44 = vld [vmem:[#allocation3 + $0x14] sm:$0xff]   ;;  %v1509_v45 = vshll.u32 %v13477_v37, 16  ;;  %v1504_v46 = vsel %vm1484_vm1, %v1499_v42, %v1503_v36  ;;  %v11106_v50 = vld [vmem:[%s16487_s6 + $0x18] sm:$0xf] }
 0x2db   : > { %1301 = vst.msk [vmem:[#allocation3 + $0x28] sm:$0xf] %vm529_vm0, %v1277_v7  ;;  %v1698_v55 = vsel %vm1691_vm15, %v1695_v43, %v1697_v15  ;;  %v2043_v43 = vshll.u32 %v13478_v33, 16  ;;  %v2057_v10 = vshrl.u32 %v13481_v44, 16  ;;  %v2060_v17 = vshll.u32 %v13481_v44, 16  ;;  %v13483_v57 = vld [vmem:[#allocation3 + $0x1c] sm:$0xff]  }
 0x2dc   : > { %v1303_v59 = vsel %vm13907_vm3, %v1278_v11, %v1302_v52  ;;  %v1511_v7 = vrot.slane %v1509_v45, 1  ;;  %v2054_v11 = vor.u32 %v2053_v49, %v2050_v48  ;;  %v1507_v52 = vor.u32 %v1505_v0, %v1503_v36  ;;  %v13485_v44 = vld [vmem:[#allocation3 + $0xc] sm:$0xff]   ;;  %v13484_v48 = vld [vmem:[#allocation3 + $0x4] sm:$0xfe]  }
 0x2dd   : > { %1304 = vst [vmem:[#allocation3 + $0x2c] sm:$0x3] %v1303_v59  ;;  %v2045_v9 = vrot.slane %v2043_v43, 2  ;;  %v2062_v63 = vrot.slane %v2060_v17, 2  ;;  %v1513_v3 = vshrl.u32 %v13477_v37, 16  ;;  %v2066_v4 = vshrl.u32 %v13483_v57, 16 }
 0x2de   : > { %v2069_v6 = vshll.u32 %v13483_v57, 16  ;;  %v1866_v49 = vrot.slane %v13485_v44, 1  ;;  %v1865_v0 = vrot.slane %v13484_v48, 1  ;;  %v13487_v17 = vld [vmem:[#allocation3 + $0x14] sm:$0xff]   ;;  %v13496_v44 = vld [vmem:[#allocation3 + $0x4] sm:$0xfc]  }
 0x2df   : > { %v13470_v54 = vld [vmem:[#allocation3 + $0x20] sm:$0xff]   ;;  %12329 = vmatmul.mubr.msk.bf16.gmra.mxu0 %vm696_vm10, %v1698_v55  ;;  %v2046_v53 = vor.u32 %v2045_v9, %v2042_v1  ;;  %v2059_v55 = vrot.slane %v2057_v10, 1  ;;  %v2068_v29 = vrot.slane %v2066_v4, 1  ;;  %v2255_v48 = vrot.slane %v13496_v44, 2 }
 0x2e0   : > { %v13474_v58 = vld [vmem:[#allocation3 + $0x20] sm:$0xff]   ;;  %12293 = vmatmul.mubr.msk.bf16.gmra.mxu1 %vm696_vm10, %v13470_v54  ;;  %12332 = vmatprep.mubr.msk.bf16.mxu0 %vm13805_vm8, %v13804_v12  ;;  %v2455_v54 = vsel %vm1356_vm12, %v11106_v50, 0  ;;  %v2071_v30 = vrot.slane %v2069_v6, 2  ;;  %v11130_v6 = vld [vmem:[%s16487_s6 + $0x20] sm:$0xf] }
 0x2e1   : > { %12298 = vmatprep.mubr.msk.bf16.mxu1 %vm13805_vm8, %v13804_v12  ;;  %v1699_v19 = vrot.slane %v13474_v58, 1  ;;  %v1512_v58 = vsel %vm1484_vm1, %v1507_v52, %v1511_v7  ;;  %v2055_v59 = vsel %vm2038_vm2, %v2046_v53, %v2054_v11  ;;  %v2063_v62 = vor.u32 %v2062_v63, %v2059_v55  ;;  %v11094_v1 = vld [vmem:[%s16487_s6 + $0x14] sm:$0xf]  ;;  %v13490_v63 = vld [vmem:[#allocation3 + $0x8] sm:$0xfc]  }
 0x2e2   : > { %v13476_v28 = vld [vmem:[#allocation3 + $0x28] ss:$0 sps:$4 sm:$0x11]   ;;  %v2072_v36 = vor.u32 %v2071_v30, %v2068_v29  ;;  %v13493_v29 = vld [vmem:[#allocation3 + $0x18] sm:$0xff]   ;;  %v2845_v30 = vsel %vm1356_vm12, %v11130_v6, 0 }
 0x2e3   : > { %v1700_v32 = vsel %vm1691_vm15, %v1697_v15, %v1699_v19  ;;  %v1701_v39 = vrot.slane %v13476_v28, 1  ;;  %v13480_v15 = vld [vmem:[#allocation3 + $0x20] sm:$0xff]   ;;  %v1515_v28 = vor.u32 %v1513_v3, %v1511_v7  ;;  %v2282_v7 = vsel %vm1356_vm12, %v11094_v1, 0 }
 0x2e4   : > { %v1517_v61 = vshll.u32 %v13480_v15, 16  ;;  %v13486_v35 = vld [vmem:[#allocation3 + $0x24] sm:$0xff]   ;;  %v1521_v37 = vshrl.u32 %v13480_v15, 16  ;;  %v2073_v43 = vsel %vm2038_vm2, %v2063_v62, %v2072_v36 }
 0x2e5   : > { %v1702_v47 = vsel %vm1691_vm15, %v1699_v19, %v1701_v39  ;;  %v2075_v39 = vshrl.u32 %v13486_v35, 16  ;;  %v2078_v40 = vshll.u32 %v13486_v35, 16 }
 0x2e6   : > { %v1519_v19 = vrot.slane %v1517_v61, 1  ;;  %v13491_v61 = vld [vmem:[#allocation3 + $0x10] sm:$0xff]  }
 0x2e7   : > { %12333 = vmatmul.mubr.msk.bf16.gmra.mxu0 %vm696_vm10, %v1700_v32  ;;  %v2064_v32 = vsel %vm2038_vm2, %v2054_v11, %v2063_v62  ;;  %v2077_v45 = vrot.slane %v2075_v39, 1  ;;  %v1867_v11 = vsel %vm1691_vm15, %v1865_v0, %v1866_v49  ;;  %v2429_v4 = vrot.slane %v13491_v61, 2  ;;  %v13504_v61 = vld [vmem:[#allocation3 + $0x24] sm:$0xff]  }
 0x2e8   : > { %12299 = vmatmul.mubr.msk.bf16.vlgmr.msra.gmra.mxu1 %vm696_vm10, %v1496_v31  ;;  %12336 = vmatprep.mubr.msk.bf16.mxu0 %vm13805_vm8, %v13804_v12  ;;  %v1520_v31 = vsel %vm1484_vm1, %v1515_v28, %v1519_v19  ;;  %v1523_v41 = vor.u32 %v1521_v37, %v1519_v19  ;;  %v2428_v19 = vrot.slane %v13490_v63, 2  ;;  %v13492_v28 = vld [vmem:[#allocation3 + $0x24] sm:$0xff]   ;;  %v13505_v63 = vld [vmem:[#allocation3 + $0x18] sm:$0xff]  }
 0x2e9   : > { %12341 = vmatpush3.bf16.msra.mxu1 %v1892_v27  ;;  %12302 = vmatprep.mubr.msk.bf16.mxu1 %vm13805_vm8, %v13804_v12  ;;  %v13482_v27 = vld [vmem:[#allocation3 + $0x28] ss:$0 sps:$4 sm:$0x11]   ;;  %v13495_v37 = vld [vmem:[#allocation3 + $0x20] sm:$0xff]  }
 0x2ea   : > { %12384 = vmatprep.subr.bf16.mxu1 %v13804_v12  ;;  %v1525_v33 = vshll.u32 %v13482_v27, 16  ;;  %v2430_v27 = vsel %vm2254_vm4, %v2428_v19, %v2429_v4  ;;  %v2433_v39 = vrot.slane %v13495_v37, 2 }
 0x2ec   : > { %v1527_v38 = vrot.slane %v1525_v33, 1 }
 0x2ee   : > { %v1528_v42 = vsel %vm1484_vm1, %v1523_v41, %v1527_v38 }
 0x2ef   : > { %12337 = vmatmul.mubr.msk.bf16.gmra.mxu0 %vm696_vm10, %v1702_v47  ;;  %v13488_v47 = vld [vmem:[#allocation3 + $0x2c] ss:$0 sps:$4 sm:$0x33]  }
 0x2f0   : > { %12303 = vmatmul.mubr.msk.bf16.gmra.mxu1 %vm696_vm10, %v1504_v46  ;;  %12364 = vmatprep.mubr.msk.bf16.mxu0 %vm13805_vm8, %v13804_v12  ;;  %v2080_v46 = vrot.slane %v2078_v40, 2  ;;  %v2084_v9 = vshrl.u32 %v13488_v47, 16  ;;  %v2087_v10 = vshll.u32 %v13488_v47, 16  ;;  %v11118_v47 = vld [vmem:[%s16487_s6 + $0x1c] sm:$0xf] }
 0x2f1   : > { %12306 = vmatprep.mubr.msk.bf16.mxu1 %vm13805_vm8, %v13804_v12 }
 0x2f2   : > { %v2081_v50 = vor.u32 %v2080_v46, %v2077_v45  ;;  %v2086_v52 = vrot.slane %v2084_v9, 1  ;;  %v2089_v53 = vrot.slane %v2087_v10, 2  ;;  %v13499_v9 = vld [vmem:[#allocation3 + $0x14] sm:$0xff]   ;;  %v13500_v10 = vld [vmem:[#allocation3 + $0x30] ss:$0 sps:$4 sm:$0x33]  }
 0x2f3   : > { %v2258_v0 = vrot.slane %v13499_v9, 2 }
 0x2f4   : > { %v2082_v15 = vsel %vm2038_vm2, %v2072_v36, %v2081_v50  ;;  %v2090_v55 = vor.u32 %v2089_v53, %v2086_v52  ;;  %v13494_v36 = vld [vmem:[#allocation3 + $0x2c] ss:$0 sps:$4 sm:$0x11]   ;;  %v13503_v52 = vld [vmem:[#allocation3 + $0x10] sm:$0xff]  }
 0x2f5   : > { %v1874_v38 = vrot.slane %v13494_v36, 1  ;;  %v13502_v53 = vld [vmem:[#allocation3 + $0x8] sm:$0xf8]  }
 0x2f7   : > { %12365 = vmatmul.mubr.msk.bf16.vlgmr.msra.gmra.mxu0 %vm696_vm10, %v2055_v59  ;;  %v13489_v59 = vld [vmem:[#allocation3 + $0x1c] sm:$0xff]  }
 0x2f8   : > { %12307 = vmatmul.mubr.msk.bf16.gmra.mxu1 %vm696_vm10, %v1512_v58  ;;  %12368 = vmatprep.mubr.msk.bf16.mxu0 %vm13805_vm8, %v13804_v12  ;;  %v2091_v58 = vsel %vm2038_vm2, %v2081_v50, %v2090_v55  ;;  %v1870_v3 = vrot.slane %v13489_v59, 1  ;;  %v2819_v55 = vrot.slane %v13503_v52, 3 }
 0x2f9   : > { %12310 = vmatprep.mubr.msk.bf16.mxu1 %vm13805_vm8, %v13804_v12  ;;  %12407 = vmatpush3.bf16.msra.mxu0 %v2455_v54  ;;  %v1868_v54 = vrot.slane %v13487_v17, 1  ;;  %v13501_v17 = vld [vmem:[#allocation3 + $0x1c] sm:$0xff]  }
 0x2fa   : > { %12450 = vmatprep.subr.bf16.mxu0 %v13804_v12 }
 0x2fb   : > { %v1869_v57 = vsel %vm1691_vm15, %v1866_v49, %v1868_v54  ;;  %v1871_v62 = vsel %vm1691_vm15, %v1868_v54, %v1870_v3  ;;  %v2671_v49 = vsel %vm1356_vm12, %v11118_v47, 0  ;;  %v2260_v54 = vrot.slane %v13501_v17, 2 }
 0x2ff   : > { %12369 = vmatmul.mubr.msk.bf16.gmra.mxu0 %vm696_vm10, %v2064_v32  ;;  %v2431_v32 = vrot.slane %v13493_v29, 2  ;;  %v13508_v29 = vld [vmem:[#allocation3 + $0x8] sm:$0xfc]  }
 0x300   : > { %12311 = vmatmul.mubr.msk.bf16.gmra.mxu1 %vm696_vm10, %v1520_v31  ;;  %12372 = vmatprep.mubr.msk.bf16.mxu0 %vm13805_vm8, %v13804_v12  ;;  %v1872_v31 = vrot.slane %v13492_v28, 1  ;;  %v13509_v28 = vld [vmem:[#allocation3 + $0x10] sm:$0xff]   ;;  %v2606_v36 = vshll.u32 %v13508_v29, 16 }
 0x301   : > { %12314 = vmatprep.mubr.msk.bf16.mxu1 %vm13805_vm8, %v13804_v12  ;;  %v2432_v35 = vsel %vm2254_vm4, %v2429_v4, %v2431_v32  ;;  %v2434_v41 = vsel %vm2254_vm4, %v2431_v32, %v2433_v39  ;;  %v2821_v4 = vrot.slane %v13505_v63, 3  ;;  %v2611_v32 = vshrl.u32 %v13509_v28, 16 }
 0x302   : > { %v1873_v33 = vsel %vm1691_vm15, %v1870_v3, %v1872_v31  ;;  %v1875_v40 = vsel %vm1691_vm15, %v1872_v31, %v1874_v38  ;;  %v2262_v3 = vrot.slane %v13504_v61, 2  ;;  %v2608_v44 = vrot.slane %v2606_v36, 3 }
 0x303   : > { %v2822_v19 = vsel %vm2817_vm5, %v2819_v55, %v2821_v4 }
 0x304   : > { %v2263_v6 = vsel %vm2254_vm4, %v2260_v54, %v2262_v3 }
 0x307   : > { %12373 = vmatmul.mubr.msk.bf16.gmra.mxu0 %vm696_vm10, %v2073_v43  ;;  %v13498_v43 = vld [vmem:[#allocation3 + $0x28] sm:$0xff]  }
 0x308   : > { %12315 = vmatmul.mubr.msk.bf16.gmra.mxu1 %vm696_vm10, %v1528_v42  ;;  %12376 = vmatprep.mubr.msk.bf16.mxu0 %vm13805_vm8, %v13804_v12  ;;  %v13497_v42 = vld [vmem:[#allocation3 + $0xc] sm:$0xff]   ;;  %v2435_v46 = vrot.slane %v13498_v43, 2 }
 0x309   : > { %12342 = vmatprep.mubr.msk.bf16.mxu1 %vm13805_vm8, %v13804_v12  ;;  %v2256_v45 = vrot.slane %v13497_v42, 2  ;;  %v13511_v42 = vld [vmem:[#allocation3 + $0x18] sm:$0xff]  }
 0x30a   : > { %v2436_v1 = vsel %vm2254_vm4, %v2433_v39, %v2435_v46  ;;  %v2613_v39 = vrot.slane %v2611_v32, 2  ;;  %v2620_v47 = vshrl.u32 %v13511_v42, 16 }
 0x30b   : > { %v2257_v50 = vsel %vm2254_vm4, %v2255_v48, %v2256_v45  ;;  %v2623_v48 = vshll.u32 %v13511_v42, 16 }
 0x30c   : > { %v2622_v9 = vrot.slane %v2620_v47, 2 }
 0x30f   : > { %12377 = vmatmul.mubr.msk.bf16.gmra.mxu0 %vm696_vm10, %v2082_v15 }
 0x310   : > { %12343 = vmatmul.mubr.msk.bf16.vlgmr.msra.gmra.mxu1 %vm696_vm10, %v1867_v11  ;;  %12380 = vmatprep.mubr.msk.bf16.mxu0 %vm13805_vm8, %v13804_v12  ;;  %v2259_v11 = vsel %vm2254_vm4, %v2256_v45, %v2258_v0 }
 0x311   : > { %12385 = vmatpush3.bf16.msra.mxu1 %v2282_v7  ;;  %12346 = vmatprep.mubr.msk.bf16.mxu1 %vm13805_vm8, %v13804_v12  ;;  %v2437_v7 = vrot.slane %v13500_v10, 2  ;;  %v2625_v10 = vrot.slane %v2623_v48, 3 }
 0x312   : > { %12428 = vmatprep.subr.bf16.mxu1 %v13804_v12 }
 0x313   : > { %v2438_v15 = vsel %vm2254_vm4, %v2435_v46, %v2437_v7  ;;  %v13513_v7 = vld [vmem:[#allocation3 + $0x20] sm:$0xff]  }
 0x314   : > { %v2629_v17 = vshrl.u32 %v13513_v7, 16  ;;  %v2632_v52 = vshll.u32 %v13513_v7, 16 }
 0x317   : > { %12381 = vmatmul.mubr.msk.bf16.gmra.mxu0 %vm696_vm10, %v2091_v58  ;;  %v2261_v58 = vsel %vm2254_vm4, %v2258_v0, %v2260_v54  ;;  %v13512_v0 = vld [vmem:[#allocation3 + $0x30] ss:$0 sps:$4 sm:$0x77]  }
 0x318   : > { %12347 = vmatmul.mubr.msk.bf16.gmra.mxu1 %vm696_vm10, %v1869_v57  ;;  %12408 = vmatprep.mubr.msk.bf16.mxu0 %vm13805_vm8, %v13804_v12  ;;  %v2818_v57 = vrot.slane %v13502_v53, 3 }
 0x319   : > { %12350 = vmatprep.mubr.msk.bf16.mxu1 %vm13805_vm8, %v13804_v12 }
 0x31a   : > { %v2820_v59 = vsel %vm2817_vm5, %v2818_v57, %v2819_v55  ;;  %v2631_v55 = vrot.slane %v2629_v17, 2  ;;  %v2634_v57 = vrot.slane %v2632_v52, 3 }
 0x31f   : > { %12409 = vmatmul.mubr.msk.bf16.vlgmr.msra.gmra.mxu0 %vm696_vm10, %v2430_v27  ;;  %v13507_v27 = vld [vmem:[#allocation3 + $0x20] sm:$0xff]  }
 0x320   : > { %12351 = vmatmul.mubr.msk.bf16.gmra.mxu1 %vm696_vm10, %v1871_v62  ;;  %12412 = vmatprep.mubr.msk.bf16.mxu0 %vm13805_vm8, %v13804_v12  ;;  %v13506_v62 = vld [vmem:[#allocation3 + $0x2c] ss:$0 sps:$4 sm:$0x33]   ;;  %v2823_v31 = vrot.slane %v13507_v27, 3 }
 0x321   : > { %12354 = vmatprep.mubr.msk.bf16.mxu1 %vm13805_vm8, %v13804_v12  ;;  %12451 = vmatpush3.bf16.msra.mxu0 %v2845_v30  ;;  %v2264_v30 = vrot.slane %v13506_v62, 2 }
 0x322   : > { %12494 = vmatprep.subr.bf16.mxu0 %v13804_v12  ;;  %v2824_v38 = vsel %vm2817_vm5, %v2821_v4, %v2823_v31 }
 0x323   : > { %v2265_v37 = vsel %vm2254_vm4, %v2262_v3, %v2264_v30 }
 0x327   : > { %12413 = vmatmul.mubr.msk.bf16.gmra.mxu0 %vm696_vm10, %v2432_v35  ;;  %v2603_v35 = vshrl.u32 %v13508_v29, 16 }
 0x328   : > { %12355 = vmatmul.mubr.msk.bf16.gmra.mxu1 %vm696_vm10, %v1873_v33  ;;  %12416 = vmatprep.mubr.msk.bf16.mxu0 %vm13805_vm8, %v13804_v12  ;;  %v2614_v33 = vshll.u32 %v13509_v28, 16 }
 0x329   : > { %12358 = vmatprep.mubr.msk.bf16.mxu1 %vm13805_vm8, %v13804_v12  ;;  %v2605_v43 = vrot.slane %v2603_v35, 2 }
 0x32f   : > { %12417 = vmatmul.mubr.msk.bf16.gmra.mxu0 %vm696_vm10, %v2434_v41  ;;  %v13510_v41 = vld [vmem:[#allocation3 + $0x28] sm:$0xff]  }
 0x330   : > { %12359 = vmatmul.mubr.msk.bf16.gmra.mxu1 %vm696_vm10, %v1875_v40  ;;  %12420 = vmatprep.mubr.msk.bf16.mxu0 %vm13805_vm8, %v13804_v12  ;;  %v2616_v40 = vrot.slane %v2614_v33, 3  ;;  %v2825_v46 = vrot.slane %v13510_v41, 3 }
 0x331   : > { %12386 = vmatprep.mubr.msk.bf16.mxu1 %vm13805_vm8, %v13804_v12 }
 0x332   : > { %v2617_v45 = vor.u32 %v2616_v40, %v2613_v39 }
 0x337   : > { %12421 = vmatmul.mubr.msk.bf16.gmra.mxu0 %vm696_vm10, %v2436_v1  ;;  %v2826_v1 = vsel %vm2817_vm5, %v2823_v31, %v2825_v46 }
 0x338   : > { %12387 = vmatmul.mubr.msk.bf16.vlgmr.msra.gmra.mxu1 %vm696_vm10, %v2257_v50  ;;  %12424 = vmatprep.mubr.msk.bf16.mxu0 %vm13805_vm8, %v13804_v12 }
 0x339   : > { %12429 = vmatpush3.bf16.msra.mxu1 %v2671_v49  ;;  %12390 = vmatprep.mubr.msk.bf16.mxu1 %vm13805_vm8, %v13804_v12  ;;  %v2609_v49 = vor.u32 %v2608_v44, %v2605_v43 }
 0x33a   : > { %12472 = vmatprep.subr.bf16.mxu1 %v13804_v12 }
 0x33b   : > { %v2618_v50 = vsel %vm2601_vm6, %v2609_v49, %v2617_v45 }
 0x33f   : > { %12425 = vmatmul.mubr.msk.bf16.gmra.mxu0 %vm696_vm10, %v2438_v15  ;;  %v2827_v15 = vrot.slane %v13512_v0, 3 }
 0x340   : > { %12391 = vmatmul.mubr.msk.bf16.gmra.mxu1 %vm696_vm10, %v2259_v11  ;;  %12452 = vmatprep.mubr.msk.bf16.mxu0 %vm13805_vm8, %v13804_v12  ;;  %v2626_v11 = vor.u32 %v2625_v10, %v2622_v9 }
 0x341   : > { %12394 = vmatprep.mubr.msk.bf16.mxu1 %vm13805_vm8, %v13804_v12  ;;  %v2828_v54 = vsel %vm2817_vm5, %v2825_v46, %v2827_v15 }
 0x342   : > { %v2627_v53 = vsel %vm2601_vm6, %v2617_v45, %v2626_v11 }
 0x347   : > { %12453 = vmatmul.mubr.msk.bf16.vlgmr.msra.gmra.mxu0 %vm696_vm10, %v2820_v59  ;;  %v2635_v59 = vor.u32 %v2634_v57, %v2631_v55 }
 0x348   : > { %12395 = vmatmul.mubr.msk.bf16.gmra.mxu1 %vm696_vm10, %v2261_v58  ;;  %12456 = vmatprep.mubr.msk.bf16.mxu0 %vm13805_vm8, %v13804_v12  ;;  %v13514_v58 = vld [vmem:[#allocation3 + $0x28] sm:$0xff]  }
 0x349   : > { %12398 = vmatprep.mubr.msk.bf16.mxu1 %vm13805_vm8, %v13804_v12  ;;  %v2638_v61 = vshrl.u32 %v13514_v58, 16  ;;  %v2641_v63 = vshll.u32 %v13514_v58, 16  ;;  %v2636_v3 = vsel %vm2601_vm6, %v2626_v11, %v2635_v59 }
 0x34b   : > { %v2640_v4 = vrot.slane %v2638_v61, 2 }
 0x34f   : > { %12457 = vmatmul.mubr.msk.bf16.gmra.mxu0 %vm696_vm10, %v2822_v19  ;;  %v13515_v19 = vld [vmem:[#allocation3 + $0x30] ss:$0 sps:$4 sm:$0x77]  }
 0x350   : > { %12399 = vmatmul.mubr.msk.bf16.gmra.mxu1 %vm696_vm10, %v2263_v6  ;;  %12460 = vmatprep.mubr.msk.bf16.mxu0 %vm13805_vm8, %v13804_v12  ;;  %v2643_v6 = vrot.slane %v2641_v63, 3  ;;  %v2647_v27 = vshrl.u32 %v13515_v19, 16  ;;  %v2650_v28 = vshll.u32 %v13515_v19, 16 }
 0x351   : > { %12402 = vmatprep.mubr.msk.bf16.mxu1 %vm13805_vm8, %v13804_v12 }
 0x352   : > { %v2644_v62 = vor.u32 %v2643_v6, %v2640_v4  ;;  %v2649_v30 = vrot.slane %v2647_v27, 2  ;;  %v2652_v31 = vrot.slane %v2650_v28, 3 }
 0x354   : > { %v2645_v29 = vsel %vm2601_vm6, %v2635_v59, %v2644_v62  ;;  %v2653_v32 = vor.u32 %v2652_v31, %v2649_v30 }
 0x356   : > { %v2654_v33 = vsel %vm2601_vm6, %v2644_v62, %v2653_v32 }
 0x357   : > { %12461 = vmatmul.mubr.msk.bf16.gmra.mxu0 %vm696_vm10, %v2824_v38 }
 0x358   : > { %12403 = vmatmul.mubr.msk.bf16.gmra.mxu1 %vm696_vm10, %v2265_v37  ;;  %12464 = vmatprep.mubr.msk.bf16.mxu0 %vm13805_vm8, %v13804_v12 }
 0x359   : > { %12430 = vmatprep.mubr.msk.bf16.mxu1 %vm13805_vm8, %v13804_v12 }
 0x35f   : > { %12465 = vmatmul.mubr.msk.bf16.gmra.mxu0 %vm696_vm10, %v2826_v1  ;;  %v2992_v1 = vld [vmem:[%s16489_s8] sm:$0xf] }
 0x360   : > { %12431 = vmatmul.mubr.msk.bf16.vlgmr.msra.gmra.mxu1 %vm696_vm10, %v2618_v50  ;;  %12468 = vmatprep.mubr.msk.bf16.mxu0 %vm13805_vm8, %v13804_v12  ;;  %v3016_v0 = vsel %vm1356_vm12, %v2992_v1, 0 }
 0x361   : > { %12434 = vmatprep.mubr.msk.bf16.mxu1 %vm13805_vm8, %v13804_v12  ;;  %12473 = vmatpush3.bf16.msra.mxu1 %v3016_v0 }
 0x362   : > { %12518 = vmatprep.subr.bf16.mxu1 %v13804_v12 }
 0x367   : > { %12469 = vmatmul.mubr.msk.bf16.gmra.mxu0 %vm696_vm10, %v2828_v54 }
 0x368   : > { %12435 = vmatmul.mubr.msk.bf16.gmra.mxu1 %vm696_vm10, %v2627_v53  ;;  %12498 = vmatprep.mubr.msk.bf16.mxu0 %vm13805_vm8, %v13804_v12 }
 0x369   : > { %12438 = vmatprep.mubr.msk.bf16.mxu1 %vm13805_vm8, %v13804_v12 }
 0x370   : > { %12439 = vmatmul.mubr.msk.bf16.gmra.mxu1 %vm696_vm10, %v2636_v3 }
 0x371   : > { %12442 = vmatprep.mubr.msk.bf16.mxu1 %vm13805_vm8, %v13804_v12 }
 0x378   : > { %12443 = vmatmul.mubr.msk.bf16.gmra.mxu1 %vm696_vm10, %v2645_v29 }
 0x379   : > { %12446 = vmatprep.mubr.msk.bf16.mxu1 %vm13805_vm8, %v13804_v12 }
 0x37f   : > { %v1394_v35 = vpop.f32.mrf.mxu0 }
 0x380   : > { %12447 = vmatmul.mubr.msk.bf16.gmra.mxu1 %vm696_vm10, %v2654_v33  ;;  %1433 = vst.msk [vmem:[#allocation2] sm:$0xff] %vm696_vm10, %v1394_v35  ;;  %v13516_v33 = vld [vmem:[%s16485_s4 + $0x18] sm:$0xff]  }
 0x381   : > { %12474 = vmatprep.mubr.msk.bf16.mxu1 %vm13805_vm8, %v13804_v12  ;;  %v12278_v36 = vpop.f32.mrf.mxu0  ;;  %12495 = vmatpush3.bf16.msra.mxu0 %v13516_v33 }
 0x382   : > { %12496 = vmatprep.subr.bf16.mxu0 %v13804_v12 }
 0x383   : > { %v1397_v37 = vpop.f32.mrf.mxu0 }
 0x384   : > { %1434 = vst.msk [vmem:[#allocation2 + $0x8] sm:$0xff] %vm696_vm10, %v1397_v37 }
 0x385   : > { %v12279_v38 = vpop.f32.mrf.mxu0 }
 0x387   : > { %v1402_v39 = vpop.f32.mrf.mxu0  ;;  %v1620_v6 = vld [vmem:[#allocation2] sm:$0xff] }
 0x388   : > { %1435 = vst.msk [vmem:[#allocation2 + $0x10] sm:$0xff] %vm696_vm10, %v1402_v39 }
 0x389   : > { %v12282_v40 = vpop.f32.mrf.mxu0 }
 0x38b   : > { %v1405_v41 = vpop.f32.mrf.mxu0  ;;  %v1621_v30 = vld [vmem:[#allocation2 + $0x8] sm:$0xff] }
 0x38c   : > { %1436 = vst.msk [vmem:[#allocation2 + $0x18] sm:$0xff] %vm696_vm10, %v1405_v41 }
 0x38d   : > { %v12283_v42 = vpop.f32.mrf.mxu0 }
 0x38f   : > { %v1410_v43 = vpop.f32.mrf.mxu1  ;;  %v1755_v44 = vpop.f32.mrf.mxu0  ;;  %v1622_v38 = vld [vmem:[#allocation2 + $0x10] sm:$0xff] }
 0x390   : > { %1437 = vst.msk [vmem:[#allocation2 + $0x20] sm:$0xff] %vm696_vm10, %v1410_v43 }
 0x391   : > { %v12286_v45 = vpop.f32.mrf.mxu1  ;;  %v12322_v46 = vpop.f32.mrf.mxu0 }
 0x393   : > { %v1413_v47 = vpop.f32.mrf.mxu1  ;;  %v1758_v48 = vpop.f32.mrf.mxu0 }
 0x394   : > { %1438 = vst.msk [vmem:[#allocation2 + $0x28] sm:$0xff] %vm696_vm10, %v1413_v47  ;;  %v1623_v47 = vld [vmem:[#allocation2 + $0x18] sm:$0xff] }
 0x395   : > { %v12287_v49 = vpop.f32.mrf.mxu1  ;;  %v12323_v50 = vpop.f32.mrf.mxu0 }
 0x397   : > { %v14460_v10 = vpop.f32.mrf.mxu0 }
 0x398   : > { %v1418_v9 = vpop.f32.mrf.mxu1 }
 0x399   : > { %1439 = vst.msk [vmem:[#allocation2 + $0x30] sm:$0xff] %vm696_vm10, %v1418_v9  ;;  %v12326_v11 = vpop.f32.mrf.mxu0 }
 0x39a   : > { %v12290_v7 = vpop.f32.mrf.mxu1 }
 0x39b   : > { %v14465_v17 = vpop.f32.mrf.mxu0 }
 0x39c   : > { %v1421_v15 = vpop.f32.mrf.mxu1 }
 0x39d   : > { %1440 = vst.msk [vmem:[#allocation2 + $0x38] sm:$0xff] %vm696_vm10, %v1421_v15  ;;  %v12327_v53 = vpop.f32.mrf.mxu0  ;;  %v1624_v15 = vld [vmem:[#allocation2 + $0x20] sm:$0xff] }
 0x39e   : > { %v12291_v52 = vpop.f32.mrf.mxu1 }
 0x39f   : > { %v14468_v55 = vpop.f32.mrf.mxu0 }
 0x3a0   : > { %v1426_v54 = vpop.f32.mrf.mxu1 }
 0x3a1   : > { %1441 = vst.msk [vmem:[#allocation2 + $0x40] sm:$0xff] %vm696_vm10, %v1426_v54  ;;  %v12330_v58 = vpop.f32.mrf.mxu0 }
 0x3a2   : > { %v12294_v57 = vpop.f32.mrf.mxu1 }
 0x3a3   : > { %v14471_v61 = vpop.f32.mrf.mxu0 }
 0x3a4   : > { %v1429_v59 = vpop.f32.mrf.mxu1 }
 0x3a5   : > { %1442 = vst.msk [vmem:[#allocation2 + $0x48] sm:$0xff] %vm696_vm10, %v1429_v59  ;;  %v12331_v3 = vpop.f32.mrf.mxu0 }
 0x3a6   : > { %v12295_v63 = vpop.f32.mrf.mxu1 }
 0x3a7   : > { %v14474_v19 = vpop.f32.mrf.mxu0  ;;  %v1625_v63 = vld [vmem:[#allocation2 + $0x28] sm:$0xff] }
 0x3a8   : > { %v1581_v4 = vpop.f32.mrf.mxu1 }
 0x3a9   : > { %v1630_v62 = vadd.f32 %v1620_v6, %v1581_v4  ;;  %v12334_v28 = vpop.f32.mrf.mxu0 }
 0x3aa   : > { %v12300_v27 = vpop.f32.mrf.mxu1 }
 0x3ab   : > { %1640 = vst.msk [vmem:[#allocation2] sm:$0xff] %vm696_vm10, %v1630_v62  ;;  %v14477_v31 = vpop.f32.mrf.mxu0 }
 0x3ac   : > { %v1584_v29 = vpop.f32.mrf.mxu1 }
 0x3ad   : > { %v1631_v32 = vadd.f32 %v1621_v30, %v1584_v29  ;;  %v12335_v36 = vpop.f32.mrf.mxu0  ;;  %v1626_v29 = vld [vmem:[#allocation2 + $0x30] sm:$0xff] }
 0x3ae   : > { %v12301_v35 = vpop.f32.mrf.mxu1 }
 0x3af   : > { %1641 = vst.msk [vmem:[#allocation2 + $0x8] sm:$0xff] %vm696_vm10, %v1631_v32  ;;  %v14483_v39 = vpop.f32.mrf.mxu0 }
 0x3b0   : > { %v1589_v37 = vpop.f32.mrf.mxu1 }
 0x3b1   : > { %v1632_v40 = vadd.f32 %v1622_v38, %v1589_v37  ;;  %v12338_v42 = vpop.f32.mrf.mxu0  ;;  %v1627_v38 = vld [vmem:[#allocation2 + $0x38] sm:$0xff] }
 0x3b2   : > { %v12304_v41 = vpop.f32.mrf.mxu1  ;;  %v1794_v43 = vld [vmem:[#allocation2] sm:$0xff] }
 0x3b3   : > { %1642 = vst.msk [vmem:[#allocation2 + $0x10] sm:$0xff] %vm696_vm10, %v1632_v40  ;;  %v1804_v45 = vadd.f32 %v1794_v43, %v1755_v44  ;;  %v14487_v49 = vpop.f32.mrf.mxu0 }
 0x3b4   : > { %v1592_v46 = vpop.f32.mrf.mxu1 }
 0x3b5   : > { %v1633_v50 = vadd.f32 %v1623_v47, %v1592_v46  ;;  %1814 = vst.msk [vmem:[#allocation2] sm:$0xff] %vm696_vm10, %v1804_v45  ;;  %v12339_v9 = vpop.f32.mrf.mxu0 }
 0x3b6   : > { %v12305_v1 = vpop.f32.mrf.mxu1  ;;  %v1795_v0 = vld [vmem:[#allocation2 + $0x8] sm:$0xff] }
 0x3b7   : > { %1643 = vst.msk [vmem:[#allocation2 + $0x18] sm:$0xff] %vm696_vm10, %v1633_v50  ;;  %v1805_v7 = vadd.f32 %v1795_v0, %v1758_v48  ;;  %v14491_v52 = vpop.f32.mrf.mxu0 }
 0x3b8   : > { %v1597_v11 = vpop.f32.mrf.mxu1 }
 0x3b9   : > { %v1634_v53 = vadd.f32 %v1624_v15, %v1597_v11  ;;  %1815 = vst.msk [vmem:[#allocation2 + $0x8] sm:$0xff] %vm696_vm10, %v1805_v7  ;;  %v12366_v54 = vpop.f32.mrf.mxu0 }
 0x3ba   : > { %v12308_v44 = vpop.f32.mrf.mxu1  ;;  %v1796_v57 = vld [vmem:[#allocation2 + $0x10] sm:$0xff]  ;;  %v11159_v54 = vld [vmem:[%s13998_s11 + $0x28] sm:$0xff]  }
 0x3bb   : > { %1644 = vst.msk [vmem:[#allocation2 + $0x20] sm:$0xff] %vm696_vm10, %v1634_v53  ;;  %v1806_v58 = vadd.f32 %v1796_v57, %v14460_v10  ;;  %v14496_v3 = vpop.f32.mrf.mxu0  ;;  %v13517_v10 = vld [vmem:[%s16485_s4 + $0x10] sm:$0xff]   ;;  %v1629_v53 = vld [vmem:[#allocation2 + $0x48] sm:$0xff] }
 0x3bc   : > { %v1600_v59 = vpop.f32.mrf.mxu1  ;;  %12497 = vmatpush3.bf16.msra.mxu0 %v13517_v10 }
 0x3bd   : > { %v1635_v4 = vadd.f32 %v1625_v63, %v1600_v59  ;;  %1816 = vst.msk [vmem:[#allocation2 + $0x10] sm:$0xff] %vm696_vm10, %v1806_v58  ;;  %v12367_v6 = vpop.f32.mrf.mxu0  ;;  %12542 = vmatprep.subr.bf16.mxu0 %v13804_v12 }
 0x3be   : > { %v12309_v48 = vpop.f32.mrf.mxu1  ;;  %v1797_v62 = vld [vmem:[#allocation2 + $0x18] sm:$0xff] }
 0x3bf   : > { %1645 = vst.msk [vmem:[#allocation2 + $0x28] sm:$0xff] %vm696_vm10, %v1635_v4  ;;  %v1807_v27 = vadd.f32 %v1797_v62, %v14465_v17  ;;  %v14501_v30 = vpop.f32.mrf.mxu0  ;;  %v1967_v48 = vld [vmem:[#allocation2] sm:$0xff]  ;;  %12499 = vmatmul.mubr.msk.bf16.vlgmr.msra.gmra.mxu0 %vm607_vm9, %v11159_v54  ;;  %v13520_v62 = vld [vmem:[%s16485_s4 + $0x28] sm:$0xff]  }
 0x3c0   : > { %v1605_v28 = vpop.f32.mrf.mxu1  ;;  %12502 = vmatprep.mubr.msk.bf16.mxu0 %vm13805_vm8, %v13804_v12  ;;  %12543 = vmatpush3.bf16.msra.mxu0 %v13520_v62 }
 0x3c1   : > { %v1636_v32 = vadd.f32 %v1626_v29, %v1605_v28  ;;  %1817 = vst.msk [vmem:[#allocation2 + $0x18] sm:$0xff] %vm696_vm10, %v1807_v27  ;;  %v12370_v35 = vpop.f32.mrf.mxu0  ;;  %v11161_v27 = vld [vmem:[%s13998_s11 + $0x30] sm:$0xff]   ;;  %12544 = vmatprep.subr.bf16.mxu0 %v13804_v12 }
 0x3c2   : > { %v12312_v33 = vpop.f32.mrf.mxu1  ;;  %v1798_v36 = vld [vmem:[#allocation2 + $0x20] sm:$0xff] }
 0x3c3   : > { %1646 = vst.msk [vmem:[#allocation2 + $0x30] sm:$0xff] %vm696_vm10, %v1636_v32  ;;  %v1808_v37 = vadd.f32 %v1798_v36, %v14468_v55  ;;  %v14509_v40 = vpop.f32.mrf.mxu0  ;;  %v1628_v55 = vld [vmem:[#allocation2 + $0x40] sm:$0xff]  ;;  %v1968_v33 = vld [vmem:[#allocation2 + $0x8] sm:$0xff] }
 0x3c4   : > { %v1608_v17 = vpop.f32.mrf.mxu1 }
 0x3c5   : > { %v1637_v41 = vadd.f32 %v1627_v38, %v1608_v17  ;;  %1818 = vst.msk [vmem:[#allocation2 + $0x20] sm:$0xff] %vm696_vm10, %v1808_v37  ;;  %v12371_v43 = vpop.f32.mrf.mxu0 }
 0x3c6   : > { %v12313_v42 = vpop.f32.mrf.mxu1  ;;  %v1799_v45 = vld [vmem:[#allocation2 + $0x28] sm:$0xff]  ;;  %v1969_v43 = vld [vmem:[#allocation2 + $0x10] sm:$0xff] }
 0x3c7   : > { %1647 = vst.msk [vmem:[#allocation2 + $0x38] sm:$0xff] %vm696_vm10, %v1637_v41  ;;  %v1809_v46 = vadd.f32 %v1799_v45, %v14471_v61  ;;  %v14515_v50 = vpop.f32.mrf.mxu0  ;;  %12503 = vmatmul.mubr.msk.bf16.gmra.mxu0 %vm607_vm9, %v11161_v27 }
 0x3c8   : > { %v1613_v47 = vpop.f32.mrf.mxu1  ;;  %12506 = vmatprep.mubr.msk.bf16.mxu0 %vm13805_vm8, %v13804_v12 }
 0x3c9   : > { %v1638_v1 = vadd.f32 %v1628_v55, %v1613_v47  ;;  %1819 = vst.msk [vmem:[#allocation2 + $0x28] sm:$0xff] %vm696_vm10, %v1809_v46  ;;  %v12374_v0 = vpop.f32.mrf.mxu0  ;;  %v11163_v47 = vld [vmem:[%s13998_s11 + $0x38] sm:$0xff]  }
 0x3ca   : > { %v12316_v9 = vpop.f32.mrf.mxu1  ;;  %v1800_v7 = vld [vmem:[#allocation2 + $0x30] sm:$0xff] }
 0x3cb   : > { %1648 = vst.msk [vmem:[#allocation2 + $0x40] sm:$0xff] %vm696_vm10, %v1638_v1  ;;  %v1810_v11 = vadd.f32 %v1800_v7, %v14474_v19  ;;  %v14520_v44 = vpop.f32.mrf.mxu0  ;;  %v1970_v7 = vld [vmem:[#allocation2 + $0x18] sm:$0xff] }
 0x3cc   : > { %v1616_v15 = vpop.f32.mrf.mxu1 }
 0x3cd   : > { %v1639_v61 = vadd.f32 %v1629_v53, %v1616_v15  ;;  %1820 = vst.msk [vmem:[#allocation2 + $0x30] sm:$0xff] %vm696_vm10, %v1810_v11  ;;  %v12375_v58 = vpop.f32.mrf.mxu0 }
 0x3ce   : > { %v12317_v57 = vpop.f32.mrf.mxu1  ;;  %v1801_v59 = vld [vmem:[#allocation2 + $0x38] sm:$0xff] }
 0x3cf   : > { %1649 = vst.msk [vmem:[#allocation2 + $0x48] sm:$0xff] %vm696_vm10, %v1639_v61  ;;  %v1811_v63 = vadd.f32 %v1801_v59, %v14477_v31  ;;  %v14526_v6 = vpop.f32.mrf.mxu0  ;;  %v1971_v59 = vld [vmem:[#allocation2 + $0x20] sm:$0xff]  ;;  %12507 = vmatmul.mubr.msk.bf16.gmra.mxu0 %vm607_vm9, %v11163_v47 }
 0x3d0   : > { %v1928_v4 = vpop.f32.mrf.mxu1  ;;  %12510 = vmatprep.mubr.msk.bf16.mxu0 %vm13805_vm8, %v13804_v12 }
 0x3d1   : > { %v1977_v19 = vadd.f32 %v1967_v48, %v1928_v4  ;;  %1821 = vst.msk [vmem:[#allocation2 + $0x38] sm:$0xff] %vm696_vm10, %v1811_v63  ;;  %v12378_v29 = vpop.f32.mrf.mxu0  ;;  %v11165_v4 = vld [vmem:[%s13998_s11 + $0x40] sm:$0xff]  }
 0x3d2   : > { %v12344_v28 = vpop.f32.mrf.mxu1  ;;  %v1802_v31 = vld [vmem:[#allocation2 + $0x40] sm:$0xff] }
 0x3d3   : > { %1987 = vst.msk [vmem:[#allocation2] sm:$0xff] %vm696_vm10, %v1977_v19  ;;  %v1812_v32 = vadd.f32 %v1802_v31, %v14483_v39  ;;  %v14538_v35 = vpop.f32.mrf.mxu0  ;;  %v13525_v39 = vld [vmem:[%s16485_s4 + $0x20] sm:$0xff]   ;;  %v1972_v28 = vld [vmem:[#allocation2 + $0x28] sm:$0xff] }
 0x3d4   : > { %v1931_v10 = vpop.f32.mrf.mxu1  ;;  %12545 = vmatpush3.bf16.msra.mxu0 %v13525_v39 }
 0x3d5   : > { %v1978_v36 = vadd.f32 %v1968_v33, %v1931_v10  ;;  %1822 = vst.msk [vmem:[#allocation2 + $0x40] sm:$0xff] %vm696_vm10, %v1812_v32  ;;  %v12379_v17 = vpop.f32.mrf.mxu0  ;;  %12588 = vmatprep.subr.bf16.mxu0 %v13804_v12 }
 0x3d6   : > { %v12345_v37 = vpop.f32.mrf.mxu1  ;;  %v1803_v38 = vld [vmem:[#allocation2 + $0x48] sm:$0xff]  ;;  %v1973_v17 = vld [vmem:[#allocation2 + $0x30] sm:$0xff] }
 0x3d7   : > { %1988 = vst.msk [vmem:[#allocation2 + $0x8] sm:$0xff] %vm696_vm10, %v1978_v36  ;;  %v1813_v41 = vadd.f32 %v1803_v38, %v14487_v49  ;;  %v14547_v45 = vpop.f32.mrf.mxu0  ;;  %12511 = vmatmul.mubr.msk.bf16.gmra.mxu0 %vm607_vm9, %v11165_v4 }
 0x3d8   : > { %v1936_v42 = vpop.f32.mrf.mxu1  ;;  %12514 = vmatprep.mubr.msk.bf16.mxu0 %vm13805_vm8, %v13804_v12  ;;  %v1974_v47 = vld [vmem:[#allocation2 + $0x38] sm:$0xff] }
 0x3d9   : > { %v1979_v46 = vadd.f32 %v1969_v43, %v1936_v42  ;;  %1823 = vst.msk [vmem:[#allocation2 + $0x48] sm:$0xff] %vm696_vm10, %v1813_v41  ;;  %v12382_v49 = vpop.f32.mrf.mxu0  ;;  %v11167_v41 = vld [vmem:[%s13998_s11 + $0x48] sm:$0xff]  }
 0x3da   : > { %v12348_v55 = vpop.f32.mrf.mxu1  ;;  %v2183_v1 = vld [vmem:[#allocation2] sm:$0xff] }
 0x3db   : > { %1989 = vst.msk [vmem:[#allocation2 + $0x10] sm:$0xff] %vm696_vm10, %v1979_v46  ;;  %v2193_v9 = vadd.f32 %v2183_v1, %v14491_v52  ;;  %v14557_v11 = vpop.f32.mrf.mxu0 }
 0x3dc   : > { %v1939_v0 = vpop.f32.mrf.mxu1 }
 0x3dd   : > { %v1980_v15 = vadd.f32 %v1970_v7, %v1939_v0  ;;  %2203 = vst.msk [vmem:[#allocation2] sm:$0xff] %vm696_vm10, %v2193_v9  ;;  %v12383_v61 = vpop.f32.mrf.mxu0 }
 0x3de   : > { %v12349_v53 = vpop.f32.mrf.mxu1  ;;  %v2184_v54 = vld [vmem:[#allocation2 + $0x8] sm:$0xff] }
 0x3df   : > { %1990 = vst.msk [vmem:[#allocation2 + $0x18] sm:$0xff] %vm696_vm10, %v1980_v15  ;;  %v2194_v57 = vadd.f32 %v2184_v54, %v14496_v3  ;;  %v14562_v63 = vpop.f32.mrf.mxu0  ;;  %v1975_v53 = vld [vmem:[#allocation2 + $0x40] sm:$0xff]  ;;  %12515 = vmatmul.mubr.msk.bf16.gmra.mxu0 %vm607_vm9, %v11167_v41 }
 0x3e0   : > { %v1944_v58 = vpop.f32.mrf.mxu1  ;;  %12546 = vmatprep.mubr.msk.bf16.mxu0 %vm13805_vm8, %v13804_v12 }
 0x3e1   : > { %v1981_v52 = vadd.f32 %v1971_v59, %v1944_v58  ;;  %2204 = vst.msk [vmem:[#allocation2 + $0x8] sm:$0xff] %vm696_vm10, %v2194_v57  ;;  %v12410_v19 = vpop.f32.mrf.mxu0 }
 0x3e2   : > { %v12352_v48 = vpop.f32.mrf.mxu1  ;;  %v2185_v62 = vld [vmem:[#allocation2 + $0x10] sm:$0xff] }
 0x3e3   : > { %1991 = vst.msk [vmem:[#allocation2 + $0x20] sm:$0xff] %vm696_vm10, %v1981_v52  ;;  %v2195_v3 = vadd.f32 %v2185_v62, %v14501_v30  ;;  %v14571_v29 = vpop.f32.mrf.mxu0  ;;  %v1976_v52 = vld [vmem:[#allocation2 + $0x48] sm:$0xff]  ;;  %v13528_v48 = vld [vmem:[%s13998_s11 + $0x50] sm:$0xff]  }
 0x3e4   : > { %v1947_v27 = vpop.f32.mrf.mxu1 }
 0x3e5   : > { %v1982_v31 = vadd.f32 %v1972_v28, %v1947_v27  ;;  %2205 = vst.msk [vmem:[#allocation2 + $0x10] sm:$0xff] %vm696_vm10, %v2195_v3  ;;  %v12411_v10 = vpop.f32.mrf.mxu0 }
 0x3e6   : > { %v12353_v32 = vpop.f32.mrf.mxu1  ;;  %v2186_v33 = vld [vmem:[#allocation2 + $0x18] sm:$0xff] }
 0x3e7   : > { %1992 = vst.msk [vmem:[#allocation2 + $0x28] sm:$0xff] %vm696_vm10, %v1982_v31  ;;  %v2196_v36 = vadd.f32 %v2186_v33, %v14509_v40  ;;  %v14576_v38 = vpop.f32.mrf.mxu0  ;;  %v2357_v32 = vld [vmem:[#allocation2] sm:$0xff]  ;;  %12547 = vmatmul.mubr.msk.bf16.vlgmr.msra.gmra.mxu0 %vm607_vm9, %v13528_v48 }
 0x3e8   : > { %v1952_v37 = vpop.f32.mrf.mxu1  ;;  %12550 = vmatprep.mubr.msk.bf16.mxu0 %vm13805_vm8, %v13804_v12 }
 0x3e9   : > { %v1983_v30 = vadd.f32 %v1973_v17, %v1952_v37  ;;  %2206 = vst.msk [vmem:[#allocation2 + $0x18] sm:$0xff] %vm696_vm10, %v2196_v36  ;;  %v12414_v42 = vpop.f32.mrf.mxu0 }
 0x3ea   : > { %v12356_v39 = vpop.f32.mrf.mxu1  ;;  %v2187_v43 = vld [vmem:[#allocation2 + $0x20] sm:$0xff] }
 0x3eb   : > { %1993 = vst.msk [vmem:[#allocation2 + $0x30] sm:$0xff] %vm696_vm10, %v1983_v30  ;;  %v2197_v40 = vadd.f32 %v2187_v43, %v14515_v50  ;;  %v14585_v55 = vpop.f32.mrf.mxu0  ;;  %v2358_v30 = vld [vmem:[#allocation2 + $0x8] sm:$0xff]  ;;  %v13530_v39 = vld [vmem:[%s13998_s11 + $0x58] sm:$0xff]  }
 0x3ec   : > { %v1955_v46 = vpop.f32.mrf.mxu1 }
 0x3ed   : > { %v1984_v49 = vadd.f32 %v1974_v47, %v1955_v46  ;;  %2207 = vst.msk [vmem:[#allocation2 + $0x20] sm:$0xff] %vm696_vm10, %v2197_v40  ;;  %v12415_v9 = vpop.f32.mrf.mxu0 }
 0x3ee   : > { %v12357_v1 = vpop.f32.mrf.mxu1  ;;  %v2188_v0 = vld [vmem:[#allocation2 + $0x28] sm:$0xff] }
 0x3ef   : > { %1994 = vst.msk [vmem:[#allocation2 + $0x38] sm:$0xff] %vm696_vm10, %v1984_v49  ;;  %v2198_v7 = vadd.f32 %v2188_v0, %v14520_v44  ;;  %v14590_v61 = vpop.f32.mrf.mxu0  ;;  %v2359_v1 = vld [vmem:[#allocation2 + $0x10] sm:$0xff]  ;;  %12551 = vmatmul.mubr.msk.bf16.gmra.mxu0 %vm607_vm9, %v13530_v39 }
 0x3f0   : > { %v1960_v15 = vpop.f32.mrf.mxu1  ;;  %12554 = vmatprep.mubr.msk.bf16.mxu0 %vm13805_vm8, %v13804_v12 }
 0x3f1   : > { %v1985_v50 = vadd.f32 %v1975_v53, %v1960_v15  ;;  %2208 = vst.msk [vmem:[#allocation2 + $0x28] sm:$0xff] %vm696_vm10, %v2198_v7  ;;  %v12418_v57 = vpop.f32.mrf.mxu0 }
 0x3f2   : > { %v12360_v54 = vpop.f32.mrf.mxu1  ;;  %v2189_v58 = vld [vmem:[#allocation2 + $0x30] sm:$0xff]  ;;  %v13532_v57 = vld [vmem:[%s13998_s11 + $0x60] sm:$0xff]  }
 0x3f3   : > { %1995 = vst.msk [vmem:[#allocation2 + $0x40] sm:$0xff] %vm696_vm10, %v1985_v50  ;;  %v2199_v44 = vadd.f32 %v2189_v58, %v14526_v6  ;;  %v14598_v4 = vpop.f32.mrf.mxu0  ;;  %v2360_v50 = vld [vmem:[#allocation2 + $0x18] sm:$0xff] }
 0x3f4   : > { %v1963_v59 = vpop.f32.mrf.mxu1 }
 0x3f5   : > { %v1986_v19 = vadd.f32 %v1976_v52, %v1963_v59  ;;  %2209 = vst.msk [vmem:[#allocation2 + $0x30] sm:$0xff] %vm696_vm10, %v2199_v44  ;;  %v12419_v3 = vpop.f32.mrf.mxu0 }
 0x3f6   : > { %v12361_v62 = vpop.f32.mrf.mxu1  ;;  %v2190_v27 = vld [vmem:[#allocation2 + $0x38] sm:$0xff] }
 0x3f7   : > { %1996 = vst.msk [vmem:[#allocation2 + $0x48] sm:$0xff] %vm696_vm10, %v1986_v19  ;;  %v2200_v28 = vadd.f32 %v2190_v27, %v14538_v35  ;;  %v14604_v10 = vpop.f32.mrf.mxu0  ;;  %v2361_v62 = vld [vmem:[#allocation2 + $0x20] sm:$0xff]  ;;  %12555 = vmatmul.mubr.msk.bf16.gmra.mxu0 %vm607_vm9, %v13532_v57 }
 0x3f8   : > { %v2318_v31 = vpop.f32.mrf.mxu1  ;;  %12558 = vmatprep.mubr.msk.bf16.mxu0 %vm13805_vm8, %v13804_v12 }
 0x3f9   : > { %v2367_v6 = vadd.f32 %v2357_v32, %v2318_v31  ;;  %2210 = vst.msk [vmem:[#allocation2 + $0x38] sm:$0xff] %vm696_vm10, %v2200_v28  ;;  %v12422_v36 = vpop.f32.mrf.mxu0 }
 0x3fa   : > { %v12388_v33 = vpop.f32.mrf.mxu1  ;;  %v2191_v37 = vld [vmem:[#allocation2 + $0x40] sm:$0xff]  ;;  %v13534_v36 = vld [vmem:[%s13998_s11 + $0x68] sm:$0xff]  }
 0x3fb   : > { %2377 = vst.msk [vmem:[#allocation2] sm:$0xff] %vm696_vm10, %v2367_v6  ;;  %v2201_v35 = vadd.f32 %v2191_v37, %v14547_v45  ;;  %v14612_v41 = vpop.f32.mrf.mxu0  ;;  %v2362_v6 = vld [vmem:[#allocation2 + $0x28] sm:$0xff] }
 0x3fc   : > { %v2321_v17 = vpop.f32.mrf.mxu1 }
 0x3fd   : > { %v2368_v42 = vadd.f32 %v2358_v30, %v2321_v17  ;;  %2211 = vst.msk [vmem:[#allocation2 + $0x40] sm:$0xff] %vm696_vm10, %v2201_v35  ;;  %v12423_v40 = vpop.f32.mrf.mxu0 }
 0x3fe   : > { %v12389_v43 = vpop.f32.mrf.mxu1  ;;  %v2192_v46 = vld [vmem:[#allocation2 + $0x48] sm:$0xff] }
 0x3ff   : > { %2378 = vst.msk [vmem:[#allocation2 + $0x8] sm:$0xff] %vm696_vm10, %v2368_v42  ;;  %v2202_v47 = vadd.f32 %v2192_v46, %v14557_v11  ;;  %v14618_v9 = vpop.f32.mrf.mxu0  ;;  %v2363_v43 = vld [vmem:[#allocation2 + $0x30] sm:$0xff]  ;;  %12559 = vmatmul.mubr.msk.bf16.gmra.mxu0 %vm607_vm9, %v13534_v36 }
 0x400   : > { %v2326_v49 = vpop.f32.mrf.mxu1  ;;  %12562 = vmatprep.mubr.msk.bf16.mxu0 %vm13805_vm8, %v13804_v12 }
 0x401   : > { %v2369_v45 = vadd.f32 %v2359_v1, %v2326_v49  ;;  %2212 = vst.msk [vmem:[#allocation2 + $0x48] sm:$0xff] %vm696_vm10, %v2202_v47  ;;  %v12426_v7 = vpop.f32.mrf.mxu0 }
 0x402   : > { %v12392_v0 = vpop.f32.mrf.mxu1  ;;  %v2530_v15 = vld [vmem:[#allocation2] sm:$0xff]  ;;  %v13536_v7 = vld [vmem:[%s13998_s11 + $0x70] sm:$0xff]  }
 0x403   : > { %2379 = vst.msk [vmem:[#allocation2 + $0x10] sm:$0xff] %vm696_vm10, %v2369_v45  ;;  %v2540_v11 = vadd.f32 %v2530_v15, %v14562_v63  ;;  %v14626_v54 = vpop.f32.mrf.mxu0  ;;  %v2364_v45 = vld [vmem:[#allocation2 + $0x38] sm:$0xff] }
 0x404   : > { %v2329_v53 = vpop.f32.mrf.mxu1 }
 0x405   : > { %v2370_v58 = vadd.f32 %v2360_v50, %v2329_v53  ;;  %2550 = vst.msk [vmem:[#allocation2] sm:$0xff] %vm696_vm10, %v2540_v11  ;;  %v12427_v59 = vpop.f32.mrf.mxu0 }
 0x406   : > { %v12393_v44 = vpop.f32.mrf.mxu1  ;;  %v2531_v52 = vld [vmem:[#allocation2 + $0x8] sm:$0xff] }
 0x407   : > { %2380 = vst.msk [vmem:[#allocation2 + $0x18] sm:$0xff] %vm696_vm10, %v2370_v58  ;;  %v2541_v48 = vadd.f32 %v2531_v52, %v14571_v29  ;;  %v14632_v3 = vpop.f32.mrf.mxu0  ;;  %v2365_v44 = vld [vmem:[#allocation2 + $0x40] sm:$0xff]  ;;  %12563 = vmatmul.mubr.msk.bf16.gmra.mxu0 %vm607_vm9, %v13536_v7 }
 0x408   : > { %v2334_v19 = vpop.f32.mrf.mxu1  ;;  %12590 = vmatprep.mubr.msk.bf16.mxu0 %vm13805_vm8, %v13804_v12 }
 0x409   : > { %v2371_v63 = vadd.f32 %v2361_v62, %v2334_v19  ;;  %2551 = vst.msk [vmem:[#allocation2 + $0x8] sm:$0xff] %vm696_vm10, %v2541_v48  ;;  %v12454_v28 = vpop.f32.mrf.mxu0 }
 0x40a   : > { %v12396_v27 = vpop.f32.mrf.mxu1  ;;  %v2532_v31 = vld [vmem:[#allocation2 + $0x10] sm:$0xff] }
 0x40b   : > { %2381 = vst.msk [vmem:[#allocation2 + $0x20] sm:$0xff] %vm696_vm10, %v2371_v63  ;;  %v2542_v29 = vadd.f32 %v2532_v31, %v14576_v38  ;;  %v14640_v33 = vpop.f32.mrf.mxu0  ;;  %v2366_v63 = vld [vmem:[#allocation2 + $0x48] sm:$0xff] }
 0x40c   : > { %v2337_v32 = vpop.f32.mrf.mxu1 }
 0x40d   : > { %v2372_v37 = vadd.f32 %v2362_v6, %v2337_v32  ;;  %2552 = vst.msk [vmem:[#allocation2 + $0x10] sm:$0xff] %vm696_vm10, %v2542_v29  ;;  %v12455_v17 = vpop.f32.mrf.mxu0 }
 0x40e   : > { %v12397_v35 = vpop.f32.mrf.mxu1  ;;  %v2533_v30 = vld [vmem:[#allocation2 + $0x18] sm:$0xff] }
 0x40f   : > { %2382 = vst.msk [vmem:[#allocation2 + $0x28] sm:$0xff] %vm696_vm10, %v2372_v37  ;;  %v2543_v39 = vadd.f32 %v2533_v30, %v14585_v55  ;;  %v14646_v40 = vpop.f32.mrf.mxu0  ;;  %v2746_v37 = vld [vmem:[#allocation2] sm:$0xff] }
 0x410   : > { %v2342_v42 = vpop.f32.mrf.mxu1 }
 0x411   : > { %v2373_v38 = vadd.f32 %v2363_v43, %v2342_v42  ;;  %2553 = vst.msk [vmem:[#allocation2 + $0x18] sm:$0xff] %vm696_vm10, %v2543_v39  ;;  %v12458_v47 = vpop.f32.mrf.mxu0 }
 0x412   : > { %v12400_v46 = vpop.f32.mrf.mxu1  ;;  %v2534_v49 = vld [vmem:[#allocation2 + $0x20] sm:$0xff] }
 0x413   : > { %2383 = vst.msk [vmem:[#allocation2 + $0x30] sm:$0xff] %vm696_vm10, %v2373_v38  ;;  %v2544_v55 = vadd.f32 %v2534_v49, %v14590_v61  ;;  %v14654_v0 = vpop.f32.mrf.mxu0  ;;  %v2747_v38 = vld [vmem:[#allocation2 + $0x8] sm:$0xff] }
 0x414   : > { %v2345_v1 = vpop.f32.mrf.mxu1  ;;  %v2748_v7 = vld [vmem:[#allocation2 + $0x10] sm:$0xff] }
 0x415   : > { %v2374_v15 = vadd.f32 %v2364_v45, %v2345_v1  ;;  %2554 = vst.msk [vmem:[#allocation2 + $0x20] sm:$0xff] %vm696_vm10, %v2544_v55  ;;  %v12459_v53 = vpop.f32.mrf.mxu0 }
 0x416   : > { %v12401_v11 = vpop.f32.mrf.mxu1  ;;  %v2535_v50 = vld [vmem:[#allocation2 + $0x28] sm:$0xff] }
 0x417   : > { %2384 = vst.msk [vmem:[#allocation2 + $0x38] sm:$0xff] %vm696_vm10, %v2374_v15  ;;  %v2545_v57 = vadd.f32 %v2535_v50, %v14598_v4  ;;  %v14660_v59 = vpop.f32.mrf.mxu0 }
 0x418   : > { %v2350_v58 = vpop.f32.mrf.mxu1 }
 0x419   : > { %v2375_v61 = vadd.f32 %v2365_v44, %v2350_v58  ;;  %2555 = vst.msk [vmem:[#allocation2 + $0x28] sm:$0xff] %vm696_vm10, %v2545_v57  ;;  %v12462_v48 = vpop.f32.mrf.mxu0  ;;  %v2749_v44 = vld [vmem:[#allocation2 + $0x18] sm:$0xff] }
 0x41a   : > { %v12404_v52 = vpop.f32.mrf.mxu1  ;;  %v2536_v19 = vld [vmem:[#allocation2 + $0x30] sm:$0xff] }
 0x41b   : > { %2385 = vst.msk [vmem:[#allocation2 + $0x40] sm:$0xff] %vm696_vm10, %v2375_v61  ;;  %v2546_v62 = vadd.f32 %v2536_v19, %v14604_v10  ;;  %v14668_v27 = vpop.f32.mrf.mxu0 }
 0x41c   : > { %v2353_v4 = vpop.f32.mrf.mxu1 }
 0x41d   : > { %v2376_v28 = vadd.f32 %v2366_v63, %v2353_v4  ;;  %2556 = vst.msk [vmem:[#allocation2 + $0x30] sm:$0xff] %vm696_vm10, %v2546_v62  ;;  %v12463_v29 = vpop.f32.mrf.mxu0  ;;  %v2750_v63 = vld [vmem:[#allocation2 + $0x20] sm:$0xff] }
 0x41e   : > { %v12405_v31 = vpop.f32.mrf.mxu1  ;;  %v2537_v32 = vld [vmem:[#allocation2 + $0x38] sm:$0xff] }
 0x41f   : > { %2386 = vst.msk [vmem:[#allocation2 + $0x48] sm:$0xff] %vm696_vm10, %v2376_v28  ;;  %v2547_v6 = vadd.f32 %v2537_v32, %v14612_v41  ;;  %v14673_v35 = vpop.f32.mrf.mxu0 }
 0x420   : > { %v2707_v36 = vpop.f32.mrf.mxu1 }
 0x421   : > { %v2756_v17 = vadd.f32 %v2746_v37, %v2707_v36  ;;  %2557 = vst.msk [vmem:[#allocation2 + $0x38] sm:$0xff] %vm696_vm10, %v2547_v6  ;;  %v12466_v30 = vpop.f32.mrf.mxu0  ;;  %v2751_v6 = vld [vmem:[#allocation2 + $0x28] sm:$0xff] }
 0x422   : > { %v12432_v10 = vpop.f32.mrf.mxu1  ;;  %v2538_v39 = vld [vmem:[#allocation2 + $0x40] sm:$0xff] }
 0x423   : > { %2766 = vst.msk [vmem:[#allocation2] sm:$0xff] %vm696_vm10, %v2756_v17  ;;  %v2548_v42 = vadd.f32 %v2538_v39, %v14618_v9  ;;  %v14678_v46 = vpop.f32.mrf.mxu0 }
 0x424   : > { %v2710_v43 = vpop.f32.mrf.mxu1 }
 0x425   : > { %v2757_v47 = vadd.f32 %v2747_v38, %v2710_v43  ;;  %2558 = vst.msk [vmem:[#allocation2 + $0x40] sm:$0xff] %vm696_vm10, %v2548_v42  ;;  %v12467_v49 = vpop.f32.mrf.mxu0  ;;  %v2752_v42 = vld [vmem:[#allocation2 + $0x30] sm:$0xff] }
 0x426   : > { %v12433_v41 = vpop.f32.mrf.mxu1  ;;  %v2539_v55 = vld [vmem:[#allocation2 + $0x48] sm:$0xff] }
 0x427   : > { %2767 = vst.msk [vmem:[#allocation2 + $0x8] sm:$0xff] %vm696_vm10, %v2757_v47  ;;  %v2549_v1 = vadd.f32 %v2539_v55, %v14626_v54  ;;  %v14683_v15 = vpop.f32.mrf.mxu0 }
 0x428   : > { %v2715_v45 = vpop.f32.mrf.mxu1 }
 0x429   : > { %v2758_v11 = vadd.f32 %v2748_v7, %v2715_v45  ;;  %2559 = vst.msk [vmem:[#allocation2 + $0x48] sm:$0xff] %vm696_vm10, %v2549_v1  ;;  %v12470_v50 = vpop.f32.mrf.mxu0  ;;  %v2753_v7 = vld [vmem:[#allocation2 + $0x38] sm:$0xff] }
 0x42a   : > { %v2920_v9 = vld [vmem:[#allocation2] sm:$0xff]  ;;  %v12436_v53 = vpop.f32.mrf.mxu1 }
 0x42b   : > { %v2930_v57 = vadd.f32 %v2920_v9, %v14632_v3  ;;  %2768 = vst.msk [vmem:[#allocation2 + $0x10] sm:$0xff] %vm696_vm10, %v2758_v11  ;;  %v14688_v61 = vpop.f32.mrf.mxu0  ;;  %v13518_v11 = vld [vmem:[%s16485_s4 + $0x8] sm:$0xff]  }
 0x42c   : > { %v2718_v58 = vpop.f32.mrf.mxu1 }
 0x42d   : > { %2940 = vst.msk [vmem:[#allocation2] sm:$0xff] %vm696_vm10, %v2930_v57  ;;  %v2759_v54 = vadd.f32 %v2749_v44, %v2718_v58  ;;  %v12471_v19 = vpop.f32.mrf.mxu0 }
 0x42e   : > { %v2921_v52 = vld [vmem:[#allocation2 + $0x8] sm:$0xff]  ;;  %v12437_v48 = vpop.f32.mrf.mxu1  ;;  %v13523_v19 = vld [vmem:[%s16485_s4] sm:$0xff]  }
 0x42f   : > { %v2931_v62 = vadd.f32 %v2921_v52, %v14640_v33  ;;  %2769 = vst.msk [vmem:[#allocation2 + $0x18] sm:$0xff] %vm696_vm10, %v2759_v54  ;;  %v14699_v33 = vld [vmem:[%s16488_s7] ss:$0 sm:$0xff] }
 0x430   : > { %v2723_v4 = vpop.f32.mrf.mxu1  ;;  %v2754_v52 = vld [vmem:[#allocation2 + $0x40] sm:$0xff] }
 0x431   : > { %2941 = vst.msk [vmem:[#allocation2 + $0x8] sm:$0xff] %vm696_vm10, %v2931_v62  ;;  %v2760_v3 = vadd.f32 %v2750_v63, %v2723_v4 }
 0x432   : > { %v2922_v28 = vld [vmem:[#allocation2 + $0x10] sm:$0xff]  ;;  %v12440_v31 = vpop.f32.mrf.mxu1 }
 0x433   : > { %v2932_v29 = vadd.f32 %v2922_v28, %v14646_v40  ;;  %2770 = vst.msk [vmem:[#allocation2 + $0x20] sm:$0xff] %vm696_vm10, %v2760_v3 }
 0x434   : > { %v2726_v32 = vpop.f32.mrf.mxu1  ;;  %v2950_v36 = vld [vmem:[#allocation2] sm:$0xff] }
 0x435   : > { %2942 = vst.msk [vmem:[#allocation2 + $0x10] sm:$0xff] %vm696_vm10, %v2932_v29  ;;  %v2761_v37 = vadd.f32 %v2751_v6, %v2726_v32  ;;  %v2967_v40 = vadd.f32 %v14699_v33, %v2950_v36  ;;  %v2755_v32 = vld [vmem:[#allocation2 + $0x48] sm:$0xff] }
 0x436   : > { %v2923_v17 = vld [vmem:[#allocation2 + $0x18] sm:$0xff]  ;;  %v12441_v10 = vpop.f32.mrf.mxu1 }
 0x437   : > { %v2933_v30 = vadd.f32 %v2923_v17, %v14654_v0  ;;  %2771 = vst.msk [vmem:[#allocation2 + $0x28] sm:$0xff] %vm696_vm10, %v2761_v37  ;;  %v2977_v1 = vmax.f32 %v2967_v40, 0.0 }
 0x438   : > { %v2731_v39 = vpop.f32.mrf.mxu1  ;;  %v2951_v43 = vld [vmem:[#allocation2 + $0x8] sm:$0xff] }
 0x439   : > { %2943 = vst.msk [vmem:[#allocation2 + $0x18] sm:$0xff] %vm696_vm10, %v2933_v30  ;;  %v2762_v38 = vadd.f32 %v2752_v42, %v2731_v39  ;;  %v2968_v47 = vadd.f32 %v14699_v33, %v2951_v43 }
 0x43a   : > { %v2924_v41 = vld [vmem:[#allocation2 + $0x20] sm:$0xff]  ;;  %v12444_v49 = vpop.f32.mrf.mxu1 }
 0x43b   : > { %v2934_v55 = vadd.f32 %v2924_v41, %v14660_v59  ;;  %2772 = vst.msk [vmem:[#allocation2 + $0x30] sm:$0xff] %vm696_vm10, %v2762_v38  ;;  %v2978_v0 = vmax.f32 %v2968_v47, 0.0 }
 0x43c   : > { %v2734_v45 = vpop.f32.mrf.mxu1  ;;  %v2952_v9 = vld [vmem:[#allocation2 + $0x10] sm:$0xff] }
 0x43d   : > { %2944 = vst.msk [vmem:[#allocation2 + $0x20] sm:$0xff] %vm696_vm10, %v2934_v55  ;;  %v2763_v53 = vadd.f32 %v2753_v7, %v2734_v45  ;;  %v2987_v50 = vpack.c.bf16 %v2978_v0, %v2977_v1  ;;  %v2969_v59 = vadd.f32 %v14699_v33, %v2952_v9 }
 0x43e   : > { %v2925_v57 = vld [vmem:[#allocation2 + $0x28] sm:$0xff]  ;;  %v12445_v58 = vpop.f32.mrf.mxu1 }
 0x43f   : > { %v2935_v44 = vadd.f32 %v2925_v57, %v14668_v27  ;;  %2773 = vst.msk [vmem:[#allocation2 + $0x38] sm:$0xff] %vm696_vm10, %v2763_v53  ;;  %12475 = vmatmul.mubr.msk.bf16.vlgmr.msra.gmra.mxu1 %vm696_vm10, %v2987_v50  ;;  %v2979_v28 = vmax.f32 %v2969_v59, 0.0  ;;  %v13527_v59 = vld [vmem:[%s13998_s11] sm:$0xff]  }
 0x440   : > { %12519 = vmatpush3.bf16.msra.mxu1 %v13518_v11  ;;  %v2739_v54 = vpop.f32.mrf.mxu1  ;;  %12478 = vmatprep.mubr.msk.bf16.mxu1 %vm13805_vm8, %v13804_v12  ;;  %v2953_v48 = vld [vmem:[#allocation2 + $0x18] sm:$0xff] }
 0x441   : > { %2945 = vst.msk [vmem:[#allocation2 + $0x28] sm:$0xff] %vm696_vm10, %v2935_v44  ;;  %v2764_v27 = vadd.f32 %v2754_v52, %v2739_v54  ;;  %v2970_v62 = vadd.f32 %v14699_v33, %v2953_v48  ;;  %12520 = vmatprep.subr.bf16.mxu1 %v13804_v12  ;;  %v13529_v54 = vld [vmem:[%s13998_s11 + $0x8] sm:$0xff]   ;;  %v13533_v52 = vld [vmem:[%s13998_s11 + $0x18] sm:$0xff]   ;;  %v13535_v48 = vld [vmem:[%s13998_s11 + $0x20] sm:$0xff]  }
 0x442   : > { %v2926_v4 = vld [vmem:[#allocation2 + $0x30] sm:$0xff]  ;;  %v12448_v63 = vpop.f32.mrf.mxu1 }
 0x443   : > { %v2936_v3 = vadd.f32 %v2926_v4, %v14673_v35  ;;  %2774 = vst.msk [vmem:[#allocation2 + $0x40] sm:$0xff] %vm696_vm10, %v2764_v27  ;;  %v2980_v31 = vmax.f32 %v2970_v62, 0.0 }
 0x444   : > { %v2742_v29 = vpop.f32.mrf.mxu1  ;;  %v2954_v6 = vld [vmem:[#allocation2 + $0x20] sm:$0xff]  ;;  %12521 = vmatpush3.bf16.msra.mxu1 %v13523_v19 }
 0x445   : > { %2946 = vst.msk [vmem:[#allocation2 + $0x30] sm:$0xff] %vm696_vm10, %v2936_v3  ;;  %v2765_v36 = vadd.f32 %v2755_v32, %v2742_v29  ;;  %v2988_v37 = vpack.c.bf16 %v2980_v31, %v2979_v28  ;;  %12566 = vmatprep.subr.bf16.mxu1 %v13804_v12  ;;  %v2971_v35 = vadd.f32 %v14699_v33, %v2954_v6 }
 0x446   : > { %v2927_v17 = vld [vmem:[#allocation2 + $0x38] sm:$0xff]  ;;  %v12449_v10 = vpop.f32.mrf.mxu1 }
 0x447   : > { %v2937_v30 = vadd.f32 %v2927_v17, %v14678_v46  ;;  %2775 = vst.msk [vmem:[#allocation2 + $0x48] sm:$0xff] %vm696_vm10, %v2765_v36  ;;  %12479 = vmatmul.mubr.msk.bf16.gmra.mxu1 %vm696_vm10, %v2988_v37  ;;  %v2981_v38 = vmax.f32 %v2971_v35, 0.0 }
 0x448   : > { %12482 = vmatprep.mubr.msk.bf16.mxu1 %vm13805_vm8, %v13804_v12  ;;  %v2955_v40 = vld [vmem:[#allocation2 + $0x28] sm:$0xff] }
 0x449   : > { %2947 = vst.msk [vmem:[#allocation2 + $0x38] sm:$0xff] %vm696_vm10, %v2937_v30  ;;  %v2972_v39 = vadd.f32 %v14699_v33, %v2955_v40 }
 0x44a   : > { %v2928_v42 = vld [vmem:[#allocation2 + $0x40] sm:$0xff] }
 0x44b   : > { %v2938_v43 = vadd.f32 %v2928_v42, %v14683_v15  ;;  %v2982_v47 = vmax.f32 %v2972_v39, 0.0 }
 0x44c   : > { %v2956_v46 = vld [vmem:[#allocation2 + $0x30] sm:$0xff] }
 0x44d   : > { %2948 = vst.msk [vmem:[#allocation2 + $0x40] sm:$0xff] %vm696_vm10, %v2938_v43  ;;  %v2989_v41 = vpack.c.bf16 %v2982_v47, %v2981_v38  ;;  %v2973_v1 = vadd.f32 %v14699_v33, %v2956_v46  ;;  %v3872_v47 = vld [vmem:[%s16487_s6] sm:$0xf] }
 0x44e   : > { %v2929_v49 = vld [vmem:[#allocation2 + $0x48] sm:$0xff] }
 0x44f   : > { %v2939_v55 = vadd.f32 %v2929_v49, %v14688_v61  ;;  %12483 = vmatmul.mubr.msk.bf16.gmra.mxu1 %vm696_vm10, %v2989_v41  ;;  %v2983_v45 = vmax.f32 %v2973_v1, 0.0  ;;  %v3914_v41 = vsel %vm1356_vm12, %v3872_v47, 0 }
 0x450   : > { %12486 = vmatprep.mubr.msk.bf16.mxu1 %vm13805_vm8, %v13804_v12  ;;  %v2957_v0 = vld [vmem:[#allocation2 + $0x38] sm:$0xff] }
 0x451   : > { %2949 = vst.msk [vmem:[#allocation2 + $0x48] sm:$0xff] %vm696_vm10, %v2939_v55  ;;  %v2974_v15 = vadd.f32 %v14699_v33, %v2957_v0 }
 0x453   : > { %v2984_v7 = vmax.f32 %v2974_v15, 0.0 }
 0x454   : > { %v2958_v11 = vld [vmem:[#allocation2 + $0x40] sm:$0xff] }
 0x455   : > { %v2990_v9 = vpack.c.bf16 %v2984_v7, %v2983_v45  ;;  %v2975_v61 = vadd.f32 %v14699_v33, %v2958_v11 }
 0x457   : > { %12487 = vmatmul.mubr.msk.bf16.gmra.mxu1 %vm696_vm10, %v2990_v9  ;;  %v2985_v57 = vmax.f32 %v2975_v61, 0.0 }
 0x458   : > { %12490 = vmatprep.mubr.msk.bf16.mxu1 %vm13805_vm8, %v13804_v12  ;;  %v2959_v53 = vld [vmem:[#allocation2 + $0x48] sm:$0xff] }
 0x459   : > { %v2976_v50 = vadd.f32 %v14699_v33, %v2959_v53  ;;  %v13531_v33 = vld [vmem:[%s13998_s11 + $0x10] sm:$0xff]  }
 0x45b   : > { %v2986_v58 = vmax.f32 %v2976_v50, 0.0 }
 0x45d   : > { %v2991_v44 = vpack.c.bf16 %v2986_v58, %v2985_v57 }
 0x45f   : > { %12491 = vmatmul.mubr.msk.bf16.gmra.mxu1 %vm696_vm10, %v2991_v44 }
 0x460   : > { %12522 = vmatprep.mubr.msk.bf16.mxu1 %vm13805_vm8, %v13804_v12 }
 0x467   : > { %12523 = vmatmul.mubr.msk.bf16.vlgmr.msra.gmra.mxu1 %vm607_vm9, %v13527_v59  ;;  %v11244_v59 = vld [vmem:[%s16487_s6 + $0x4] sm:$0xf] }
 0x468   : > { %12526 = vmatprep.mubr.msk.bf16.mxu1 %vm13805_vm8, %v13804_v12  ;;  %12567 = vmatpush3.bf16.msra.mxu1 %v3914_v41 }
 0x469   : > { %12610 = vmatprep.subr.bf16.mxu1 %v13804_v12 }
 0x46f   : > { %12527 = vmatmul.mubr.msk.bf16.gmra.mxu1 %vm607_vm9, %v13529_v54 }
 0x470   : > { %12530 = vmatprep.mubr.msk.bf16.mxu1 %vm13805_vm8, %v13804_v12 }
 0x477   : > { %12531 = vmatmul.mubr.msk.bf16.gmra.mxu1 %vm607_vm9, %v13531_v33  ;;  %v4099_v33 = vsel %vm1356_vm12, %v11244_v59, 0  ;;  %v3096_v59 = vunpack.c.h.bf16 %v14048_v24 }
 0x478   : > { %12534 = vmatprep.mubr.msk.bf16.mxu1 %vm13805_vm8, %v13804_v12  ;;  %12589 = vmatpush3.bf16.msra.mxu0 %v4099_v33 }
 0x479   : > { %12632 = vmatprep.subr.bf16.mxu0 %v13804_v12 }
 0x47f   : > { %12535 = vmatmul.mubr.msk.bf16.gmra.mxu1 %vm607_vm9, %v13533_v52  ;;  %v3272_v19 = vpop.f32.mrf.mxu0 }
 0x480   : > { %12538 = vmatprep.mubr.msk.bf16.mxu1 %vm13805_vm8, %v13804_v12  ;;  %3311 = vst.msk [vmem:[#allocation2] sm:$0xff] %vm696_vm10, %v3272_v19  ;;  %v3091_v19 = vunpack.c.l.bf16 %v14006_v20 }
 0x481   : > { %v12500_v27 = vpop.f32.mrf.mxu0 }
 0x483   : > { %v3275_v62 = vpop.f32.mrf.mxu0 }
 0x484   : > { %3312 = vst.msk [vmem:[#allocation2 + $0x8] sm:$0xff] %vm696_vm10, %v3275_v62 }
 0x485   : > { %v12501_v4 = vpop.f32.mrf.mxu0 }
 0x487   : > { %12539 = vmatmul.mubr.msk.bf16.gmra.mxu1 %vm607_vm9, %v13535_v48  ;;  %v3280_v63 = vpop.f32.mrf.mxu0  ;;  %v14817_v48 = vld [vmem:[%s16490_s9] ss:$0 sm:$0xff] }
 0x488   : > { %12568 = vmatprep.mubr.msk.bf16.mxu1 %vm13805_vm8, %v13804_v12  ;;  %3313 = vst.msk [vmem:[#allocation2 + $0x10] sm:$0xff] %vm696_vm10, %v3280_v63 }
 0x489   : > { %v12504_v3 = vpop.f32.mrf.mxu0 }
 0x48a   : > { %v3092_v3 = vunpack.c.h.bf16 %v14006_v20 }
 0x48b   : > { %v3283_v28 = vpop.f32.mrf.mxu0 }
 0x48c   : > { %3314 = vst.msk [vmem:[#allocation2 + $0x18] sm:$0xff] %vm696_vm10, %v3283_v28 }
 0x48d   : > { %v12505_v31 = vpop.f32.mrf.mxu0 }
 0x48f   : > { %v3288_v29 = vpop.f32.mrf.mxu0 }
 0x490   : > { %3315 = vst.msk [vmem:[#allocation2 + $0x20] sm:$0xff] %vm696_vm10, %v3288_v29 }
 0x491   : > { %v12508_v32 = vpop.f32.mrf.mxu0 }
 0x493   : > { %v3291_v6 = vpop.f32.mrf.mxu0 }
 0x494   : > { %3316 = vst.msk [vmem:[#allocation2 + $0x28] sm:$0xff] %vm696_vm10, %v3291_v6 }
 0x495   : > { %v12509_v36 = vpop.f32.mrf.mxu0 }
 0x497   : > { %v3296_v37 = vpop.f32.mrf.mxu0 }
 0x498   : > { %3317 = vst.msk [vmem:[#allocation2 + $0x30] sm:$0xff] %vm696_vm10, %v3296_v37  ;;  %v3093_v37 = vunpack.c.l.bf16 %v14023_v22 }
 0x499   : > { %v12512_v17 = vpop.f32.mrf.mxu0 }
 0x49b   : > { %v3299_v10 = vpop.f32.mrf.mxu0 }
 0x49c   : > { %3318 = vst.msk [vmem:[#allocation2 + $0x38] sm:$0xff] %vm696_vm10, %v3299_v10 }
 0x49d   : > { %v12513_v30 = vpop.f32.mrf.mxu0 }
 0x49f   : > { %v3304_v35 = vpop.f32.mrf.mxu0 }
 0x4a0   : > { %3319 = vst.msk [vmem:[#allocation2 + $0x40] sm:$0xff] %vm696_vm10, %v3304_v35 }
 0x4a1   : > { %v12516_v40 = vpop.f32.mrf.mxu0 }
 0x4a3   : > { %v3307_v39 = vpop.f32.mrf.mxu0 }
 0x4a4   : > { %3320 = vst.msk [vmem:[#allocation2 + $0x48] sm:$0xff] %vm696_vm10, %v3307_v39  ;;  %v3094_v39 = vunpack.c.h.bf16 %v14023_v22 }
 0x4a5   : > { %v12517_v42 = vpop.f32.mrf.mxu0 }
 0x4a7   : > { %v14784_v43 = vpop.f32.mrf.mxu0 }
 0x4a9   : > { %v12548_v38 = vpop.f32.mrf.mxu0 }
 0x4ab   : > { %v14789_v46 = vpop.f32.mrf.mxu0 }
 0x4ad   : > { %v12549_v49 = vpop.f32.mrf.mxu0 }
 0x4af   : > { %v14793_v55 = vpop.f32.mrf.mxu0 }
 0x4b1   : > { %v12552_v1 = vpop.f32.mrf.mxu0 }
 0x4b3   : > { %v14795_v0 = vpop.f32.mrf.mxu0 }
 0x4b5   : > { %v12553_v15 = vpop.f32.mrf.mxu0 }
 0x4b6   : > { %v3095_v15 = vunpack.c.l.bf16 %v14048_v24 }
 0x4b7   : > { %v14797_v45 = vpop.f32.mrf.mxu0 }
 0x4b9   : > { %v12556_v7 = vpop.f32.mrf.mxu0 }
 0x4bb   : > { %v14799_v11 = vpop.f32.mrf.mxu0 }
 0x4bd   : > { %v12557_v9 = vpop.f32.mrf.mxu0 }
 0x4bf   : > { %v14801_v61 = vpop.f32.mrf.mxu0 }
 0x4c1   : > { %v12560_v53 = vpop.f32.mrf.mxu0 }
 0x4c3   : > { %v14803_v50 = vpop.f32.mrf.mxu0 }
 0x4c5   : > { %v12561_v57 = vpop.f32.mrf.mxu0 }
 0x4c7   : > { %v14805_v58 = vpop.f32.mrf.mxu0 }
 0x4c9   : > { %v12564_v44 = vpop.f32.mrf.mxu0 }
 0x4cb   : > { %v14810_v54 = vpop.f32.mrf.mxu0 }
 0x4cd   : > { %v12565_v52 = vpop.f32.mrf.mxu0 }
 0x4ff   : > { %v3052_v27 = vpop.f32.mrf.mxu1 }
 0x500   : > { %v3053_v62 = vadd.f32 %v14817_v48, %v3052_v27 }
 0x501   : > { %v12476_v4 = vpop.f32.mrf.mxu1 }
 0x502   : > { %v3101_v63 = vadd.f32 %v3091_v19, %v3053_v62 }
 0x503   : > { %v3055_v28 = vpop.f32.mrf.mxu1 }
 0x504   : > { %v3111_v31 = vmax.f32 %v3101_v63, 0.0  ;;  %v3056_v29 = vadd.f32 %v14817_v48, %v3055_v28  ;;  %v3097_v63 = vunpack.c.l.bf16 %v14009_v21 }
 0x505   : > { %v12477_v32 = vpop.f32.mrf.mxu1 }
 0x506   : > { %v11808_v6 = vpack.c.bf16 %v3111_v31, %v3111_v31  ;;  %v3102_v36 = vadd.f32 %v3092_v3, %v3056_v29 }
 0x507   : > { %v3060_v17 = vpop.f32.mrf.mxu1 }
 0x508   : > { %3162 = vst.msk [vmem:[%s14003_s30] sm:$0xf] %vm3161_vm11, %v11808_v6  ;;  %v3112_v10 = vmax.f32 %v3102_v36, 0.0  ;;  %v3061_v30 = vadd.f32 %v14817_v48, %v3060_v17  ;;  %v3098_v6 = vunpack.c.h.bf16 %v14009_v21 }
 0x509   : > { %v12480_v35 = vpop.f32.mrf.mxu1 }
 0x50a   : > { %v11809_v20 = vpack.c.bf16 %v3112_v10, %v3112_v10  ;;  %v3103_v40 = vadd.f32 %v3093_v37, %v3061_v30 }
 0x50b   : > { %v3063_v42 = vpop.f32.mrf.mxu1 }
 0x50c   : > { %3163 = vst.msk [vmem:[%s14003_s30 + $0x4] sm:$0xf] %vm3161_vm11, %v11809_v20  ;;  %v3113_v38 = vmax.f32 %v3103_v40, 0.0  ;;  %v3064_v47 = vadd.f32 %v14817_v48, %v3063_v42  ;;  %v3099_v20 = vunpack.c.l.bf16 %v14028_v23 }
 0x50d   : > { %v12481_v41 = vpop.f32.mrf.mxu1 }
 0x50e   : > { %v11810_v49 = vpack.c.bf16 %v3113_v38, %v3113_v38  ;;  %v3104_v1 = vadd.f32 %v3094_v39, %v3064_v47  ;;  %v3100_v41 = vunpack.c.h.bf16 %v14028_v23  ;;  %v3322_v23 = vld [vmem:[#allocation2 + $0x8] sm:$0xff] }
 0x50f   : > { %v3068_v7 = vpop.f32.mrf.mxu1 }
 0x510   : > { %3164 = vst.msk [vmem:[%s14003_s30 + $0x8] sm:$0xf] %vm3161_vm11, %v11810_v49  ;;  %v3114_v9 = vmax.f32 %v3104_v1, 0.0  ;;  %v3069_v53 = vadd.f32 %v14817_v48, %v3068_v7 }
 0x511   : > { %v12484_v22 = vpop.f32.mrf.mxu1 }
 0x512   : > { %v11811_v57 = vpack.c.bf16 %v3114_v9, %v3114_v9  ;;  %v3105_v44 = vadd.f32 %v3095_v15, %v3069_v53  ;;  %v3321_v22 = vld [vmem:[#allocation2] sm:$0xff] }
 0x513   : > { %v3071_v33 = vpop.f32.mrf.mxu1 }
 0x514   : > { %3165 = vst.msk [vmem:[%s14003_s30 + $0xc] sm:$0xf] %vm3161_vm11, %v11811_v57  ;;  %v3115_v52 = vmax.f32 %v3105_v44, 0.0  ;;  %v3072_v19 = vadd.f32 %v14817_v48, %v3071_v33 }
 0x515   : > { %v12485_v27 = vpop.f32.mrf.mxu1 }
 0x516   : > { %v11812_v62 = vpack.c.bf16 %v3115_v52, %v3115_v52  ;;  %v3106_v4 = vadd.f32 %v3096_v59, %v3072_v19 }
 0x517   : > { %v3076_v3 = vpop.f32.mrf.mxu1 }
 0x518   : > { %3166 = vst.msk [vmem:[%s14003_s30 + $0x10] sm:$0xf] %vm3161_vm11, %v11812_v62  ;;  %v3116_v28 = vmax.f32 %v3106_v4, 0.0  ;;  %v3077_v31 = vadd.f32 %v14817_v48, %v3076_v3 }
 0x519   : > { %v12488_v24 = vpop.f32.mrf.mxu1 }
 0x51a   : > { %v11813_v29 = vpack.c.bf16 %v3116_v28, %v3116_v28  ;;  %v3107_v32 = vadd.f32 %v3097_v63, %v3077_v31  ;;  %v3324_v24 = vld [vmem:[#allocation2 + $0x18] sm:$0xff] }
 0x51b   : > { %v3079_v36 = vpop.f32.mrf.mxu1 }
 0x51c   : > { %3167 = vst.msk [vmem:[%s14003_s30 + $0x14] sm:$0xf] %vm3161_vm11, %v11813_v29  ;;  %v3117_v37 = vmax.f32 %v3107_v32, 0.0  ;;  %v3080_v17 = vadd.f32 %v14817_v48, %v3079_v36 }
 0x51d   : > { %v12489_v10 = vpop.f32.mrf.mxu1 }
 0x51e   : > { %v11814_v30 = vpack.c.bf16 %v3117_v37, %v3117_v37  ;;  %v3108_v35 = vadd.f32 %v3098_v6, %v3080_v17  ;;  %v3325_v17 = vld [vmem:[#allocation2 + $0x20] sm:$0xff] }
 0x51f   : > { %v3084_v40 = vpop.f32.mrf.mxu1 }
 0x520   : > { %3168 = vst.msk [vmem:[%s14003_s30 + $0x18] sm:$0xf] %vm3161_vm11, %v11814_v30  ;;  %v3118_v39 = vmax.f32 %v3108_v35, 0.0  ;;  %v3085_v42 = vadd.f32 %v14817_v48, %v3084_v40 }
 0x521   : > { %v12492_v21 = vpop.f32.mrf.mxu1 }
 0x522   : > { %v11815_v38 = vpack.c.bf16 %v3118_v39, %v3118_v39  ;;  %v3109_v47 = vadd.f32 %v3099_v20, %v3085_v42 }
 0x523   : > { %v3087_v49 = vpop.f32.mrf.mxu1 }
 0x524   : > { %3169 = vst.msk [vmem:[%s14003_s30 + $0x1c] sm:$0xf] %vm3161_vm11, %v11815_v38  ;;  %v3119_v1 = vmax.f32 %v3109_v47, 0.0  ;;  %v3088_v15 = vadd.f32 %v14817_v48, %v3087_v49  ;;  %v3323_v48 = vld [vmem:[#allocation2 + $0x10] sm:$0xff] }
 0x525   : > { %v12493_v7 = vpop.f32.mrf.mxu1 }
 0x526   : > { %v11816_v9 = vpack.c.bf16 %v3119_v1, %v3119_v1  ;;  %v3110_v53 = vadd.f32 %v3100_v41, %v3088_v15  ;;  %v3327_v7 = vld [vmem:[#allocation2 + $0x30] sm:$0xff] }
 0x527   : > { %v3431_v57 = vpop.f32.mrf.mxu1 }
 0x528   : > { %3170 = vst.msk [vmem:[%s14003_s30 + $0x20] sm:$0xf] %vm3161_vm11, %v11816_v9  ;;  %v3120_v44 = vmax.f32 %v3110_v53, 0.0  ;;  %v3470_v59 = vadd.f32 %v3431_v57, %v3321_v22 }
 0x529   : > { %v12524_v33 = vpop.f32.mrf.mxu1 }
 0x52a   : > { %v11817_v52 = vpack.c.bf16 %v3120_v44, %v3120_v44  ;;  %3480 = vst.msk [vmem:[#allocation2] sm:$0xff] %vm696_vm10, %v3470_v59 }
 0x52b   : > { %v3434_v19 = vpop.f32.mrf.mxu1 }
 0x52c   : > { %3171 = vst.msk [vmem:[%s14003_s30 + $0x24] sm:$0xf] %vm3161_vm11, %v11817_v52  ;;  %v3471_v27 = vadd.f32 %v3434_v19, %v3322_v23 }
 0x52d   : > { %v12525_v62 = vpop.f32.mrf.mxu1 }
 0x52e   : > { %3481 = vst.msk [vmem:[#allocation2 + $0x8] sm:$0xff] %vm696_vm10, %v3471_v27 }
 0x52f   : > { %v3439_v4 = vpop.f32.mrf.mxu1 }
 0x530   : > { %v3472_v63 = vadd.f32 %v3439_v4, %v3323_v48  ;;  %v3328_v4 = vld [vmem:[#allocation2 + $0x38] sm:$0xff] }
 0x531   : > { %v3490_v3 = vld [vmem:[#allocation2] sm:$0xff]  ;;  %v12528_v28 = vpop.f32.mrf.mxu1 }
 0x532   : > { %v3640_v31 = vadd.f32 %v14784_v43, %v3490_v3  ;;  %3482 = vst.msk [vmem:[#allocation2 + $0x10] sm:$0xff] %vm696_vm10, %v3472_v63  ;;  %v14870_v43 = vld [vmem:[%s16486_s5] ss:$0 sm:$0xff] }
 0x533   : > { %v3442_v29 = vpop.f32.mrf.mxu1 }
 0x534   : > { %3650 = vst.msk [vmem:[#allocation2] sm:$0xff] %vm696_vm10, %v3640_v31  ;;  %v3473_v32 = vadd.f32 %v3442_v29, %v3324_v24 }
 0x535   : > { %v3491_v6 = vld [vmem:[#allocation2 + $0x8] sm:$0xff]  ;;  %v12529_v36 = vpop.f32.mrf.mxu1 }
 0x536   : > { %v3641_v37 = vadd.f32 %v14789_v46, %v3491_v6  ;;  %3483 = vst.msk [vmem:[#allocation2 + $0x18] sm:$0xff] %vm696_vm10, %v3473_v32  ;;  %v3326_v46 = vld [vmem:[#allocation2 + $0x28] sm:$0xff] }
 0x537   : > { %v3447_v10 = vpop.f32.mrf.mxu1 }
 0x538   : > { %3651 = vst.msk [vmem:[#allocation2 + $0x8] sm:$0xff] %vm696_vm10, %v3641_v37  ;;  %v3474_v30 = vadd.f32 %v3447_v10, %v3325_v17 }
 0x539   : > { %v3492_v35 = vld [vmem:[#allocation2 + $0x10] sm:$0xff]  ;;  %v12532_v20 = vpop.f32.mrf.mxu1 }
 0x53a   : > { %v3642_v40 = vadd.f32 %v14793_v55, %v3492_v35  ;;  %3484 = vst.msk [vmem:[#allocation2 + $0x20] sm:$0xff] %vm696_vm10, %v3474_v30  ;;  %v3329_v35 = vld [vmem:[#allocation2 + $0x40] sm:$0xff]  ;;  %v3847_v20 = vld [vmem:[#allocation3 + $0x4] sm:$0xe] }
 0x53b   : > { %v3660_v39 = vld [vmem:[#allocation2] sm:$0xff]  ;;  %v3450_v42 = vpop.f32.mrf.mxu1 }
 0x53c   : > { %v3677_v21 = vadd.f32 %v14870_v43, %v3660_v39  ;;  %3652 = vst.msk [vmem:[#allocation2 + $0x10] sm:$0xff] %vm696_vm10, %v3642_v40  ;;  %v3475_v38 = vadd.f32 %v3450_v42, %v3326_v46 }
 0x53d   : > { %v3493_v47 = vld [vmem:[#allocation2 + $0x18] sm:$0xff]  ;;  %v12533_v41 = vpop.f32.mrf.mxu1 }
 0x53e   : > { %v3687_v49 = vmax.f32 %v3677_v21, 0.0  ;;  %v3643_v1 = vadd.f32 %v14795_v0, %v3493_v47  ;;  %3485 = vst.msk [vmem:[#allocation2 + $0x28] sm:$0xff] %vm696_vm10, %v3475_v38 }
 0x53f   : > { %v3661_v15 = vld [vmem:[#allocation2 + $0x8] sm:$0xff]  ;;  %v3455_v55 = vpop.f32.mrf.mxu1 }
 0x540   : > { %v3697_v9 = vmul.f32 %v3687_v49, %v14164_v25  ;;  %v3678_v53 = vadd.f32 %v14870_v43, %v3661_v15  ;;  %3653 = vst.msk [vmem:[#allocation2 + $0x18] sm:$0xff] %vm696_vm10, %v3643_v1  ;;  %v3476_v22 = vadd.f32 %v3455_v55, %v3327_v7  ;;  %v3330_v15 = vld [vmem:[#allocation2 + $0x48] sm:$0xff] }
 0x541   : > { %v3494_v57 = vld [vmem:[#allocation2 + $0x20] sm:$0xff]  ;;  %v12536_v44 = vpop.f32.mrf.mxu1 }
 0x542   : > { %v11818_v59 = vpack.c.bf16 %v3697_v9, %v3697_v9  ;;  %v3688_v33 = vmax.f32 %v3678_v53, 0.0  ;;  %v3644_v52 = vadd.f32 %v14797_v45, %v3494_v57  ;;  %3486 = vst.msk [vmem:[#allocation2 + $0x30] sm:$0xff] %vm696_vm10, %v3476_v22 }
 0x543   : > { %v3662_v0 = vld [vmem:[#allocation2 + $0x10] sm:$0xff]  ;;  %v3458_v23 = vpop.f32.mrf.mxu1 }
 0x544   : > { %v3738_v19 = vshrl.u32 %v11818_v59, 16  ;;  %v3741_v27 = vshll.u32 %v11818_v59, 16  ;;  %v3698_v62 = vmul.f32 %v3688_v33, %v14169_v34  ;;  %v3679_v48 = vadd.f32 %v14870_v43, %v3662_v0  ;;  %3654 = vst.msk [vmem:[#allocation2 + $0x20] sm:$0xff] %vm696_vm10, %v3644_v52 }
 0x545   : > { %v3495_v63 = vld [vmem:[#allocation2 + $0x28] sm:$0xff]  ;;  %v3477_v3 = vadd.f32 %v3458_v23, %v3328_v4  ;;  %v12537_v28 = vpop.f32.mrf.mxu1 }
 0x546   : > { %v3740_v31 = vrot.slane %v3738_v19, 6  ;;  %v3743_v24 = vrot.slane %v3741_v27, 7  ;;  %v11819_v29 = vpack.c.bf16 %v3698_v62, %v3698_v62  ;;  %v3689_v45 = vmax.f32 %v3679_v48, 0.0  ;;  %v11256_v48 = vld [vmem:[%s16487_s6 + $0x8] sm:$0xf] }
 0x547   : > { %v3663_v32 = vld [vmem:[#allocation2 + $0x18] sm:$0xff]  ;;  %v3645_v6 = vadd.f32 %v14799_v11, %v3495_v63  ;;  %3487 = vst.msk [vmem:[#allocation2 + $0x38] sm:$0xff] %vm696_vm10, %v3477_v3  ;;  %v3463_v36 = vpop.f32.mrf.mxu1 }
 0x548   : > { %v3744_v37 = vor.u32 %v3743_v24, %v3740_v31  ;;  %v3747_v17 = vshrl.u32 %v11819_v29, 16  ;;  %v3750_v10 = vshll.u32 %v11819_v29, 16  ;;  %v3699_v30 = vmul.f32 %v3689_v45, %v14141_v13 }
 0x549   : > { %v3680_v40 = vadd.f32 %v14870_v43, %v3663_v32  ;;  %3655 = vst.msk [vmem:[#allocation2 + $0x28] sm:$0xff] %vm696_vm10, %v3645_v6  ;;  %v3496_v39 = vld [vmem:[#allocation2 + $0x30] sm:$0xff]  ;;  %v3478_v46 = vadd.f32 %v3463_v36, %v3329_v35  ;;  %v12540_v42 = vpop.f32.mrf.mxu1 }
 0x54a   : > { %v3848_v11 = vsel %vm13913_vm7, %v3744_v37, %v3847_v20  ;;  %v3749_v21 = vrot.slane %v3747_v17, 6  ;;  %v3752_v38 = vrot.slane %v3750_v10, 7  ;;  %v11820_v47 = vpack.c.bf16 %v3699_v30, %v3699_v30 }
 0x54b   : > { %3849 = vst [vmem:[#allocation3 + $0x4] sm:$0xe] %v3848_v11  ;;  %v3690_v41 = vmax.f32 %v3680_v40, 0.0  ;;  %v3664_v49 = vld [vmem:[#allocation2 + $0x20] sm:$0xff]  ;;  %v3646_v1 = vadd.f32 %v14801_v61, %v3496_v39  ;;  %3488 = vst.msk [vmem:[#allocation2 + $0x40] sm:$0xff] %vm696_vm10, %v3478_v46  ;;  %v3466_v7 = vpop.f32.mrf.mxu1  ;;  %v3745_v55 = vrot.slane %v3744_v37, 4 }
 0x54c   : > { %v3753_v9 = vor.u32 %v3752_v38, %v3749_v21  ;;  %v3681_v53 = vadd.f32 %v14870_v43, %v3664_v49  ;;  %v3479_v22 = vadd.f32 %v3466_v7, %v3330_v15  ;;  %v3757_v57 = vshrl.u32 %v11820_v47, 16 }
 0x54d   : > { %v3760_v44 = vshll.u32 %v11820_v47, 16  ;;  %v3700_v59 = vmul.f32 %v3690_v41, %v14145_v16  ;;  %3656 = vst.msk [vmem:[#allocation2 + $0x30] sm:$0xff] %vm696_vm10, %v3646_v1  ;;  %v12541_v33 = vpop.f32.mrf.mxu1 }
 0x54e   : > { %v3754_v52 = vsel %vm14183_vm14, %v3745_v55, %v3753_v9  ;;  %v3691_v61 = vmax.f32 %v3681_v53, 0.0  ;;  %v3497_v0 = vld [vmem:[#allocation2 + $0x38] sm:$0xff]  ;;  %3489 = vst.msk [vmem:[#allocation2 + $0x48] sm:$0xff] %vm696_vm10, %v3479_v22  ;;  %v3759_v23 = vrot.slane %v3757_v57, 6  ;;  %v3755_v4 = vrot.slane %v3753_v9, 4 }
 0x54f   : > { %3850 = vst.msk [vmem:[#allocation3 + $0x8] sm:$0xf] %vm529_vm0, %v3754_v52  ;;  %v3762_v19 = vrot.slane %v3760_v44, 7  ;;  %v11821_v27 = vpack.c.bf16 %v3700_v59, %v3700_v59  ;;  %v3647_v62 = vadd.f32 %v14803_v50, %v3497_v0  ;;  %v4271_v50 = vsel %vm1356_vm12, %v11256_v48, 0 }
 0x550   : > { %v3701_v63 = vmul.f32 %v3691_v61, %v14143_v14  ;;  %v3665_v3 = vld [vmem:[#allocation2 + $0x28] sm:$0xff] }
 0x551   : > { %v3763_v28 = vor.u32 %v3762_v19, %v3759_v23  ;;  %v3767_v31 = vshrl.u32 %v11821_v27, 16  ;;  %v3770_v24 = vshll.u32 %v11821_v27, 16  ;;  %v3682_v29 = vadd.f32 %v14870_v43, %v3665_v3  ;;  %3657 = vst.msk [vmem:[#allocation2 + $0x38] sm:$0xff] %vm696_vm10, %v3647_v62 }
 0x552   : > { %v11822_v45 = vpack.c.bf16 %v3701_v63, %v3701_v63  ;;  %v3498_v32 = vld [vmem:[#allocation2 + $0x40] sm:$0xff]  ;;  %v13537_v6 = vld [vmem:[#allocation3] sm:$0xff]  }
 0x553   : > { %v3764_v36 = vsel %vm14183_vm14, %v3755_v4, %v3763_v28  ;;  %v3769_v37 = vrot.slane %v3767_v31, 6  ;;  %v3772_v17 = vrot.slane %v3770_v24, 7  ;;  %v3692_v35 = vmax.f32 %v3682_v29, 0.0  ;;  %12569 = vmatmul.mubr.msk.bf16.vlgmr.msra.gmra.mxu1 %vm696_vm10, %v13537_v6  ;;  %v13539_v21 = vld [vmem:[#allocation3] sm:$0xff]  }
 0x554   : > { %3851 = vst.msk [vmem:[#allocation3 + $0xc] sm:$0xf] %vm529_vm0, %v3764_v36  ;;  %v3777_v10 = vshrl.u32 %v11822_v45, 16  ;;  %v3780_v30 = vshll.u32 %v11822_v45, 16  ;;  %v3666_v20 = vld [vmem:[#allocation2 + $0x30] sm:$0xff]  ;;  %v3648_v40 = vadd.f32 %v14805_v58, %v3498_v32  ;;  %v3765_v39 = vrot.slane %v3763_v28, 4  ;;  %12611 = vmatpush3.bf16.msra.mxu1 %v4271_v50  ;;  %12572 = vmatprep.mubr.msk.bf16.mxu1 %vm13805_vm8, %v13804_v12 }
 0x555   : > { %v3773_v46 = vor.u32 %v3772_v17, %v3769_v37  ;;  %v3683_v42 = vadd.f32 %v14870_v43, %v3666_v20  ;;  %v3499_v11 = vld [vmem:[#allocation2 + $0x48] sm:$0xff]  ;;  %v3702_v41 = vmul.f32 %v3692_v35, %v14147_v51  ;;  %12654 = vmatprep.subr.bf16.mxu1 %v13804_v12  ;;  %v4042_v57 = vshll.u32 %v13539_v21, 16 }
 0x556   : > { %v3779_v38 = vrot.slane %v3777_v10, 6  ;;  %v3782_v47 = vrot.slane %v3780_v30, 7  ;;  %3658 = vst.msk [vmem:[#allocation2 + $0x40] sm:$0xff] %vm696_vm10, %v3648_v40  ;;  %v3649_v58 = vadd.f32 %v14810_v54, %v3499_v11  ;;  %v4040_v50 = vshrl.u32 %v13539_v21, 16  ;;  %v11268_v36 = vld [vmem:[%s16487_s6 + $0xc] sm:$0xf] }
 0x557   : > { %v3774_v49 = vsel %vm14183_vm14, %v3765_v39, %v3773_v46  ;;  %v3693_v1 = vmax.f32 %v3683_v42, 0.0  ;;  %v3775_v15 = vrot.slane %v3773_v46, 4  ;;  %v11823_v55 = vpack.c.bf16 %v3702_v41, %v3702_v41 }
 0x558   : > { %3852 = vst.msk [vmem:[#allocation3 + $0x10] sm:$0xf] %vm529_vm0, %v3774_v49  ;;  %v3783_v7 = vor.u32 %v3782_v47, %v3779_v38  ;;  %v3667_v9 = vld [vmem:[#allocation2 + $0x38] sm:$0xff]  ;;  %v4044_v63 = vrot.slane %v4042_v57, 1 }
 0x559   : > { %3659 = vst.msk [vmem:[#allocation2 + $0x48] sm:$0xff] %vm696_vm10, %v3649_v58  ;;  %v3703_v53 = vmul.f32 %v3693_v1, %v14150_v56  ;;  %v3684_v22 = vadd.f32 %v14870_v43, %v3667_v9  ;;  %v3787_v44 = vshrl.u32 %v11823_v55, 16  ;;  %v3790_v59 = vshll.u32 %v11823_v55, 16 }
 0x55a   : > { %v3784_v54 = vsel %vm14183_vm14, %v3775_v15, %v3783_v7  ;;  %v3785_v3 = vrot.slane %v3783_v7, 4  ;;  %v4045_v11 = vor.u32 %v4044_v63, %v4040_v50  ;;  %v4443_v15 = vsel %vm1356_vm12, %v11268_v36, 0  ;;  %v3859_v50 = vld [vmem:[#allocation3 + $0x2c] sm:$0x3] }
 0x55b   : > { %3853 = vst.msk [vmem:[#allocation3 + $0x14] sm:$0xf] %vm529_vm0, %v3784_v54  ;;  %v11824_v33 = vpack.c.bf16 %v3703_v53, %v3703_v53  ;;  %v3694_v52 = vmax.f32 %v3684_v22, 0.0  ;;  %v13538_v61 = vld [vmem:[#allocation3 + $0x8] sm:$0xff]   ;;  %v3789_v0 = vrot.slane %v3787_v44, 6  ;;  %v3792_v23 = vrot.slane %v3790_v59, 7 }
 0x55c   : > { %v13540_v19 = vld [vmem:[#allocation3 + $0x8] sm:$0xff]   ;;  %12573 = vmatmul.mubr.msk.bf16.gmra.mxu1 %vm696_vm10, %v13538_v61 }
 0x55d   : > { %v3797_v27 = vshrl.u32 %v11824_v33, 16  ;;  %v3800_v62 = vshll.u32 %v11824_v33, 16  ;;  %v3704_v48 = vmul.f32 %v3694_v52, %v14152_v60  ;;  %v3668_v4 = vld [vmem:[#allocation2 + $0x40] sm:$0xff]  ;;  %v3793_v28 = vor.u32 %v3792_v23, %v3789_v0  ;;  %12576 = vmatprep.mubr.msk.bf16.mxu1 %vm13805_vm8, %v13804_v12 }
 0x55e   : > { %v3685_v31 = vadd.f32 %v14870_v43, %v3668_v4  ;;  %v4047_v24 = vshll.u32 %v13540_v19, 16  ;;  %v4051_v9 = vshrl.u32 %v13540_v19, 16 }
 0x55f   : > { %v3799_v29 = vrot.slane %v3797_v27, 6  ;;  %v3802_v45 = vrot.slane %v3800_v62, 7  ;;  %v11825_v32 = vpack.c.bf16 %v3704_v48, %v3704_v48  ;;  %v3794_v37 = vsel %vm14183_vm14, %v3785_v3, %v3793_v28 }
 0x560   : > { %v3669_v6 = vld [vmem:[#allocation2 + $0x48] sm:$0xff]  ;;  %v3795_v17 = vrot.slane %v3793_v28, 4  ;;  %v3695_v10 = vmax.f32 %v3685_v31, 0.0  ;;  %3854 = vst.msk [vmem:[#allocation3 + $0x18] sm:$0xf] %vm529_vm0, %v3794_v37  ;;  %v4049_v39 = vrot.slane %v4047_v24, 1 }
 0x561   : > { %v3686_v30 = vadd.f32 %v14870_v43, %v3669_v6  ;;  %v3803_v35 = vor.u32 %v3802_v45, %v3799_v29  ;;  %v3807_v20 = vshrl.u32 %v11825_v32, 16  ;;  %v3810_v40 = vshll.u32 %v11825_v32, 16 }
 0x562   : > { %v3705_v46 = vmul.f32 %v3695_v10, %v14160_v8  ;;  %v13541_v21 = vld [vmem:[#allocation3 + $0x10] sm:$0xff]   ;;  %v4050_v1 = vsel %vm1484_vm1, %v4045_v11, %v4049_v39  ;;  %v4053_v33 = vor.u32 %v4051_v9, %v4049_v39 }
 0x563   : > { %v3696_v42 = vmax.f32 %v3686_v30, 0.0  ;;  %v3804_v38 = vsel %vm14183_vm14, %v3795_v17, %v3803_v35  ;;  %v3809_v47 = vrot.slane %v3807_v20, 6  ;;  %v3812_v41 = vrot.slane %v3810_v40, 7  ;;  %v13542_v58 = vld [vmem:[#allocation3 + $0x10] sm:$0xff]   ;;  %12591 = vmatmul.mubr.msk.bf16.vlgmr.msra.gmra.mxu0 %vm696_vm10, %v4050_v1  ;;  %v13548_v20 = vld [vmem:[#allocation3 + $0x8] sm:$0xff]  }
 0x564   : > { %3855 = vst.msk [vmem:[#allocation3 + $0x1c] sm:$0xf] %vm529_vm0, %v3804_v38  ;;  %v11826_v43 = vpack.c.bf16 %v3705_v46, %v3705_v46  ;;  %v3805_v7 = vrot.slane %v3803_v35, 4  ;;  %12577 = vmatmul.mubr.msk.bf16.gmra.mxu1 %vm696_vm10, %v13541_v21  ;;  %v4055_v53 = vshll.u32 %v13542_v58, 16  ;;  %12594 = vmatprep.mubr.msk.bf16.mxu0 %vm13805_vm8, %v13804_v12  ;;  %v4059_v32 = vshrl.u32 %v13542_v58, 16 }
 0x565   : > { %v3706_v49 = vmul.f32 %v3696_v42, %v14237_v26  ;;  %v3813_v55 = vor.u32 %v3812_v41, %v3809_v47  ;;  %12580 = vmatprep.mubr.msk.bf16.mxu1 %vm13805_vm8, %v13804_v12  ;;  %12633 = vmatpush3.bf16.msra.mxu0 %v4443_v15  ;;  %v13547_v46 = vld [vmem:[#allocation3] sm:$0xfe]   ;;  %v4245_v47 = vrot.slane %v13548_v20, 1  ;;  %v13550_v15 = vld [vmem:[#allocation3 + $0x10] sm:$0xff]  }
 0x566   : > { %v3817_v22 = vshrl.u32 %v11826_v43, 16  ;;  %v3820_v57 = vshll.u32 %v11826_v43, 16  ;;  %v4057_v52 = vrot.slane %v4055_v53, 1  ;;  %12676 = vmatprep.subr.bf16.mxu0 %v13804_v12  ;;  %v11280_v42 = vld [vmem:[%s16487_s6 + $0x10] sm:$0xf]  ;;  %v4244_v58 = vrot.slane %v13547_v46, 1 }
 0x567   : > { %v11827_v54 = vpack.c.bf16 %v3706_v49, %v3706_v49  ;;  %v3814_v44 = vsel %vm14183_vm14, %v3805_v7, %v3813_v55  ;;  %v3815_v59 = vrot.slane %v3813_v55, 4  ;;  %v4657_v43 = vsel %vm1356_vm12, %v11280_v42, 0 }
 0x568   : > { %3856 = vst.msk [vmem:[#allocation3 + $0x20] sm:$0xf] %vm529_vm0, %v3814_v44  ;;  %v3819_v61 = vrot.slane %v3817_v22, 6  ;;  %v3822_v0 = vrot.slane %v3820_v57, 7  ;;  %v4058_v4 = vsel %vm1484_vm1, %v4053_v33, %v4057_v52  ;;  %v4061_v37 = vor.u32 %v4059_v32, %v4057_v52  ;;  %v13552_v57 = vld [vmem:[#allocation3 + $0xc] sm:$0xff]  }
 0x569   : > { %v3827_v23 = vshrl.u32 %v11827_v54, 16  ;;  %v3830_v19 = vshll.u32 %v11827_v54, 16  ;;  %v4246_v1 = vsel %vm1691_vm15, %v4244_v58, %v4245_v47  ;;  %v4247_v9 = vrot.slane %v13550_v15, 1  ;;  %v11292_v52 = vld [vmem:[%s16487_s6 + $0x14] sm:$0xf] }
 0x56a   : > { %v3823_v27 = vor.u32 %v3822_v0, %v3819_v61  ;;  %v4417_v33 = vrot.slane %v13552_v57, 1 }
 0x56b   : > { %v3829_v62 = vrot.slane %v3827_v23, 6  ;;  %v3832_v48 = vrot.slane %v3830_v19, 7  ;;  %v13543_v63 = vld [vmem:[#allocation3 + $0x18] sm:$0xff]   ;;  %12595 = vmatmul.mubr.msk.bf16.gmra.mxu0 %vm696_vm10, %v4058_v4  ;;  %v4248_v54 = vsel %vm1691_vm15, %v4245_v47, %v4247_v9 }
 0x56c   : > { %v3824_v3 = vsel %vm14183_vm14, %v3815_v59, %v3823_v27  ;;  %v3825_v28 = vrot.slane %v3823_v27, 4  ;;  %v13544_v24 = vld [vmem:[#allocation3 + $0x18] sm:$0xff]   ;;  %12581 = vmatmul.mubr.msk.bf16.gmra.mxu1 %vm696_vm10, %v13543_v63  ;;  %12598 = vmatprep.mubr.msk.bf16.mxu0 %vm13805_vm8, %v13804_v12  ;;  %v13551_v59 = vld [vmem:[#allocation3 + $0x4] sm:$0xfe]  }
 0x56d   : > { %v3833_v31 = vor.u32 %v3832_v48, %v3829_v62  ;;  %3857 = vst.msk [vmem:[#allocation3 + $0x24] sm:$0xf] %vm529_vm0, %v3824_v3  ;;  %v4063_v6 = vshll.u32 %v13544_v24, 16  ;;  %12584 = vmatprep.mubr.msk.bf16.mxu1 %vm13805_vm8, %v13804_v12  ;;  %v4067_v40 = vshrl.u32 %v13544_v24, 16  ;;  %v13553_v44 = vld [vmem:[#allocation3 + $0x18] sm:$0xff]   ;;  %v4416_v0 = vrot.slane %v13551_v59, 1 }
 0x56e   : > { %v4249_v61 = vrot.slane %v13553_v44, 1  ;;  %v13554_v19 = vld [vmem:[#allocation3 + $0x14] sm:$0xff]   ;;  %v4829_v62 = vsel %vm1356_vm12, %v11292_v52, 0  ;;  %v13564_v59 = vld [vmem:[#allocation3 + $0xc] sm:$0xff]  }
 0x56f   : > { %v3834_v29 = vsel %vm14183_vm14, %v3825_v28, %v3833_v31  ;;  %v3835_v45 = vrot.slane %v3833_v31, 4  ;;  %v4065_v17 = vrot.slane %v4063_v6, 1  ;;  %v4418_v23 = vsel %vm1691_vm15, %v4416_v0, %v4417_v33  ;;  %v13556_v28 = vld [vmem:[#allocation3 + $0x1c] sm:$0xff]  }
 0x570   : > { %3858 = vst.msk [vmem:[#allocation3 + $0x28] sm:$0xf] %vm529_vm0, %v3834_v29  ;;  %v4250_v48 = vsel %vm1691_vm15, %v4247_v9, %v4249_v61  ;;  %v4419_v4 = vrot.slane %v13554_v19, 1  ;;  %v13560_v29 = vld [vmem:[#allocation3 + $0xc] sm:$0xff]   ;;  %v4421_v32 = vrot.slane %v13556_v28, 1  ;;  %v13565_v9 = vld [vmem:[#allocation3 + $0x1c] sm:$0xff]  }
 0x571   : > { %v3860_v36 = vsel %vm13907_vm3, %v3835_v45, %v3859_v50  ;;  %v4066_v10 = vsel %vm1484_vm1, %v4061_v37, %v4065_v17  ;;  %v4069_v21 = vor.u32 %v4067_v40, %v4065_v17  ;;  %v13559_v45 = vld [vmem:[#allocation3 + $0x4] sm:$0xfe]   ;;  %v4597_v50 = vshrl.u32 %v13560_v29, 16  ;;  %v13566_v28 = vld [vmem:[#allocation3 + $0x14] sm:$0xff]  }
 0x572   : > { %3861 = vst [vmem:[#allocation3 + $0x2c] sm:$0x3] %v3860_v36  ;;  %v4420_v3 = vsel %vm1691_vm15, %v4417_v33, %v4419_v4  ;;  %v4600_v36 = vshll.u32 %v13560_v29, 16  ;;  %v4589_v37 = vshrl.u32 %v13559_v45, 16  ;;  %v4592_v17 = vshll.u32 %v13559_v45, 16 }
 0x573   : > { %12599 = vmatmul.mubr.msk.bf16.gmra.mxu0 %vm696_vm10, %v4066_v10  ;;  %v4422_v10 = vsel %vm1691_vm15, %v4419_v4, %v4421_v32  ;;  %v4599_v20 = vrot.slane %v4597_v50, 1  ;;  %v4615_v57 = vshrl.u32 %v13565_v9, 16  ;;  %v4803_v19 = vrot.slane %v13564_v59, 2  ;;  %v11316_v4 = vld [vmem:[%s16487_s6 + $0x1c] sm:$0xf] }
 0x574   : > { %v13545_v30 = vld [vmem:[#allocation3 + $0x20] sm:$0xff]   ;;  %12602 = vmatprep.mubr.msk.bf16.mxu0 %vm13805_vm8, %v13804_v12  ;;  %v4602_v40 = vrot.slane %v4600_v36, 2  ;;  %v4591_v46 = vrot.slane %v4589_v37, 1  ;;  %v4594_v42 = vrot.slane %v4592_v17, 2 }
 0x575   : > { %v13546_v35 = vld [vmem:[#allocation3 + $0x20] sm:$0xff]   ;;  %12585 = vmatmul.mubr.msk.bf16.gmra.mxu1 %vm696_vm10, %v13545_v30  ;;  %v4617_v52 = vrot.slane %v4615_v57, 1 }
 0x576   : > { %v4071_v39 = vshll.u32 %v13546_v35, 16  ;;  %12612 = vmatprep.mubr.msk.bf16.mxu1 %vm13805_vm8, %v13804_v12  ;;  %v4075_v7 = vshrl.u32 %v13546_v35, 16  ;;  %v13555_v27 = vld [vmem:[#allocation3 + $0x20] sm:$0xff]   ;;  %v4595_v58 = vor.u32 %v4594_v42, %v4591_v46 }
 0x577   : > { %v13549_v11 = vld [vmem:[#allocation3 + $0x28] ss:$0 sps:$4 sm:$0x11]   ;;  %v4251_v63 = vrot.slane %v13555_v27, 1 }
 0x578   : > { %v4073_v38 = vrot.slane %v4071_v39, 1  ;;  %v4079_v49 = vshll.u32 %v13549_v11, 16  ;;  %v13557_v24 = vld [vmem:[#allocation3 + $0x28] ss:$0 sps:$4 sm:$0x11]   ;;  %v13562_v39 = vld [vmem:[#allocation3 + $0x14] sm:$0xff]  }
 0x579   : > { %v4252_v31 = vsel %vm1691_vm15, %v4249_v61, %v4251_v63  ;;  %v4253_v6 = vrot.slane %v13557_v24, 1  ;;  %v13558_v30 = vld [vmem:[#allocation3 + $0x24] sm:$0xff]   ;;  %v4606_v47 = vshrl.u32 %v13562_v39, 16 }
 0x57a   : > { %v4074_v41 = vsel %vm1484_vm1, %v4069_v21, %v4073_v38  ;;  %v4081_v55 = vrot.slane %v4079_v49, 1  ;;  %v4077_v53 = vor.u32 %v4075_v7, %v4073_v38  ;;  %v4423_v11 = vrot.slane %v13558_v30, 1  ;;  %v11304_v38 = vld [vmem:[%s16487_s6 + $0x18] sm:$0xf] }
 0x57b   : > { %12603 = vmatmul.mubr.msk.bf16.gmra.mxu0 %vm696_vm10, %v4074_v41  ;;  %v4254_v35 = vsel %vm1691_vm15, %v4251_v63, %v4253_v6  ;;  %v4603_v21 = vor.u32 %v4602_v40, %v4599_v20  ;;  %v4609_v41 = vshll.u32 %v13562_v39, 16  ;;  %v5001_v49 = vsel %vm1356_vm12, %v11304_v38, 0  ;;  %v13567_v0 = vld [vmem:[#allocation3 + $0x24] sm:$0xff]  }
 0x57c   : > { %12606 = vmatprep.mubr.msk.bf16.mxu0 %vm13805_vm8, %v13804_v12  ;;  %v4082_v22 = vsel %vm1484_vm1, %v4077_v53, %v4081_v55  ;;  %v4608_v7 = vrot.slane %v4606_v47, 1  ;;  %v4805_v6 = vrot.slane %v13566_v28, 2  ;;  %v13570_v42 = vld [vmem:[#allocation3 + $0x24] sm:$0xff]  }
 0x57d   : > { %12613 = vmatmul.mubr.msk.bf16.vlgmr.msra.gmra.mxu1 %vm696_vm10, %v4246_v1  ;;  %v13561_v1 = vld [vmem:[#allocation3 + $0x2c] ss:$0 sps:$4 sm:$0x11]   ;;  %v4604_v15 = vsel %vm2038_vm2, %v4595_v58, %v4603_v21  ;;  %v4611_v55 = vrot.slane %v4609_v41, 2  ;;  %v4809_v47 = vrot.slane %v13570_v42, 2 }
 0x57e   : > { %12655 = vmatpush3.bf16.msra.mxu1 %v4657_v43  ;;  %12616 = vmatprep.mubr.msk.bf16.mxu1 %vm13805_vm8, %v13804_v12  ;;  %v4424_v43 = vsel %vm1691_vm15, %v4421_v32, %v4423_v11  ;;  %v4425_v53 = vrot.slane %v13561_v1, 1  ;;  %v13569_v32 = vld [vmem:[#allocation3 + $0x2c] ss:$0 sps:$4 sm:$0x33]   ;;  %v4806_v17 = vsel %vm2254_vm4, %v4803_v19, %v4805_v6  ;;  %v11328_v58 = vld [vmem:[%s16487_s6 + $0x20] sm:$0xf] }
 0x57f   : > { %12698 = vmatprep.subr.bf16.mxu1 %v13804_v12  ;;  %v4633_v36 = vshrl.u32 %v13569_v32, 16  ;;  %v4636_v37 = vshll.u32 %v13569_v32, 16  ;;  %v13571_v38 = vld [vmem:[#allocation3 + $0x8] sm:$0xfc]   ;;  %v5387_v1 = vsel %vm1356_vm12, %v11328_v58, 0  ;;  %v13580_v32 = vld [vmem:[#allocation3 + $0x20] sm:$0xff]  }
 0x580   : > { %v4426_v44 = vsel %vm1691_vm15, %v4423_v11, %v4425_v53  ;;  %v13575_v53 = vld [vmem:[#allocation3 + $0x8] sm:$0xfc]  }
 0x581   : > { %v4638_v20 = vrot.slane %v4636_v37, 2  ;;  %v5147_v59 = vshrl.u32 %v13575_v53, 16  ;;  %v5173_v37 = vshrl.u32 %v13580_v32, 16 }
 0x583   : > { %12607 = vmatmul.mubr.msk.bf16.gmra.mxu0 %vm696_vm10, %v4082_v22  ;;  %v4612_v22 = vor.u32 %v4611_v55, %v4608_v7  ;;  %v13576_v7 = vld [vmem:[#allocation3 + $0x10] sm:$0xff]  }
 0x584   : > { %12634 = vmatprep.mubr.msk.bf16.mxu0 %vm13805_vm8, %v13804_v12  ;;  %v5155_v57 = vshrl.u32 %v13576_v7, 16 }
 0x585   : > { %12617 = vmatmul.mubr.msk.bf16.gmra.mxu1 %vm696_vm10, %v4248_v54  ;;  %v4618_v54 = vshll.u32 %v13565_v9, 16  ;;  %v4613_v33 = vsel %vm2038_vm2, %v4603_v21, %v4612_v22  ;;  %v13572_v21 = vld [vmem:[#allocation3 + $0x10] sm:$0xff]   ;;  %v13574_v9 = vld [vmem:[#allocation3 + $0x18] sm:$0xff]  }
 0x586   : > { %12620 = vmatprep.mubr.msk.bf16.mxu1 %vm13805_vm8, %v13804_v12  ;;  %v4975_v41 = vrot.slane %v13572_v21, 2 }
 0x587   : > { %v4620_v61 = vrot.slane %v4618_v54, 2  ;;  %v5158_v54 = vshll.u32 %v13576_v7, 16 }
 0x589   : > { %v4621_v27 = vor.u32 %v4620_v61, %v4617_v52  ;;  %v5157_v61 = vrot.slane %v5155_v57, 2 }
 0x58b   : > { %12635 = vmatmul.mubr.msk.bf16.vlgmr.msra.gmra.mxu0 %vm696_vm10, %v4418_v23  ;;  %v13563_v23 = vld [vmem:[#allocation3 + $0x4] sm:$0xfc]   ;;  %v4622_v24 = vsel %vm2038_vm2, %v4612_v22, %v4621_v27 }
 0x58c   : > { %12638 = vmatprep.mubr.msk.bf16.mxu0 %vm13805_vm8, %v13804_v12  ;;  %12677 = vmatpush3.bf16.msra.mxu0 %v4829_v62  ;;  %v4624_v62 = vshrl.u32 %v13567_v0, 16  ;;  %v4802_v63 = vrot.slane %v13563_v23, 2  ;;  %v13578_v23 = vld [vmem:[#allocation3 + $0x18] sm:$0xff]  }
 0x58d   : > { %12621 = vmatmul.mubr.msk.bf16.gmra.mxu1 %vm696_vm10, %v4250_v48  ;;  %12720 = vmatprep.subr.bf16.mxu0 %v13804_v12  ;;  %v4627_v48 = vshll.u32 %v13567_v0, 16  ;;  %v5160_v0 = vrot.slane %v5158_v54, 3 }
 0x58e   : > { %12624 = vmatprep.mubr.msk.bf16.mxu1 %vm13805_vm8, %v13804_v12  ;;  %v4626_v29 = vrot.slane %v4624_v62, 1  ;;  %v5149_v62 = vrot.slane %v5147_v59, 2 }
 0x58f   : > { %v4629_v45 = vrot.slane %v4627_v48, 2 }
 0x591   : > { %v4630_v50 = vor.u32 %v4629_v45, %v4626_v29 }
 0x593   : > { %12639 = vmatmul.mubr.msk.bf16.gmra.mxu0 %vm696_vm10, %v4420_v3  ;;  %v4804_v3 = vsel %vm2254_vm4, %v4802_v63, %v4803_v19  ;;  %v4631_v30 = vsel %vm2038_vm2, %v4621_v27, %v4630_v50  ;;  %v13577_v27 = vld [vmem:[#allocation3 + $0x20] sm:$0xff]   ;;  %v5164_v63 = vshrl.u32 %v13578_v23, 16 }
 0x594   : > { %12642 = vmatprep.mubr.msk.bf16.mxu0 %vm13805_vm8, %v13804_v12  ;;  %v4979_v28 = vrot.slane %v13577_v27, 2 }
 0x595   : > { %12625 = vmatmul.mubr.msk.bf16.gmra.mxu1 %vm696_vm10, %v4252_v31  ;;  %v5215_v31 = vsel %vm1356_vm12, %v11316_v4, 0  ;;  %v5161_v4 = vor.u32 %v5160_v0, %v5157_v61  ;;  %v5166_v29 = vrot.slane %v5164_v63, 2 }
 0x596   : > { %12628 = vmatprep.mubr.msk.bf16.mxu1 %vm13805_vm8, %v13804_v12 }
 0x59b   : > { %12643 = vmatmul.mubr.msk.bf16.gmra.mxu0 %vm696_vm10, %v4422_v10  ;;  %v13568_v10 = vld [vmem:[#allocation3 + $0x1c] sm:$0xff]  }
 0x59c   : > { %12646 = vmatprep.mubr.msk.bf16.mxu0 %vm13805_vm8, %v13804_v12  ;;  %v4807_v40 = vrot.slane %v13568_v10, 2 }
 0x59d   : > { %12629 = vmatmul.mubr.msk.bf16.gmra.mxu1 %vm696_vm10, %v4254_v35  ;;  %v4635_v35 = vrot.slane %v4633_v36, 1 }
 0x59e   : > { %12656 = vmatprep.mubr.msk.bf16.mxu1 %vm13805_vm8, %v13804_v12  ;;  %v4808_v46 = vsel %vm2254_vm4, %v4805_v6, %v4807_v40 }
 0x59f   : > { %v4639_v39 = vor.u32 %v4638_v20, %v4635_v35  ;;  %v5175_v35 = vrot.slane %v5173_v37, 2 }
 0x5a1   : > { %v4640_v11 = vsel %vm2038_vm2, %v4630_v50, %v4639_v39  ;;  %v13579_v50 = vld [vmem:[#allocation3 + $0x28] sm:$0xff]  }
 0x5a2   : > { %v4981_v10 = vrot.slane %v13579_v50, 2 }
 0x5a3   : > { %12647 = vmatmul.mubr.msk.bf16.gmra.mxu0 %vm696_vm10, %v4424_v43  ;;  %v4974_v43 = vrot.slane %v13571_v38, 2 }
 0x5a4   : > { %12650 = vmatprep.mubr.msk.bf16.mxu0 %vm13805_vm8, %v13804_v12  ;;  %v4982_v39 = vsel %vm2254_vm4, %v4979_v28, %v4981_v10 }
 0x5a5   : > { %12657 = vmatmul.mubr.msk.bf16.vlgmr.msra.gmra.mxu1 %vm696_vm10, %v4604_v15  ;;  %v13573_v15 = vld [vmem:[#allocation3 + $0x2c] ss:$0 sps:$4 sm:$0x33]   ;;  %v4976_v55 = vsel %vm2254_vm4, %v4974_v43, %v4975_v41  ;;  %v13585_v43 = vld [vmem:[#allocation3 + $0x30] ss:$0 sps:$4 sm:$0x77]  }
 0x5a6   : > { %12699 = vmatpush3.bf16.msra.mxu1 %v5001_v49  ;;  %12660 = vmatprep.mubr.msk.bf16.mxu1 %vm13805_vm8, %v13804_v12  ;;  %v4810_v49 = vsel %vm2254_vm4, %v4807_v40, %v4809_v47  ;;  %v4811_v22 = vrot.slane %v13573_v15, 2  ;;  %v13582_v40 = vld [vmem:[#allocation3 + $0x28] sm:$0xff]  }
 0x5a7   : > { %12742 = vmatprep.subr.bf16.mxu1 %v13804_v12  ;;  %v5185_v21 = vshll.u32 %v13582_v40, 16  ;;  %v13583_v15 = vld [vmem:[#allocation3 + $0x8] sm:$0xf8]  }
 0x5a8   : > { %v4812_v52 = vsel %vm2254_vm4, %v4809_v47, %v4811_v22  ;;  %v5360_v22 = vrot.slane %v13583_v15, 3 }
 0x5a9   : > { %v5187_v58 = vrot.slane %v5185_v21, 3 }
 0x5ab   : > { %12651 = vmatmul.mubr.msk.bf16.gmra.mxu0 %vm696_vm10, %v4426_v44  ;;  %v4977_v44 = vrot.slane %v13574_v9, 2  ;;  %v5194_v9 = vshll.u32 %v13585_v43, 16 }
 0x5ac   : > { %12678 = vmatprep.mubr.msk.bf16.mxu0 %vm13805_vm8, %v13804_v12 }
 0x5ad   : > { %12661 = vmatmul.mubr.msk.bf16.gmra.mxu1 %vm696_vm10, %v4613_v33  ;;  %v5150_v33 = vshll.u32 %v13575_v53, 16  ;;  %v4978_v19 = vsel %vm2254_vm4, %v4975_v41, %v4977_v44  ;;  %v4980_v6 = vsel %vm2254_vm4, %v4977_v44, %v4979_v28  ;;  %v5196_v44 = vrot.slane %v5194_v9, 3 }
 0x5ae   : > { %12664 = vmatprep.mubr.msk.bf16.mxu1 %vm13805_vm8, %v13804_v12 }
 0x5af   : > { %v5152_v48 = vrot.slane %v5150_v33, 3  ;;  %v13586_v33 = vld [vmem:[#allocation3 + $0x18] sm:$0xff]  }
 0x5b0   : > { %v5363_v61 = vrot.slane %v13586_v33, 3 }
 0x5b3   : > { %12679 = vmatmul.mubr.msk.bf16.vlgmr.msra.gmra.mxu0 %vm696_vm10, %v4804_v3  ;;  %v5167_v3 = vshll.u32 %v13578_v23, 16 }
 0x5b4   : > { %12682 = vmatprep.mubr.msk.bf16.mxu0 %vm13805_vm8, %v13804_v12  ;;  %12721 = vmatpush3.bf16.msra.mxu0 %v5215_v31  ;;  %v5153_v31 = vor.u32 %v5152_v48, %v5149_v62  ;;  %v13588_v48 = vld [vmem:[#allocation3 + $0x28] sm:$0xff]  }
 0x5b5   : > { %12665 = vmatmul.mubr.msk.bf16.gmra.mxu1 %vm696_vm10, %v4622_v24  ;;  %12764 = vmatprep.subr.bf16.mxu0 %v13804_v12  ;;  %v5169_v45 = vrot.slane %v5167_v3, 3  ;;  %v13589_v3 = vld [vmem:[#allocation3 + $0x30] ss:$0 sps:$4 sm:$0x77]  }
 0x5b6   : > { %12668 = vmatprep.mubr.msk.bf16.mxu1 %vm13805_vm8, %v13804_v12  ;;  %v5162_v24 = vsel %vm2601_vm6, %v5153_v31, %v5161_v4  ;;  %v5369_v28 = vrot.slane %v13589_v3, 3 }
 0x5b7   : > { %v5170_v36 = vor.u32 %v5169_v45, %v5166_v29 }
 0x5bb   : > { %12683 = vmatmul.mubr.msk.bf16.gmra.mxu0 %vm696_vm10, %v4806_v17  ;;  %v5176_v17 = vshll.u32 %v13580_v32, 16 }
 0x5bc   : > { %12686 = vmatprep.mubr.msk.bf16.mxu0 %vm13805_vm8, %v13804_v12 }
 0x5bd   : > { %12669 = vmatmul.mubr.msk.bf16.gmra.mxu1 %vm696_vm10, %v4631_v30  ;;  %v5171_v30 = vsel %vm2601_vm6, %v5161_v4, %v5170_v36  ;;  %v5178_v20 = vrot.slane %v5176_v17, 3  ;;  %v5367_v4 = vrot.slane %v13588_v48, 3 }
 0x5be   : > { %12672 = vmatprep.mubr.msk.bf16.mxu1 %vm13805_vm8, %v13804_v12 }
 0x5bf   : > { %v5179_v42 = vor.u32 %v5178_v20, %v5175_v35 }
 0x5c1   : > { %v5180_v47 = vsel %vm2601_vm6, %v5170_v36, %v5179_v42 }
 0x5c3   : > { %12687 = vmatmul.mubr.msk.bf16.gmra.mxu0 %vm696_vm10, %v4808_v46  ;;  %v13581_v46 = vld [vmem:[#allocation3 + $0x30] ss:$0 sps:$4 sm:$0x33]  }
 0x5c4   : > { %12690 = vmatprep.mubr.msk.bf16.mxu0 %vm13805_vm8, %v13804_v12  ;;  %v4983_v38 = vrot.slane %v13581_v46, 2 }
 0x5c5   : > { %12673 = vmatmul.mubr.msk.bf16.gmra.mxu1 %vm696_vm10, %v4640_v11  ;;  %v5182_v11 = vshrl.u32 %v13582_v40, 16 }
 0x5c6   : > { %12700 = vmatprep.mubr.msk.bf16.mxu1 %vm13805_vm8, %v13804_v12 }
 0x5c7   : > { %v5184_v41 = vrot.slane %v5182_v11, 2 }
 0x5c9   : > { %v5188_v7 = vor.u32 %v5187_v58, %v5184_v41 }
 0x5cb   : > { %12691 = vmatmul.mubr.msk.bf16.gmra.mxu0 %vm696_vm10, %v4810_v49  ;;  %v4984_v49 = vsel %vm2254_vm4, %v4981_v10, %v4983_v38  ;;  %v5189_v57 = vsel %vm2601_vm6, %v5179_v42, %v5188_v7 }
 0x5cc   : > { %12694 = vmatprep.mubr.msk.bf16.mxu0 %vm13805_vm8, %v13804_v12 }
 0x5cd   : > { %12701 = vmatmul.mubr.msk.bf16.vlgmr.msra.gmra.mxu1 %vm696_vm10, %v4976_v55  ;;  %v5191_v55 = vshrl.u32 %v13585_v43, 16 }
 0x5ce   : > { %12743 = vmatpush3.bf16.msra.mxu1 %v5387_v1  ;;  %12704 = vmatprep.mubr.msk.bf16.mxu1 %vm13805_vm8, %v13804_v12  ;;  %v13584_v1 = vld [vmem:[#allocation3 + $0x10] sm:$0xff]  }
 0x5cf   : > { %12786 = vmatprep.subr.bf16.mxu1 %v13804_v12  ;;  %v5361_v53 = vrot.slane %v13584_v1, 3  ;;  %v5193_v54 = vrot.slane %v5191_v55, 2  ;;  %v13590_v55 = vld [vmem:[%s16485_s4 + $0x18] sm:$0xff]  }
 0x5d1   : > { %v5362_v59 = vsel %vm2817_vm5, %v5360_v22, %v5361_v53  ;;  %v5364_v23 = vsel %vm2817_vm5, %v5361_v53, %v5363_v61 }
 0x5d3   : > { %12695 = vmatmul.mubr.msk.bf16.gmra.mxu0 %vm696_vm10, %v4812_v52  ;;  %v5197_v52 = vor.u32 %v5196_v44, %v5193_v54 }
 0x5d4   : > { %12722 = vmatprep.mubr.msk.bf16.mxu0 %vm13805_vm8, %v13804_v12 }
 0x5d5   : > { %12705 = vmatmul.mubr.msk.bf16.gmra.mxu1 %vm696_vm10, %v4978_v19  ;;  %v5198_v0 = vsel %vm2601_vm6, %v5188_v7, %v5197_v52  ;;  %v13587_v19 = vld [vmem:[#allocation3 + $0x20] sm:$0xff]  }
 0x5d6   : > { %12708 = vmatprep.mubr.msk.bf16.mxu1 %vm13805_vm8, %v13804_v12  ;;  %v5365_v27 = vrot.slane %v13587_v19, 3 }
 0x5d8   : > { %v5366_v62 = vsel %vm2817_vm5, %v5363_v61, %v5365_v27  ;;  %v5368_v63 = vsel %vm2817_vm5, %v5365_v27, %v5367_v4 }
 0x5db   : > { %12723 = vmatmul.mubr.msk.bf16.vlgmr.msra.gmra.mxu0 %vm696_vm10, %v5162_v24  ;;  %v5370_v24 = vsel %vm2817_vm5, %v5367_v4, %v5369_v28 }
 0x5dc   : > { %12726 = vmatprep.mubr.msk.bf16.mxu0 %vm13805_vm8, %v13804_v12 }
 0x5dd   : > { %12709 = vmatmul.mubr.msk.bf16.gmra.mxu1 %vm696_vm10, %v4980_v6 }
 0x5de   : > { %12712 = vmatprep.mubr.msk.bf16.mxu1 %vm13805_vm8, %v13804_v12 }
 0x5e3   : > { %12727 = vmatmul.mubr.msk.bf16.gmra.mxu0 %vm696_vm10, %v5171_v30 }
 0x5e4   : > { %12730 = vmatprep.mubr.msk.bf16.mxu0 %vm13805_vm8, %v13804_v12 }
 0x5e5   : > { %12713 = vmatmul.mubr.msk.bf16.gmra.mxu1 %vm696_vm10, %v4982_v39  ;;  %v5534_v39 = vld [vmem:[%s16489_s8] sm:$0xf] }
 0x5e6   : > { %12716 = vmatprep.mubr.msk.bf16.mxu1 %vm13805_vm8, %v13804_v12  ;;  %v5558_v21 = vsel %vm1356_vm12, %v5534_v39, 0 }
 0x5e7   : > { %12765 = vmatpush3.bf16.msra.mxu0 %v5558_v21 }
 0x5e8   : > { %12810 = vmatprep.subr.bf16.mxu0 %v13804_v12 }
 0x5eb   : > { %12731 = vmatmul.mubr.msk.bf16.gmra.mxu0 %vm696_vm10, %v5180_v47 }
 0x5ec   : > { %12734 = vmatprep.mubr.msk.bf16.mxu0 %vm13805_vm8, %v13804_v12 }
 0x5ed   : > { %12717 = vmatmul.mubr.msk.bf16.gmra.mxu1 %vm696_vm10, %v4984_v49 }
 0x5ee   : > { %12744 = vmatprep.mubr.msk.bf16.mxu1 %vm13805_vm8, %v13804_v12 }
 0x5f3   : > { %12735 = vmatmul.mubr.msk.bf16.gmra.mxu0 %vm696_vm10, %v5189_v57 }
 0x5f4   : > { %12738 = vmatprep.mubr.msk.bf16.mxu0 %vm13805_vm8, %v13804_v12 }
 0x5f5   : > { %12745 = vmatmul.mubr.msk.bf16.vlgmr.msra.gmra.mxu1 %vm696_vm10, %v5362_v59 }
 0x5f6   : > { %12748 = vmatprep.mubr.msk.bf16.mxu1 %vm13805_vm8, %v13804_v12  ;;  %12787 = vmatpush3.bf16.msra.mxu1 %v13590_v55 }
 0x5f7   : > { %12788 = vmatprep.subr.bf16.mxu1 %v13804_v12 }
 0x5fb   : > { %12739 = vmatmul.mubr.msk.bf16.gmra.mxu0 %vm696_vm10, %v5198_v0 }
 0x5fc   : > { %12766 = vmatprep.mubr.msk.bf16.mxu0 %vm13805_vm8, %v13804_v12 }
 0x5fd   : > { %12749 = vmatmul.mubr.msk.bf16.gmra.mxu1 %vm696_vm10, %v5364_v23 }
 0x5fe   : > { %12752 = vmatprep.mubr.msk.bf16.mxu1 %vm13805_vm8, %v13804_v12 }
 0x605   : > { %12753 = vmatmul.mubr.msk.bf16.gmra.mxu1 %vm696_vm10, %v5366_v62 }
 0x606   : > { %12756 = vmatprep.mubr.msk.bf16.mxu1 %vm13805_vm8, %v13804_v12 }
 0x60d   : > { %12757 = vmatmul.mubr.msk.bf16.gmra.mxu1 %vm696_vm10, %v5368_v63 }
 0x60e   : > { %12760 = vmatprep.mubr.msk.bf16.mxu1 %vm13805_vm8, %v13804_v12 }
 0x613   : > { %v3950_v31 = vpop.f32.mrf.mxu1 }
 0x614   : > { %3989 = vst.msk [vmem:[#allocation2] sm:$0xff] %vm696_vm10, %v3950_v31 }
 0x615   : > { %12761 = vmatmul.mubr.msk.bf16.gmra.mxu1 %vm696_vm10, %v5370_v24  ;;  %v12570_v29 = vpop.f32.mrf.mxu1 }
 0x616   : > { %12790 = vmatprep.mubr.msk.bf16.mxu1 %vm13805_vm8, %v13804_v12 }
 0x617   : > { %v3953_v45 = vpop.f32.mrf.mxu1 }
 0x618   : > { %3990 = vst.msk [vmem:[#allocation2 + $0x8] sm:$0xff] %vm696_vm10, %v3953_v45 }
 0x619   : > { %v12571_v32 = vpop.f32.mrf.mxu1 }
 0x61b   : > { %v4174_v10 = vld [vmem:[#allocation2] sm:$0xff] }
 0x61c   : > { %v3958_v6 = vpop.f32.mrf.mxu1 }
 0x61d   : > { %3991 = vst.msk [vmem:[#allocation2 + $0x10] sm:$0xff] %vm696_vm10, %v3958_v6 }
 0x61e   : > { %v12574_v50 = vpop.f32.mrf.mxu1 }
 0x61f   : > { %v4175_v42 = vld [vmem:[#allocation2 + $0x8] sm:$0xff] }
 0x620   : > { %v3961_v36 = vpop.f32.mrf.mxu1 }
 0x621   : > { %3992 = vst.msk [vmem:[#allocation2 + $0x18] sm:$0xff] %vm696_vm10, %v3961_v36 }
 0x622   : > { %v12575_v37 = vpop.f32.mrf.mxu1 }
 0x623   : > { %v4135_v17 = vpop.f32.mrf.mxu0 }
 0x624   : > { %v3966_v30 = vpop.f32.mrf.mxu1  ;;  %v4184_v35 = vadd.f32 %v4174_v10, %v4135_v17  ;;  %v4176_v43 = vld [vmem:[#allocation2 + $0x10] sm:$0xff] }
 0x625   : > { %3993 = vst.msk [vmem:[#allocation2 + $0x20] sm:$0xff] %vm696_vm10, %v3966_v30  ;;  %v12592_v20 = vpop.f32.mrf.mxu0 }
 0x626   : > { %v12578_v40 = vpop.f32.mrf.mxu1  ;;  %4194 = vst.msk [vmem:[#allocation2] sm:$0xff] %vm696_vm10, %v4184_v35 }
 0x627   : > { %v4138_v46 = vpop.f32.mrf.mxu0  ;;  %v13591_v40 = vld [vmem:[%s16485_s4 + $0x10] sm:$0xff]  }
 0x628   : > { %v3969_v11 = vpop.f32.mrf.mxu1  ;;  %v4185_v38 = vadd.f32 %v4175_v42, %v4138_v46  ;;  %v4177_v53 = vld [vmem:[#allocation2 + $0x18] sm:$0xff]  ;;  %12789 = vmatpush3.bf16.msra.mxu1 %v13591_v40 }
 0x629   : > { %3994 = vst.msk [vmem:[#allocation2 + $0x28] sm:$0xff] %vm696_vm10, %v3969_v11  ;;  %v12593_v47 = vpop.f32.mrf.mxu0  ;;  %12834 = vmatprep.subr.bf16.mxu1 %v13804_v12 }
 0x62a   : > { %v12579_v41 = vpop.f32.mrf.mxu1  ;;  %4195 = vst.msk [vmem:[#allocation2 + $0x8] sm:$0xff] %vm696_vm10, %v4185_v38 }
 0x62b   : > { %v4143_v58 = vpop.f32.mrf.mxu0 }
 0x62c   : > { %v3974_v49 = vpop.f32.mrf.mxu1  ;;  %v4186_v1 = vadd.f32 %v4176_v43, %v4143_v58  ;;  %v4178_v33 = vld [vmem:[#allocation2 + $0x20] sm:$0xff] }
 0x62d   : > { %3995 = vst.msk [vmem:[#allocation2 + $0x30] sm:$0xff] %vm696_vm10, %v3974_v49  ;;  %v12596_v15 = vpop.f32.mrf.mxu0  ;;  %v4346_v29 = vld [vmem:[#allocation2] sm:$0xff] }
 0x62e   : > { %v12582_v7 = vpop.f32.mrf.mxu1  ;;  %4196 = vst.msk [vmem:[#allocation2 + $0x10] sm:$0xff] %vm696_vm10, %v4186_v1 }
 0x62f   : > { %v4146_v9 = vpop.f32.mrf.mxu0 }
 0x630   : > { %v3977_v22 = vpop.f32.mrf.mxu1  ;;  %v4187_v57 = vadd.f32 %v4177_v53, %v4146_v9  ;;  %v4179_v27 = vld [vmem:[#allocation2 + $0x28] sm:$0xff] }
 0x631   : > { %3996 = vst.msk [vmem:[#allocation2 + $0x38] sm:$0xff] %vm696_vm10, %v3977_v22  ;;  %v12597_v54 = vpop.f32.mrf.mxu0  ;;  %v4347_v10 = vld [vmem:[#allocation2 + $0x8] sm:$0xff] }
 0x632   : > { %v12583_v44 = vpop.f32.mrf.mxu1  ;;  %4197 = vst.msk [vmem:[#allocation2 + $0x18] sm:$0xff] %vm696_vm10, %v4187_v57 }
 0x633   : > { %v4151_v59 = vpop.f32.mrf.mxu0 }
 0x634   : > { %v4188_v52 = vadd.f32 %v4178_v33, %v4151_v59  ;;  %v4180_v28 = vld [vmem:[#allocation2 + $0x30] sm:$0xff] }
 0x635   : > { %v3982_v61 = vpop.f32.mrf.mxu1  ;;  %v12600_v0 = vpop.f32.mrf.mxu0  ;;  %v4348_v21 = vld [vmem:[#allocation2 + $0x10] sm:$0xff] }
 0x636   : > { %3997 = vst.msk [vmem:[#allocation2 + $0x40] sm:$0xff] %vm696_vm10, %v3982_v61  ;;  %4198 = vst.msk [vmem:[#allocation2 + $0x20] sm:$0xff] %vm696_vm10, %v4188_v52 }
 0x637   : > { %v12586_v23 = vpop.f32.mrf.mxu1  ;;  %v4154_v19 = vpop.f32.mrf.mxu0 }
 0x638   : > { %v4189_v62 = vadd.f32 %v4179_v27, %v4154_v19  ;;  %v4181_v36 = vld [vmem:[#allocation2 + $0x38] sm:$0xff]  ;;  %v11367_v23 = vld [vmem:[%s13998_s11 + $0x50] sm:$0xff]  }
 0x639   : > { %v3985_v48 = vpop.f32.mrf.mxu1  ;;  %v12601_v4 = vpop.f32.mrf.mxu0  ;;  %v4349_v15 = vld [vmem:[#allocation2 + $0x18] sm:$0xff]  ;;  %12791 = vmatmul.mubr.msk.bf16.vlgmr.msra.gmra.mxu1 %vm607_vm9, %v11367_v23 }
 0x63a   : > { %3998 = vst.msk [vmem:[#allocation2 + $0x48] sm:$0xff] %vm696_vm10, %v3985_v48  ;;  %4199 = vst.msk [vmem:[#allocation2 + $0x28] sm:$0xff] %vm696_vm10, %v4189_v62  ;;  %12794 = vmatprep.mubr.msk.bf16.mxu1 %vm13805_vm8, %v13804_v12 }
 0x63b   : > { %v12587_v63 = vpop.f32.mrf.mxu1  ;;  %v4159_v3 = vpop.f32.mrf.mxu0 }
 0x63c   : > { %v4190_v31 = vadd.f32 %v4180_v28, %v4159_v3 }
 0x63d   : > { %v4307_v24 = vpop.f32.mrf.mxu1  ;;  %v12604_v45 = vpop.f32.mrf.mxu0  ;;  %v4182_v46 = vld [vmem:[#allocation2 + $0x40] sm:$0xff] }
 0x63e   : > { %v4356_v32 = vadd.f32 %v4346_v29, %v4307_v24  ;;  %4200 = vst.msk [vmem:[#allocation2 + $0x30] sm:$0xff] %vm696_vm10, %v4190_v31  ;;  %v4350_v44 = vld [vmem:[#allocation2 + $0x20] sm:$0xff]  ;;  %v13594_v31 = vld [vmem:[%s16485_s4 + $0x28] sm:$0xff]  }
 0x63f   : > { %v12614_v6 = vpop.f32.mrf.mxu1  ;;  %v4162_v50 = vpop.f32.mrf.mxu0  ;;  %12835 = vmatpush3.bf16.msra.mxu1 %v13594_v31 }
 0x640   : > { %4366 = vst.msk [vmem:[#allocation2] sm:$0xff] %vm696_vm10, %v4356_v32  ;;  %v4191_v37 = vadd.f32 %v4181_v36, %v4162_v50  ;;  %12836 = vmatprep.subr.bf16.mxu1 %v13804_v12 }
 0x641   : > { %v4310_v17 = vpop.f32.mrf.mxu1  ;;  %v12605_v30 = vpop.f32.mrf.mxu0  ;;  %v4183_v43 = vld [vmem:[#allocation2 + $0x48] sm:$0xff] }
 0x642   : > { %v4357_v35 = vadd.f32 %v4347_v10, %v4310_v17  ;;  %4201 = vst.msk [vmem:[#allocation2 + $0x38] sm:$0xff] %vm696_vm10, %v4191_v37  ;;  %v4351_v62 = vld [vmem:[#allocation2 + $0x28] sm:$0xff]  ;;  %v11369_v17 = vld [vmem:[%s13998_s11 + $0x58] sm:$0xff]  }
 0x643   : > { %v12615_v20 = vpop.f32.mrf.mxu1  ;;  %v4167_v39 = vpop.f32.mrf.mxu0  ;;  %12795 = vmatmul.mubr.msk.bf16.gmra.mxu1 %vm607_vm9, %v11369_v17 }
 0x644   : > { %4367 = vst.msk [vmem:[#allocation2 + $0x8] sm:$0xff] %vm696_vm10, %v4357_v35  ;;  %v4192_v42 = vadd.f32 %v4182_v46, %v4167_v39  ;;  %12798 = vmatprep.mubr.msk.bf16.mxu1 %vm13805_vm8, %v13804_v12 }
 0x645   : > { %v4315_v11 = vpop.f32.mrf.mxu1  ;;  %v12608_v38 = vpop.f32.mrf.mxu0  ;;  %v4352_v45 = vld [vmem:[#allocation2 + $0x30] sm:$0xff] }
 0x646   : > { %v4358_v47 = vadd.f32 %v4348_v21, %v4315_v11  ;;  %4202 = vst.msk [vmem:[#allocation2 + $0x40] sm:$0xff] %vm696_vm10, %v4192_v42  ;;  %v11371_v11 = vld [vmem:[%s13998_s11 + $0x60] sm:$0xff]  }
 0x647   : > { %v12618_v41 = vpop.f32.mrf.mxu1  ;;  %v4170_v58 = vpop.f32.mrf.mxu0  ;;  %v4518_v22 = vld [vmem:[#allocation2] sm:$0xff] }
 0x648   : > { %4368 = vst.msk [vmem:[#allocation2 + $0x10] sm:$0xff] %vm696_vm10, %v4358_v47  ;;  %v4193_v49 = vadd.f32 %v4183_v43, %v4170_v58 }
 0x649   : > { %v4318_v1 = vpop.f32.mrf.mxu1  ;;  %v12609_v7 = vpop.f32.mrf.mxu0  ;;  %v4353_v35 = vld [vmem:[#allocation2 + $0x38] sm:$0xff] }
 0x64a   : > { %v4359_v55 = vadd.f32 %v4349_v15, %v4318_v1  ;;  %4203 = vst.msk [vmem:[#allocation2 + $0x48] sm:$0xff] %vm696_vm10, %v4193_v49 }
 0x64b   : > { %v12619_v9 = vpop.f32.mrf.mxu1  ;;  %v4479_v53 = vpop.f32.mrf.mxu0  ;;  %v4519_v0 = vld [vmem:[#allocation2 + $0x8] sm:$0xff]  ;;  %12799 = vmatmul.mubr.msk.bf16.gmra.mxu1 %vm607_vm9, %v11371_v11 }
 0x64c   : > { %4369 = vst.msk [vmem:[#allocation2 + $0x18] sm:$0xff] %vm696_vm10, %v4359_v55  ;;  %v4528_v57 = vadd.f32 %v4518_v22, %v4479_v53  ;;  %v13599_v22 = vld [vmem:[%s16485_s4 + $0x20] sm:$0xff]   ;;  %12802 = vmatprep.mubr.msk.bf16.mxu1 %vm13805_vm8, %v13804_v12 }
 0x64d   : > { %v4323_v54 = vpop.f32.mrf.mxu1  ;;  %v12636_v59 = vpop.f32.mrf.mxu0  ;;  %v4354_v47 = vld [vmem:[#allocation2 + $0x40] sm:$0xff]  ;;  %12837 = vmatpush3.bf16.msra.mxu1 %v13599_v22 }
 0x64e   : > { %v4360_v33 = vadd.f32 %v4350_v44, %v4323_v54  ;;  %4538 = vst.msk [vmem:[#allocation2] sm:$0xff] %vm696_vm10, %v4528_v57  ;;  %v11373_v59 = vld [vmem:[%s13998_s11 + $0x68] sm:$0xff]   ;;  %12880 = vmatprep.subr.bf16.mxu1 %v13804_v12 }
 0x64f   : > { %v12622_v52 = vpop.f32.mrf.mxu1  ;;  %v4482_v61 = vpop.f32.mrf.mxu0  ;;  %v4520_v28 = vld [vmem:[#allocation2 + $0x10] sm:$0xff] }
 0x650   : > { %4370 = vst.msk [vmem:[#allocation2 + $0x20] sm:$0xff] %vm696_vm10, %v4360_v33  ;;  %v4529_v19 = vadd.f32 %v4519_v0, %v4482_v61 }
 0x651   : > { %v4326_v27 = vpop.f32.mrf.mxu1  ;;  %v12637_v48 = vpop.f32.mrf.mxu0  ;;  %v4355_v55 = vld [vmem:[#allocation2 + $0x48] sm:$0xff] }
 0x652   : > { %v4361_v4 = vadd.f32 %v4351_v62, %v4326_v27  ;;  %4539 = vst.msk [vmem:[#allocation2 + $0x8] sm:$0xff] %vm696_vm10, %v4529_v19 }
 0x653   : > { %v12623_v63 = vpop.f32.mrf.mxu1  ;;  %v4487_v3 = vpop.f32.mrf.mxu0  ;;  %v4521_v37 = vld [vmem:[#allocation2 + $0x18] sm:$0xff]  ;;  %12803 = vmatmul.mubr.msk.bf16.gmra.mxu1 %vm607_vm9, %v11373_v59 }
 0x654   : > { %4371 = vst.msk [vmem:[#allocation2 + $0x28] sm:$0xff] %vm696_vm10, %v4361_v4  ;;  %v4530_v24 = vadd.f32 %v4520_v28, %v4487_v3  ;;  %12806 = vmatprep.mubr.msk.bf16.mxu1 %vm13805_vm8, %v13804_v12 }
 0x655   : > { %v4331_v29 = vpop.f32.mrf.mxu1  ;;  %v12640_v32 = vpop.f32.mrf.mxu0  ;;  %v4732_v61 = vld [vmem:[#allocation2] sm:$0xff] }
 0x656   : > { %v4362_v6 = vadd.f32 %v4352_v45, %v4331_v29  ;;  %4540 = vst.msk [vmem:[#allocation2 + $0x10] sm:$0xff] %vm696_vm10, %v4530_v24  ;;  %v11375_v45 = vld [vmem:[%s13998_s11 + $0x70] sm:$0xff]  }
 0x657   : > { %v12626_v50 = vpop.f32.mrf.mxu1  ;;  %v4490_v36 = vpop.f32.mrf.mxu0  ;;  %v4522_v42 = vld [vmem:[#allocation2 + $0x20] sm:$0xff] }
 0x658   : > { %4372 = vst.msk [vmem:[#allocation2 + $0x30] sm:$0xff] %vm696_vm10, %v4362_v6  ;;  %v4531_v10 = vadd.f32 %v4521_v37, %v4490_v36 }
 0x659   : > { %v4334_v30 = vpop.f32.mrf.mxu1  ;;  %v12641_v20 = vpop.f32.mrf.mxu0  ;;  %v4733_v63 = vld [vmem:[#allocation2 + $0x8] sm:$0xff] }
 0x65a   : > { %v4363_v40 = vadd.f32 %v4353_v35, %v4334_v30  ;;  %4541 = vst.msk [vmem:[#allocation2 + $0x18] sm:$0xff] %vm696_vm10, %v4531_v10 }
 0x65b   : > { %v12627_v39 = vpop.f32.mrf.mxu1  ;;  %v4495_v46 = vpop.f32.mrf.mxu0  ;;  %v4523_v1 = vld [vmem:[#allocation2 + $0x28] sm:$0xff]  ;;  %12807 = vmatmul.mubr.msk.bf16.gmra.mxu1 %vm607_vm9, %v11375_v45 }
 0x65c   : > { %4373 = vst.msk [vmem:[#allocation2 + $0x38] sm:$0xff] %vm696_vm10, %v4363_v40  ;;  %v4532_v21 = vadd.f32 %v4522_v42, %v4495_v46  ;;  %12838 = vmatprep.mubr.msk.bf16.mxu1 %vm13805_vm8, %v13804_v12 }
 0x65d   : > { %v4339_v38 = vpop.f32.mrf.mxu1  ;;  %v12644_v41 = vpop.f32.mrf.mxu0  ;;  %v4734_v50 = vld [vmem:[#allocation2 + $0x10] sm:$0xff] }
 0x65e   : > { %v4364_v58 = vadd.f32 %v4354_v47, %v4339_v38  ;;  %4542 = vst.msk [vmem:[#allocation2 + $0x20] sm:$0xff] %vm696_vm10, %v4532_v21 }
 0x65f   : > { %v12630_v43 = vpop.f32.mrf.mxu1  ;;  %v4498_v49 = vpop.f32.mrf.mxu0  ;;  %v4524_v44 = vld [vmem:[#allocation2 + $0x30] sm:$0xff] }
 0x660   : > { %4374 = vst.msk [vmem:[#allocation2 + $0x40] sm:$0xff] %vm696_vm10, %v4364_v58  ;;  %v4533_v15 = vadd.f32 %v4523_v1, %v4498_v49  ;;  %v13602_v1 = vld [vmem:[%s13998_s11 + $0x78] sm:$0xff]  }
 0x661   : > { %v4342_v7 = vpop.f32.mrf.mxu1  ;;  %v12645_v9 = vpop.f32.mrf.mxu0  ;;  %v4735_v40 = vld [vmem:[#allocation2 + $0x18] sm:$0xff] }
 0x662   : > { %v4365_v53 = vadd.f32 %v4355_v55, %v4342_v7  ;;  %4543 = vst.msk [vmem:[#allocation2 + $0x28] sm:$0xff] %vm696_vm10, %v4533_v15 }
 0x663   : > { %v12631_v57 = vpop.f32.mrf.mxu1  ;;  %v4503_v54 = vpop.f32.mrf.mxu0  ;;  %v4525_v62 = vld [vmem:[#allocation2 + $0x38] sm:$0xff]  ;;  %12839 = vmatmul.mubr.msk.bf16.vlgmr.msra.gmra.mxu1 %vm607_vm9, %v13602_v1 }
 0x664   : > { %4375 = vst.msk [vmem:[#allocation2 + $0x48] sm:$0xff] %vm696_vm10, %v4365_v53  ;;  %v4534_v33 = vadd.f32 %v4524_v44, %v4503_v54  ;;  %12842 = vmatprep.mubr.msk.bf16.mxu1 %vm13805_vm8, %v13804_v12 }
 0x665   : > { %v4693_v52 = vpop.f32.mrf.mxu1  ;;  %v12648_v0 = vpop.f32.mrf.mxu0  ;;  %v4736_v41 = vld [vmem:[#allocation2 + $0x20] sm:$0xff] }
 0x666   : > { %v4742_v23 = vadd.f32 %v4732_v61, %v4693_v52  ;;  %4544 = vst.msk [vmem:[#allocation2 + $0x30] sm:$0xff] %vm696_vm10, %v4534_v33 }
 0x667   : > { %v12658_v19 = vpop.f32.mrf.mxu1  ;;  %v4506_v27 = vpop.f32.mrf.mxu0  ;;  %v4526_v29 = vld [vmem:[#allocation2 + $0x40] sm:$0xff] }
 0x668   : > { %4752 = vst.msk [vmem:[#allocation2] sm:$0xff] %vm696_vm10, %v4742_v23  ;;  %v4535_v48 = vadd.f32 %v4525_v62, %v4506_v27  ;;  %v13604_v27 = vld [vmem:[%s13998_s11 + $0x80] sm:$0xff]  }
 0x669   : > { %v4696_v4 = vpop.f32.mrf.mxu1  ;;  %v12649_v3 = vpop.f32.mrf.mxu0  ;;  %v4737_v53 = vld [vmem:[#allocation2 + $0x28] sm:$0xff] }
 0x66a   : > { %v4743_v28 = vadd.f32 %v4733_v63, %v4696_v4  ;;  %4545 = vst.msk [vmem:[#allocation2 + $0x38] sm:$0xff] %vm696_vm10, %v4535_v48 }
 0x66b   : > { %v12659_v31 = vpop.f32.mrf.mxu1  ;;  %v4511_v24 = vpop.f32.mrf.mxu0  ;;  %v4527_v30 = vld [vmem:[#allocation2 + $0x48] sm:$0xff]  ;;  %12843 = vmatmul.mubr.msk.bf16.gmra.mxu1 %vm607_vm9, %v13604_v27 }
 0x66c   : > { %4753 = vst.msk [vmem:[#allocation2 + $0x8] sm:$0xff] %vm696_vm10, %v4743_v28  ;;  %v4536_v32 = vadd.f32 %v4526_v29, %v4511_v24  ;;  %12846 = vmatprep.mubr.msk.bf16.mxu1 %vm13805_vm8, %v13804_v12 }
 0x66d   : > { %v4701_v6 = vpop.f32.mrf.mxu1  ;;  %v12652_v36 = vpop.f32.mrf.mxu0  ;;  %v4738_v61 = vld [vmem:[#allocation2 + $0x30] sm:$0xff] }
 0x66e   : > { %v4744_v37 = vadd.f32 %v4734_v50, %v4701_v6  ;;  %4546 = vst.msk [vmem:[#allocation2 + $0x40] sm:$0xff] %vm696_vm10, %v4536_v32 }
 0x66f   : > { %v12662_v17 = vpop.f32.mrf.mxu1  ;;  %v4514_v10 = vpop.f32.mrf.mxu0  ;;  %v4904_v21 = vld [vmem:[#allocation2] sm:$0xff] }
 0x670   : > { %4754 = vst.msk [vmem:[#allocation2 + $0x10] sm:$0xff] %vm696_vm10, %v4744_v37  ;;  %v4537_v35 = vadd.f32 %v4527_v30, %v4514_v10  ;;  %v13606_v10 = vld [vmem:[%s13998_s11 + $0x88] sm:$0xff]  }
 0x671   : > { %v4704_v20 = vpop.f32.mrf.mxu1  ;;  %v12653_v39 = vpop.f32.mrf.mxu0  ;;  %v4739_v3 = vld [vmem:[#allocation2 + $0x38] sm:$0xff] }
 0x672   : > { %v4745_v46 = vadd.f32 %v4735_v40, %v4704_v20  ;;  %4547 = vst.msk [vmem:[#allocation2 + $0x48] sm:$0xff] %vm696_vm10, %v4537_v35 }
 0x673   : > { %v12663_v42 = vpop.f32.mrf.mxu1  ;;  %v4865_v11 = vpop.f32.mrf.mxu0  ;;  %v4905_v7 = vld [vmem:[#allocation2 + $0x8] sm:$0xff]  ;;  %12847 = vmatmul.mubr.msk.bf16.gmra.mxu1 %vm607_vm9, %v13606_v10 }
 0x674   : > { %4755 = vst.msk [vmem:[#allocation2 + $0x18] sm:$0xff] %vm696_vm10, %v4745_v46  ;;  %v4914_v38 = vadd.f32 %v4904_v21, %v4865_v11  ;;  %12850 = vmatprep.mubr.msk.bf16.mxu1 %vm13805_vm8, %v13804_v12 }
 0x675   : > { %v4709_v47 = vpop.f32.mrf.mxu1  ;;  %v12680_v58 = vpop.f32.mrf.mxu0  ;;  %v4740_v50 = vld [vmem:[#allocation2 + $0x40] sm:$0xff] }
 0x676   : > { %v4746_v43 = vadd.f32 %v4736_v41, %v4709_v47  ;;  %4924 = vst.msk [vmem:[#allocation2] sm:$0xff] %vm696_vm10, %v4914_v38 }
 0x677   : > { %v12666_v49 = vpop.f32.mrf.mxu1  ;;  %v4868_v15 = vpop.f32.mrf.mxu0  ;;  %v4906_v59 = vld [vmem:[#allocation2 + $0x10] sm:$0xff] }
 0x678   : > { %4756 = vst.msk [vmem:[#allocation2 + $0x20] sm:$0xff] %vm696_vm10, %v4746_v43  ;;  %v4915_v55 = vadd.f32 %v4905_v7, %v4868_v15  ;;  %v13608_v15 = vld [vmem:[%s13998_s11 + $0x90] sm:$0xff]  }
 0x679   : > { %v4712_v9 = vpop.f32.mrf.mxu1  ;;  %v12681_v22 = vpop.f32.mrf.mxu0  ;;  %v4741_v39 = vld [vmem:[#allocation2 + $0x48] sm:$0xff] }
 0x67a   : > { %v4747_v57 = vadd.f32 %v4737_v53, %v4712_v9  ;;  %4925 = vst.msk [vmem:[#allocation2 + $0x8] sm:$0xff] %vm696_vm10, %v4915_v55 }
 0x67b   : > { %v12667_v54 = vpop.f32.mrf.mxu1  ;;  %v4873_v44 = vpop.f32.mrf.mxu0  ;;  %v4907_v48 = vld [vmem:[#allocation2 + $0x18] sm:$0xff]  ;;  %12851 = vmatmul.mubr.msk.bf16.gmra.mxu1 %vm607_vm9, %v13608_v15 }
 0x67c   : > { %4757 = vst.msk [vmem:[#allocation2 + $0x28] sm:$0xff] %vm696_vm10, %v4747_v57  ;;  %v4916_v33 = vadd.f32 %v4906_v59, %v4873_v44  ;;  %12854 = vmatprep.mubr.msk.bf16.mxu1 %vm13805_vm8, %v13804_v12 }
 0x67d   : > { %v4717_v52 = vpop.f32.mrf.mxu1  ;;  %v12684_v0 = vpop.f32.mrf.mxu0  ;;  %v5076_v58 = vld [vmem:[#allocation2] sm:$0xff] }
 0x67e   : > { %v4748_v23 = vadd.f32 %v4738_v61, %v4717_v52  ;;  %4926 = vst.msk [vmem:[#allocation2 + $0x10] sm:$0xff] %vm696_vm10, %v4916_v33 }
 0x67f   : > { %v12670_v19 = vpop.f32.mrf.mxu1  ;;  %v4876_v62 = vpop.f32.mrf.mxu0  ;;  %v4908_v45 = vld [vmem:[#allocation2 + $0x20] sm:$0xff] }
 0x680   : > { %4758 = vst.msk [vmem:[#allocation2 + $0x30] sm:$0xff] %vm696_vm10, %v4748_v23  ;;  %v4917_v4 = vadd.f32 %v4907_v48, %v4876_v62  ;;  %v13610_v62 = vld [vmem:[%s13998_s11 + $0x98] sm:$0xff]  }
 0x681   : > { %v4720_v63 = vpop.f32.mrf.mxu1  ;;  %v12685_v28 = vpop.f32.mrf.mxu0  ;;  %v5077_v22 = vld [vmem:[#allocation2 + $0x8] sm:$0xff] }
 0x682   : > { %v4749_v31 = vadd.f32 %v4739_v3, %v4720_v63  ;;  %4927 = vst.msk [vmem:[#allocation2 + $0x18] sm:$0xff] %vm696_vm10, %v4917_v4 }
 0x683   : > { %v12671_v24 = vpop.f32.mrf.mxu1  ;;  %v4881_v29 = vpop.f32.mrf.mxu0  ;;  %v4909_v35 = vld [vmem:[#allocation2 + $0x28] sm:$0xff]  ;;  %12855 = vmatmul.mubr.msk.bf16.gmra.mxu1 %vm607_vm9, %v13610_v62 }
 0x684   : > { %4759 = vst.msk [vmem:[#allocation2 + $0x38] sm:$0xff] %vm696_vm10, %v4749_v31  ;;  %v4918_v32 = vadd.f32 %v4908_v45, %v4881_v29  ;;  %12882 = vmatprep.mubr.msk.bf16.mxu1 %vm13805_vm8, %v13804_v12 }
 0x685   : > { %v4725_v6 = vpop.f32.mrf.mxu1  ;;  %v12688_v36 = vpop.f32.mrf.mxu0  ;;  %v5078_v0 = vld [vmem:[#allocation2 + $0x10] sm:$0xff] }
 0x686   : > { %v4750_v37 = vadd.f32 %v4740_v50, %v4725_v6  ;;  %4928 = vst.msk [vmem:[#allocation2 + $0x20] sm:$0xff] %vm696_vm10, %v4918_v32 }
 0x687   : > { %v12674_v17 = vpop.f32.mrf.mxu1  ;;  %v4884_v30 = vpop.f32.mrf.mxu0  ;;  %v4910_v38 = vld [vmem:[#allocation2 + $0x30] sm:$0xff] }
 0x688   : > { %4760 = vst.msk [vmem:[#allocation2 + $0x40] sm:$0xff] %vm696_vm10, %v4750_v37  ;;  %v4919_v20 = vadd.f32 %v4909_v35, %v4884_v30 }
 0x689   : > { %v4728_v40 = vpop.f32.mrf.mxu1  ;;  %v12689_v46 = vpop.f32.mrf.mxu0  ;;  %v5079_v28 = vld [vmem:[#allocation2 + $0x18] sm:$0xff] }
 0x68a   : > { %v4751_v42 = vadd.f32 %v4741_v39, %v4728_v40  ;;  %4929 = vst.msk [vmem:[#allocation2 + $0x28] sm:$0xff] %vm696_vm10, %v4919_v20 }
 0x68b   : > { %v12675_v11 = vpop.f32.mrf.mxu1  ;;  %v4889_v21 = vpop.f32.mrf.mxu0  ;;  %v4911_v55 = vld [vmem:[#allocation2 + $0x38] sm:$0xff] }
 0x68c   : > { %4761 = vst.msk [vmem:[#allocation2 + $0x48] sm:$0xff] %vm696_vm10, %v4751_v42  ;;  %v4920_v47 = vadd.f32 %v4910_v38, %v4889_v21 }
 0x68d   : > { %v5037_v41 = vpop.f32.mrf.mxu1  ;;  %v12692_v43 = vpop.f32.mrf.mxu0  ;;  %v5080_v36 = vld [vmem:[#allocation2 + $0x20] sm:$0xff] }
 0x68e   : > { %v5086_v49 = vadd.f32 %v5076_v58, %v5037_v41  ;;  %4930 = vst.msk [vmem:[#allocation2 + $0x30] sm:$0xff] %vm696_vm10, %v4920_v47 }
 0x68f   : > { %v12702_v1 = vpop.f32.mrf.mxu1  ;;  %v4892_v7 = vpop.f32.mrf.mxu0  ;;  %v4912_v33 = vld [vmem:[#allocation2 + $0x40] sm:$0xff] }
 0x690   : > { %5096 = vst.msk [vmem:[#allocation2] sm:$0xff] %vm696_vm10, %v5086_v49  ;;  %v4921_v9 = vadd.f32 %v4911_v55, %v4892_v7 }
 0x691   : > { %v5040_v53 = vpop.f32.mrf.mxu1  ;;  %v12693_v57 = vpop.f32.mrf.mxu0  ;;  %v5081_v39 = vld [vmem:[#allocation2 + $0x28] sm:$0xff] }
 0x692   : > { %v5087_v54 = vadd.f32 %v5077_v22, %v5040_v53  ;;  %4931 = vst.msk [vmem:[#allocation2 + $0x38] sm:$0xff] %vm696_vm10, %v4921_v9 }
 0x693   : > { %v12703_v44 = vpop.f32.mrf.mxu1  ;;  %v4897_v59 = vpop.f32.mrf.mxu0  ;;  %v4913_v4 = vld [vmem:[#allocation2 + $0x48] sm:$0xff] }
 0x694   : > { %5097 = vst.msk [vmem:[#allocation2 + $0x8] sm:$0xff] %vm696_vm10, %v5087_v54  ;;  %v4922_v52 = vadd.f32 %v4912_v33, %v4897_v59 }
 0x695   : > { %v5045_v61 = vpop.f32.mrf.mxu1  ;;  %v12696_v23 = vpop.f32.mrf.mxu0  ;;  %v5082_v58 = vld [vmem:[#allocation2 + $0x30] sm:$0xff] }
 0x696   : > { %v5088_v19 = vadd.f32 %v5078_v0, %v5045_v61  ;;  %4932 = vst.msk [vmem:[#allocation2 + $0x40] sm:$0xff] %vm696_vm10, %v4922_v52 }
 0x697   : > { %v12706_v27 = vpop.f32.mrf.mxu1  ;;  %v4900_v48 = vpop.f32.mrf.mxu0  ;;  %v5290_v32 = vld [vmem:[#allocation2] sm:$0xff] }
 0x698   : > { %5098 = vst.msk [vmem:[#allocation2 + $0x10] sm:$0xff] %vm696_vm10, %v5088_v19  ;;  %v4923_v63 = vadd.f32 %v4913_v4, %v4900_v48 }
 0x699   : > { %v5048_v3 = vpop.f32.mrf.mxu1  ;;  %v12697_v31 = vpop.f32.mrf.mxu0  ;;  %v5083_v53 = vld [vmem:[#allocation2 + $0x38] sm:$0xff] }
 0x69a   : > { %v5089_v24 = vadd.f32 %v5079_v28, %v5048_v3  ;;  %4933 = vst.msk [vmem:[#allocation2 + $0x48] sm:$0xff] %vm696_vm10, %v4923_v63 }
 0x69b   : > { %v12707_v29 = vpop.f32.mrf.mxu1  ;;  %v5251_v45 = vpop.f32.mrf.mxu0  ;;  %v5291_v35 = vld [vmem:[#allocation2 + $0x8] sm:$0xff] }
 0x69c   : > { %5099 = vst.msk [vmem:[#allocation2 + $0x18] sm:$0xff] %vm696_vm10, %v5089_v24  ;;  %v5300_v6 = vadd.f32 %v5290_v32, %v5251_v45 }
 0x69d   : > { %v5053_v50 = vpop.f32.mrf.mxu1  ;;  %v12724_v37 = vpop.f32.mrf.mxu0  ;;  %v5084_v61 = vld [vmem:[#allocation2 + $0x40] sm:$0xff] }
 0x69e   : > { %v5090_v17 = vadd.f32 %v5080_v36, %v5053_v50  ;;  %5310 = vst.msk [vmem:[#allocation2] sm:$0xff] %vm696_vm10, %v5300_v6 }
 0x69f   : > { %v12710_v10 = vpop.f32.mrf.mxu1  ;;  %v5254_v30 = vpop.f32.mrf.mxu0  ;;  %v5292_v38 = vld [vmem:[#allocation2 + $0x10] sm:$0xff] }
 0x6a0   : > { %5100 = vst.msk [vmem:[#allocation2 + $0x20] sm:$0xff] %vm696_vm10, %v5090_v17  ;;  %v5301_v20 = vadd.f32 %v5291_v35, %v5254_v30 }
 0x6a1   : > { %v5056_v40 = vpop.f32.mrf.mxu1  ;;  %v12725_v46 = vpop.f32.mrf.mxu0  ;;  %v5085_v63 = vld [vmem:[#allocation2 + $0x48] sm:$0xff] }
 0x6a2   : > { %v5091_v42 = vadd.f32 %v5081_v39, %v5056_v40  ;;  %5311 = vst.msk [vmem:[#allocation2 + $0x8] sm:$0xff] %vm696_vm10, %v5301_v20 }
 0x6a3   : > { %v12711_v11 = vpop.f32.mrf.mxu1  ;;  %v5259_v21 = vpop.f32.mrf.mxu0  ;;  %v5293_v7 = vld [vmem:[#allocation2 + $0x18] sm:$0xff] }
 0x6a4   : > { %5101 = vst.msk [vmem:[#allocation2 + $0x28] sm:$0xff] %vm696_vm10, %v5091_v42  ;;  %v5302_v47 = vadd.f32 %v5292_v38, %v5259_v21 }
 0x6a5   : > { %v5061_v41 = vpop.f32.mrf.mxu1  ;;  %v12728_v43 = vpop.f32.mrf.mxu0  ;;  %v5462_v6 = vld [vmem:[#allocation2] sm:$0xff] }
 0x6a6   : > { %v5092_v49 = vadd.f32 %v5082_v58, %v5061_v41  ;;  %5312 = vst.msk [vmem:[#allocation2 + $0x10] sm:$0xff] %vm696_vm10, %v5302_v47 }
 0x6a7   : > { %v12714_v1 = vpop.f32.mrf.mxu1  ;;  %v5262_v15 = vpop.f32.mrf.mxu0  ;;  %v5294_v59 = vld [vmem:[#allocation2 + $0x20] sm:$0xff] }
 0x6a8   : > { %5102 = vst.msk [vmem:[#allocation2 + $0x30] sm:$0xff] %vm696_vm10, %v5092_v49  ;;  %v5303_v55 = vadd.f32 %v5293_v7, %v5262_v15  ;;  %v15300_v1 = vld [vmem:[%s16488_s7] ss:$0 sm:$0xff] }
 0x6a9   : > { %v5064_v9 = vpop.f32.mrf.mxu1  ;;  %v12729_v22 = vpop.f32.mrf.mxu0  ;;  %v5463_v20 = vld [vmem:[#allocation2 + $0x8] sm:$0xff] }
 0x6aa   : > { %v5093_v57 = vadd.f32 %v5083_v53, %v5064_v9  ;;  %5313 = vst.msk [vmem:[#allocation2 + $0x18] sm:$0xff] %vm696_vm10, %v5303_v55 }
 0x6ab   : > { %v12715_v54 = vpop.f32.mrf.mxu1  ;;  %v5267_v44 = vpop.f32.mrf.mxu0  ;;  %v5295_v62 = vld [vmem:[#allocation2 + $0x28] sm:$0xff] }
 0x6ac   : > { %5103 = vst.msk [vmem:[#allocation2 + $0x38] sm:$0xff] %vm696_vm10, %v5093_v57  ;;  %v5304_v33 = vadd.f32 %v5294_v59, %v5267_v44 }
 0x6ad   : > { %v5069_v52 = vpop.f32.mrf.mxu1  ;;  %v12732_v0 = vpop.f32.mrf.mxu0  ;;  %v5464_v47 = vld [vmem:[#allocation2 + $0x10] sm:$0xff] }
 0x6ae   : > { %v5094_v23 = vadd.f32 %v5084_v61, %v5069_v52  ;;  %5314 = vst.msk [vmem:[#allocation2 + $0x20] sm:$0xff] %vm696_vm10, %v5304_v33 }
 0x6af   : > { %v12718_v19 = vpop.f32.mrf.mxu1  ;;  %v5270_v27 = vpop.f32.mrf.mxu0  ;;  %v5296_v29 = vld [vmem:[#allocation2 + $0x30] sm:$0xff] }
 0x6b0   : > { %5104 = vst.msk [vmem:[#allocation2 + $0x40] sm:$0xff] %vm696_vm10, %v5094_v23  ;;  %v5305_v48 = vadd.f32 %v5295_v62, %v5270_v27  ;;  %v13592_v62 = vld [vmem:[%s16485_s4 + $0x8] sm:$0xff]  }
 0x6b1   : > { %v5072_v4 = vpop.f32.mrf.mxu1  ;;  %v12733_v3 = vpop.f32.mrf.mxu0  ;;  %v5465_v53 = vld [vmem:[#allocation2 + $0x18] sm:$0xff] }
 0x6b2   : > { %v5095_v28 = vadd.f32 %v5085_v63, %v5072_v4  ;;  %5315 = vst.msk [vmem:[#allocation2 + $0x28] sm:$0xff] %vm696_vm10, %v5305_v48 }
 0x6b3   : > { %v12719_v31 = vpop.f32.mrf.mxu1  ;;  %v5275_v24 = vpop.f32.mrf.mxu0  ;;  %v5297_v10 = vld [vmem:[#allocation2 + $0x38] sm:$0xff] }
 0x6b4   : > { %5105 = vst.msk [vmem:[#allocation2 + $0x48] sm:$0xff] %vm696_vm10, %v5095_v28  ;;  %v5306_v45 = vadd.f32 %v5296_v29, %v5275_v24 }
 0x6b5   : > { %v5423_v32 = vpop.f32.mrf.mxu1  ;;  %v12736_v50 = vpop.f32.mrf.mxu0  ;;  %v5466_v61 = vld [vmem:[#allocation2 + $0x20] sm:$0xff] }
 0x6b6   : > { %v5472_v36 = vadd.f32 %v5462_v6, %v5423_v32  ;;  %5316 = vst.msk [vmem:[#allocation2 + $0x30] sm:$0xff] %vm696_vm10, %v5306_v45  ;;  %v13597_v45 = vld [vmem:[%s16485_s4] sm:$0xff]  }
 0x6b7   : > { %v12746_v37 = vpop.f32.mrf.mxu1  ;;  %v5278_v17 = vpop.f32.mrf.mxu0  ;;  %v5298_v11 = vld [vmem:[#allocation2 + $0x40] sm:$0xff] }
 0x6b8   : > { %5482 = vst.msk [vmem:[#allocation2] sm:$0xff] %vm696_vm10, %v5472_v36  ;;  %v5307_v30 = vadd.f32 %v5297_v10, %v5278_v17 }
 0x6b9   : > { %v5426_v35 = vpop.f32.mrf.mxu1  ;;  %v12737_v40 = vpop.f32.mrf.mxu0  ;;  %v5467_v3 = vld [vmem:[#allocation2 + $0x28] sm:$0xff] }
 0x6ba   : > { %v5473_v39 = vadd.f32 %v5463_v20, %v5426_v35  ;;  %5317 = vst.msk [vmem:[#allocation2 + $0x38] sm:$0xff] %vm696_vm10, %v5307_v30 }
 0x6bb   : > { %v12747_v46 = vpop.f32.mrf.mxu1  ;;  %v5283_v42 = vpop.f32.mrf.mxu0  ;;  %v5299_v7 = vld [vmem:[#allocation2 + $0x48] sm:$0xff] }
 0x6bc   : > { %5483 = vst.msk [vmem:[#allocation2 + $0x8] sm:$0xff] %vm696_vm10, %v5473_v39  ;;  %v5308_v21 = vadd.f32 %v5298_v11, %v5283_v42 }
 0x6bd   : > { %v5431_v38 = vpop.f32.mrf.mxu1  ;;  %v12740_v41 = vpop.f32.mrf.mxu0  ;;  %v5468_v50 = vld [vmem:[#allocation2 + $0x30] sm:$0xff] }
 0x6be   : > { %v5474_v58 = vadd.f32 %v5464_v47, %v5431_v38  ;;  %5318 = vst.msk [vmem:[#allocation2 + $0x40] sm:$0xff] %vm696_vm10, %v5308_v21 }
 0x6bf   : > { %v12750_v43 = vpop.f32.mrf.mxu1  ;;  %v5492_v49 = vld [vmem:[#allocation2] sm:$0xff]  ;;  %v5286_v15 = vpop.f32.mrf.mxu0 }
 0x6c0   : > { %5484 = vst.msk [vmem:[#allocation2 + $0x10] sm:$0xff] %vm696_vm10, %v5474_v58  ;;  %v5309_v55 = vadd.f32 %v5299_v7, %v5286_v15  ;;  %v5509_v54 = vadd.f32 %v15300_v1, %v5492_v49 }
 0x6c1   : > { %v5434_v9 = vpop.f32.mrf.mxu1  ;;  %v12741_v22 = vpop.f32.mrf.mxu0  ;;  %v5469_v40 = vld [vmem:[#allocation2 + $0x38] sm:$0xff] }
 0x6c2   : > { %v5475_v57 = vadd.f32 %v5465_v53, %v5434_v9  ;;  %5319 = vst.msk [vmem:[#allocation2 + $0x48] sm:$0xff] %vm696_vm10, %v5309_v55  ;;  %v5519_v23 = vmax.f32 %v5509_v54, 0.0 }
 0x6c3   : > { %v12751_v44 = vpop.f32.mrf.mxu1  ;;  %v5493_v59 = vld [vmem:[#allocation2 + $0x8] sm:$0xff] }
 0x6c4   : > { %5485 = vst.msk [vmem:[#allocation2 + $0x18] sm:$0xff] %vm696_vm10, %v5475_v57  ;;  %v5510_v33 = vadd.f32 %v15300_v1, %v5493_v59 }
 0x6c5   : > { %v5439_v52 = vpop.f32.mrf.mxu1  ;;  %v5470_v47 = vld [vmem:[#allocation2 + $0x40] sm:$0xff] }
 0x6c6   : > { %v5476_v0 = vadd.f32 %v5466_v61, %v5439_v52  ;;  %v5520_v19 = vmax.f32 %v5510_v33, 0.0 }
 0x6c7   : > { %v12754_v27 = vpop.f32.mrf.mxu1  ;;  %v5494_v48 = vld [vmem:[#allocation2 + $0x10] sm:$0xff] }
 0x6c8   : > { %5486 = vst.msk [vmem:[#allocation2 + $0x20] sm:$0xff] %vm696_vm10, %v5476_v0  ;;  %v5529_v4 = vpack.c.bf16 %v5520_v19, %v5519_v23  ;;  %v5511_v31 = vadd.f32 %v15300_v1, %v5494_v48 }
 0x6c9   : > { %v5442_v63 = vpop.f32.mrf.mxu1  ;;  %v5471_v9 = vld [vmem:[#allocation2 + $0x48] sm:$0xff] }
 0x6ca   : > { %v5477_v28 = vadd.f32 %v5467_v3, %v5442_v63  ;;  %12767 = vmatmul.mubr.msk.bf16.vlgmr.msra.gmra.mxu0 %vm696_vm10, %v5529_v4  ;;  %v5521_v37 = vmax.f32 %v5511_v31, 0.0  ;;  %v13601_v4 = vld [vmem:[%s13998_s11 + $0x28] sm:$0xff]   ;;  %v13603_v63 = vld [vmem:[%s13998_s11 + $0x30] sm:$0xff]   ;;  %v13607_v3 = vld [vmem:[%s13998_s11 + $0x40] sm:$0xff]  }
 0x6cb   : > { %12811 = vmatpush3.bf16.msra.mxu0 %v13592_v62  ;;  %v12755_v24 = vpop.f32.mrf.mxu1  ;;  %12770 = vmatprep.mubr.msk.bf16.mxu0 %vm13805_vm8, %v13804_v12  ;;  %v5495_v29 = vld [vmem:[#allocation2 + $0x18] sm:$0xff] }
 0x6cc   : > { %5487 = vst.msk [vmem:[#allocation2 + $0x28] sm:$0xff] %vm696_vm10, %v5477_v28  ;;  %v5512_v32 = vadd.f32 %v15300_v1, %v5495_v29  ;;  %12812 = vmatprep.subr.bf16.mxu0 %v13804_v12  ;;  %v13609_v28 = vld [vmem:[%s13998_s11 + $0x48] sm:$0xff]  }
 0x6cd   : > { %v5447_v6 = vpop.f32.mrf.mxu1 }
 0x6ce   : > { %v5478_v36 = vadd.f32 %v5468_v50, %v5447_v6  ;;  %v5522_v17 = vmax.f32 %v5512_v32, 0.0 }
 0x6cf   : > { %v12758_v10 = vpop.f32.mrf.mxu1  ;;  %v5496_v30 = vld [vmem:[#allocation2 + $0x20] sm:$0xff]  ;;  %12813 = vmatpush3.bf16.msra.mxu0 %v13597_v45 }
 0x6d0   : > { %5488 = vst.msk [vmem:[#allocation2 + $0x30] sm:$0xff] %vm696_vm10, %v5478_v36  ;;  %v5530_v35 = vpack.c.bf16 %v5522_v17, %v5521_v37  ;;  %12858 = vmatprep.subr.bf16.mxu0 %v13804_v12  ;;  %v5513_v46 = vadd.f32 %v15300_v1, %v5496_v30 }
 0x6d1   : > { %v5450_v20 = vpop.f32.mrf.mxu1 }
 0x6d2   : > { %v5479_v39 = vadd.f32 %v5469_v40, %v5450_v20  ;;  %12771 = vmatmul.mubr.msk.bf16.gmra.mxu0 %vm696_vm10, %v5530_v35  ;;  %v5523_v58 = vmax.f32 %v5513_v46, 0.0 }
 0x6d3   : > { %v12759_v42 = vpop.f32.mrf.mxu1  ;;  %12774 = vmatprep.mubr.msk.bf16.mxu0 %vm13805_vm8, %v13804_v12  ;;  %v5497_v11 = vld [vmem:[#allocation2 + $0x28] sm:$0xff] }
 0x6d4   : > { %5489 = vst.msk [vmem:[#allocation2 + $0x38] sm:$0xff] %vm696_vm10, %v5479_v39  ;;  %v5514_v21 = vadd.f32 %v15300_v1, %v5497_v11 }
 0x6d5   : > { %v5455_v38 = vpop.f32.mrf.mxu1 }
 0x6d6   : > { %v5480_v41 = vadd.f32 %v5470_v47, %v5455_v38  ;;  %v5524_v43 = vmax.f32 %v5514_v21, 0.0 }
 0x6d7   : > { %v12762_v49 = vpop.f32.mrf.mxu1  ;;  %v5498_v15 = vld [vmem:[#allocation2 + $0x30] sm:$0xff] }
 0x6d8   : > { %5490 = vst.msk [vmem:[#allocation2 + $0x40] sm:$0xff] %vm696_vm10, %v5480_v41  ;;  %v5531_v7 = vpack.c.bf16 %v5524_v43, %v5523_v58  ;;  %v5515_v22 = vadd.f32 %v15300_v1, %v5498_v15  ;;  %v6414_v41 = vld [vmem:[%s16487_s6] sm:$0xf] }
 0x6d9   : > { %v5458_v55 = vpop.f32.mrf.mxu1  ;;  %v6456_v43 = vsel %vm1356_vm12, %v6414_v41, 0 }
 0x6da   : > { %v5481_v53 = vadd.f32 %v5471_v9, %v5458_v55  ;;  %12775 = vmatmul.mubr.msk.bf16.gmra.mxu0 %vm696_vm10, %v5531_v7  ;;  %v5525_v59 = vmax.f32 %v5515_v22, 0.0 }
 0x6db   : > { %v12763_v57 = vpop.f32.mrf.mxu1  ;;  %12778 = vmatprep.mubr.msk.bf16.mxu0 %vm13805_vm8, %v13804_v12  ;;  %v5499_v54 = vld [vmem:[#allocation2 + $0x38] sm:$0xff] }
 0x6dc   : > { %5491 = vst.msk [vmem:[#allocation2 + $0x48] sm:$0xff] %vm696_vm10, %v5481_v53  ;;  %v5516_v44 = vadd.f32 %v15300_v1, %v5499_v54 }
 0x6de   : > { %v5526_v33 = vmax.f32 %v5516_v44, 0.0 }
 0x6df   : > { %v5500_v52 = vld [vmem:[#allocation2 + $0x40] sm:$0xff] }
 0x6e0   : > { %v5532_v61 = vpack.c.bf16 %v5526_v33, %v5525_v59  ;;  %v5517_v0 = vadd.f32 %v15300_v1, %v5500_v52 }
 0x6e2   : > { %12779 = vmatmul.mubr.msk.bf16.gmra.mxu0 %vm696_vm10, %v5532_v61  ;;  %v5527_v27 = vmax.f32 %v5517_v0, 0.0 }
 0x6e3   : > { %12782 = vmatprep.mubr.msk.bf16.mxu0 %vm13805_vm8, %v13804_v12  ;;  %v5501_v23 = vld [vmem:[#allocation2 + $0x48] sm:$0xff] }
 0x6e4   : > { %v5518_v19 = vadd.f32 %v15300_v1, %v5501_v23  ;;  %v13605_v1 = vld [vmem:[%s13998_s11 + $0x38] sm:$0xff]   ;;  %v11462_v23 = vld [vmem:[%s16487_s6 + $0x4] sm:$0xf] }
 0x6e6   : > { %v5528_v62 = vmax.f32 %v5518_v19, 0.0 }
 0x6e8   : > { %v5533_v48 = vpack.c.bf16 %v5528_v62, %v5527_v27  ;;  %v6641_v27 = vsel %vm1356_vm12, %v11462_v23, 0 }
 0x6e9   : > { %12881 = vmatpush3.bf16.msra.mxu1 %v6641_v27 }
 0x6ea   : > { %12783 = vmatmul.mubr.msk.bf16.gmra.mxu0 %vm696_vm10, %v5533_v48  ;;  %12924 = vmatprep.subr.bf16.mxu1 %v13804_v12  ;;  %v15407_v48 = vld [vmem:[%s16490_s9] ss:$0 sm:$0xff] }
 0x6eb   : > { %12814 = vmatprep.mubr.msk.bf16.mxu0 %vm13805_vm8, %v13804_v12 }
 0x6f2   : > { %12815 = vmatmul.mubr.msk.bf16.vlgmr.msra.gmra.mxu0 %vm607_vm9, %v13601_v4  ;;  %v13693_v4 = vld [vmem:[%s13998_s11 + $0x28] sm:$0xff]  }
 0x6f3   : > { %12818 = vmatprep.mubr.msk.bf16.mxu0 %vm13805_vm8, %v13804_v12  ;;  %12859 = vmatpush3.bf16.msra.mxu0 %v6456_v43 }
 0x6f4   : > { %12902 = vmatprep.subr.bf16.mxu0 %v13804_v12 }
 0x6f9   : > { %v5814_v31 = vpop.f32.mrf.mxu1 }
 0x6fa   : > { %12819 = vmatmul.mubr.msk.bf16.gmra.mxu0 %vm607_vm9, %v13603_v63  ;;  %5853 = vst.msk [vmem:[#allocation2] sm:$0xff] %vm696_vm10, %v5814_v31  ;;  %v5633_v63 = vunpack.c.l.bf16 %v13693_v4 }
 0x6fb   : > { %12822 = vmatprep.mubr.msk.bf16.mxu0 %vm13805_vm8, %v13804_v12  ;;  %v12792_v24 = vpop.f32.mrf.mxu1 }
 0x6fc   : > { %v5634_v24 = vunpack.c.h.bf16 %v13693_v4 }
 0x6fd   : > { %v5817_v29 = vpop.f32.mrf.mxu1 }
 0x6fe   : > { %5854 = vst.msk [vmem:[#allocation2 + $0x8] sm:$0xff] %vm696_vm10, %v5817_v29 }
 0x6ff   : > { %v12793_v45 = vpop.f32.mrf.mxu1 }
 0x702   : > { %12823 = vmatmul.mubr.msk.bf16.gmra.mxu0 %vm607_vm9, %v13605_v1 }
 0x703   : > { %12826 = vmatprep.mubr.msk.bf16.mxu0 %vm13805_vm8, %v13804_v12  ;;  %v5822_v32 = vpop.f32.mrf.mxu1 }
 0x704   : > { %5855 = vst.msk [vmem:[#allocation2 + $0x10] sm:$0xff] %vm696_vm10, %v5822_v32 }
 0x705   : > { %v12796_v6 = vpop.f32.mrf.mxu1 }
 0x707   : > { %v5825_v50 = vpop.f32.mrf.mxu1 }
 0x708   : > { %5856 = vst.msk [vmem:[#allocation2 + $0x18] sm:$0xff] %vm696_vm10, %v5825_v50 }
 0x709   : > { %v12797_v36 = vpop.f32.mrf.mxu1 }
 0x70a   : > { %12827 = vmatmul.mubr.msk.bf16.gmra.mxu0 %vm607_vm9, %v13607_v3 }
 0x70b   : > { %12830 = vmatprep.mubr.msk.bf16.mxu0 %vm13805_vm8, %v13804_v12  ;;  %v5830_v37 = vpop.f32.mrf.mxu1 }
 0x70c   : > { %5857 = vst.msk [vmem:[#allocation2 + $0x20] sm:$0xff] %vm696_vm10, %v5830_v37  ;;  %v13694_v37 = vld [vmem:[%s13998_s11 + $0x30] sm:$0xff]  }
 0x70d   : > { %v12800_v17 = vpop.f32.mrf.mxu1 }
 0x70e   : > { %v5635_v17 = vunpack.c.l.bf16 %v13694_v37 }
 0x70f   : > { %v5833_v10 = vpop.f32.mrf.mxu1 }
 0x710   : > { %5858 = vst.msk [vmem:[#allocation2 + $0x28] sm:$0xff] %vm696_vm10, %v5833_v10 }
 0x711   : > { %v12801_v30 = vpop.f32.mrf.mxu1 }
 0x712   : > { %12831 = vmatmul.mubr.msk.bf16.gmra.mxu0 %vm607_vm9, %v13609_v28 }
 0x713   : > { %12860 = vmatprep.mubr.msk.bf16.mxu0 %vm13805_vm8, %v13804_v12  ;;  %v5838_v35 = vpop.f32.mrf.mxu1 }
 0x714   : > { %5859 = vst.msk [vmem:[#allocation2 + $0x30] sm:$0xff] %vm696_vm10, %v5838_v35 }
 0x715   : > { %v12804_v20 = vpop.f32.mrf.mxu1 }
 0x717   : > { %v5841_v40 = vpop.f32.mrf.mxu1 }
 0x718   : > { %5860 = vst.msk [vmem:[#allocation2 + $0x38] sm:$0xff] %vm696_vm10, %v5841_v40 }
 0x719   : > { %v12805_v39 = vpop.f32.mrf.mxu1 }
 0x71b   : > { %v5846_v46 = vpop.f32.mrf.mxu1 }
 0x71c   : > { %5861 = vst.msk [vmem:[#allocation2 + $0x40] sm:$0xff] %vm696_vm10, %v5846_v46  ;;  %v5636_v46 = vunpack.c.h.bf16 %v13694_v37 }
 0x71d   : > { %v12808_v42 = vpop.f32.mrf.mxu1 }
 0x71f   : > { %v5849_v11 = vpop.f32.mrf.mxu1 }
 0x720   : > { %5862 = vst.msk [vmem:[#allocation2 + $0x48] sm:$0xff] %vm696_vm10, %v5849_v11 }
 0x721   : > { %v12809_v21 = vpop.f32.mrf.mxu1 }
 0x723   : > { %v15374_v38 = vpop.f32.mrf.mxu1 }
 0x725   : > { %v12840_v47 = vpop.f32.mrf.mxu1 }
 0x727   : > { %v15379_v58 = vpop.f32.mrf.mxu1 }
 0x729   : > { %v12841_v49 = vpop.f32.mrf.mxu1 }
 0x72a   : > { %v13695_v49 = vld [vmem:[%s13998_s11 + $0x38] sm:$0xff]  }
 0x72b   : > { %v15383_v15 = vpop.f32.mrf.mxu1  ;;  %v5638_v23 = vunpack.c.h.bf16 %v13695_v49 }
 0x72d   : > { %v12844_v7 = vpop.f32.mrf.mxu1 }
 0x72e   : > { %v5637_v7 = vunpack.c.l.bf16 %v13695_v49 }
 0x72f   : > { %v15385_v55 = vpop.f32.mrf.mxu1 }
 0x731   : > { %v12845_v9 = vpop.f32.mrf.mxu1 }
 0x733   : > { %v15387_v53 = vpop.f32.mrf.mxu1 }
 0x735   : > { %v12848_v22 = vpop.f32.mrf.mxu1 }
 0x737   : > { %v15389_v57 = vpop.f32.mrf.mxu1 }
 0x739   : > { %v12849_v54 = vpop.f32.mrf.mxu1 }
 0x73b   : > { %v15391_v44 = vpop.f32.mrf.mxu1 }
 0x73d   : > { %v12852_v59 = vpop.f32.mrf.mxu1 }
 0x73f   : > { %v15393_v33 = vpop.f32.mrf.mxu1 }
 0x741   : > { %v12853_v52 = vpop.f32.mrf.mxu1 }
 0x743   : > { %v15395_v61 = vpop.f32.mrf.mxu1 }
 0x745   : > { %v12856_v0 = vpop.f32.mrf.mxu1 }
 0x747   : > { %v15400_v19 = vpop.f32.mrf.mxu1 }
 0x749   : > { %v12857_v62 = vpop.f32.mrf.mxu1 }
 0x78a   : > { %v5594_v1 = vpop.f32.mrf.mxu0 }
 0x78b   : > { %v5595_v3 = vadd.f32 %v15407_v48, %v5594_v1 }
 0x78c   : > { %v12768_v28 = vpop.f32.mrf.mxu0 }
 0x78d   : > { %v5643_v31 = vadd.f32 %v5633_v63, %v5595_v3  ;;  %v13696_v28 = vld [vmem:[%s13998_s11 + $0x40] sm:$0xff]  }
 0x78e   : > { %v5597_v29 = vpop.f32.mrf.mxu0 }
 0x78f   : > { %v5653_v45 = vmax.f32 %v5643_v31, 0.0  ;;  %v5598_v32 = vadd.f32 %v15407_v48, %v5597_v29  ;;  %v5639_v31 = vunpack.c.l.bf16 %v13696_v28 }
 0x790   : > { %v12769_v6 = vpop.f32.mrf.mxu0 }
 0x791   : > { %v11828_v50 = vpack.c.bf16 %v5653_v45, %v5653_v45  ;;  %v5644_v36 = vadd.f32 %v5634_v24, %v5598_v32 }
 0x792   : > { %v5602_v10 = vpop.f32.mrf.mxu0 }
 0x793   : > { %11357 = vst.msk [vmem:[%s14003_s30 + $0x28] sm:$0xf] %vm3161_vm11, %v11828_v50  ;;  %v5654_v30 = vmax.f32 %v5644_v36, 0.0  ;;  %v5603_v35 = vadd.f32 %v15407_v48, %v5602_v10  ;;  %v5640_v36 = vunpack.c.h.bf16 %v13696_v28 }
 0x794   : > { %v12772_v20 = vpop.f32.mrf.mxu0 }
 0x795   : > { %v11829_v40 = vpack.c.bf16 %v5654_v30, %v5654_v30  ;;  %v5645_v39 = vadd.f32 %v5635_v17, %v5603_v35 }
 0x796   : > { %v5605_v42 = vpop.f32.mrf.mxu0 }
 0x797   : > { %11358 = vst.msk [vmem:[%s14003_s30 + $0x2c] sm:$0xf] %vm3161_vm11, %v11829_v40  ;;  %v5655_v11 = vmax.f32 %v5645_v39, 0.0  ;;  %v5606_v21 = vadd.f32 %v15407_v48, %v5605_v42  ;;  %v13697_v40 = vld [vmem:[%s13998_s11 + $0x48] sm:$0xff]  }
 0x798   : > { %v12773_v47 = vpop.f32.mrf.mxu0  ;;  %v5641_v39 = vunpack.c.l.bf16 %v13697_v40 }
 0x799   : > { %v11830_v41 = vpack.c.bf16 %v5655_v11, %v5655_v11  ;;  %v5646_v43 = vadd.f32 %v5636_v46, %v5606_v21 }
 0x79a   : > { %v5610_v9 = vpop.f32.mrf.mxu0 }
 0x79b   : > { %11359 = vst.msk [vmem:[%s14003_s30 + $0x30] sm:$0xf] %vm3161_vm11, %v11830_v41  ;;  %v5656_v22 = vmax.f32 %v5646_v43, 0.0  ;;  %v5611_v54 = vadd.f32 %v15407_v48, %v5610_v9  ;;  %v5642_v43 = vunpack.c.h.bf16 %v13697_v40 }
 0x79c   : > { %v12776_v59 = vpop.f32.mrf.mxu0 }
 0x79d   : > { %v11831_v52 = vpack.c.bf16 %v5656_v22, %v5656_v22  ;;  %v5647_v0 = vadd.f32 %v5637_v7, %v5611_v54 }
 0x79e   : > { %v5613_v27 = vpop.f32.mrf.mxu0 }
 0x79f   : > { %11360 = vst.msk [vmem:[%s14003_s30 + $0x34] sm:$0xf] %vm3161_vm11, %v11831_v52  ;;  %v5657_v62 = vmax.f32 %v5647_v0, 0.0  ;;  %v5614_v4 = vadd.f32 %v15407_v48, %v5613_v27  ;;  %v5863_v52 = vld [vmem:[#allocation2] sm:$0xff] }
 0x7a0   : > { %v12777_v63 = vpop.f32.mrf.mxu0 }
 0x7a1   : > { %v11832_v1 = vpack.c.bf16 %v5657_v62, %v5657_v62  ;;  %v5648_v3 = vadd.f32 %v5638_v23, %v5614_v4  ;;  %v5864_v63 = vld [vmem:[#allocation2 + $0x8] sm:$0xff] }
 0x7a2   : > { %v5618_v24 = vpop.f32.mrf.mxu0 }
 0x7a3   : > { %11361 = vst.msk [vmem:[%s14003_s30 + $0x38] sm:$0xf] %vm3161_vm11, %v11832_v1  ;;  %v5658_v29 = vmax.f32 %v5648_v3, 0.0  ;;  %v5619_v45 = vadd.f32 %v15407_v48, %v5618_v24 }
 0x7a4   : > { %v12780_v32 = vpop.f32.mrf.mxu0 }
 0x7a5   : > { %v11833_v6 = vpack.c.bf16 %v5658_v29, %v5658_v29  ;;  %v5649_v50 = vadd.f32 %v5639_v31, %v5619_v45 }
 0x7a6   : > { %v5621_v37 = vpop.f32.mrf.mxu0 }
 0x7a7   : > { %11362 = vst.msk [vmem:[%s14003_s30 + $0x3c] sm:$0xf] %vm3161_vm11, %v11833_v6  ;;  %v5659_v17 = vmax.f32 %v5649_v50, 0.0  ;;  %v5622_v10 = vadd.f32 %v15407_v48, %v5621_v37  ;;  %v5866_v6 = vld [vmem:[#allocation2 + $0x18] sm:$0xff] }
 0x7a8   : > { %v12781_v30 = vpop.f32.mrf.mxu0 }
 0x7a9   : > { %v11834_v35 = vpack.c.bf16 %v5659_v17, %v5659_v17  ;;  %v5650_v20 = vadd.f32 %v5640_v36, %v5622_v10  ;;  %v5867_v30 = vld [vmem:[#allocation2 + $0x20] sm:$0xff] }
 0x7aa   : > { %v5626_v46 = vpop.f32.mrf.mxu0 }
 0x7ab   : > { %11363 = vst.msk [vmem:[%s14003_s30 + $0x40] sm:$0xf] %vm3161_vm11, %v11834_v35  ;;  %v5660_v42 = vmax.f32 %v5650_v20, 0.0  ;;  %v5627_v11 = vadd.f32 %v15407_v48, %v5626_v46 }
 0x7ac   : > { %v12784_v21 = vpop.f32.mrf.mxu0 }
 0x7ad   : > { %v11835_v47 = vpack.c.bf16 %v5660_v42, %v5660_v42  ;;  %v5651_v41 = vadd.f32 %v5641_v39, %v5627_v11 }
 0x7ae   : > { %v5629_v49 = vpop.f32.mrf.mxu0 }
 0x7af   : > { %11364 = vst.msk [vmem:[%s14003_s30 + $0x44] sm:$0xf] %vm3161_vm11, %v11835_v47  ;;  %v5661_v7 = vmax.f32 %v5651_v41, 0.0  ;;  %v5630_v9 = vadd.f32 %v15407_v48, %v5629_v49  ;;  %v5865_v48 = vld [vmem:[#allocation2 + $0x10] sm:$0xff] }
 0x7b0   : > { %v12785_v22 = vpop.f32.mrf.mxu0 }
 0x7b1   : > { %v11836_v54 = vpack.c.bf16 %v5661_v7, %v5661_v7  ;;  %v5652_v59 = vadd.f32 %v5642_v43, %v5630_v9  ;;  %v5869_v22 = vld [vmem:[#allocation2 + $0x30] sm:$0xff] }
 0x7b2   : > { %v5973_v0 = vpop.f32.mrf.mxu0 }
 0x7b3   : > { %11365 = vst.msk [vmem:[%s14003_s30 + $0x48] sm:$0xf] %vm3161_vm11, %v11836_v54  ;;  %v5662_v23 = vmax.f32 %v5652_v59, 0.0  ;;  %v6012_v27 = vadd.f32 %v5973_v0, %v5863_v52 }
 0x7b4   : > { %v12816_v62 = vpop.f32.mrf.mxu0 }
 0x7b5   : > { %v11837_v4 = vpack.c.bf16 %v5662_v23, %v5662_v23  ;;  %6022 = vst.msk [vmem:[#allocation2] sm:$0xff] %vm696_vm10, %v6012_v27 }
 0x7b6   : > { %v5976_v1 = vpop.f32.mrf.mxu0 }
 0x7b7   : > { %11366 = vst.msk [vmem:[%s14003_s30 + $0x4c] sm:$0xf] %vm3161_vm11, %v11837_v4  ;;  %v6013_v3 = vadd.f32 %v5976_v1, %v5864_v63 }
 0x7b8   : > { %v12817_v28 = vpop.f32.mrf.mxu0 }
 0x7b9   : > { %6023 = vst.msk [vmem:[#allocation2 + $0x8] sm:$0xff] %vm696_vm10, %v6013_v3 }
 0x7ba   : > { %v5981_v31 = vpop.f32.mrf.mxu0 }
 0x7bb   : > { %v6014_v24 = vadd.f32 %v5981_v31, %v5865_v48  ;;  %v5870_v31 = vld [vmem:[#allocation2 + $0x38] sm:$0xff] }
 0x7bc   : > { %v6032_v29 = vld [vmem:[#allocation2] sm:$0xff]  ;;  %v12820_v45 = vpop.f32.mrf.mxu0 }
 0x7bd   : > { %v6182_v32 = vadd.f32 %v15374_v38, %v6032_v29  ;;  %6024 = vst.msk [vmem:[#allocation2 + $0x10] sm:$0xff] %vm696_vm10, %v6014_v24  ;;  %v15455_v38 = vld [vmem:[%s16486_s5] ss:$0 sm:$0xff] }
 0x7be   : > { %v5984_v50 = vpop.f32.mrf.mxu0 }
 0x7bf   : > { %6192 = vst.msk [vmem:[#allocation2] sm:$0xff] %vm696_vm10, %v6182_v32  ;;  %v6015_v36 = vadd.f32 %v5984_v50, %v5866_v6 }
 0x7c0   : > { %v6033_v37 = vld [vmem:[#allocation2 + $0x8] sm:$0xff]  ;;  %v12821_v17 = vpop.f32.mrf.mxu0 }
 0x7c1   : > { %v6183_v10 = vadd.f32 %v15379_v58, %v6033_v37  ;;  %6025 = vst.msk [vmem:[#allocation2 + $0x18] sm:$0xff] %vm696_vm10, %v6015_v36  ;;  %v5868_v58 = vld [vmem:[#allocation2 + $0x28] sm:$0xff] }
 0x7c2   : > { %v5989_v35 = vpop.f32.mrf.mxu0 }
 0x7c3   : > { %6193 = vst.msk [vmem:[#allocation2 + $0x8] sm:$0xff] %vm696_vm10, %v6183_v10  ;;  %v6016_v20 = vadd.f32 %v5989_v35, %v5867_v30 }
 0x7c4   : > { %v6034_v40 = vld [vmem:[#allocation2 + $0x10] sm:$0xff]  ;;  %v12824_v39 = vpop.f32.mrf.mxu0 }
 0x7c5   : > { %v6184_v46 = vadd.f32 %v15383_v15, %v6034_v40  ;;  %6026 = vst.msk [vmem:[#allocation2 + $0x20] sm:$0xff] %vm696_vm10, %v6016_v20  ;;  %v5871_v40 = vld [vmem:[#allocation2 + $0x40] sm:$0xff]  ;;  %v6389_v39 = vld [vmem:[#allocation3 + $0x4] sm:$0xe] }
 0x7c6   : > { %v6202_v42 = vld [vmem:[#allocation2] sm:$0xff]  ;;  %v5992_v11 = vpop.f32.mrf.mxu0 }
 0x7c7   : > { %v6219_v21 = vadd.f32 %v15455_v38, %v6202_v42  ;;  %6194 = vst.msk [vmem:[#allocation2 + $0x10] sm:$0xff] %vm696_vm10, %v6184_v46  ;;  %v6017_v47 = vadd.f32 %v5992_v11, %v5868_v58 }
 0x7c8   : > { %v6035_v41 = vld [vmem:[#allocation2 + $0x18] sm:$0xff]  ;;  %v12825_v43 = vpop.f32.mrf.mxu0 }
 0x7c9   : > { %v6229_v49 = vmax.f32 %v6219_v21, 0.0  ;;  %v6185_v7 = vadd.f32 %v15385_v55, %v6035_v41  ;;  %6027 = vst.msk [vmem:[#allocation2 + $0x28] sm:$0xff] %vm696_vm10, %v6017_v47 }
 0x7ca   : > { %v6203_v9 = vld [vmem:[#allocation2 + $0x8] sm:$0xff]  ;;  %v5997_v15 = vpop.f32.mrf.mxu0 }
 0x7cb   : > { %v6239_v54 = vmul.f32 %v6229_v49, %v14164_v25  ;;  %v6220_v59 = vadd.f32 %v15455_v38, %v6203_v9  ;;  %6195 = vst.msk [vmem:[#allocation2 + $0x18] sm:$0xff] %vm696_vm10, %v6185_v7  ;;  %v6018_v52 = vadd.f32 %v5997_v15, %v5869_v22  ;;  %v5872_v9 = vld [vmem:[#allocation2 + $0x48] sm:$0xff] }
 0x7cc   : > { %v6036_v0 = vld [vmem:[#allocation2 + $0x20] sm:$0xff]  ;;  %v12828_v23 = vpop.f32.mrf.mxu0 }
 0x7cd   : > { %v11838_v27 = vpack.c.bf16 %v6239_v54, %v6239_v54  ;;  %v6230_v62 = vmax.f32 %v6220_v59, 0.0  ;;  %v6186_v4 = vadd.f32 %v15387_v53, %v6036_v0  ;;  %6028 = vst.msk [vmem:[#allocation2 + $0x30] sm:$0xff] %vm696_vm10, %v6018_v52 }
 0x7ce   : > { %v6204_v55 = vld [vmem:[#allocation2 + $0x10] sm:$0xff]  ;;  %v6000_v63 = vpop.f32.mrf.mxu0 }
 0x7cf   : > { %v6280_v1 = vshrl.u32 %v11838_v27, 16  ;;  %v6283_v3 = vshll.u32 %v11838_v27, 16  ;;  %v6240_v28 = vmul.f32 %v6230_v62, %v14169_v34  ;;  %v6221_v48 = vadd.f32 %v15455_v38, %v6204_v55  ;;  %6196 = vst.msk [vmem:[#allocation2 + $0x20] sm:$0xff] %vm696_vm10, %v6186_v4 }
 0x7d0   : > { %v6037_v24 = vld [vmem:[#allocation2 + $0x28] sm:$0xff]  ;;  %v6019_v29 = vadd.f32 %v6000_v63, %v5870_v31  ;;  %v12829_v45 = vpop.f32.mrf.mxu0 }
 0x7d1   : > { %v6282_v32 = vrot.slane %v6280_v1, 6  ;;  %v6285_v6 = vrot.slane %v6283_v3, 7  ;;  %v11839_v50 = vpack.c.bf16 %v6240_v28, %v6240_v28  ;;  %v6231_v53 = vmax.f32 %v6221_v48, 0.0  ;;  %v11474_v48 = vld [vmem:[%s16487_s6 + $0x8] sm:$0xf] }
 0x7d2   : > { %v6205_v36 = vld [vmem:[#allocation2 + $0x18] sm:$0xff]  ;;  %v6187_v37 = vadd.f32 %v15389_v57, %v6037_v24  ;;  %6029 = vst.msk [vmem:[#allocation2 + $0x38] sm:$0xff] %vm696_vm10, %v6019_v29  ;;  %v6005_v17 = vpop.f32.mrf.mxu0 }
 0x7d3   : > { %v6286_v10 = vor.u32 %v6285_v6, %v6282_v32  ;;  %v6289_v30 = vshrl.u32 %v11839_v50, 16  ;;  %v6292_v35 = vshll.u32 %v11839_v50, 16  ;;  %v6241_v20 = vmul.f32 %v6231_v53, %v14141_v13 }
 0x7d4   : > { %v6222_v46 = vadd.f32 %v15455_v38, %v6205_v36  ;;  %6197 = vst.msk [vmem:[#allocation2 + $0x28] sm:$0xff] %vm696_vm10, %v6187_v37  ;;  %v6038_v42 = vld [vmem:[#allocation2 + $0x30] sm:$0xff]  ;;  %v6020_v58 = vadd.f32 %v6005_v17, %v5871_v40  ;;  %v12832_v11 = vpop.f32.mrf.mxu0 }
 0x7d5   : > { %v6390_v57 = vsel %vm13913_vm7, %v6286_v10, %v6389_v39  ;;  %v6291_v21 = vrot.slane %v6289_v30, 6  ;;  %v6294_v47 = vrot.slane %v6292_v35, 7  ;;  %v11840_v41 = vpack.c.bf16 %v6241_v20, %v6241_v20 }
 0x7d6   : > { %6391 = vst [vmem:[#allocation3 + $0x4] sm:$0xe] %v6390_v57  ;;  %v6232_v43 = vmax.f32 %v6222_v46, 0.0  ;;  %v6206_v49 = vld [vmem:[#allocation2 + $0x20] sm:$0xff]  ;;  %v6188_v7 = vadd.f32 %v15391_v44, %v6038_v42  ;;  %6030 = vst.msk [vmem:[#allocation2 + $0x40] sm:$0xff] %vm696_vm10, %v6020_v58  ;;  %v6008_v22 = vpop.f32.mrf.mxu0  ;;  %v6287_v15 = vrot.slane %v6286_v10, 4 }
 0x7d7   : > { %v6295_v54 = vor.u32 %v6294_v47, %v6291_v21  ;;  %v6223_v59 = vadd.f32 %v15455_v38, %v6206_v49  ;;  %v6021_v52 = vadd.f32 %v6008_v22, %v5872_v9  ;;  %v6299_v0 = vshrl.u32 %v11840_v41, 16 }
 0x7d8   : > { %v6302_v23 = vshll.u32 %v11840_v41, 16  ;;  %v6242_v27 = vmul.f32 %v6232_v43, %v14145_v16  ;;  %6198 = vst.msk [vmem:[#allocation2 + $0x30] sm:$0xff] %vm696_vm10, %v6188_v7  ;;  %v12833_v62 = vpop.f32.mrf.mxu0 }
 0x7d9   : > { %v6296_v4 = vsel %vm14183_vm14, %v6287_v15, %v6295_v54  ;;  %v6233_v44 = vmax.f32 %v6223_v59, 0.0  ;;  %v6039_v55 = vld [vmem:[#allocation2 + $0x38] sm:$0xff]  ;;  %6031 = vst.msk [vmem:[#allocation2 + $0x48] sm:$0xff] %vm696_vm10, %v6021_v52  ;;  %v6301_v63 = vrot.slane %v6299_v0, 6  ;;  %v6297_v31 = vrot.slane %v6295_v54, 4 }
 0x7da   : > { %6392 = vst.msk [vmem:[#allocation3 + $0x8] sm:$0xf] %vm529_vm0, %v6296_v4  ;;  %v6304_v1 = vrot.slane %v6302_v23, 7  ;;  %v11841_v3 = vpack.c.bf16 %v6242_v27, %v6242_v27  ;;  %v6189_v28 = vadd.f32 %v15393_v33, %v6039_v55  ;;  %v6813_v33 = vsel %vm1356_vm12, %v11474_v48, 0 }
 0x7db   : > { %v6243_v24 = vmul.f32 %v6233_v44, %v14143_v14  ;;  %v6207_v29 = vld [vmem:[#allocation2 + $0x28] sm:$0xff] }
 0x7dc   : > { %v6305_v45 = vor.u32 %v6304_v1, %v6301_v63  ;;  %v6309_v32 = vshrl.u32 %v11841_v3, 16  ;;  %v6312_v6 = vshll.u32 %v11841_v3, 16  ;;  %v6224_v50 = vadd.f32 %v15455_v38, %v6207_v29  ;;  %6199 = vst.msk [vmem:[#allocation2 + $0x38] sm:$0xff] %vm696_vm10, %v6189_v28 }
 0x7dd   : > { %v11842_v53 = vpack.c.bf16 %v6243_v24, %v6243_v24  ;;  %v6040_v36 = vld [vmem:[#allocation2 + $0x40] sm:$0xff]  ;;  %v13611_v37 = vld [vmem:[#allocation3] sm:$0xff]  }
 0x7de   : > { %v6306_v17 = vsel %vm14183_vm14, %v6297_v31, %v6305_v45  ;;  %v6311_v10 = vrot.slane %v6309_v32, 6  ;;  %v6314_v30 = vrot.slane %v6312_v6, 7  ;;  %v6234_v40 = vmax.f32 %v6224_v50, 0.0  ;;  %12861 = vmatmul.mubr.msk.bf16.vlgmr.msra.gmra.mxu0 %vm696_vm10, %v13611_v37  ;;  %v13613_v21 = vld [vmem:[#allocation3] sm:$0xff]  }
 0x7df   : > { %6393 = vst.msk [vmem:[#allocation3 + $0xc] sm:$0xf] %vm529_vm0, %v6306_v17  ;;  %v6319_v35 = vshrl.u32 %v11842_v53, 16  ;;  %v6322_v20 = vshll.u32 %v11842_v53, 16  ;;  %v6208_v39 = vld [vmem:[#allocation2 + $0x30] sm:$0xff]  ;;  %v6190_v46 = vadd.f32 %v15395_v61, %v6040_v36  ;;  %v6307_v42 = vrot.slane %v6305_v45, 4  ;;  %12903 = vmatpush3.bf16.msra.mxu0 %v6813_v33  ;;  %12864 = vmatprep.mubr.msk.bf16.mxu0 %vm13805_vm8, %v13804_v12 }
 0x7e0   : > { %v6315_v58 = vor.u32 %v6314_v30, %v6311_v10  ;;  %v6225_v11 = vadd.f32 %v15455_v38, %v6208_v39  ;;  %v6041_v57 = vld [vmem:[#allocation2 + $0x48] sm:$0xff]  ;;  %v6244_v43 = vmul.f32 %v6234_v40, %v14147_v51  ;;  %12946 = vmatprep.subr.bf16.mxu0 %v13804_v12  ;;  %v6584_v0 = vshll.u32 %v13613_v21, 16 }
 0x7e1   : > { %v6321_v47 = vrot.slane %v6319_v35, 6  ;;  %v6324_v41 = vrot.slane %v6322_v20, 7  ;;  %6200 = vst.msk [vmem:[#allocation2 + $0x40] sm:$0xff] %vm696_vm10, %v6190_v46  ;;  %v6191_v61 = vadd.f32 %v15400_v19, %v6041_v57  ;;  %v6582_v33 = vshrl.u32 %v13613_v21, 16  ;;  %v11486_v17 = vld [vmem:[%s16487_s6 + $0xc] sm:$0xf] }
 0x7e2   : > { %v6316_v49 = vsel %vm14183_vm14, %v6307_v42, %v6315_v58  ;;  %v6235_v7 = vmax.f32 %v6225_v11, 0.0  ;;  %v6317_v9 = vrot.slane %v6315_v58, 4  ;;  %v11843_v15 = vpack.c.bf16 %v6244_v43, %v6244_v43 }
 0x7e3   : > { %6394 = vst.msk [vmem:[#allocation3 + $0x10] sm:$0xf] %vm529_vm0, %v6316_v49  ;;  %v6325_v22 = vor.u32 %v6324_v41, %v6321_v47  ;;  %v6209_v54 = vld [vmem:[#allocation2 + $0x38] sm:$0xff]  ;;  %v6586_v24 = vrot.slane %v6584_v0, 1 }
 0x7e4   : > { %6201 = vst.msk [vmem:[#allocation2 + $0x48] sm:$0xff] %vm696_vm10, %v6191_v61  ;;  %v6245_v59 = vmul.f32 %v6235_v7, %v14150_v56  ;;  %v6226_v52 = vadd.f32 %v15455_v38, %v6209_v54  ;;  %v6329_v23 = vshrl.u32 %v11843_v15, 16  ;;  %v6332_v27 = vshll.u32 %v11843_v15, 16 }
 0x7e5   : > { %v6326_v19 = vsel %vm14183_vm14, %v6317_v9, %v6325_v22  ;;  %v6327_v29 = vrot.slane %v6325_v22, 4  ;;  %v6587_v57 = vor.u32 %v6586_v24, %v6582_v33  ;;  %v6985_v9 = vsel %vm1356_vm12, %v11486_v17, 0  ;;  %v6401_v33 = vld [vmem:[#allocation3 + $0x2c] sm:$0x3] }
 0x7e6   : > { %6395 = vst.msk [vmem:[#allocation3 + $0x14] sm:$0xf] %vm529_vm0, %v6326_v19  ;;  %v11844_v62 = vpack.c.bf16 %v6245_v59, %v6245_v59  ;;  %v6236_v4 = vmax.f32 %v6226_v52, 0.0  ;;  %v13612_v44 = vld [vmem:[#allocation3 + $0x8] sm:$0xff]   ;;  %v6331_v55 = vrot.slane %v6329_v23, 6  ;;  %v6334_v63 = vrot.slane %v6332_v27, 7 }
 0x7e7   : > { %v13614_v1 = vld [vmem:[#allocation3 + $0x8] sm:$0xff]   ;;  %12865 = vmatmul.mubr.msk.bf16.gmra.mxu0 %vm696_vm10, %v13612_v44 }
 0x7e8   : > { %v6339_v3 = vshrl.u32 %v11844_v62, 16  ;;  %v6342_v28 = vshll.u32 %v11844_v62, 16  ;;  %v6246_v48 = vmul.f32 %v6236_v4, %v14152_v60  ;;  %v6210_v31 = vld [vmem:[#allocation2 + $0x40] sm:$0xff]  ;;  %v6335_v45 = vor.u32 %v6334_v63, %v6331_v55  ;;  %12868 = vmatprep.mubr.msk.bf16.mxu0 %vm13805_vm8, %v13804_v12 }
 0x7e9   : > { %v6227_v32 = vadd.f32 %v15455_v38, %v6210_v31  ;;  %v6589_v6 = vshll.u32 %v13614_v1, 16  ;;  %v6593_v54 = vshrl.u32 %v13614_v1, 16 }
 0x7ea   : > { %v6341_v50 = vrot.slane %v6339_v3, 6  ;;  %v6344_v53 = vrot.slane %v6342_v28, 7  ;;  %v11845_v36 = vpack.c.bf16 %v6246_v48, %v6246_v48  ;;  %v6336_v10 = vsel %vm14183_vm14, %v6327_v29, %v6335_v45 }
 0x7eb   : > { %v6211_v37 = vld [vmem:[#allocation2 + $0x48] sm:$0xff]  ;;  %v6337_v30 = vrot.slane %v6335_v45, 4  ;;  %v6237_v35 = vmax.f32 %v6227_v32, 0.0  ;;  %6396 = vst.msk [vmem:[#allocation3 + $0x18] sm:$0xf] %vm529_vm0, %v6336_v10  ;;  %v6591_v42 = vrot.slane %v6589_v6, 1 }
 0x7ec   : > { %v6228_v20 = vadd.f32 %v15455_v38, %v6211_v37  ;;  %v6345_v40 = vor.u32 %v6344_v53, %v6341_v50  ;;  %v6349_v39 = vshrl.u32 %v11845_v36, 16  ;;  %v6352_v46 = vshll.u32 %v11845_v36, 16 }
 0x7ed   : > { %v6247_v58 = vmul.f32 %v6237_v35, %v14160_v8  ;;  %v13615_v21 = vld [vmem:[#allocation3 + $0x10] sm:$0xff]   ;;  %v6592_v7 = vsel %vm1484_vm1, %v6587_v57, %v6591_v42  ;;  %v6595_v62 = vor.u32 %v6593_v54, %v6591_v42 }
 0x7ee   : > { %v6238_v11 = vmax.f32 %v6228_v20, 0.0  ;;  %v6346_v47 = vsel %vm14183_vm14, %v6337_v30, %v6345_v40  ;;  %v6351_v41 = vrot.slane %v6349_v39, 6  ;;  %v6354_v43 = vrot.slane %v6352_v46, 7  ;;  %v13616_v61 = vld [vmem:[#allocation3 + $0x10] sm:$0xff]   ;;  %12883 = vmatmul.mubr.msk.bf16.vlgmr.msra.gmra.mxu1 %vm696_vm10, %v6592_v7  ;;  %v13622_v39 = vld [vmem:[#allocation3 + $0x8] sm:$0xff]  }
 0x7ef   : > { %6397 = vst.msk [vmem:[#allocation3 + $0x1c] sm:$0xf] %vm529_vm0, %v6346_v47  ;;  %v11846_v38 = vpack.c.bf16 %v6247_v58, %v6247_v58  ;;  %v6347_v22 = vrot.slane %v6345_v40, 4  ;;  %12869 = vmatmul.mubr.msk.bf16.gmra.mxu0 %vm696_vm10, %v13615_v21  ;;  %v6597_v59 = vshll.u32 %v13616_v61, 16  ;;  %12886 = vmatprep.mubr.msk.bf16.mxu1 %vm13805_vm8, %v13804_v12  ;;  %v6601_v36 = vshrl.u32 %v13616_v61, 16 }
 0x7f0   : > { %v6248_v49 = vmul.f32 %v6238_v11, %v14237_v26  ;;  %v6355_v15 = vor.u32 %v6354_v43, %v6351_v41  ;;  %12872 = vmatprep.mubr.msk.bf16.mxu0 %vm13805_vm8, %v13804_v12  ;;  %12925 = vmatpush3.bf16.msra.mxu1 %v6985_v9  ;;  %v13621_v58 = vld [vmem:[#allocation3] sm:$0xfe]   ;;  %v6787_v41 = vrot.slane %v13622_v39, 1  ;;  %v13624_v9 = vld [vmem:[#allocation3 + $0x10] sm:$0xff]  }
 0x7f1   : > { %v6359_v52 = vshrl.u32 %v11846_v38, 16  ;;  %v6362_v0 = vshll.u32 %v11846_v38, 16  ;;  %v6599_v4 = vrot.slane %v6597_v59, 1  ;;  %12968 = vmatprep.subr.bf16.mxu1 %v13804_v12  ;;  %v11498_v11 = vld [vmem:[%s16487_s6 + $0x10] sm:$0xf]  ;;  %v6786_v61 = vrot.slane %v13621_v58, 1 }
 0x7f2   : > { %v11847_v19 = vpack.c.bf16 %v6248_v49, %v6248_v49  ;;  %v6356_v23 = vsel %vm14183_vm14, %v6347_v22, %v6355_v15  ;;  %v6357_v27 = vrot.slane %v6355_v15, 4  ;;  %v7199_v38 = vsel %vm1356_vm12, %v11498_v11, 0 }
 0x7f3   : > { %6398 = vst.msk [vmem:[#allocation3 + $0x20] sm:$0xf] %vm529_vm0, %v6356_v23  ;;  %v6361_v44 = vrot.slane %v6359_v52, 6  ;;  %v6364_v55 = vrot.slane %v6362_v0, 7  ;;  %v6600_v31 = vsel %vm1484_vm1, %v6595_v62, %v6599_v4  ;;  %v6603_v10 = vor.u32 %v6601_v36, %v6599_v4  ;;  %v13626_v0 = vld [vmem:[#allocation3 + $0xc] sm:$0xff]  }
 0x7f4   : > { %v6369_v63 = vshrl.u32 %v11847_v19, 16  ;;  %v6372_v1 = vshll.u32 %v11847_v19, 16  ;;  %v6788_v7 = vsel %vm1691_vm15, %v6786_v61, %v6787_v41  ;;  %v6789_v54 = vrot.slane %v13624_v9, 1  ;;  %v11510_v4 = vld [vmem:[%s16487_s6 + $0x14] sm:$0xf] }
 0x7f5   : > { %v6365_v3 = vor.u32 %v6364_v55, %v6361_v44  ;;  %v6959_v62 = vrot.slane %v13626_v0, 1 }
 0x7f6   : > { %v6371_v28 = vrot.slane %v6369_v63, 6  ;;  %v6374_v48 = vrot.slane %v6372_v1, 7  ;;  %v13617_v24 = vld [vmem:[#allocation3 + $0x18] sm:$0xff]   ;;  %12887 = vmatmul.mubr.msk.bf16.gmra.mxu1 %vm696_vm10, %v6600_v31  ;;  %v6790_v19 = vsel %vm1691_vm15, %v6787_v41, %v6789_v54 }
 0x7f7   : > { %v6366_v29 = vsel %vm14183_vm14, %v6357_v27, %v6365_v3  ;;  %v6367_v45 = vrot.slane %v6365_v3, 4  ;;  %v13618_v6 = vld [vmem:[#allocation3 + $0x18] sm:$0xff]   ;;  %12873 = vmatmul.mubr.msk.bf16.gmra.mxu0 %vm696_vm10, %v13617_v24  ;;  %12890 = vmatprep.mubr.msk.bf16.mxu1 %vm13805_vm8, %v13804_v12  ;;  %v13625_v27 = vld [vmem:[#allocation3 + $0x4] sm:$0xfe]  }
 0x7f8   : > { %v6375_v32 = vor.u32 %v6374_v48, %v6371_v28  ;;  %6399 = vst.msk [vmem:[#allocation3 + $0x24] sm:$0xf] %vm529_vm0, %v6366_v29  ;;  %v6605_v37 = vshll.u32 %v13618_v6, 16  ;;  %12876 = vmatprep.mubr.msk.bf16.mxu0 %vm13805_vm8, %v13804_v12  ;;  %v6609_v46 = vshrl.u32 %v13618_v6, 16  ;;  %v13627_v23 = vld [vmem:[#allocation3 + $0x18] sm:$0xff]   ;;  %v6958_v55 = vrot.slane %v13625_v27, 1 }
 0x7f9   : > { %v6791_v44 = vrot.slane %v13627_v23, 1  ;;  %v13628_v1 = vld [vmem:[#allocation3 + $0x14] sm:$0xff]   ;;  %v7371_v28 = vsel %vm1356_vm12, %v11510_v4, 0  ;;  %v13638_v27 = vld [vmem:[#allocation3 + $0xc] sm:$0xff]  }
 0x7fa   : > { %v6376_v50 = vsel %vm14183_vm14, %v6367_v45, %v6375_v32  ;;  %v6377_v53 = vrot.slane %v6375_v32, 4  ;;  %v6607_v30 = vrot.slane %v6605_v37, 1  ;;  %v6960_v63 = vsel %vm1691_vm15, %v6958_v55, %v6959_v62  ;;  %v13630_v45 = vld [vmem:[#allocation3 + $0x1c] sm:$0xff]  }
 0x7fb   : > { %6400 = vst.msk [vmem:[#allocation3 + $0x28] sm:$0xf] %vm529_vm0, %v6376_v50  ;;  %v6792_v48 = vsel %vm1691_vm15, %v6789_v54, %v6791_v44  ;;  %v6961_v31 = vrot.slane %v13628_v1, 1  ;;  %v13634_v50 = vld [vmem:[#allocation3 + $0xc] sm:$0xff]   ;;  %v6963_v36 = vrot.slane %v13630_v45, 1  ;;  %v13639_v54 = vld [vmem:[#allocation3 + $0x1c] sm:$0xff]  }
 0x7fc   : > { %v6402_v17 = vsel %vm13907_vm3, %v6377_v53, %v6401_v33  ;;  %v6608_v35 = vsel %vm1484_vm1, %v6603_v10, %v6607_v30  ;;  %v6611_v21 = vor.u32 %v6609_v46, %v6607_v30  ;;  %v13633_v53 = vld [vmem:[#allocation3 + $0x4] sm:$0xfe]   ;;  %v7139_v33 = vshrl.u32 %v13634_v50, 16  ;;  %v13640_v45 = vld [vmem:[#allocation3 + $0x14] sm:$0xff]  }
 0x7fd   : > { %6403 = vst [vmem:[#allocation3 + $0x2c] sm:$0x3] %v6402_v17  ;;  %v6962_v29 = vsel %vm1691_vm15, %v6959_v62, %v6961_v31  ;;  %v7142_v17 = vshll.u32 %v13634_v50, 16  ;;  %v7131_v10 = vshrl.u32 %v13633_v53, 16  ;;  %v7134_v30 = vshll.u32 %v13633_v53, 16 }
 0x7fe   : > { %12891 = vmatmul.mubr.msk.bf16.gmra.mxu1 %vm696_vm10, %v6608_v35  ;;  %v6964_v35 = vsel %vm1691_vm15, %v6961_v31, %v6963_v36  ;;  %v7141_v39 = vrot.slane %v7139_v33, 1  ;;  %v7157_v0 = vshrl.u32 %v13639_v54, 16  ;;  %v7345_v1 = vrot.slane %v13638_v27, 2  ;;  %v11534_v31 = vld [vmem:[%s16487_s6 + $0x1c] sm:$0xf] }
 0x7ff   : > { %v13619_v20 = vld [vmem:[#allocation3 + $0x20] sm:$0xff]   ;;  %12894 = vmatprep.mubr.msk.bf16.mxu1 %vm13805_vm8, %v13804_v12  ;;  %v7144_v46 = vrot.slane %v7142_v17, 2  ;;  %v7133_v58 = vrot.slane %v7131_v10, 1  ;;  %v7136_v11 = vrot.slane %v7134_v30, 2 }
 0x800   : > { %v13620_v40 = vld [vmem:[#allocation3 + $0x20] sm:$0xff]   ;;  %12877 = vmatmul.mubr.msk.bf16.gmra.mxu0 %vm696_vm10, %v13619_v20  ;;  %v7159_v4 = vrot.slane %v7157_v0, 1 }
 0x801   : > { %v6613_v42 = vshll.u32 %v13620_v40, 16  ;;  %12904 = vmatprep.mubr.msk.bf16.mxu0 %vm13805_vm8, %v13804_v12  ;;  %v6617_v22 = vshrl.u32 %v13620_v40, 16  ;;  %v13629_v3 = vld [vmem:[#allocation3 + $0x20] sm:$0xff]   ;;  %v7137_v61 = vor.u32 %v7136_v11, %v7133_v58 }
 0x802   : > { %v13623_v57 = vld [vmem:[#allocation3 + $0x28] ss:$0 sps:$4 sm:$0x11]   ;;  %v6793_v24 = vrot.slane %v13629_v3, 1 }
 0x803   : > { %v6615_v47 = vrot.slane %v6613_v42, 1  ;;  %v6621_v49 = vshll.u32 %v13623_v57, 16  ;;  %v13631_v6 = vld [vmem:[#allocation3 + $0x28] ss:$0 sps:$4 sm:$0x11]   ;;  %v13636_v42 = vld [vmem:[#allocation3 + $0x14] sm:$0xff]  }
 0x804   : > { %v6794_v32 = vsel %vm1691_vm15, %v6791_v44, %v6793_v24  ;;  %v6795_v37 = vrot.slane %v13631_v6, 1  ;;  %v13632_v20 = vld [vmem:[#allocation3 + $0x24] sm:$0xff]   ;;  %v7148_v41 = vshrl.u32 %v13636_v42, 16 }
 0x805   : > { %v6616_v43 = vsel %vm1484_vm1, %v6611_v21, %v6615_v47  ;;  %v6623_v15 = vrot.slane %v6621_v49, 1  ;;  %v6619_v59 = vor.u32 %v6617_v22, %v6615_v47  ;;  %v6965_v57 = vrot.slane %v13632_v20, 1  ;;  %v11522_v47 = vld [vmem:[%s16487_s6 + $0x18] sm:$0xf] }
 0x806   : > { %12895 = vmatmul.mubr.msk.bf16.gmra.mxu1 %vm696_vm10, %v6616_v43  ;;  %v6796_v40 = vsel %vm1691_vm15, %v6793_v24, %v6795_v37  ;;  %v7145_v21 = vor.u32 %v7144_v46, %v7141_v39  ;;  %v7151_v43 = vshll.u32 %v13636_v42, 16  ;;  %v7543_v49 = vsel %vm1356_vm12, %v11522_v47, 0  ;;  %v13641_v55 = vld [vmem:[#allocation3 + $0x24] sm:$0xff]  }
 0x807   : > { %12898 = vmatprep.mubr.msk.bf16.mxu1 %vm13805_vm8, %v13804_v12  ;;  %v6624_v52 = vsel %vm1484_vm1, %v6619_v59, %v6623_v15  ;;  %v7150_v22 = vrot.slane %v7148_v41, 1  ;;  %v7347_v37 = vrot.slane %v13640_v45, 2  ;;  %v13644_v11 = vld [vmem:[#allocation3 + $0x24] sm:$0xff]  }
 0x808   : > { %12905 = vmatmul.mubr.msk.bf16.vlgmr.msra.gmra.mxu0 %vm696_vm10, %v6788_v7  ;;  %v13635_v7 = vld [vmem:[#allocation3 + $0x2c] ss:$0 sps:$4 sm:$0x11]   ;;  %v7146_v9 = vsel %vm2038_vm2, %v7137_v61, %v7145_v21  ;;  %v7153_v15 = vrot.slane %v7151_v43, 2  ;;  %v7351_v41 = vrot.slane %v13644_v11, 2 }
 0x809   : > { %12947 = vmatpush3.bf16.msra.mxu0 %v7199_v38  ;;  %12908 = vmatprep.mubr.msk.bf16.mxu0 %vm13805_vm8, %v13804_v12  ;;  %v6966_v38 = vsel %vm1691_vm15, %v6963_v36, %v6965_v57  ;;  %v6967_v59 = vrot.slane %v13635_v7, 1  ;;  %v13643_v36 = vld [vmem:[#allocation3 + $0x2c] ss:$0 sps:$4 sm:$0x33]   ;;  %v7348_v30 = vsel %vm2254_vm4, %v7345_v1, %v7347_v37  ;;  %v11546_v61 = vld [vmem:[%s16487_s6 + $0x20] sm:$0xf] }
 0x80a   : > { %12990 = vmatprep.subr.bf16.mxu0 %v13804_v12  ;;  %v7175_v17 = vshrl.u32 %v13643_v36, 16  ;;  %v7178_v10 = vshll.u32 %v13643_v36, 16  ;;  %v13645_v47 = vld [vmem:[#allocation3 + $0x8] sm:$0xfc]   ;;  %v7929_v7 = vsel %vm1356_vm12, %v11546_v61, 0  ;;  %v13654_v36 = vld [vmem:[#allocation3 + $0x20] sm:$0xff]  }
 0x80b   : > { %v6968_v23 = vsel %vm1691_vm15, %v6965_v57, %v6967_v59  ;;  %v13649_v59 = vld [vmem:[#allocation3 + $0x8] sm:$0xfc]  }
 0x80c   : > { %v7180_v39 = vrot.slane %v7178_v10, 2  ;;  %v7689_v27 = vshrl.u32 %v13649_v59, 16  ;;  %v7715_v10 = vshrl.u32 %v13654_v36, 16 }
 0x80e   : > { %12899 = vmatmul.mubr.msk.bf16.gmra.mxu1 %vm696_vm10, %v6624_v52  ;;  %v7154_v52 = vor.u32 %v7153_v15, %v7150_v22  ;;  %v13650_v22 = vld [vmem:[#allocation3 + $0x10] sm:$0xff]  }
 0x80f   : > { %12926 = vmatprep.mubr.msk.bf16.mxu1 %vm13805_vm8, %v13804_v12  ;;  %v7697_v0 = vshrl.u32 %v13650_v22, 16 }
 0x810   : > { %12909 = vmatmul.mubr.msk.bf16.gmra.mxu0 %vm696_vm10, %v6790_v19  ;;  %v7160_v19 = vshll.u32 %v13639_v54, 16  ;;  %v7155_v62 = vsel %vm2038_vm2, %v7145_v21, %v7154_v52  ;;  %v13646_v21 = vld [vmem:[#allocation3 + $0x10] sm:$0xff]   ;;  %v13648_v54 = vld [vmem:[#allocation3 + $0x18] sm:$0xff]  }
 0x811   : > { %12912 = vmatprep.mubr.msk.bf16.mxu0 %vm13805_vm8, %v13804_v12  ;;  %v7517_v43 = vrot.slane %v13646_v21, 2 }
 0x812   : > { %v7162_v44 = vrot.slane %v7160_v19, 2  ;;  %v7700_v19 = vshll.u32 %v13650_v22, 16 }
 0x814   : > { %v7163_v3 = vor.u32 %v7162_v44, %v7159_v4  ;;  %v7699_v44 = vrot.slane %v7697_v0, 2 }
 0x816   : > { %12927 = vmatmul.mubr.msk.bf16.vlgmr.msra.gmra.mxu1 %vm696_vm10, %v6960_v63  ;;  %v13637_v63 = vld [vmem:[#allocation3 + $0x4] sm:$0xfc]   ;;  %v7164_v6 = vsel %vm2038_vm2, %v7154_v52, %v7163_v3 }
 0x817   : > { %12930 = vmatprep.mubr.msk.bf16.mxu1 %vm13805_vm8, %v13804_v12  ;;  %12969 = vmatpush3.bf16.msra.mxu1 %v7371_v28  ;;  %v7166_v28 = vshrl.u32 %v13641_v55, 16  ;;  %v7344_v24 = vrot.slane %v13637_v63, 2  ;;  %v13652_v63 = vld [vmem:[#allocation3 + $0x18] sm:$0xff]  }
 0x818   : > { %12913 = vmatmul.mubr.msk.bf16.gmra.mxu0 %vm696_vm10, %v6792_v48  ;;  %13012 = vmatprep.subr.bf16.mxu1 %v13804_v12  ;;  %v7169_v48 = vshll.u32 %v13641_v55, 16  ;;  %v7702_v55 = vrot.slane %v7700_v19, 3 }
 0x819   : > { %12916 = vmatprep.mubr.msk.bf16.mxu0 %vm13805_vm8, %v13804_v12  ;;  %v7168_v50 = vrot.slane %v7166_v28, 1  ;;  %v7691_v28 = vrot.slane %v7689_v27, 2 }
 0x81a   : > { %v7171_v53 = vrot.slane %v7169_v48, 2 }
 0x81c   : > { %v7172_v33 = vor.u32 %v7171_v53, %v7168_v50 }
 0x81e   : > { %12931 = vmatmul.mubr.msk.bf16.gmra.mxu1 %vm696_vm10, %v6962_v29  ;;  %v7346_v29 = vsel %vm2254_vm4, %v7344_v24, %v7345_v1  ;;  %v7173_v20 = vsel %vm2038_vm2, %v7163_v3, %v7172_v33  ;;  %v13651_v3 = vld [vmem:[#allocation3 + $0x20] sm:$0xff]   ;;  %v7706_v24 = vshrl.u32 %v13652_v63, 16 }
 0x81f   : > { %12934 = vmatprep.mubr.msk.bf16.mxu1 %vm13805_vm8, %v13804_v12  ;;  %v7521_v45 = vrot.slane %v13651_v3, 2 }
 0x820   : > { %12917 = vmatmul.mubr.msk.bf16.gmra.mxu0 %vm696_vm10, %v6794_v32  ;;  %v7757_v32 = vsel %vm1356_vm12, %v11534_v31, 0  ;;  %v7703_v31 = vor.u32 %v7702_v55, %v7699_v44  ;;  %v7708_v50 = vrot.slane %v7706_v24, 2 }
 0x821   : > { %12920 = vmatprep.mubr.msk.bf16.mxu0 %vm13805_vm8, %v13804_v12 }
 0x826   : > { %12935 = vmatmul.mubr.msk.bf16.gmra.mxu1 %vm696_vm10, %v6964_v35  ;;  %v13642_v35 = vld [vmem:[#allocation3 + $0x1c] sm:$0xff]  }
 0x827   : > { %12938 = vmatprep.mubr.msk.bf16.mxu1 %vm13805_vm8, %v13804_v12  ;;  %v7349_v46 = vrot.slane %v13642_v35, 2 }
 0x828   : > { %12921 = vmatmul.mubr.msk.bf16.gmra.mxu0 %vm696_vm10, %v6796_v40  ;;  %v7177_v40 = vrot.slane %v7175_v17, 1 }
 0x829   : > { %12948 = vmatprep.mubr.msk.bf16.mxu0 %vm13805_vm8, %v13804_v12  ;;  %v7350_v58 = vsel %vm2254_vm4, %v7347_v37, %v7349_v46 }
 0x82a   : > { %v7181_v42 = vor.u32 %v7180_v39, %v7177_v40  ;;  %v7717_v40 = vrot.slane %v7715_v10, 2 }
 0x82c   : > { %v7182_v57 = vsel %vm2038_vm2, %v7172_v33, %v7181_v42  ;;  %v13653_v33 = vld [vmem:[#allocation3 + $0x28] sm:$0xff]  }
 0x82d   : > { %v7523_v35 = vrot.slane %v13653_v33, 2 }
 0x82e   : > { %12939 = vmatmul.mubr.msk.bf16.gmra.mxu1 %vm696_vm10, %v6966_v38  ;;  %v7516_v38 = vrot.slane %v13645_v47, 2 }
 0x82f   : > { %12942 = vmatprep.mubr.msk.bf16.mxu1 %vm13805_vm8, %v13804_v12  ;;  %v7524_v42 = vsel %vm2254_vm4, %v7521_v45, %v7523_v35 }
 0x830   : > { %12949 = vmatmul.mubr.msk.bf16.vlgmr.msra.gmra.mxu0 %vm696_vm10, %v7146_v9  ;;  %v13647_v9 = vld [vmem:[#allocation3 + $0x2c] ss:$0 sps:$4 sm:$0x33]   ;;  %v7518_v15 = vsel %vm2254_vm4, %v7516_v38, %v7517_v43  ;;  %v13659_v38 = vld [vmem:[#allocation3 + $0x30] ss:$0 sps:$4 sm:$0x77]  }
 0x831   : > { %12991 = vmatpush3.bf16.msra.mxu0 %v7543_v49  ;;  %12952 = vmatprep.mubr.msk.bf16.mxu0 %vm13805_vm8, %v13804_v12  ;;  %v7352_v49 = vsel %vm2254_vm4, %v7349_v46, %v7351_v41  ;;  %v7353_v52 = vrot.slane %v13647_v9, 2  ;;  %v13656_v46 = vld [vmem:[#allocation3 + $0x28] sm:$0xff]  }
 0x832   : > { %13034 = vmatprep.subr.bf16.mxu0 %v13804_v12  ;;  %v7727_v21 = vshll.u32 %v13656_v46, 16  ;;  %v13657_v9 = vld [vmem:[#allocation3 + $0x8] sm:$0xf8]  }
 0x833   : > { %v7354_v4 = vsel %vm2254_vm4, %v7351_v41, %v7353_v52  ;;  %v7902_v52 = vrot.slane %v13657_v9, 3 }
 0x834   : > { %v7729_v61 = vrot.slane %v7727_v21, 3 }
 0x836   : > { %12943 = vmatmul.mubr.msk.bf16.gmra.mxu1 %vm696_vm10, %v6968_v23  ;;  %v7519_v23 = vrot.slane %v13648_v54, 2  ;;  %v7736_v54 = vshll.u32 %v13659_v38, 16 }
 0x837   : > { %12970 = vmatprep.mubr.msk.bf16.mxu1 %vm13805_vm8, %v13804_v12 }
 0x838   : > { %12953 = vmatmul.mubr.msk.bf16.gmra.mxu0 %vm696_vm10, %v7155_v62  ;;  %v7692_v62 = vshll.u32 %v13649_v59, 16  ;;  %v7520_v1 = vsel %vm2254_vm4, %v7517_v43, %v7519_v23  ;;  %v7522_v37 = vsel %vm2254_vm4, %v7519_v23, %v7521_v45  ;;  %v7738_v23 = vrot.slane %v7736_v54, 3 }
 0x839   : > { %12956 = vmatprep.mubr.msk.bf16.mxu0 %vm13805_vm8, %v13804_v12 }
 0x83a   : > { %v7694_v48 = vrot.slane %v7692_v62, 3  ;;  %v13660_v62 = vld [vmem:[#allocation3 + $0x18] sm:$0xff]  }
 0x83b   : > { %v7905_v44 = vrot.slane %v13660_v62, 3 }
 0x83e   : > { %12971 = vmatmul.mubr.msk.bf16.vlgmr.msra.gmra.mxu1 %vm696_vm10, %v7346_v29  ;;  %v7709_v29 = vshll.u32 %v13652_v63, 16 }
 0x83f   : > { %12974 = vmatprep.mubr.msk.bf16.mxu1 %vm13805_vm8, %v13804_v12  ;;  %13013 = vmatpush3.bf16.msra.mxu1 %v7757_v32  ;;  %v7695_v32 = vor.u32 %v7694_v48, %v7691_v28  ;;  %v13662_v48 = vld [vmem:[#allocation3 + $0x28] sm:$0xff]  }
 0x840   : > { %12957 = vmatmul.mubr.msk.bf16.gmra.mxu0 %vm696_vm10, %v7164_v6  ;;  %13056 = vmatprep.subr.bf16.mxu1 %v13804_v12  ;;  %v7711_v53 = vrot.slane %v7709_v29, 3  ;;  %v13663_v29 = vld [vmem:[#allocation3 + $0x30] ss:$0 sps:$4 sm:$0x77]  }
 0x841   : > { %12960 = vmatprep.mubr.msk.bf16.mxu0 %vm13805_vm8, %v13804_v12  ;;  %v7704_v6 = vsel %vm2601_vm6, %v7695_v32, %v7703_v31  ;;  %v7911_v45 = vrot.slane %v13663_v29, 3 }
 0x842   : > { %v7712_v17 = vor.u32 %v7711_v53, %v7708_v50 }
 0x846   : > { %12975 = vmatmul.mubr.msk.bf16.gmra.mxu1 %vm696_vm10, %v7348_v30  ;;  %v7718_v30 = vshll.u32 %v13654_v36, 16 }
 0x847   : > { %12978 = vmatprep.mubr.msk.bf16.mxu1 %vm13805_vm8, %v13804_v12 }
 0x848   : > { %12961 = vmatmul.mubr.msk.bf16.gmra.mxu0 %vm696_vm10, %v7173_v20  ;;  %v7713_v20 = vsel %vm2601_vm6, %v7703_v31, %v7712_v17  ;;  %v7720_v39 = vrot.slane %v7718_v30, 3  ;;  %v7909_v31 = vrot.slane %v13662_v48, 3 }
 0x849   : > { %12964 = vmatprep.mubr.msk.bf16.mxu0 %vm13805_vm8, %v13804_v12 }
 0x84a   : > { %v7721_v11 = vor.u32 %v7720_v39, %v7717_v40 }
 0x84c   : > { %v7722_v41 = vsel %vm2601_vm6, %v7712_v17, %v7721_v11 }
 0x84e   : > { %12979 = vmatmul.mubr.msk.bf16.gmra.mxu1 %vm696_vm10, %v7350_v58  ;;  %v13655_v58 = vld [vmem:[#allocation3 + $0x30] ss:$0 sps:$4 sm:$0x33]  }
 0x84f   : > { %12982 = vmatprep.mubr.msk.bf16.mxu1 %vm13805_vm8, %v13804_v12  ;;  %v7525_v47 = vrot.slane %v13655_v58, 2 }
 0x850   : > { %12965 = vmatmul.mubr.msk.bf16.gmra.mxu0 %vm696_vm10, %v7182_v57  ;;  %v7724_v57 = vshrl.u32 %v13656_v46, 16 }
 0x851   : > { %12992 = vmatprep.mubr.msk.bf16.mxu0 %vm13805_vm8, %v13804_v12 }
 0x852   : > { %v7726_v43 = vrot.slane %v7724_v57, 2 }
 0x854   : > { %v7730_v22 = vor.u32 %v7729_v61, %v7726_v43 }
 0x856   : > { %12983 = vmatmul.mubr.msk.bf16.gmra.mxu1 %vm696_vm10, %v7352_v49  ;;  %v7526_v49 = vsel %vm2254_vm4, %v7523_v35, %v7525_v47  ;;  %v7731_v0 = vsel %vm2601_vm6, %v7721_v11, %v7730_v22 }
 0x857   : > { %12986 = vmatprep.mubr.msk.bf16.mxu1 %vm13805_vm8, %v13804_v12 }
 0x858   : > { %12993 = vmatmul.mubr.msk.bf16.vlgmr.msra.gmra.mxu0 %vm696_vm10, %v7518_v15  ;;  %v7733_v15 = vshrl.u32 %v13659_v38, 16 }
 0x859   : > { %13035 = vmatpush3.bf16.msra.mxu0 %v7929_v7  ;;  %12996 = vmatprep.mubr.msk.bf16.mxu0 %vm13805_vm8, %v13804_v12  ;;  %v13658_v7 = vld [vmem:[#allocation3 + $0x10] sm:$0xff]  }
 0x85a   : > { %13078 = vmatprep.subr.bf16.mxu0 %v13804_v12  ;;  %v7903_v59 = vrot.slane %v13658_v7, 3  ;;  %v7735_v19 = vrot.slane %v7733_v15, 2 }
 0x85c   : > { %v7904_v27 = vsel %vm2817_vm5, %v7902_v52, %v7903_v59  ;;  %v7906_v63 = vsel %vm2817_vm5, %v7903_v59, %v7905_v44 }
 0x85e   : > { %12987 = vmatmul.mubr.msk.bf16.gmra.mxu1 %vm696_vm10, %v7354_v4  ;;  %v7739_v4 = vor.u32 %v7738_v23, %v7735_v19 }
 0x85f   : > { %13014 = vmatprep.mubr.msk.bf16.mxu1 %vm13805_vm8, %v13804_v12 }
 0x860   : > { %12997 = vmatmul.mubr.msk.bf16.gmra.mxu0 %vm696_vm10, %v7520_v1  ;;  %v7740_v55 = vsel %vm2601_vm6, %v7730_v22, %v7739_v4  ;;  %v13661_v1 = vld [vmem:[#allocation3 + $0x20] sm:$0xff]  }
 0x861   : > { %13000 = vmatprep.mubr.msk.bf16.mxu0 %vm13805_vm8, %v13804_v12  ;;  %v7907_v3 = vrot.slane %v13661_v1, 3 }
 0x863   : > { %v7908_v28 = vsel %vm2817_vm5, %v7905_v44, %v7907_v3  ;;  %v7910_v24 = vsel %vm2817_vm5, %v7907_v3, %v7909_v31 }
 0x866   : > { %13015 = vmatmul.mubr.msk.bf16.vlgmr.msra.gmra.mxu1 %vm696_vm10, %v7704_v6  ;;  %v7912_v6 = vsel %vm2817_vm5, %v7909_v31, %v7911_v45 }
 0x867   : > { %13018 = vmatprep.mubr.msk.bf16.mxu1 %vm13805_vm8, %v13804_v12 }
 0x868   : > { %13001 = vmatmul.mubr.msk.bf16.gmra.mxu0 %vm696_vm10, %v7522_v37 }
 0x869   : > { %13004 = vmatprep.mubr.msk.bf16.mxu0 %vm13805_vm8, %v13804_v12 }
 0x86e   : > { %13019 = vmatmul.mubr.msk.bf16.gmra.mxu1 %vm696_vm10, %v7713_v20 }
 0x86f   : > { %13022 = vmatprep.mubr.msk.bf16.mxu1 %vm13805_vm8, %v13804_v12 }
 0x870   : > { %13005 = vmatmul.mubr.msk.bf16.gmra.mxu0 %vm696_vm10, %v7524_v42  ;;  %v8076_v42 = vld [vmem:[%s16489_s8] sm:$0xf] }
 0x871   : > { %13008 = vmatprep.mubr.msk.bf16.mxu0 %vm13805_vm8, %v13804_v12  ;;  %v8100_v21 = vsel %vm1356_vm12, %v8076_v42, 0  ;;  %v13664_v42 = vld [vmem:[%s16485_s4 + $0x18] sm:$0xff]  }
 0x872   : > { %13057 = vmatpush3.bf16.msra.mxu1 %v8100_v21 }
 0x873   : > { %13102 = vmatprep.subr.bf16.mxu1 %v13804_v12 }
 0x876   : > { %13023 = vmatmul.mubr.msk.bf16.gmra.mxu1 %vm696_vm10, %v7722_v41 }
 0x877   : > { %13026 = vmatprep.mubr.msk.bf16.mxu1 %vm13805_vm8, %v13804_v12 }
 0x878   : > { %13009 = vmatmul.mubr.msk.bf16.gmra.mxu0 %vm696_vm10, %v7526_v49 }
 0x879   : > { %13036 = vmatprep.mubr.msk.bf16.mxu0 %vm13805_vm8, %v13804_v12 }
 0x87e   : > { %13027 = vmatmul.mubr.msk.bf16.gmra.mxu1 %vm696_vm10, %v7731_v0 }
 0x87f   : > { %13030 = vmatprep.mubr.msk.bf16.mxu1 %vm13805_vm8, %v13804_v12 }
 0x880   : > { %13037 = vmatmul.mubr.msk.bf16.vlgmr.msra.gmra.mxu0 %vm696_vm10, %v7904_v27 }
 0x881   : > { %13040 = vmatprep.mubr.msk.bf16.mxu0 %vm13805_vm8, %v13804_v12  ;;  %13079 = vmatpush3.bf16.msra.mxu0 %v13664_v42 }
 0x882   : > { %13080 = vmatprep.subr.bf16.mxu0 %v13804_v12 }
 0x886   : > { %13031 = vmatmul.mubr.msk.bf16.gmra.mxu1 %vm696_vm10, %v7740_v55 }
 0x887   : > { %13058 = vmatprep.mubr.msk.bf16.mxu1 %vm13805_vm8, %v13804_v12 }
 0x888   : > { %13041 = vmatmul.mubr.msk.bf16.gmra.mxu0 %vm696_vm10, %v7906_v63 }
 0x889   : > { %13044 = vmatprep.mubr.msk.bf16.mxu0 %vm13805_vm8, %v13804_v12 }
 0x890   : > { %13045 = vmatmul.mubr.msk.bf16.gmra.mxu0 %vm696_vm10, %v7908_v28 }
 0x891   : > { %13048 = vmatprep.mubr.msk.bf16.mxu0 %vm13805_vm8, %v13804_v12 }
 0x898   : > { %13049 = vmatmul.mubr.msk.bf16.gmra.mxu0 %vm696_vm10, %v7910_v24 }
 0x899   : > { %13052 = vmatprep.mubr.msk.bf16.mxu0 %vm13805_vm8, %v13804_v12 }
 0x89e   : > { %v6492_v32 = vpop.f32.mrf.mxu0 }
 0x89f   : > { %6531 = vst.msk [vmem:[#allocation2] sm:$0xff] %vm696_vm10, %v6492_v32 }
 0x8a0   : > { %13053 = vmatmul.mubr.msk.bf16.gmra.mxu0 %vm696_vm10, %v7912_v6  ;;  %v12862_v50 = vpop.f32.mrf.mxu0 }
 0x8a1   : > { %13082 = vmatprep.mubr.msk.bf16.mxu0 %vm13805_vm8, %v13804_v12 }
 0x8a2   : > { %v6495_v53 = vpop.f32.mrf.mxu0 }
 0x8a3   : > { %6532 = vst.msk [vmem:[#allocation2 + $0x8] sm:$0xff] %vm696_vm10, %v6495_v53 }
 0x8a4   : > { %v12863_v36 = vpop.f32.mrf.mxu0 }
 0x8a6   : > { %v6716_v35 = vld [vmem:[#allocation2] sm:$0xff] }
 0x8a7   : > { %v6500_v37 = vpop.f32.mrf.mxu0 }
 0x8a8   : > { %6533 = vst.msk [vmem:[#allocation2 + $0x10] sm:$0xff] %vm696_vm10, %v6500_v37 }
 0x8a9   : > { %v12866_v33 = vpop.f32.mrf.mxu0 }
 0x8aa   : > { %v6717_v11 = vld [vmem:[#allocation2 + $0x8] sm:$0xff] }
 0x8ab   : > { %v6503_v17 = vpop.f32.mrf.mxu0 }
 0x8ac   : > { %6534 = vst.msk [vmem:[#allocation2 + $0x18] sm:$0xff] %vm696_vm10, %v6503_v17 }
 0x8ad   : > { %v12867_v10 = vpop.f32.mrf.mxu0 }
 0x8ae   : > { %v6677_v30 = vpop.f32.mrf.mxu1 }
 0x8af   : > { %v6508_v20 = vpop.f32.mrf.mxu0  ;;  %v6726_v40 = vadd.f32 %v6716_v35, %v6677_v30  ;;  %v6718_v38 = vld [vmem:[#allocation2 + $0x10] sm:$0xff] }
 0x8b0   : > { %6535 = vst.msk [vmem:[#allocation2 + $0x20] sm:$0xff] %vm696_vm10, %v6508_v20  ;;  %v12884_v39 = vpop.f32.mrf.mxu1 }
 0x8b1   : > { %v12870_v46 = vpop.f32.mrf.mxu0  ;;  %6736 = vst.msk [vmem:[#allocation2] sm:$0xff] %vm696_vm10, %v6726_v40 }
 0x8b2   : > { %v6680_v58 = vpop.f32.mrf.mxu1 }
 0x8b3   : > { %v6511_v57 = vpop.f32.mrf.mxu0  ;;  %v6727_v47 = vadd.f32 %v6717_v11, %v6680_v58  ;;  %v6719_v54 = vld [vmem:[#allocation2 + $0x18] sm:$0xff] }
 0x8b4   : > { %6536 = vst.msk [vmem:[#allocation2 + $0x28] sm:$0xff] %vm696_vm10, %v6511_v57  ;;  %v12885_v41 = vpop.f32.mrf.mxu1 }
 0x8b5   : > { %v12871_v43 = vpop.f32.mrf.mxu0  ;;  %6737 = vst.msk [vmem:[#allocation2 + $0x8] sm:$0xff] %vm696_vm10, %v6727_v47 }
 0x8b6   : > { %v6685_v61 = vpop.f32.mrf.mxu1 }
 0x8b7   : > { %v6516_v49 = vpop.f32.mrf.mxu0  ;;  %v6728_v7 = vadd.f32 %v6718_v38, %v6685_v61  ;;  %v6720_v27 = vld [vmem:[#allocation2 + $0x20] sm:$0xff] }
 0x8b8   : > { %6537 = vst.msk [vmem:[#allocation2 + $0x30] sm:$0xff] %vm696_vm10, %v6516_v49  ;;  %v12888_v9 = vpop.f32.mrf.mxu1  ;;  %v6888_v6 = vld [vmem:[#allocation2] sm:$0xff] }
 0x8b9   : > { %v12874_v22 = vpop.f32.mrf.mxu0  ;;  %6738 = vst.msk [vmem:[#allocation2 + $0x10] sm:$0xff] %vm696_vm10, %v6728_v7 }
 0x8ba   : > { %v6688_v15 = vpop.f32.mrf.mxu1 }
 0x8bb   : > { %v6519_v59 = vpop.f32.mrf.mxu0  ;;  %v6729_v52 = vadd.f32 %v6719_v54, %v6688_v15  ;;  %v6721_v1 = vld [vmem:[#allocation2 + $0x28] sm:$0xff] }
 0x8bc   : > { %6538 = vst.msk [vmem:[#allocation2 + $0x38] sm:$0xff] %vm696_vm10, %v6519_v59  ;;  %v12889_v0 = vpop.f32.mrf.mxu1  ;;  %v6889_v30 = vld [vmem:[#allocation2 + $0x8] sm:$0xff] }
 0x8bd   : > { %v12875_v19 = vpop.f32.mrf.mxu0  ;;  %6739 = vst.msk [vmem:[#allocation2 + $0x18] sm:$0xff] %vm696_vm10, %v6729_v52 }
 0x8be   : > { %v6693_v23 = vpop.f32.mrf.mxu1 }
 0x8bf   : > { %v6730_v62 = vadd.f32 %v6720_v27, %v6693_v23  ;;  %v6722_v29 = vld [vmem:[#allocation2 + $0x30] sm:$0xff] }
 0x8c0   : > { %v6524_v4 = vpop.f32.mrf.mxu0  ;;  %v12892_v44 = vpop.f32.mrf.mxu1  ;;  %v6890_v57 = vld [vmem:[#allocation2 + $0x10] sm:$0xff] }
 0x8c1   : > { %6539 = vst.msk [vmem:[#allocation2 + $0x40] sm:$0xff] %vm696_vm10, %v6524_v4  ;;  %6740 = vst.msk [vmem:[#allocation2 + $0x20] sm:$0xff] %vm696_vm10, %v6730_v62 }
 0x8c2   : > { %v12878_v55 = vpop.f32.mrf.mxu0  ;;  %v6696_v63 = vpop.f32.mrf.mxu1 }
 0x8c3   : > { %v6731_v3 = vadd.f32 %v6721_v1, %v6696_v63  ;;  %v6723_v33 = vld [vmem:[#allocation2 + $0x38] sm:$0xff] }
 0x8c4   : > { %v6527_v28 = vpop.f32.mrf.mxu0  ;;  %v12893_v48 = vpop.f32.mrf.mxu1  ;;  %v6891_v7 = vld [vmem:[#allocation2 + $0x18] sm:$0xff] }
 0x8c5   : > { %6540 = vst.msk [vmem:[#allocation2 + $0x48] sm:$0xff] %vm696_vm10, %v6527_v28  ;;  %6741 = vst.msk [vmem:[#allocation2 + $0x28] sm:$0xff] %vm696_vm10, %v6731_v3 }
 0x8c6   : > { %v12879_v31 = vpop.f32.mrf.mxu0  ;;  %v6701_v24 = vpop.f32.mrf.mxu1 }
 0x8c7   : > { %v6732_v45 = vadd.f32 %v6722_v29, %v6701_v24 }
 0x8c8   : > { %v6849_v32 = vpop.f32.mrf.mxu0  ;;  %v12896_v50 = vpop.f32.mrf.mxu1  ;;  %v6724_v46 = vld [vmem:[#allocation2 + $0x40] sm:$0xff] }
 0x8c9   : > { %v6898_v53 = vadd.f32 %v6888_v6, %v6849_v32  ;;  %6742 = vst.msk [vmem:[#allocation2 + $0x30] sm:$0xff] %vm696_vm10, %v6732_v45  ;;  %v6892_v19 = vld [vmem:[#allocation2 + $0x20] sm:$0xff] }
 0x8ca   : > { %v12906_v36 = vpop.f32.mrf.mxu0  ;;  %v6704_v37 = vpop.f32.mrf.mxu1 }
 0x8cb   : > { %6908 = vst.msk [vmem:[#allocation2] sm:$0xff] %vm696_vm10, %v6898_v53  ;;  %v6733_v17 = vadd.f32 %v6723_v33, %v6704_v37  ;;  %v13666_v33 = vld [vmem:[%s16485_s4 + $0x10] sm:$0xff]  }
 0x8cc   : > { %v6852_v10 = vpop.f32.mrf.mxu0  ;;  %v12897_v35 = vpop.f32.mrf.mxu1  ;;  %v6725_v61 = vld [vmem:[#allocation2 + $0x48] sm:$0xff]  ;;  %13081 = vmatpush3.bf16.msra.mxu0 %v13666_v33 }
 0x8cd   : > { %v6899_v20 = vadd.f32 %v6889_v30, %v6852_v10  ;;  %6743 = vst.msk [vmem:[#allocation2 + $0x38] sm:$0xff] %vm696_vm10, %v6733_v17  ;;  %v6893_v1 = vld [vmem:[#allocation2 + $0x28] sm:$0xff] }
 0x8ce   : > { %v12907_v40 = vpop.f32.mrf.mxu0  ;;  %v6709_v39 = vpop.f32.mrf.mxu1 }
 0x8cf   : > { %6909 = vst.msk [vmem:[#allocation2 + $0x8] sm:$0xff] %vm696_vm10, %v6899_v20  ;;  %v6734_v58 = vadd.f32 %v6724_v46, %v6709_v39 }
 0x8d0   : > { %v6857_v11 = vpop.f32.mrf.mxu0  ;;  %v12900_v21 = vpop.f32.mrf.mxu1  ;;  %v6894_v32 = vld [vmem:[#allocation2 + $0x30] sm:$0xff] }
 0x8d1   : > { %v6900_v47 = vadd.f32 %v6890_v57, %v6857_v11  ;;  %6744 = vst.msk [vmem:[#allocation2 + $0x40] sm:$0xff] %vm696_vm10, %v6734_v58 }
 0x8d2   : > { %v12910_v41 = vpop.f32.mrf.mxu0  ;;  %v6712_v43 = vpop.f32.mrf.mxu1  ;;  %v7060_v59 = vld [vmem:[#allocation2] sm:$0xff] }
 0x8d3   : > { %6910 = vst.msk [vmem:[#allocation2 + $0x10] sm:$0xff] %vm696_vm10, %v6900_v47  ;;  %v6735_v38 = vadd.f32 %v6725_v61, %v6712_v43 }
 0x8d4   : > { %v6860_v49 = vpop.f32.mrf.mxu0  ;;  %v12901_v9 = vpop.f32.mrf.mxu1  ;;  %v6895_v30 = vld [vmem:[#allocation2 + $0x38] sm:$0xff] }
 0x8d5   : > { %v6901_v22 = vadd.f32 %v6891_v7, %v6860_v49  ;;  %6745 = vst.msk [vmem:[#allocation2 + $0x48] sm:$0xff] %vm696_vm10, %v6735_v38 }
 0x8d6   : > { %v12911_v15 = vpop.f32.mrf.mxu0  ;;  %v7021_v54 = vpop.f32.mrf.mxu1  ;;  %v7061_v44 = vld [vmem:[#allocation2 + $0x8] sm:$0xff] }
 0x8d7   : > { %6911 = vst.msk [vmem:[#allocation2 + $0x18] sm:$0xff] %vm696_vm10, %v6901_v22  ;;  %v7070_v52 = vadd.f32 %v7060_v59, %v7021_v54  ;;  %v15787_v22 = vld [vmem:[%s13998_s11 + $0x78] sm:$0xff]  }
 0x8d8   : > { %v6865_v0 = vpop.f32.mrf.mxu0  ;;  %v12928_v23 = vpop.f32.mrf.mxu1  ;;  %v6896_v11 = vld [vmem:[#allocation2 + $0x40] sm:$0xff]  ;;  %13083 = vmatmul.mubr.msk.bf16.vlgmr.msra.gmra.mxu0 %vm607_vm9, %v15787_v22 }
 0x8d9   : > { %v6902_v27 = vadd.f32 %v6892_v19, %v6865_v0  ;;  %7080 = vst.msk [vmem:[#allocation2] sm:$0xff] %vm696_vm10, %v7070_v52  ;;  %13086 = vmatprep.mubr.msk.bf16.mxu0 %vm13805_vm8, %v13804_v12 }
 0x8da   : > { %v12914_v62 = vpop.f32.mrf.mxu0  ;;  %v7024_v4 = vpop.f32.mrf.mxu1  ;;  %v7062_v24 = vld [vmem:[#allocation2 + $0x10] sm:$0xff] }
 0x8db   : > { %6912 = vst.msk [vmem:[#allocation2 + $0x20] sm:$0xff] %vm696_vm10, %v6902_v27  ;;  %v7071_v55 = vadd.f32 %v7061_v44, %v7024_v4 }
 0x8dc   : > { %v6868_v63 = vpop.f32.mrf.mxu0  ;;  %v12929_v3 = vpop.f32.mrf.mxu1  ;;  %v6897_v49 = vld [vmem:[#allocation2 + $0x48] sm:$0xff] }
 0x8dd   : > { %v6903_v28 = vadd.f32 %v6893_v1, %v6868_v63  ;;  %7081 = vst.msk [vmem:[#allocation2 + $0x8] sm:$0xff] %vm696_vm10, %v7071_v55 }
 0x8de   : > { %v12915_v48 = vpop.f32.mrf.mxu0  ;;  %v7029_v31 = vpop.f32.mrf.mxu1  ;;  %v7063_v37 = vld [vmem:[#allocation2 + $0x18] sm:$0xff] }
 0x8df   : > { %6913 = vst.msk [vmem:[#allocation2 + $0x28] sm:$0xff] %vm696_vm10, %v6903_v28  ;;  %v7072_v29 = vadd.f32 %v7062_v24, %v7029_v31  ;;  %v15798_v48 = vld [vmem:[%s13998_s11 + $0x80] sm:$0xff]  }
 0x8e0   : > { %v6873_v45 = vpop.f32.mrf.mxu0  ;;  %v12932_v6 = vpop.f32.mrf.mxu1  ;;  %v7274_v19 = vld [vmem:[#allocation2] sm:$0xff]  ;;  %13087 = vmatmul.mubr.msk.bf16.gmra.mxu0 %vm607_vm9, %v15798_v48 }
 0x8e1   : > { %v6904_v50 = vadd.f32 %v6894_v32, %v6873_v45  ;;  %7082 = vst.msk [vmem:[#allocation2 + $0x10] sm:$0xff] %vm696_vm10, %v7072_v29  ;;  %13090 = vmatprep.mubr.msk.bf16.mxu0 %vm13805_vm8, %v13804_v12 }
 0x8e2   : > { %v12918_v53 = vpop.f32.mrf.mxu0  ;;  %v7032_v36 = vpop.f32.mrf.mxu1  ;;  %v7064_v46 = vld [vmem:[#allocation2 + $0x20] sm:$0xff] }
 0x8e3   : > { %6914 = vst.msk [vmem:[#allocation2 + $0x30] sm:$0xff] %vm696_vm10, %v6904_v50  ;;  %v7073_v17 = vadd.f32 %v7063_v37, %v7032_v36 }
 0x8e4   : > { %v6876_v10 = vpop.f32.mrf.mxu0  ;;  %v12933_v35 = vpop.f32.mrf.mxu1  ;;  %v7275_v1 = vld [vmem:[#allocation2 + $0x8] sm:$0xff] }
 0x8e5   : > { %v6905_v20 = vadd.f32 %v6895_v30, %v6876_v10  ;;  %7083 = vst.msk [vmem:[#allocation2 + $0x18] sm:$0xff] %vm696_vm10, %v7073_v17 }
 0x8e6   : > { %v12919_v40 = vpop.f32.mrf.mxu0  ;;  %v7037_v39 = vpop.f32.mrf.mxu1  ;;  %v7065_v43 = vld [vmem:[#allocation2 + $0x28] sm:$0xff] }
 0x8e7   : > { %6915 = vst.msk [vmem:[#allocation2 + $0x38] sm:$0xff] %vm696_vm10, %v6905_v20  ;;  %v7074_v42 = vadd.f32 %v7064_v46, %v7037_v39  ;;  %v15809_v40 = vld [vmem:[%s13998_s11 + $0x88] sm:$0xff]  }
 0x8e8   : > { %v6881_v58 = vpop.f32.mrf.mxu0  ;;  %v12936_v57 = vpop.f32.mrf.mxu1  ;;  %v7276_v6 = vld [vmem:[#allocation2 + $0x10] sm:$0xff]  ;;  %13091 = vmatmul.mubr.msk.bf16.gmra.mxu0 %vm607_vm9, %v15809_v40 }
 0x8e9   : > { %v6906_v21 = vadd.f32 %v6896_v11, %v6881_v58  ;;  %7084 = vst.msk [vmem:[#allocation2 + $0x20] sm:$0xff] %vm696_vm10, %v7074_v42  ;;  %13094 = vmatprep.mubr.msk.bf16.mxu0 %vm13805_vm8, %v13804_v12 }
 0x8ea   : > { %v12922_v47 = vpop.f32.mrf.mxu0  ;;  %v7040_v41 = vpop.f32.mrf.mxu1  ;;  %v7066_v59 = vld [vmem:[#allocation2 + $0x30] sm:$0xff] }
 0x8eb   : > { %6916 = vst.msk [vmem:[#allocation2 + $0x40] sm:$0xff] %vm696_vm10, %v6906_v21  ;;  %v7075_v61 = vadd.f32 %v7065_v43, %v7040_v41 }
 0x8ec   : > { %v6884_v38 = vpop.f32.mrf.mxu0  ;;  %v12937_v7 = vpop.f32.mrf.mxu1  ;;  %v7277_v30 = vld [vmem:[#allocation2 + $0x18] sm:$0xff] }
 0x8ed   : > { %v6907_v9 = vadd.f32 %v6897_v49, %v6884_v38  ;;  %7085 = vst.msk [vmem:[#allocation2 + $0x28] sm:$0xff] %vm696_vm10, %v7075_v61 }
 0x8ee   : > { %v12923_v15 = vpop.f32.mrf.mxu0  ;;  %v7045_v54 = vpop.f32.mrf.mxu1  ;;  %v7067_v44 = vld [vmem:[#allocation2 + $0x38] sm:$0xff] }
 0x8ef   : > { %6917 = vst.msk [vmem:[#allocation2 + $0x48] sm:$0xff] %vm696_vm10, %v6907_v9  ;;  %v7076_v52 = vadd.f32 %v7066_v59, %v7045_v54  ;;  %v15820_v54 = vld [vmem:[%s13998_s11 + $0x90] sm:$0xff]  }
 0x8f0   : > { %v7235_v0 = vpop.f32.mrf.mxu0  ;;  %v12940_v23 = vpop.f32.mrf.mxu1  ;;  %v7278_v57 = vld [vmem:[#allocation2 + $0x20] sm:$0xff]  ;;  %13095 = vmatmul.mubr.msk.bf16.gmra.mxu0 %vm607_vm9, %v15820_v54 }
 0x8f1   : > { %v7284_v27 = vadd.f32 %v7274_v19, %v7235_v0  ;;  %7086 = vst.msk [vmem:[#allocation2 + $0x30] sm:$0xff] %vm696_vm10, %v7076_v52  ;;  %13098 = vmatprep.mubr.msk.bf16.mxu0 %vm13805_vm8, %v13804_v12 }
 0x8f2   : > { %v12950_v62 = vpop.f32.mrf.mxu0  ;;  %v7048_v4 = vpop.f32.mrf.mxu1  ;;  %v7068_v29 = vld [vmem:[#allocation2 + $0x40] sm:$0xff] }
 0x8f3   : > { %7294 = vst.msk [vmem:[#allocation2] sm:$0xff] %vm696_vm10, %v7284_v27  ;;  %v7077_v55 = vadd.f32 %v7067_v44, %v7048_v4 }
 0x8f4   : > { %v7238_v63 = vpop.f32.mrf.mxu0  ;;  %v12941_v3 = vpop.f32.mrf.mxu1  ;;  %v7279_v7 = vld [vmem:[#allocation2 + $0x28] sm:$0xff] }
 0x8f5   : > { %v7285_v28 = vadd.f32 %v7275_v1, %v7238_v63  ;;  %7087 = vst.msk [vmem:[#allocation2 + $0x38] sm:$0xff] %vm696_vm10, %v7077_v55 }
 0x8f6   : > { %v12951_v31 = vpop.f32.mrf.mxu0  ;;  %v7053_v24 = vpop.f32.mrf.mxu1  ;;  %v7069_v33 = vld [vmem:[#allocation2 + $0x48] sm:$0xff] }
 0x8f7   : > { %7295 = vst.msk [vmem:[#allocation2 + $0x8] sm:$0xff] %vm696_vm10, %v7285_v28  ;;  %v7078_v45 = vadd.f32 %v7068_v29, %v7053_v24  ;;  %v15831_v29 = vld [vmem:[%s13998_s11 + $0x98] sm:$0xff]  }
 0x8f8   : > { %v7243_v32 = vpop.f32.mrf.mxu0  ;;  %v12944_v50 = vpop.f32.mrf.mxu1  ;;  %v7280_v27 = vld [vmem:[#allocation2 + $0x30] sm:$0xff]  ;;  %13099 = vmatmul.mubr.msk.bf16.gmra.mxu0 %vm607_vm9, %v15831_v29 }
 0x8f9   : > { %v7286_v53 = vadd.f32 %v7276_v6, %v7243_v32  ;;  %7088 = vst.msk [vmem:[#allocation2 + $0x40] sm:$0xff] %vm696_vm10, %v7078_v45 }
 0x8fa   : > { %v12954_v36 = vpop.f32.mrf.mxu0  ;;  %v7056_v37 = vpop.f32.mrf.mxu1  ;;  %v7446_v42 = vld [vmem:[#allocation2] sm:$0xff] }
 0x8fb   : > { %7296 = vst.msk [vmem:[#allocation2 + $0x10] sm:$0xff] %vm696_vm10, %v7286_v53  ;;  %v7079_v17 = vadd.f32 %v7069_v33, %v7056_v37 }
 0x8fc   : > { %v7246_v10 = vpop.f32.mrf.mxu0  ;;  %v12945_v35 = vpop.f32.mrf.mxu1  ;;  %v7281_v28 = vld [vmem:[#allocation2 + $0x38] sm:$0xff] }
 0x8fd   : > { %v7287_v20 = vadd.f32 %v7277_v30, %v7246_v10  ;;  %7089 = vst.msk [vmem:[#allocation2 + $0x48] sm:$0xff] %vm696_vm10, %v7079_v17 }
 0x8fe   : > { %v12955_v39 = vpop.f32.mrf.mxu0  ;;  %v7407_v46 = vpop.f32.mrf.mxu1  ;;  %v7447_v61 = vld [vmem:[#allocation2 + $0x8] sm:$0xff] }
 0x8ff   : > { %7297 = vst.msk [vmem:[#allocation2 + $0x18] sm:$0xff] %vm696_vm10, %v7287_v20  ;;  %v7456_v58 = vadd.f32 %v7446_v42, %v7407_v46 }
 0x900   : > { %v7251_v11 = vpop.f32.mrf.mxu0  ;;  %v12972_v21 = vpop.f32.mrf.mxu1  ;;  %v7282_v36 = vld [vmem:[#allocation2 + $0x40] sm:$0xff] }
 0x901   : > { %v7288_v47 = vadd.f32 %v7278_v57, %v7251_v11  ;;  %7466 = vst.msk [vmem:[#allocation2] sm:$0xff] %vm696_vm10, %v7456_v58 }
 0x902   : > { %v12958_v41 = vpop.f32.mrf.mxu0  ;;  %v7410_v43 = vpop.f32.mrf.mxu1  ;;  %v7448_v0 = vld [vmem:[#allocation2 + $0x10] sm:$0xff] }
 0x903   : > { %7298 = vst.msk [vmem:[#allocation2 + $0x20] sm:$0xff] %vm696_vm10, %v7288_v47  ;;  %v7457_v38 = vadd.f32 %v7447_v61, %v7410_v43 }
 0x904   : > { %v7254_v49 = vpop.f32.mrf.mxu0  ;;  %v12973_v9 = vpop.f32.mrf.mxu1  ;;  %v7283_v39 = vld [vmem:[#allocation2 + $0x48] sm:$0xff] }
 0x905   : > { %v7289_v15 = vadd.f32 %v7279_v7, %v7254_v49  ;;  %7467 = vst.msk [vmem:[#allocation2 + $0x8] sm:$0xff] %vm696_vm10, %v7457_v38 }
 0x906   : > { %v12959_v59 = vpop.f32.mrf.mxu0  ;;  %v7415_v52 = vpop.f32.mrf.mxu1  ;;  %v7449_v63 = vld [vmem:[#allocation2 + $0x18] sm:$0xff] }
 0x907   : > { %7299 = vst.msk [vmem:[#allocation2 + $0x28] sm:$0xff] %vm696_vm10, %v7289_v15  ;;  %v7458_v19 = vadd.f32 %v7448_v0, %v7415_v52 }
 0x908   : > { %v7259_v23 = vpop.f32.mrf.mxu0  ;;  %v12976_v62 = vpop.f32.mrf.mxu1  ;;  %v7618_v41 = vld [vmem:[#allocation2] sm:$0xff] }
 0x909   : > { %v7290_v4 = vadd.f32 %v7280_v27, %v7259_v23  ;;  %7468 = vst.msk [vmem:[#allocation2 + $0x10] sm:$0xff] %vm696_vm10, %v7458_v19 }
 0x90a   : > { %v12962_v44 = vpop.f32.mrf.mxu0  ;;  %v7418_v55 = vpop.f32.mrf.mxu1  ;;  %v7450_v6 = vld [vmem:[#allocation2 + $0x20] sm:$0xff] }
 0x90b   : > { %7300 = vst.msk [vmem:[#allocation2 + $0x30] sm:$0xff] %vm696_vm10, %v7290_v4  ;;  %v7459_v1 = vadd.f32 %v7449_v63, %v7418_v55 }
 0x90c   : > { %v7262_v3 = vpop.f32.mrf.mxu0  ;;  %v12977_v31 = vpop.f32.mrf.mxu1  ;;  %v7619_v59 = vld [vmem:[#allocation2 + $0x8] sm:$0xff] }
 0x90d   : > { %v7291_v24 = vadd.f32 %v7281_v28, %v7262_v3  ;;  %7469 = vst.msk [vmem:[#allocation2 + $0x18] sm:$0xff] %vm696_vm10, %v7459_v1 }
 0x90e   : > { %v12963_v45 = vpop.f32.mrf.mxu0  ;;  %v7423_v32 = vpop.f32.mrf.mxu1  ;;  %v7451_v30 = vld [vmem:[#allocation2 + $0x28] sm:$0xff] }
 0x90f   : > { %7301 = vst.msk [vmem:[#allocation2 + $0x38] sm:$0xff] %vm696_vm10, %v7291_v24  ;;  %v7460_v50 = vadd.f32 %v7450_v6, %v7423_v32 }
 0x910   : > { %v7267_v53 = vpop.f32.mrf.mxu0  ;;  %v12980_v37 = vpop.f32.mrf.mxu1  ;;  %v7620_v44 = vld [vmem:[#allocation2 + $0x10] sm:$0xff] }
 0x911   : > { %v7292_v33 = vadd.f32 %v7282_v36, %v7267_v53  ;;  %7470 = vst.msk [vmem:[#allocation2 + $0x20] sm:$0xff] %vm696_vm10, %v7460_v50 }
 0x912   : > { %v12966_v17 = vpop.f32.mrf.mxu0  ;;  %v7426_v10 = vpop.f32.mrf.mxu1  ;;  %v7452_v57 = vld [vmem:[#allocation2 + $0x30] sm:$0xff] }
 0x913   : > { %7302 = vst.msk [vmem:[#allocation2 + $0x40] sm:$0xff] %vm696_vm10, %v7292_v33  ;;  %v7461_v35 = vadd.f32 %v7451_v30, %v7426_v10 }
 0x914   : > { %v7270_v20 = vpop.f32.mrf.mxu0  ;;  %v12981_v46 = vpop.f32.mrf.mxu1  ;;  %v7621_v45 = vld [vmem:[#allocation2 + $0x18] sm:$0xff] }
 0x915   : > { %v7293_v42 = vadd.f32 %v7283_v39, %v7270_v20  ;;  %7471 = vst.msk [vmem:[#allocation2 + $0x28] sm:$0xff] %vm696_vm10, %v7461_v35 }
 0x916   : > { %v12967_v58 = vpop.f32.mrf.mxu0  ;;  %v7431_v11 = vpop.f32.mrf.mxu1  ;;  %v7453_v7 = vld [vmem:[#allocation2 + $0x38] sm:$0xff] }
 0x917   : > { %7303 = vst.msk [vmem:[#allocation2 + $0x48] sm:$0xff] %vm696_vm10, %v7293_v42  ;;  %v7462_v21 = vadd.f32 %v7452_v57, %v7431_v11 }
 0x918   : > { %v7579_v47 = vpop.f32.mrf.mxu0  ;;  %v12984_v43 = vpop.f32.mrf.mxu1  ;;  %v7622_v17 = vld [vmem:[#allocation2 + $0x20] sm:$0xff] }
 0x919   : > { %v7628_v61 = vadd.f32 %v7618_v41, %v7579_v47  ;;  %7472 = vst.msk [vmem:[#allocation2 + $0x30] sm:$0xff] %vm696_vm10, %v7462_v21 }
 0x91a   : > { %v12994_v38 = vpop.f32.mrf.mxu0  ;;  %v7434_v49 = vpop.f32.mrf.mxu1  ;;  %v7454_v27 = vld [vmem:[#allocation2 + $0x40] sm:$0xff] }
 0x91b   : > { %7638 = vst.msk [vmem:[#allocation2] sm:$0xff] %vm696_vm10, %v7628_v61  ;;  %v7463_v9 = vadd.f32 %v7453_v7, %v7434_v49 }
 0x91c   : > { %v7582_v15 = vpop.f32.mrf.mxu0  ;;  %v12985_v52 = vpop.f32.mrf.mxu1  ;;  %v7623_v58 = vld [vmem:[#allocation2 + $0x28] sm:$0xff] }
 0x91d   : > { %v7629_v0 = vadd.f32 %v7619_v59, %v7582_v15  ;;  %7473 = vst.msk [vmem:[#allocation2 + $0x38] sm:$0xff] %vm696_vm10, %v7463_v9 }
 0x91e   : > { %v12995_v19 = vpop.f32.mrf.mxu0  ;;  %v7439_v23 = vpop.f32.mrf.mxu1  ;;  %v7455_v28 = vld [vmem:[#allocation2 + $0x48] sm:$0xff] }
 0x91f   : > { %7639 = vst.msk [vmem:[#allocation2 + $0x8] sm:$0xff] %vm696_vm10, %v7629_v0  ;;  %v7464_v62 = vadd.f32 %v7454_v27, %v7439_v23 }
 0x920   : > { %v7587_v4 = vpop.f32.mrf.mxu0  ;;  %v12988_v55 = vpop.f32.mrf.mxu1  ;;  %v7624_v38 = vld [vmem:[#allocation2 + $0x30] sm:$0xff] }
 0x921   : > { %v7630_v63 = vadd.f32 %v7620_v44, %v7587_v4  ;;  %7474 = vst.msk [vmem:[#allocation2 + $0x40] sm:$0xff] %vm696_vm10, %v7464_v62 }
 0x922   : > { %v12998_v1 = vpop.f32.mrf.mxu0  ;;  %v7442_v3 = vpop.f32.mrf.mxu1  ;;  %v7832_v36 = vld [vmem:[#allocation2] sm:$0xff] }
 0x923   : > { %7640 = vst.msk [vmem:[#allocation2 + $0x10] sm:$0xff] %vm696_vm10, %v7630_v63  ;;  %v7465_v31 = vadd.f32 %v7455_v28, %v7442_v3 }
 0x924   : > { %v7590_v24 = vpop.f32.mrf.mxu0  ;;  %v12989_v32 = vpop.f32.mrf.mxu1  ;;  %v7625_v19 = vld [vmem:[#allocation2 + $0x38] sm:$0xff] }
 0x925   : > { %v7631_v6 = vadd.f32 %v7621_v45, %v7590_v24  ;;  %7475 = vst.msk [vmem:[#allocation2 + $0x48] sm:$0xff] %vm696_vm10, %v7465_v31 }
 0x926   : > { %v12999_v50 = vpop.f32.mrf.mxu0  ;;  %v7793_v53 = vpop.f32.mrf.mxu1  ;;  %v7833_v39 = vld [vmem:[#allocation2 + $0x8] sm:$0xff] }
 0x927   : > { %7641 = vst.msk [vmem:[#allocation2 + $0x18] sm:$0xff] %vm696_vm10, %v7631_v6  ;;  %v7842_v37 = vadd.f32 %v7832_v36, %v7793_v53 }
 0x928   : > { %v7595_v33 = vpop.f32.mrf.mxu0  ;;  %v13016_v10 = vpop.f32.mrf.mxu1  ;;  %v7626_v1 = vld [vmem:[#allocation2 + $0x40] sm:$0xff] }
 0x929   : > { %v7632_v30 = vadd.f32 %v7622_v17, %v7595_v33  ;;  %7852 = vst.msk [vmem:[#allocation2] sm:$0xff] %vm696_vm10, %v7842_v37 }
 0x92a   : > { %v13002_v35 = vpop.f32.mrf.mxu0  ;;  %v7796_v20 = vpop.f32.mrf.mxu1  ;;  %v7834_v41 = vld [vmem:[#allocation2 + $0x10] sm:$0xff] }
 0x92b   : > { %7642 = vst.msk [vmem:[#allocation2 + $0x20] sm:$0xff] %vm696_vm10, %v7632_v30  ;;  %v7843_v46 = vadd.f32 %v7833_v39, %v7796_v20 }
 0x92c   : > { %v7598_v42 = vpop.f32.mrf.mxu0  ;;  %v13017_v11 = vpop.f32.mrf.mxu1  ;;  %v7627_v50 = vld [vmem:[#allocation2 + $0x48] sm:$0xff] }
 0x92d   : > { %v7633_v57 = vadd.f32 %v7623_v58, %v7598_v42  ;;  %7853 = vst.msk [vmem:[#allocation2 + $0x8] sm:$0xff] %vm696_vm10, %v7843_v46 }
 0x92e   : > { %v13003_v21 = vpop.f32.mrf.mxu0  ;;  %v7801_v47 = vpop.f32.mrf.mxu1  ;;  %v7835_v59 = vld [vmem:[#allocation2 + $0x18] sm:$0xff] }
 0x92f   : > { %7643 = vst.msk [vmem:[#allocation2 + $0x28] sm:$0xff] %vm696_vm10, %v7633_v57  ;;  %v7844_v43 = vadd.f32 %v7834_v41, %v7801_v47 }
 0x930   : > { %v7603_v61 = vpop.f32.mrf.mxu0  ;;  %v13020_v49 = vpop.f32.mrf.mxu1  ;;  %v8004_v35 = vld [vmem:[#allocation2] sm:$0xff] }
 0x931   : > { %v7634_v7 = vadd.f32 %v7624_v38, %v7603_v61  ;;  %7854 = vst.msk [vmem:[#allocation2 + $0x10] sm:$0xff] %vm696_vm10, %v7844_v43 }
 0x932   : > { %v13006_v9 = vpop.f32.mrf.mxu0  ;;  %v7804_v15 = vpop.f32.mrf.mxu1  ;;  %v7836_v44 = vld [vmem:[#allocation2 + $0x20] sm:$0xff] }
 0x933   : > { %7644 = vst.msk [vmem:[#allocation2 + $0x30] sm:$0xff] %vm696_vm10, %v7634_v7  ;;  %v7845_v52 = vadd.f32 %v7835_v59, %v7804_v15 }
 0x934   : > { %v7606_v0 = vpop.f32.mrf.mxu0  ;;  %v13021_v23 = vpop.f32.mrf.mxu1  ;;  %v8005_v21 = vld [vmem:[#allocation2 + $0x8] sm:$0xff] }
 0x935   : > { %v7635_v27 = vadd.f32 %v7625_v19, %v7606_v0  ;;  %7855 = vst.msk [vmem:[#allocation2 + $0x18] sm:$0xff] %vm696_vm10, %v7845_v52  ;;  %v15869_v19 = vld [vmem:[%s16488_s7] ss:$0 sm:$0xff] }
 0x936   : > { %v13007_v62 = vpop.f32.mrf.mxu0  ;;  %v7809_v4 = vpop.f32.mrf.mxu1  ;;  %v7837_v45 = vld [vmem:[#allocation2 + $0x28] sm:$0xff] }
 0x937   : > { %7645 = vst.msk [vmem:[#allocation2 + $0x38] sm:$0xff] %vm696_vm10, %v7635_v27  ;;  %v7846_v55 = vadd.f32 %v7836_v44, %v7809_v4 }
 0x938   : > { %v7611_v63 = vpop.f32.mrf.mxu0  ;;  %v13024_v3 = vpop.f32.mrf.mxu1  ;;  %v8006_v9 = vld [vmem:[#allocation2 + $0x10] sm:$0xff] }
 0x939   : > { %v7636_v28 = vadd.f32 %v7626_v1, %v7611_v63  ;;  %7856 = vst.msk [vmem:[#allocation2 + $0x20] sm:$0xff] %vm696_vm10, %v7846_v55 }
 0x93a   : > { %v13010_v31 = vpop.f32.mrf.mxu0  ;;  %v7812_v24 = vpop.f32.mrf.mxu1  ;;  %v7838_v17 = vld [vmem:[#allocation2 + $0x30] sm:$0xff] }
 0x93b   : > { %7646 = vst.msk [vmem:[#allocation2 + $0x40] sm:$0xff] %vm696_vm10, %v7636_v28  ;;  %v7847_v32 = vadd.f32 %v7837_v45, %v7812_v24 }
 0x93c   : > { %v7614_v6 = vpop.f32.mrf.mxu0  ;;  %v13025_v53 = vpop.f32.mrf.mxu1  ;;  %v8007_v44 = vld [vmem:[#allocation2 + $0x18] sm:$0xff] }
 0x93d   : > { %v7637_v36 = vadd.f32 %v7627_v50, %v7614_v6  ;;  %7857 = vst.msk [vmem:[#allocation2 + $0x28] sm:$0xff] %vm696_vm10, %v7847_v32 }
 0x93e   : > { %v13011_v37 = vpop.f32.mrf.mxu0  ;;  %v7817_v33 = vpop.f32.mrf.mxu1  ;;  %v7839_v58 = vld [vmem:[#allocation2 + $0x38] sm:$0xff] }
 0x93f   : > { %7647 = vst.msk [vmem:[#allocation2 + $0x48] sm:$0xff] %vm696_vm10, %v7637_v36  ;;  %v7848_v10 = vadd.f32 %v7838_v17, %v7817_v33  ;;  %v13665_v36 = vld [vmem:[%s16485_s4 + $0x8] sm:$0xff]  }
 0x940   : > { %v7965_v30 = vpop.f32.mrf.mxu0  ;;  %v13028_v20 = vpop.f32.mrf.mxu1  ;;  %v8008_v45 = vld [vmem:[#allocation2 + $0x20] sm:$0xff] }
 0x941   : > { %v8014_v39 = vadd.f32 %v8004_v35, %v7965_v30  ;;  %7858 = vst.msk [vmem:[#allocation2 + $0x30] sm:$0xff] %vm696_vm10, %v7848_v10 }
 0x942   : > { %v13038_v46 = vpop.f32.mrf.mxu0  ;;  %v7820_v42 = vpop.f32.mrf.mxu1  ;;  %v7840_v38 = vld [vmem:[#allocation2 + $0x40] sm:$0xff] }
 0x943   : > { %8024 = vst.msk [vmem:[#allocation2] sm:$0xff] %vm696_vm10, %v8014_v39  ;;  %v7849_v11 = vadd.f32 %v7839_v58, %v7820_v42  ;;  %v13667_v46 = vld [vmem:[%s16485_s4] sm:$0xff]  }
 0x944   : > { %v7968_v57 = vpop.f32.mrf.mxu0  ;;  %v13029_v47 = vpop.f32.mrf.mxu1  ;;  %v8009_v10 = vld [vmem:[#allocation2 + $0x28] sm:$0xff] }
 0x945   : > { %v8015_v41 = vadd.f32 %v8005_v21, %v7968_v57  ;;  %7859 = vst.msk [vmem:[#allocation2 + $0x38] sm:$0xff] %vm696_vm10, %v7849_v11 }
 0x946   : > { %v13039_v43 = vpop.f32.mrf.mxu0  ;;  %v7825_v61 = vpop.f32.mrf.mxu1  ;;  %v7841_v27 = vld [vmem:[#allocation2 + $0x48] sm:$0xff] }
 0x947   : > { %8025 = vst.msk [vmem:[#allocation2 + $0x8] sm:$0xff] %vm696_vm10, %v8015_v41  ;;  %v7850_v49 = vadd.f32 %v7840_v38, %v7825_v61 }
 0x948   : > { %v7973_v7 = vpop.f32.mrf.mxu0  ;;  %v13032_v15 = vpop.f32.mrf.mxu1  ;;  %v8010_v11 = vld [vmem:[#allocation2 + $0x30] sm:$0xff] }
 0x949   : > { %v8016_v59 = vadd.f32 %v8006_v9, %v7973_v7  ;;  %7860 = vst.msk [vmem:[#allocation2 + $0x40] sm:$0xff] %vm696_vm10, %v7850_v49 }
 0x94a   : > { %v13042_v52 = vpop.f32.mrf.mxu0  ;;  %v8034_v0 = vld [vmem:[#allocation2] sm:$0xff]  ;;  %v7828_v23 = vpop.f32.mrf.mxu1 }
 0x94b   : > { %8026 = vst.msk [vmem:[#allocation2 + $0x10] sm:$0xff] %vm696_vm10, %v8016_v59  ;;  %v7851_v62 = vadd.f32 %v7841_v27, %v7828_v23  ;;  %v8051_v1 = vadd.f32 %v15869_v19, %v8034_v0 }
 0x94c   : > { %v7976_v4 = vpop.f32.mrf.mxu0  ;;  %v13033_v55 = vpop.f32.mrf.mxu1  ;;  %v8011_v49 = vld [vmem:[#allocation2 + $0x38] sm:$0xff] }
 0x94d   : > { %v8017_v63 = vadd.f32 %v8007_v44, %v7976_v4  ;;  %7861 = vst.msk [vmem:[#allocation2 + $0x48] sm:$0xff] %vm696_vm10, %v7851_v62  ;;  %v8061_v6 = vmax.f32 %v8051_v1, 0.0 }
 0x94e   : > { %v13043_v3 = vpop.f32.mrf.mxu0  ;;  %v8035_v28 = vld [vmem:[#allocation2 + $0x8] sm:$0xff] }
 0x94f   : > { %8027 = vst.msk [vmem:[#allocation2 + $0x18] sm:$0xff] %vm696_vm10, %v8017_v63  ;;  %v8052_v31 = vadd.f32 %v15869_v19, %v8035_v28 }
 0x950   : > { %v7981_v24 = vpop.f32.mrf.mxu0  ;;  %v8012_v23 = vld [vmem:[#allocation2 + $0x40] sm:$0xff] }
 0x951   : > { %v8018_v32 = vadd.f32 %v8008_v45, %v7981_v24  ;;  %v8062_v50 = vmax.f32 %v8052_v31, 0.0 }
 0x952   : > { %v13046_v53 = vpop.f32.mrf.mxu0  ;;  %v8036_v37 = vld [vmem:[#allocation2 + $0x10] sm:$0xff] }
 0x953   : > { %8028 = vst.msk [vmem:[#allocation2 + $0x20] sm:$0xff] %vm696_vm10, %v8018_v32  ;;  %v8071_v33 = vpack.c.bf16 %v8062_v50, %v8061_v6  ;;  %v8053_v35 = vadd.f32 %v15869_v19, %v8036_v37 }
 0x954   : > { %v7984_v17 = vpop.f32.mrf.mxu0  ;;  %v8013_v3 = vld [vmem:[#allocation2 + $0x48] sm:$0xff] }
 0x955   : > { %v8019_v30 = vadd.f32 %v8009_v10, %v7984_v17  ;;  %13059 = vmatmul.mubr.msk.bf16.vlgmr.msra.gmra.mxu1 %vm696_vm10, %v8071_v33  ;;  %v8063_v21 = vmax.f32 %v8053_v35, 0.0 }
 0x956   : > { %13103 = vmatpush3.bf16.msra.mxu1 %v13665_v36  ;;  %v13047_v20 = vpop.f32.mrf.mxu0  ;;  %13062 = vmatprep.mubr.msk.bf16.mxu1 %vm13805_vm8, %v13804_v12  ;;  %v8037_v39 = vld [vmem:[#allocation2 + $0x18] sm:$0xff] }
 0x957   : > { %8029 = vst.msk [vmem:[#allocation2 + $0x28] sm:$0xff] %vm696_vm10, %v8019_v30  ;;  %v8054_v42 = vadd.f32 %v15869_v19, %v8037_v39  ;;  %13104 = vmatprep.subr.bf16.mxu1 %v13804_v12  ;;  %v13670_v20 = vld [vmem:[%s13998_s11 + $0x50] sm:$0xff]   ;;  %v13672_v39 = vld [vmem:[%s13998_s11 + $0x58] sm:$0xff]  }
 0x958   : > { %v7989_v58 = vpop.f32.mrf.mxu0 }
 0x959   : > { %v8020_v57 = vadd.f32 %v8010_v11, %v7989_v58  ;;  %v8064_v47 = vmax.f32 %v8054_v42, 0.0  ;;  %v13677_v42 = vld [vmem:[%s13998_s11 + $0x70] sm:$0xff]  }
 0x95a   : > { %v13050_v41 = vpop.f32.mrf.mxu0  ;;  %v8038_v43 = vld [vmem:[#allocation2 + $0x20] sm:$0xff]  ;;  %13105 = vmatpush3.bf16.msra.mxu1 %v13667_v46  ;;  %v13676_v46 = vld [vmem:[%s13998_s11 + $0x68] sm:$0xff]  }
 0x95b   : > { %8030 = vst.msk [vmem:[#allocation2 + $0x30] sm:$0xff] %vm696_vm10, %v8020_v57  ;;  %v8072_v61 = vpack.c.bf16 %v8064_v47, %v8063_v21  ;;  %v8055_v9 = vadd.f32 %v15869_v19, %v8038_v43 }
 0x95c   : > { %v7992_v38 = vpop.f32.mrf.mxu0 }
 0x95d   : > { %v8021_v7 = vadd.f32 %v8011_v49, %v7992_v38  ;;  %13063 = vmatmul.mubr.msk.bf16.gmra.mxu1 %vm696_vm10, %v8072_v61  ;;  %v8065_v62 = vmax.f32 %v8055_v9, 0.0 }
 0x95e   : > { %v13051_v15 = vpop.f32.mrf.mxu0  ;;  %13066 = vmatprep.mubr.msk.bf16.mxu1 %vm13805_vm8, %v13804_v12  ;;  %v8039_v59 = vld [vmem:[#allocation2 + $0x28] sm:$0xff] }
 0x95f   : > { %8031 = vst.msk [vmem:[#allocation2 + $0x38] sm:$0xff] %vm696_vm10, %v8021_v7  ;;  %v8056_v52 = vadd.f32 %v15869_v19, %v8039_v59 }
 0x960   : > { %v7997_v0 = vpop.f32.mrf.mxu0 }
 0x961   : > { %v8022_v27 = vadd.f32 %v8012_v23, %v7997_v0  ;;  %v8066_v4 = vmax.f32 %v8056_v52, 0.0 }
 0x962   : > { %v13054_v44 = vpop.f32.mrf.mxu0  ;;  %v8040_v55 = vld [vmem:[#allocation2 + $0x30] sm:$0xff] }
 0x963   : > { %8032 = vst.msk [vmem:[#allocation2 + $0x40] sm:$0xff] %vm696_vm10, %v8022_v27  ;;  %v8073_v63 = vpack.c.bf16 %v8066_v4, %v8065_v62  ;;  %v8057_v31 = vadd.f32 %v15869_v19, %v8040_v55  ;;  %v15943_v44 = vld [vmem:[%s16490_s9] ss:$0 sm:$0xff]  ;;  %v13698_v55 = vld [vmem:[%s13998_s11 + $0x50] sm:$0xff]  }
 0x964   : > { %v8000_v1 = vpop.f32.mrf.mxu0 }
 0x965   : > { %v8023_v28 = vadd.f32 %v8013_v3, %v8000_v1  ;;  %13067 = vmatmul.mubr.msk.bf16.gmra.mxu1 %vm696_vm10, %v8073_v63  ;;  %v8067_v6 = vmax.f32 %v8057_v31, 0.0  ;;  %v8175_v63 = vunpack.c.l.bf16 %v13698_v55 }
 0x966   : > { %v13055_v24 = vpop.f32.mrf.mxu0  ;;  %13070 = vmatprep.mubr.msk.bf16.mxu1 %vm13805_vm8, %v13804_v12  ;;  %v8041_v45 = vld [vmem:[#allocation2 + $0x38] sm:$0xff] }
 0x967   : > { %8033 = vst.msk [vmem:[#allocation2 + $0x48] sm:$0xff] %vm696_vm10, %v8023_v28  ;;  %v8058_v32 = vadd.f32 %v15869_v19, %v8041_v45  ;;  %v8176_v24 = vunpack.c.h.bf16 %v13698_v55 }
 0x969   : > { %v8068_v50 = vmax.f32 %v8058_v32, 0.0 }
 0x96a   : > { %v8042_v53 = vld [vmem:[#allocation2 + $0x40] sm:$0xff] }
 0x96b   : > { %v8074_v36 = vpack.c.bf16 %v8068_v50, %v8067_v6  ;;  %v8059_v37 = vadd.f32 %v15869_v19, %v8042_v53 }
 0x96d   : > { %13071 = vmatmul.mubr.msk.bf16.gmra.mxu1 %vm696_vm10, %v8074_v36  ;;  %v8069_v10 = vmax.f32 %v8059_v37, 0.0  ;;  %v13699_v37 = vld [vmem:[%s13998_s11 + $0x58] sm:$0xff]  }
 0x96e   : > { %13074 = vmatprep.mubr.msk.bf16.mxu1 %vm13805_vm8, %v13804_v12  ;;  %v8043_v33 = vld [vmem:[#allocation2 + $0x48] sm:$0xff] }
 0x96f   : > { %v8060_v17 = vadd.f32 %v15869_v19, %v8043_v33  ;;  %v13674_v19 = vld [vmem:[%s13998_s11 + $0x60] sm:$0xff]   ;;  %v8177_v33 = vunpack.c.l.bf16 %v13699_v37 }
 0x971   : > { %v8070_v30 = vmax.f32 %v8060_v17, 0.0 }
 0x973   : > { %v8075_v35 = vpack.c.bf16 %v8070_v30, %v8069_v10 }
 0x975   : > { %13075 = vmatmul.mubr.msk.bf16.gmra.mxu1 %vm696_vm10, %v8075_v35 }
 0x976   : > { %13106 = vmatprep.mubr.msk.bf16.mxu1 %vm13805_vm8, %v13804_v12 }
 0x97d   : > { %13107 = vmatmul.mubr.msk.bf16.vlgmr.msra.gmra.mxu1 %vm607_vm9, %v13670_v20 }
 0x97e   : > { %13110 = vmatprep.mubr.msk.bf16.mxu1 %vm13805_vm8, %v13804_v12 }
 0x985   : > { %13111 = vmatmul.mubr.msk.bf16.gmra.mxu1 %vm607_vm9, %v13672_v39 }
 0x986   : > { %13114 = vmatprep.mubr.msk.bf16.mxu1 %vm13805_vm8, %v13804_v12 }
 0x98d   : > { %13115 = vmatmul.mubr.msk.bf16.gmra.mxu1 %vm607_vm9, %v13674_v19  ;;  %v8178_v19 = vunpack.c.h.bf16 %v13699_v37 }
 0x98e   : > { %13118 = vmatprep.mubr.msk.bf16.mxu1 %vm13805_vm8, %v13804_v12 }
 0x995   : > { %13119 = vmatmul.mubr.msk.bf16.gmra.mxu1 %vm607_vm9, %v13676_v46 }
 0x996   : > { %13122 = vmatprep.mubr.msk.bf16.mxu1 %vm13805_vm8, %v13804_v12 }
 0x998   : > { %v8356_v58 = vpop.f32.mrf.mxu0 }
 0x999   : > { %8395 = vst.msk [vmem:[#allocation2] sm:$0xff] %vm696_vm10, %v8356_v58 }
 0x99a   : > { %v13084_v11 = vpop.f32.mrf.mxu0 }
 0x99c   : > { %v8359_v57 = vpop.f32.mrf.mxu0 }
 0x99d   : > { %13123 = vmatmul.mubr.msk.bf16.gmra.mxu1 %vm607_vm9, %v13677_v42  ;;  %8396 = vst.msk [vmem:[#allocation2 + $0x8] sm:$0xff] %vm696_vm10, %v8359_v57 }
 0x99e   : > { %v13085_v21 = vpop.f32.mrf.mxu0 }
 0x9a0   : > { %v8364_v47 = vpop.f32.mrf.mxu0 }
 0x9a1   : > { %8397 = vst.msk [vmem:[#allocation2 + $0x10] sm:$0xff] %vm696_vm10, %v8364_v47  ;;  %v13700_v47 = vld [vmem:[%s13998_s11 + $0x60] sm:$0xff]  }
 0x9a2   : > { %v13088_v41 = vpop.f32.mrf.mxu0 }
 0x9a3   : > { %v8179_v41 = vunpack.c.l.bf16 %v13700_v47 }
 0x9a4   : > { %v8367_v43 = vpop.f32.mrf.mxu0 }
 0x9a5   : > { %8398 = vst.msk [vmem:[#allocation2 + $0x18] sm:$0xff] %vm696_vm10, %v8367_v43 }
 0x9a6   : > { %v13089_v61 = vpop.f32.mrf.mxu0 }
 0x9a8   : > { %v8372_v38 = vpop.f32.mrf.mxu0 }
 0x9a9   : > { %8399 = vst.msk [vmem:[#allocation2 + $0x20] sm:$0xff] %vm696_vm10, %v8372_v38 }
 0x9aa   : > { %v13092_v49 = vpop.f32.mrf.mxu0 }
 0x9ac   : > { %v8375_v7 = vpop.f32.mrf.mxu0 }
 0x9ad   : > { %8400 = vst.msk [vmem:[#allocation2 + $0x28] sm:$0xff] %vm696_vm10, %v8375_v7 }
 0x9ae   : > { %v13093_v9 = vpop.f32.mrf.mxu0 }
 0x9b0   : > { %v8380_v15 = vpop.f32.mrf.mxu0 }
 0x9b1   : > { %8401 = vst.msk [vmem:[#allocation2 + $0x30] sm:$0xff] %vm696_vm10, %v8380_v15  ;;  %v8180_v15 = vunpack.c.h.bf16 %v13700_v47 }
 0x9b2   : > { %v13096_v59 = vpop.f32.mrf.mxu0 }
 0x9b4   : > { %v8383_v52 = vpop.f32.mrf.mxu0 }
 0x9b5   : > { %8402 = vst.msk [vmem:[#allocation2 + $0x38] sm:$0xff] %vm696_vm10, %v8383_v52 }
 0x9b6   : > { %v13097_v0 = vpop.f32.mrf.mxu0 }
 0x9b8   : > { %v8388_v23 = vpop.f32.mrf.mxu0 }
 0x9b9   : > { %8403 = vst.msk [vmem:[#allocation2 + $0x40] sm:$0xff] %vm696_vm10, %v8388_v23 }
 0x9ba   : > { %v13100_v27 = vpop.f32.mrf.mxu0 }
 0x9bc   : > { %v8391_v62 = vpop.f32.mrf.mxu0 }
 0x9bd   : > { %8404 = vst.msk [vmem:[#allocation2 + $0x48] sm:$0xff] %vm696_vm10, %v8391_v62 }
 0x9be   : > { %v13101_v4 = vpop.f32.mrf.mxu0 }
 0x9bf   : > { %v13701_v4 = vld [vmem:[%s13998_s11 + $0x68] sm:$0xff]  }
 0x9c0   : > { %v8181_v55 = vunpack.c.l.bf16 %v13701_v4 }
 0xa15   : > { %v8136_v1 = vpop.f32.mrf.mxu1 }
 0xa16   : > { %v8137_v3 = vadd.f32 %v15943_v44, %v8136_v1 }
 0xa17   : > { %v13060_v28 = vpop.f32.mrf.mxu1 }
 0xa18   : > { %v8185_v31 = vadd.f32 %v8175_v63, %v8137_v3 }
 0xa19   : > { %v8139_v45 = vpop.f32.mrf.mxu1 }
 0xa1a   : > { %v8195_v32 = vmax.f32 %v8185_v31, 0.0  ;;  %v8140_v6 = vadd.f32 %v15943_v44, %v8139_v45  ;;  %v8182_v45 = vunpack.c.h.bf16 %v13701_v4 }
 0xa1b   : > { %v13061_v50 = vpop.f32.mrf.mxu1 }
 0xa1c   : > { %v11848_v53 = vpack.c.bf16 %v8195_v32, %v8195_v32  ;;  %v8186_v36 = vadd.f32 %v8176_v24, %v8140_v6 }
 0xa1d   : > { %v8144_v17 = vpop.f32.mrf.mxu1 }
 0xa1e   : > { %11575 = vst.msk [vmem:[%s14003_s30 + $0x50] sm:$0xf] %vm3161_vm11, %v11848_v53  ;;  %v8196_v10 = vmax.f32 %v8186_v36, 0.0  ;;  %v8145_v30 = vadd.f32 %v15943_v44, %v8144_v17 }
 0xa1f   : > { %v13064_v35 = vpop.f32.mrf.mxu1 }
 0xa20   : > { %v11849_v20 = vpack.c.bf16 %v8196_v10, %v8196_v10  ;;  %v8187_v39 = vadd.f32 %v8177_v33, %v8145_v30  ;;  %v13702_v33 = vld [vmem:[%s13998_s11 + $0x70] sm:$0xff]  }
 0xa21   : > { %v8147_v46 = vpop.f32.mrf.mxu1  ;;  %v8183_v17 = vunpack.c.l.bf16 %v13702_v33 }
 0xa22   : > { %11576 = vst.msk [vmem:[%s14003_s30 + $0x54] sm:$0xf] %vm3161_vm11, %v11849_v20  ;;  %v8197_v42 = vmax.f32 %v8187_v39, 0.0  ;;  %v8148_v58 = vadd.f32 %v15943_v44, %v8147_v46  ;;  %v8184_v46 = vunpack.c.h.bf16 %v13702_v33  ;;  %v8412_v33 = vld [vmem:[#allocation2 + $0x38] sm:$0xff] }
 0xa23   : > { %v13065_v11 = vpop.f32.mrf.mxu1 }
 0xa24   : > { %v11850_v57 = vpack.c.bf16 %v8197_v42, %v8197_v42  ;;  %v8188_v21 = vadd.f32 %v8178_v19, %v8148_v58 }
 0xa25   : > { %v8152_v43 = vpop.f32.mrf.mxu1 }
 0xa26   : > { %11577 = vst.msk [vmem:[%s14003_s30 + $0x58] sm:$0xf] %vm3161_vm11, %v11850_v57  ;;  %v8198_v61 = vmax.f32 %v8188_v21, 0.0  ;;  %v8153_v38 = vadd.f32 %v15943_v44, %v8152_v43  ;;  %v8405_v21 = vld [vmem:[#allocation2] sm:$0xff] }
 0xa27   : > { %v13068_v49 = vpop.f32.mrf.mxu1 }
 0xa28   : > { %v11851_v7 = vpack.c.bf16 %v8198_v61, %v8198_v61  ;;  %v8189_v9 = vadd.f32 %v8179_v41, %v8153_v38 }
 0xa29   : > { %v8155_v59 = vpop.f32.mrf.mxu1 }
 0xa2a   : > { %11578 = vst.msk [vmem:[%s14003_s30 + $0x5c] sm:$0xf] %vm3161_vm11, %v11851_v7  ;;  %v8199_v52 = vmax.f32 %v8189_v9, 0.0  ;;  %v8156_v0 = vadd.f32 %v15943_v44, %v8155_v59  ;;  %v8406_v9 = vld [vmem:[#allocation2 + $0x8] sm:$0xff] }
 0xa2b   : > { %v13069_v23 = vpop.f32.mrf.mxu1 }
 0xa2c   : > { %v11852_v27 = vpack.c.bf16 %v8199_v52, %v8199_v52  ;;  %v8190_v62 = vadd.f32 %v8180_v15, %v8156_v0 }
 0xa2d   : > { %v8160_v63 = vpop.f32.mrf.mxu1 }
 0xa2e   : > { %11579 = vst.msk [vmem:[%s14003_s30 + $0x60] sm:$0xf] %vm3161_vm11, %v11852_v27  ;;  %v8200_v1 = vmax.f32 %v8190_v62, 0.0  ;;  %v8161_v3 = vadd.f32 %v15943_v44, %v8160_v63  ;;  %v8408_v62 = vld [vmem:[#allocation2 + $0x18] sm:$0xff] }
 0xa2f   : > { %v13072_v28 = vpop.f32.mrf.mxu1 }
 0xa30   : > { %v11853_v31 = vpack.c.bf16 %v8200_v1, %v8200_v1  ;;  %v8191_v24 = vadd.f32 %v8181_v55, %v8161_v3  ;;  %v8409_v1 = vld [vmem:[#allocation2 + $0x20] sm:$0xff] }
 0xa31   : > { %v8163_v32 = vpop.f32.mrf.mxu1 }
 0xa32   : > { %11580 = vst.msk [vmem:[%s14003_s30 + $0x64] sm:$0xf] %vm3161_vm11, %v11853_v31  ;;  %v8201_v6 = vmax.f32 %v8191_v24, 0.0  ;;  %v8164_v50 = vadd.f32 %v15943_v44, %v8163_v32  ;;  %v8410_v24 = vld [vmem:[#allocation2 + $0x28] sm:$0xff] }
 0xa33   : > { %v13073_v53 = vpop.f32.mrf.mxu1 }
 0xa34   : > { %v11854_v36 = vpack.c.bf16 %v8201_v6, %v8201_v6  ;;  %v8192_v37 = vadd.f32 %v8182_v45, %v8164_v50  ;;  %v8411_v50 = vld [vmem:[#allocation2 + $0x30] sm:$0xff] }
 0xa35   : > { %v8168_v10 = vpop.f32.mrf.mxu1 }
 0xa36   : > { %11581 = vst.msk [vmem:[%s14003_s30 + $0x68] sm:$0xf] %vm3161_vm11, %v11854_v36  ;;  %v8202_v30 = vmax.f32 %v8192_v37, 0.0  ;;  %v8169_v35 = vadd.f32 %v15943_v44, %v8168_v10 }
 0xa37   : > { %v13076_v20 = vpop.f32.mrf.mxu1 }
 0xa38   : > { %v11855_v39 = vpack.c.bf16 %v8202_v30, %v8202_v30  ;;  %v8193_v19 = vadd.f32 %v8183_v17, %v8169_v35  ;;  %v8413_v35 = vld [vmem:[#allocation2 + $0x40] sm:$0xff] }
 0xa39   : > { %v8171_v42 = vpop.f32.mrf.mxu1 }
 0xa3a   : > { %11582 = vst.msk [vmem:[%s14003_s30 + $0x6c] sm:$0xf] %vm3161_vm11, %v11855_v39  ;;  %v8203_v58 = vmax.f32 %v8193_v19, 0.0  ;;  %v8172_v11 = vadd.f32 %v15943_v44, %v8171_v42  ;;  %v8407_v44 = vld [vmem:[#allocation2 + $0x10] sm:$0xff] }
 0xa3b   : > { %v13077_v57 = vpop.f32.mrf.mxu1 }
 0xa3c   : > { %v11856_v47 = vpack.c.bf16 %v8203_v58, %v8203_v58  ;;  %v8194_v41 = vadd.f32 %v8184_v46, %v8172_v11  ;;  %v8414_v46 = vld [vmem:[#allocation2 + $0x48] sm:$0xff] }
 0xa3d   : > { %v8515_v43 = vpop.f32.mrf.mxu1 }
 0xa3e   : > { %11583 = vst.msk [vmem:[%s14003_s30 + $0x70] sm:$0xf] %vm3161_vm11, %v11856_v47  ;;  %v8204_v61 = vmax.f32 %v8194_v41, 0.0  ;;  %v8554_v38 = vadd.f32 %v8515_v43, %v8405_v21 }
 0xa3f   : > { %v13108_v49 = vpop.f32.mrf.mxu1 }
 0xa40   : > { %v11857_v7 = vpack.c.bf16 %v8204_v61, %v8204_v61  ;;  %8564 = vst.msk [vmem:[#allocation2] sm:$0xff] %vm696_vm10, %v8554_v38 }
 0xa41   : > { %v8518_v15 = vpop.f32.mrf.mxu1 }
 0xa42   : > { %11584 = vst.msk [vmem:[%s14003_s30 + $0x74] sm:$0xf] %vm3161_vm11, %v11857_v7  ;;  %v8555_v59 = vadd.f32 %v8518_v15, %v8406_v9 }
 0xa43   : > { %v13109_v52 = vpop.f32.mrf.mxu1 }
 0xa44   : > { %8565 = vst.msk [vmem:[#allocation2 + $0x8] sm:$0xff] %vm696_vm10, %v8555_v59 }
 0xa45   : > { %v8523_v0 = vpop.f32.mrf.mxu1 }
 0xa46   : > { %v8556_v23 = vadd.f32 %v8523_v0, %v8407_v44 }
 0xa47   : > { %v13112_v27 = vpop.f32.mrf.mxu1 }
 0xa48   : > { %8566 = vst.msk [vmem:[#allocation2 + $0x10] sm:$0xff] %vm696_vm10, %v8556_v23 }
 0xa49   : > { %v8526_v4 = vpop.f32.mrf.mxu1 }
 0xa4a   : > { %v8557_v55 = vadd.f32 %v8526_v4, %v8408_v62 }
 0xa4b   : > { %v13113_v63 = vpop.f32.mrf.mxu1 }
 0xa4c   : > { %8567 = vst.msk [vmem:[#allocation2 + $0x18] sm:$0xff] %vm696_vm10, %v8557_v55 }
 0xa4d   : > { %v8531_v3 = vpop.f32.mrf.mxu1 }
 0xa4e   : > { %v8558_v28 = vadd.f32 %v8531_v3, %v8409_v1 }
 0xa4f   : > { %v13116_v31 = vpop.f32.mrf.mxu1 }
 0xa50   : > { %8568 = vst.msk [vmem:[#allocation2 + $0x20] sm:$0xff] %vm696_vm10, %v8558_v28 }
 0xa51   : > { %v8534_v45 = vpop.f32.mrf.mxu1 }
 0xa52   : > { %v8559_v32 = vadd.f32 %v8534_v45, %v8410_v24 }
 0xa53   : > { %v13117_v6 = vpop.f32.mrf.mxu1 }
 0xa54   : > { %8569 = vst.msk [vmem:[#allocation2 + $0x28] sm:$0xff] %vm696_vm10, %v8559_v32 }
 0xa55   : > { %v8539_v53 = vpop.f32.mrf.mxu1 }
 0xa56   : > { %v8560_v36 = vadd.f32 %v8539_v53, %v8411_v50 }
 0xa57   : > { %v13120_v37 = vpop.f32.mrf.mxu1 }
 0xa58   : > { %8570 = vst.msk [vmem:[#allocation2 + $0x30] sm:$0xff] %vm696_vm10, %v8560_v36 }
 0xa59   : > { %v8542_v17 = vpop.f32.mrf.mxu1 }
 0xa5a   : > { %v8561_v10 = vadd.f32 %v8542_v17, %v8412_v33 }
 0xa5b   : > { %v13121_v30 = vpop.f32.mrf.mxu1 }
 0xa5c   : > { %8571 = vst.msk [vmem:[#allocation2 + $0x38] sm:$0xff] %vm696_vm10, %v8561_v10 }
 0xa5d   : > { %v8547_v20 = vpop.f32.mrf.mxu1 }
 0xa5e   : > { %v8562_v39 = vadd.f32 %v8547_v20, %v8413_v35 }
 0xa5f   : > { %v13124_v19 = vpop.f32.mrf.mxu1 }
 0xa60   : > { %8572 = vst.msk [vmem:[#allocation2 + $0x40] sm:$0xff] %vm696_vm10, %v8562_v39  ;;  %8577 = sbr.rel (%p11633_p11) target bundleno = 2886 (0xb46), region = 68 }
 0xa61   : > { %v8550_v42 = vpop.f32.mrf.mxu1 }
 0xa62   : > { %v8563_v58 = vadd.f32 %v8550_v42, %v8414_v46 }
 0xa63   : > { %v13125_v11 = vpop.f32.mrf.mxu1 }
 0xa64   : > { %8573 = vst.msk [vmem:[#allocation2 + $0x48] sm:$0xff] %vm696_vm10, %v8563_v58 }
 0xa65   : > { %v13703_v57 = vld [vmem:[%s16485_s4 + $0x28] sm:$0xff]   ;;  %v13808_v21 = vmov 0.0   ;;  %v13704_v47 = vld [vmem:[%s16485_s4 + $0x20] sm:$0xff]   ;;  %vm13809_vm13 = vmmov 0   ;;  %v13706_v43 = vld [vmem:[%s14039_s0 + $0x18] sm:$0xff]  }
 0xa66   : > { %13126 = vmatprep.subr.bf16.mxu0 %v13808_v21  ;;  %13380 = vmatprep.subr.bf16.mxu1 %v13808_v21  ;;  %v13705_v41 = vld [vmem:[%s14039_s0] sm:$0xff]   ;;  %v13707_v61 = vld [vmem:[%s14039_s0 + $0x8] sm:$0xff]   ;;  %v13709_v49 = vld [vmem:[%s14039_s0 + $0x10] sm:$0xff]  }
 0xa67   : > { %13127 = vmatpush3.bf16.msra.mxu0 %v13703_v57  ;;  %13382 = vmatpush3.bf16.msra.mxu1 %v13703_v57  ;;  %v13708_v38 = vld [vmem:[%s14039_s0 + $0x20] sm:$0xff]   ;;  %v8584_v9 = vld [vmem:[#allocation2 + $0x30] sm:$0xff]  ;;  %v8579_v23 = vld [vmem:[#allocation2 + $0x8] sm:$0xff] }
 0xa68   : > { %13128 = vmatprep.subr.bf16.mxu0 %v13808_v21  ;;  %13381 = vmatprep.subr.bf16.mxu1 %v13808_v21  ;;  %v8578_v7 = vld [vmem:[#allocation2] sm:$0xff]  ;;  %v8585_v62 = vld [vmem:[#allocation2 + $0x38] sm:$0xff]  ;;  %v8580_v28 = vld [vmem:[#allocation2 + $0x10] sm:$0xff] }
 0xa69   : > { %13130 = vmatprep.mubr.msk.bf16.mxu0 %vm13809_vm13, %v13808_v21  ;;  %13142 = vmatprep.mubr.msk.bf16.mxu1 %vm13809_vm13, %v13808_v21  ;;  %v8586_v24 = vld [vmem:[#allocation2 + $0x40] sm:$0xff]  ;;  %v8581_v36 = vld [vmem:[#allocation2 + $0x18] sm:$0xff]  ;;  %v8583_v11 = vld [vmem:[#allocation2 + $0x28] sm:$0xff] }
 0xa6a   : > { %v8582_v39 = vld [vmem:[#allocation2 + $0x20] sm:$0xff] }
 0xa6b   : > { %13129 = vmatpush3.bf16.msra.mxu0 %v13704_v47  ;;  %13383 = vmatpush3.bf16.msra.mxu1 %v13704_v47  ;;  %v8587_v33 = vld [vmem:[#allocation2 + $0x48] sm:$0xff] }
 0xa6e   : > { %13131 = vmatmul.mubr.msk.bf16.vlgmr.msra.gmra.mxu0 %vm607_vm9, %v13705_v41  ;;  %13143 = vmatmul.mubr.msk.bf16.vlgmr.msra.gmra.mxu1 %vm607_vm9, %v13706_v43 }
 0xa6f   : > { %13134 = vmatprep.mubr.msk.bf16.mxu0 %vm13809_vm13, %v13808_v21  ;;  %13146 = vmatprep.mubr.msk.bf16.mxu1 %vm13809_vm13, %v13808_v21 }
 0xa76   : > { %13135 = vmatmul.mubr.msk.bf16.gmra.mxu0 %vm607_vm9, %v13707_v61  ;;  %13147 = vmatmul.mubr.msk.bf16.gmra.mxu1 %vm607_vm9, %v13708_v38 }
 0xa77   : > { %13138 = vmatprep.mubr.msk.bf16.mxu0 %vm13809_vm13, %v13808_v21 }
 0xa7e   : > { %13139 = vmatmul.mubr.msk.bf16.gmra.mxu0 %vm607_vm9, %v13709_v49 }
 0xb2e   : > { %v8688_v15 = vpop.f32.mrf.mxu0  ;;  %v8712_v59 = vpop.f32.mrf.mxu1 }
 0xb2f   : > { %v8727_v52 = vadd.f32 %v8688_v15, %v8578_v7  ;;  %v8733_v44 = vadd.f32 %v8712_v59, %v8584_v9 }
 0xb30   : > { %v13132_v0 = vpop.f32.mrf.mxu0  ;;  %v13144_v27 = vpop.f32.mrf.mxu1 }
 0xb31   : > { %8737 = vst.msk [vmem:[#allocation2] sm:$0xff] %vm696_vm10, %v8727_v52  ;;  %8743 = vst.msk [vmem:[#allocation2 + $0x30] sm:$0xff] %vm696_vm10, %v8733_v44 }
 0xb32   : > { %v8691_v4 = vpop.f32.mrf.mxu0  ;;  %v8715_v55 = vpop.f32.mrf.mxu1 }
 0xb33   : > { %v8728_v63 = vadd.f32 %v8691_v4, %v8579_v23  ;;  %v8734_v1 = vadd.f32 %v8715_v55, %v8585_v62 }
 0xb34   : > { %v13133_v3 = vpop.f32.mrf.mxu0  ;;  %v13145_v31 = vpop.f32.mrf.mxu1 }
 0xb35   : > { %8738 = vst.msk [vmem:[#allocation2 + $0x8] sm:$0xff] %vm696_vm10, %v8728_v63  ;;  %8744 = vst.msk [vmem:[#allocation2 + $0x38] sm:$0xff] %vm696_vm10, %v8734_v1 }
 0xb36   : > { %v8696_v45 = vpop.f32.mrf.mxu0  ;;  %v8720_v32 = vpop.f32.mrf.mxu1 }
 0xb37   : > { %v8729_v6 = vadd.f32 %v8696_v45, %v8580_v28  ;;  %v8735_v50 = vadd.f32 %v8720_v32, %v8586_v24 }
 0xb38   : > { %v13136_v53 = vpop.f32.mrf.mxu0  ;;  %v13148_v37 = vpop.f32.mrf.mxu1 }
 0xb39   : > { %8739 = vst.msk [vmem:[#allocation2 + $0x10] sm:$0xff] %vm696_vm10, %v8729_v6  ;;  %8745 = vst.msk [vmem:[#allocation2 + $0x40] sm:$0xff] %vm696_vm10, %v8735_v50 }
 0xb3a   : > { %v8699_v17 = vpop.f32.mrf.mxu0  ;;  %v8723_v10 = vpop.f32.mrf.mxu1 }
 0xb3b   : > { %v8730_v30 = vadd.f32 %v8699_v17, %v8581_v36  ;;  %v8736_v35 = vadd.f32 %v8723_v10, %v8587_v33 }
 0xb3c   : > { %v13137_v20 = vpop.f32.mrf.mxu0  ;;  %v13149_v19 = vpop.f32.mrf.mxu1 }
 0xb3d   : > { %8740 = vst.msk [vmem:[#allocation2 + $0x18] sm:$0xff] %vm696_vm10, %v8730_v30  ;;  %8746 = vst.msk [vmem:[#allocation2 + $0x48] sm:$0xff] %vm696_vm10, %v8736_v35 }
 0xb3e   : > { %v8704_v46 = vpop.f32.mrf.mxu0 }
 0xb3f   : > { %v8731_v42 = vadd.f32 %v8704_v46, %v8582_v39 }
 0xb40   : > { %v13140_v58 = vpop.f32.mrf.mxu0 }
 0xb41   : > { %8741 = vst.msk [vmem:[#allocation2 + $0x20] sm:$0xff] %vm696_vm10, %v8731_v42 }
 0xb42   : > { %v8707_v57 = vpop.f32.mrf.mxu0 }
 0xb43   : > { %v8732_v21 = vadd.f32 %v8707_v57, %v8583_v11 }
 0xb44   : > { %v13141_v47 = vpop.f32.mrf.mxu0 }
 0xb45   : > { %8742 = vst.msk [vmem:[#allocation2 + $0x28] sm:$0xff] %vm696_vm10, %v8732_v21 }
 0xb46 PF: > { %13150 = vmatprep.subr.bf16.mxu0 %v13804_v12  ;;  %v8959_v41 = vld [vmem:[%s16487_s6] sm:$0xf]  ;;  %13152 = vmatprep.mubr.msk.bf16.mxu0 %vm13805_vm8, %v13804_v12  ;;  %v8748_v7 = vld [vmem:[#allocation2 + $0x8] sm:$0xff]  ;;  %v11671_v9 = vld [vmem:[%s16487_s6 + $0x4] sm:$0xf] }
 0xb47   : > { %v8747_v43 = vld [vmem:[#allocation2] sm:$0xff]  ;;  %v9001_v38 = vsel %vm1356_vm12, %v8959_v41, 0  ;;  %13172 = vmatprep.subr.bf16.mxu1 %v13804_v12  ;;  %13174 = vmatprep.mubr.msk.bf16.mxu1 %vm13805_vm8, %v13804_v12  ;;  %v8749_v15 = vld [vmem:[#allocation2 + $0x10] sm:$0xff]  ;;  %v9186_v44 = vsel %vm1356_vm12, %v11671_v9, 0  ;;  %v8750_v23 = vld [vmem:[#allocation2 + $0x18] sm:$0xff] }
 0xb48   : > { %v16026_v61 = vld [vmem:[%s16486_s5] ss:$0 sm:$0xff]  ;;  %13151 = vmatpush3.bf16.msra.mxu0 %v9001_v38  ;;  %13173 = vmatpush3.bf16.msra.mxu1 %v9186_v44  ;;  %v8753_v63 = vld [vmem:[#allocation2 + $0x30] sm:$0xff]  ;;  %v8754_v24 = vld [vmem:[#allocation2 + $0x38] sm:$0xff] }
 0xb49   : > { %v8764_v49 = vadd.f32 %v16026_v61, %v8747_v43  ;;  %v8765_v59 = vadd.f32 %v16026_v61, %v8748_v7  ;;  %13194 = vmatprep.subr.bf16.mxu0 %v13804_v12  ;;  %v8766_v0 = vadd.f32 %v16026_v61, %v8749_v15  ;;  %v8751_v62 = vld [vmem:[#allocation2 + $0x20] sm:$0xff]  ;;  %v8767_v4 = vadd.f32 %v16026_v61, %v8750_v23  ;;  %v8934_v21 = vld [vmem:[#allocation3 + $0x4] sm:$0xe] }
 0xb4a   : > { %v8768_v28 = vadd.f32 %v16026_v61, %v8751_v62  ;;  %13216 = vmatprep.subr.bf16.mxu1 %v13804_v12  ;;  %v8770_v6 = vadd.f32 %v16026_v61, %v8753_v63  ;;  %v16050_v10 = vadd.f32 %v16026_v61, %v8754_v24 }
 0xb4b   : > { %v8774_v52 = vmax.f32 %v8764_v49, 0.0  ;;  %v8775_v27 = vmax.f32 %v8765_v59, 0.0  ;;  %v8776_v3 = vmax.f32 %v8766_v0, 0.0  ;;  %v8777_v32 = vmax.f32 %v8767_v4, 0.0 }
 0xb4c   : > { %v8752_v55 = vld [vmem:[#allocation2 + $0x28] sm:$0xff]  ;;  %v8778_v36 = vmax.f32 %v8768_v28, 0.0  ;;  %v8780_v17 = vmax.f32 %v8770_v6, 0.0 }
 0xb4d   : > { %v8784_v1 = vmul.f32 %v8774_v52, %v14164_v25  ;;  %v8769_v31 = vadd.f32 %v16026_v61, %v8752_v55  ;;  %v8785_v45 = vmul.f32 %v8775_v27, %v14169_v34  ;;  %v8786_v53 = vmul.f32 %v8776_v3, %v14141_v13  ;;  %v8755_v27 = vld [vmem:[#allocation2 + $0x40] sm:$0xff] }
 0xb4e   : > { %v8787_v25 = vmul.f32 %v8777_v32, %v14145_v16  ;;  %v8788_v34 = vmul.f32 %v8778_v36, %v14143_v14  ;;  %v8790_v63 = vmul.f32 %v8780_v17, %v14150_v56  ;;  %v8772_v32 = vadd.f32 %v16026_v61, %v8755_v27  ;;  %v8756_v36 = vld [vmem:[#allocation2 + $0x48] sm:$0xff] }
 0xb4f   : > { %v11858_v50 = vpack.c.bf16 %v8784_v1, %v8784_v1  ;;  %v8779_v37 = vmax.f32 %v8769_v31, 0.0  ;;  %v11859_v33 = vpack.c.bf16 %v8785_v45, %v8785_v45  ;;  %v11860_v20 = vpack.c.bf16 %v8786_v53, %v8786_v53 }
 0xb50   : > { %v11861_v46 = vpack.c.bf16 %v8787_v25, %v8787_v25  ;;  %v11862_v41 = vpack.c.bf16 %v8788_v34, %v8788_v34  ;;  %v11864_v45 = vpack.c.bf16 %v8790_v63, %v8790_v63 }
 0xb51   : > { %v8825_v30 = vshrl.u32 %v11858_v50, 16  ;;  %v8828_v35 = vshll.u32 %v11858_v50, 16  ;;  %v8834_v39 = vshrl.u32 %v11859_v33, 16  ;;  %v8837_v19 = vshll.u32 %v11859_v33, 16 }
 0xb52   : > { %v8789_v42 = vmul.f32 %v8779_v37, %v14147_v51  ;;  %v8844_v11 = vshrl.u32 %v11860_v20, 16  ;;  %v8847_v57 = vshll.u32 %v11860_v20, 16  ;;  %v8854_v43 = vshrl.u32 %v11861_v46, 16  ;;  %v11683_v37 = vld [vmem:[%s16487_s6 + $0x8] sm:$0xf] }
 0xb53   : > { %v8827_v13 = vrot.slane %v8825_v30, 6  ;;  %v8830_v58 = vrot.slane %v8828_v35, 7  ;;  %v8836_v16 = vrot.slane %v8834_v39, 6  ;;  %v8839_v47 = vrot.slane %v8837_v19, 7 }
 0xb54   : > { %v8846_v49 = vrot.slane %v8844_v11, 6  ;;  %v8849_v7 = vrot.slane %v8847_v57, 7  ;;  %v8857_v9 = vshll.u32 %v11861_v46, 16  ;;  %v8856_v14 = vrot.slane %v8854_v43, 6 }
 0xb55   : > { %v8831_v38 = vor.u32 %v8830_v58, %v8827_v13  ;;  %v8840_v15 = vor.u32 %v8839_v47, %v8836_v16  ;;  %v8864_v59 = vshrl.u32 %v11862_v41, 16  ;;  %v8867_v52 = vshll.u32 %v11862_v41, 16  ;;  %v11695_v47 = vld [vmem:[%s16487_s6 + $0xc] sm:$0xf] }
 0xb56   : > { %v8850_v0 = vor.u32 %v8849_v7, %v8846_v49  ;;  %v8859_v23 = vrot.slane %v8857_v9, 7  ;;  %v11863_v31 = vpack.c.bf16 %v8789_v42, %v8789_v42  ;;  %v8884_v25 = vshrl.u32 %v11864_v45, 16 }
 0xb57   : > { %v8935_v51 = vsel %vm13913_vm7, %v8831_v38, %v8934_v21  ;;  %v8832_v44 = vrot.slane %v8831_v38, 4  ;;  %v8842_v62 = vrot.slane %v8840_v15, 4  ;;  %v8866_v4 = vrot.slane %v8864_v59, 6 }
 0xb58   : > { %8936 = vst [vmem:[#allocation3 + $0x4] sm:$0xe] %v8935_v51  ;;  %v8869_v55 = vrot.slane %v8867_v52, 7  ;;  %v8852_v3 = vrot.slane %v8850_v0, 4  ;;  %v8860_v28 = vor.u32 %v8859_v23, %v8856_v14  ;;  %v8874_v50 = vshrl.u32 %v11863_v31, 16 }
 0xb59   : > { %v8841_v1 = vsel %vm14183_vm14, %v8832_v44, %v8840_v15  ;;  %v8851_v5 = vsel %vm14183_vm14, %v8842_v62, %v8850_v0  ;;  %v8877_v53 = vshll.u32 %v11863_v31, 16  ;;  %v8887_v17 = vshll.u32 %v11864_v45, 16 }
 0xb5a   : > { %8937 = vst.msk [vmem:[#allocation3 + $0x8] sm:$0xf] %vm529_vm0, %v8841_v1  ;;  %v8870_v24 = vor.u32 %v8869_v55, %v8866_v4  ;;  %8938 = vst.msk [vmem:[#allocation3 + $0xc] sm:$0xf] %vm529_vm0, %v8851_v5  ;;  %v8861_v56 = vsel %vm14183_vm14, %v8852_v3, %v8860_v28  ;;  %v8862_v6 = vrot.slane %v8860_v28, 4  ;;  %v8781_v30 = vmax.f32 %v16050_v10, 0.0 }
 0xb5b   : > { %8939 = vst.msk [vmem:[#allocation3 + $0x10] sm:$0xf] %vm529_vm0, %v8861_v56  ;;  %v8876_v20 = vrot.slane %v8874_v50, 6  ;;  %v8879_v34 = vrot.slane %v8877_v53, 7  ;;  %v8782_v39 = vmax.f32 %v8772_v32, 0.0  ;;  %v8886_v19 = vrot.slane %v8884_v25, 6 }
 0xb5c   : > { %v8872_v33 = vrot.slane %v8870_v24, 4  ;;  %v8871_v35 = vsel %vm14183_vm14, %v8862_v6, %v8870_v24  ;;  %v8889_v46 = vrot.slane %v8887_v17, 7  ;;  %v8791_v42 = vmul.f32 %v8781_v30, %v14152_v60 }
 0xb5d   : > { %8940 = vst.msk [vmem:[#allocation3 + $0x14] sm:$0xf] %vm529_vm0, %v8871_v35  ;;  %v8773_v13 = vadd.f32 %v16026_v61, %v8756_v36  ;;  %v9358_v11 = vsel %vm1356_vm12, %v11683_v37, 0  ;;  %v8880_v57 = vor.u32 %v8879_v34, %v8876_v20  ;;  %v8792_v10 = vmul.f32 %v8782_v39, %v14160_v8 }
 0xb5e   : > { %v8890_v16 = vor.u32 %v8889_v46, %v8886_v19  ;;  %v11865_v41 = vpack.c.bf16 %v8791_v42, %v8791_v42  ;;  %v9530_v14 = vsel %vm1356_vm12, %v11695_v47, 0 }
 0xb5f   : > { %v13710_v58 = vld [vmem:[#allocation3] sm:$0xff]   ;;  %v8783_v43 = vmax.f32 %v8773_v13, 0.0  ;;  %v8881_v60 = vsel %vm14183_vm14, %v8872_v33, %v8880_v57  ;;  %v8882_v61 = vrot.slane %v8880_v57, 4  ;;  %v11866_v38 = vpack.c.bf16 %v8792_v10, %v8792_v10  ;;  %v8946_v57 = vld [vmem:[#allocation3 + $0x2c] sm:$0x3] }
 0xb60   : > { %v13712_v21 = vld [vmem:[#allocation3] sm:$0xff]   ;;  %13153 = vmatmul.mubr.msk.bf16.vlgmr.msra.gmra.mxu0 %vm696_vm10, %v13710_v58  ;;  %8941 = vst.msk [vmem:[#allocation3 + $0x18] sm:$0xf] %vm529_vm0, %v8881_v60  ;;  %v8894_v59 = vshrl.u32 %v11865_v41, 16  ;;  %v8897_v52 = vshll.u32 %v11865_v41, 16  ;;  %v8892_v4 = vrot.slane %v8890_v16, 4 }
 0xb61   : > { %13195 = vmatpush3.bf16.msra.mxu0 %v9358_v11  ;;  %13156 = vmatprep.mubr.msk.bf16.mxu0 %vm13805_vm8, %v13804_v12  ;;  %v9127_v8 = vshrl.u32 %v13712_v21, 16  ;;  %v8793_v49 = vmul.f32 %v8783_v43, %v14237_v26  ;;  %v13713_v7 = vld [vmem:[#allocation3 + $0x8] sm:$0xff]   ;;  %v9129_v9 = vshll.u32 %v13712_v21, 16  ;;  %v8891_v15 = vsel %vm14183_vm14, %v8882_v61, %v8890_v16 }
 0xb62   : > { %13238 = vmatprep.subr.bf16.mxu0 %v13804_v12  ;;  %8942 = vst.msk [vmem:[#allocation3 + $0x1c] sm:$0xf] %vm529_vm0, %v8891_v15  ;;  %v8904_v51 = vshrl.u32 %v11866_v38, 16  ;;  %v13711_v44 = vld [vmem:[#allocation3 + $0x8] sm:$0xff]   ;;  %v9134_v23 = vshll.u32 %v13713_v7, 16  ;;  %v9138_v26 = vshrl.u32 %v13713_v7, 16 }
 0xb63   : > { %v9131_v0 = vrot.slane %v9129_v9, 1  ;;  %v11867_v62 = vpack.c.bf16 %v8793_v49, %v8793_v49  ;;  %v8896_v55 = vrot.slane %v8894_v59, 6  ;;  %v8899_v63 = vrot.slane %v8897_v52, 7  ;;  %v13721_v49 = vld [vmem:[#allocation3] sm:$0xfe]   ;;  %v13722_v7 = vld [vmem:[#allocation3 + $0x8] sm:$0xff]  }
 0xb64   : > { %v13715_v27 = vld [vmem:[#allocation3 + $0x10] sm:$0xff]   ;;  %v9136_v3 = vrot.slane %v9134_v23, 1  ;;  %v8906_v31 = vrot.slane %v8904_v51, 6  ;;  %v8907_v24 = vshll.u32 %v11866_v38, 16  ;;  %v9331_v59 = vrot.slane %v13721_v49, 1 }
 0xb65   : > { %v9132_v1 = vor.u32 %v9131_v0, %v9127_v8  ;;  %v9142_v28 = vshll.u32 %v13715_v27, 16  ;;  %v8900_v5 = vor.u32 %v8899_v63, %v8896_v55  ;;  %v8914_v45 = vshrl.u32 %v11867_v62, 16  ;;  %v13714_v17 = vld [vmem:[#allocation3 + $0x10] sm:$0xff]   ;;  %v11731_v49 = vld [vmem:[%s16487_s6 + $0x18] sm:$0xf] }
 0xb66   : > { %v8917_v32 = vshll.u32 %v11867_v62, 16  ;;  %v8909_v53 = vrot.slane %v8907_v24, 7  ;;  %v9140_v37 = vor.u32 %v9138_v26, %v9136_v3  ;;  %v9146_v34 = vshrl.u32 %v13715_v27, 16  ;;  %v13723_v27 = vld [vmem:[#allocation3 + $0x10] sm:$0xff]  }
 0xb67   : > { %v9137_v56 = vsel %vm1484_vm1, %v9132_v1, %v9136_v3  ;;  %v8901_v6 = vsel %vm14183_vm14, %v8892_v4, %v8900_v5  ;;  %v8902_v50 = vrot.slane %v8900_v5, 4  ;;  %v8916_v36 = vrot.slane %v8914_v45, 6  ;;  %v13725_v62 = vld [vmem:[#allocation3 + $0xc] sm:$0xff]   ;;  %v13724_v4 = vld [vmem:[#allocation3 + $0x4] sm:$0xfe]   ;;  %v13727_v24 = vld [vmem:[#allocation3 + $0x14] sm:$0xff]  }
 0xb68   : > { %13157 = vmatmul.mubr.msk.bf16.gmra.mxu0 %vm696_vm10, %v13711_v44  ;;  %13175 = vmatmul.mubr.msk.bf16.vlgmr.msra.gmra.mxu1 %vm696_vm10, %v9137_v56  ;;  %v9144_v33 = vrot.slane %v9142_v28, 1  ;;  %8943 = vst.msk [vmem:[#allocation3 + $0x20] sm:$0xf] %vm529_vm0, %v8901_v6  ;;  %v8919_v25 = vrot.slane %v8917_v32, 7  ;;  %v8910_v35 = vor.u32 %v8909_v53, %v8906_v31  ;;  %v9332_v52 = vrot.slane %v13722_v7, 1 }
 0xb69   : > { %13160 = vmatprep.mubr.msk.bf16.mxu0 %vm13805_vm8, %v13804_v12  ;;  %13178 = vmatprep.mubr.msk.bf16.mxu1 %vm13805_vm8, %v13804_v12  ;;  %v13717_v30 = vld [vmem:[#allocation3 + $0x18] sm:$0xff]   ;;  %v9334_v55 = vrot.slane %v13723_v27, 1  ;;  %v9503_v63 = vrot.slane %v13724_v4, 1  ;;  %v9504_v1 = vrot.slane %v13725_v62, 1  ;;  %v11719_v3 = vld [vmem:[%s16487_s6 + $0x14] sm:$0xf] }
 0xb6a   : > { %13217 = vmatpush3.bf16.msra.mxu1 %v9530_v14  ;;  %v8920_v20 = vor.u32 %v8919_v25, %v8916_v36  ;;  %v9150_v39 = vshll.u32 %v13717_v30, 16  ;;  %v8911_v19 = vsel %vm14183_vm14, %v8902_v50, %v8910_v35  ;;  %v8912_v46 = vrot.slane %v8910_v35, 4  ;;  %v13716_v10 = vld [vmem:[#allocation3 + $0x18] sm:$0xff]   ;;  %v11707_v14 = vld [vmem:[%s16487_s6 + $0x10] sm:$0xf]  ;;  %v13733_v35 = vld [vmem:[#allocation3 + $0xc] sm:$0xff]  }
 0xb6b   : > { %13260 = vmatprep.subr.bf16.mxu1 %v13804_v12  ;;  %v9145_v42 = vsel %vm1484_vm1, %v9140_v37, %v9144_v33  ;;  %8944 = vst.msk [vmem:[#allocation3 + $0x24] sm:$0xf] %vm529_vm0, %v8911_v19  ;;  %v9148_v11 = vor.u32 %v9146_v34, %v9144_v33  ;;  %v9154_v47 = vshrl.u32 %v13717_v30, 16  ;;  %v9333_v0 = vsel %vm1691_vm15, %v9331_v59, %v9332_v52  ;;  %v13726_v31 = vld [vmem:[#allocation3 + $0x18] sm:$0xff]   ;;  %v13732_v25 = vld [vmem:[#allocation3 + $0x4] sm:$0xfe]  }
 0xb6c   : > { %v8921_v13 = vsel %vm14183_vm14, %v8912_v46, %v8920_v20  ;;  %v9152_v58 = vrot.slane %v9150_v39, 1  ;;  %v8922_v21 = vrot.slane %v8920_v20, 4  ;;  %v9744_v23 = vsel %vm1356_vm12, %v11707_v14, 0 }
 0xb6d   : > { %8945 = vst.msk [vmem:[#allocation3 + $0x28] sm:$0xf] %vm529_vm0, %v8921_v13  ;;  %v9335_v28 = vsel %vm1691_vm15, %v9332_v52, %v9334_v55  ;;  %v9505_v5 = vsel %vm1691_vm15, %v9503_v63, %v9504_v1  ;;  %v9916_v45 = vsel %vm1356_vm12, %v11719_v3, 0  ;;  %v9336_v32 = vrot.slane %v13726_v31, 1  ;;  %v13736_v52 = vld [vmem:[#allocation3 + $0x4] sm:$0xfc]  }
 0xb6e   : > { %v9153_v18 = vsel %vm1484_vm1, %v9148_v11, %v9152_v58  ;;  %v8947_v41 = vsel %vm13907_vm3, %v8922_v21, %v8946_v57  ;;  %v9156_v60 = vor.u32 %v9154_v47, %v9152_v58  ;;  %v9506_v56 = vrot.slane %v13727_v24, 1 }
 0xb6f   : > { %8948 = vst [vmem:[#allocation3 + $0x2c] sm:$0x3] %v8947_v41  ;;  %v9337_v6 = vsel %vm1691_vm15, %v9334_v55, %v9336_v32  ;;  %v13729_v36 = vld [vmem:[#allocation3 + $0x1c] sm:$0xff]   ;;  %v9676_v39 = vshrl.u32 %v13732_v25, 16  ;;  %v9679_v46 = vshll.u32 %v13732_v25, 16  ;;  %v9687_v13 = vshll.u32 %v13733_v35, 16 }
 0xb70   : > { %13161 = vmatmul.mubr.msk.bf16.gmra.mxu0 %vm696_vm10, %v13714_v17  ;;  %13179 = vmatmul.mubr.msk.bf16.gmra.mxu1 %vm696_vm10, %v9145_v42  ;;  %v9507_v53 = vsel %vm1691_vm15, %v9504_v1, %v9506_v56  ;;  %v9508_v33 = vrot.slane %v13729_v36, 1  ;;  %v9684_v42 = vshrl.u32 %v13733_v35, 16  ;;  %v10088_v14 = vsel %vm1356_vm12, %v11731_v49, 0 }
 0xb71   : > { %13164 = vmatprep.mubr.msk.bf16.mxu0 %vm13805_vm8, %v13804_v12  ;;  %13182 = vmatprep.mubr.msk.bf16.mxu1 %vm13805_vm8, %v13804_v12  ;;  %v9678_v11 = vrot.slane %v9676_v39, 1  ;;  %v9889_v27 = vrot.slane %v13736_v52, 2 }
 0xb72   : > { %v13719_v16 = vld [vmem:[#allocation3 + $0x20] sm:$0xff]   ;;  %v9509_v20 = vsel %vm1691_vm15, %v9506_v56, %v9508_v33  ;;  %v9686_v21 = vrot.slane %v9684_v42, 1 }
 0xb73   : > { %v9158_v43 = vshll.u32 %v13719_v16, 16  ;;  %v13718_v8 = vld [vmem:[#allocation3 + $0x20] sm:$0xff]   ;;  %v9162_v9 = vshrl.u32 %v13719_v16, 16  ;;  %v13735_v16 = vld [vmem:[#allocation3 + $0x14] sm:$0xff]  }
 0xb74   : > { %v13720_v38 = vld [vmem:[#allocation3 + $0x28] ss:$0 sps:$4 sm:$0x11]   ;;  %v13728_v50 = vld [vmem:[#allocation3 + $0x20] sm:$0xff]  }
 0xb75   : > { %v9160_v61 = vrot.slane %v9158_v43, 1  ;;  %v9166_v15 = vshll.u32 %v13720_v38, 16  ;;  %v9338_v37 = vrot.slane %v13728_v50, 1  ;;  %v13730_v30 = vld [vmem:[#allocation3 + $0x28] ss:$0 sps:$4 sm:$0x11]  }
 0xb76   : > { %v13731_v34 = vld [vmem:[#allocation3 + $0x24] sm:$0xff]   ;;  %v9340_v19 = vrot.slane %v13730_v30, 1  ;;  %v13734_v41 = vld [vmem:[#allocation3 + $0x2c] ss:$0 sps:$4 sm:$0x11]   ;;  %v9696_v38 = vshll.u32 %v13735_v16, 16 }
 0xb77   : > { %v9161_v2 = vsel %vm1484_vm1, %v9156_v60, %v9160_v61  ;;  %v9164_v51 = vor.u32 %v9162_v9, %v9160_v61  ;;  %v9168_v44 = vrot.slane %v9166_v15, 1  ;;  %v9339_v17 = vsel %vm1691_vm15, %v9336_v32, %v9338_v37  ;;  %v13738_v15 = vld [vmem:[#allocation3 + $0x1c] sm:$0xff]   ;;  %v13740_v1 = vld [vmem:[#allocation3 + $0x24] sm:$0xff]  }
 0xb78   : > { %13165 = vmatmul.mubr.msk.bf16.gmra.mxu0 %vm696_vm10, %v13716_v10  ;;  %13183 = vmatmul.mubr.msk.bf16.gmra.mxu1 %vm696_vm10, %v9153_v18  ;;  %v9510_v58 = vrot.slane %v13731_v34, 1  ;;  %v9341_v57 = vsel %vm1691_vm15, %v9338_v37, %v9340_v19  ;;  %v9681_v10 = vrot.slane %v9679_v46, 2  ;;  %v9689_v18 = vrot.slane %v9687_v13, 2  ;;  %v13741_v37 = vld [vmem:[#allocation3 + $0x1c] sm:$0xff]   ;;  %v13743_v19 = vld [vmem:[#allocation3 + $0x24] sm:$0xff]  }
 0xb79   : > { %13168 = vmatprep.mubr.msk.bf16.mxu0 %vm13805_vm8, %v13804_v12  ;;  %13186 = vmatprep.mubr.msk.bf16.mxu1 %vm13805_vm8, %v13804_v12  ;;  %v9169_v26 = vsel %vm1484_vm1, %v9164_v51, %v9168_v44  ;;  %v9693_v61 = vshrl.u32 %v13735_v16, 16  ;;  %v9698_v9 = vrot.slane %v9696_v38, 2  ;;  %v13737_v51 = vld [vmem:[#allocation3 + $0xc] sm:$0xff]   ;;  %v9711_v24 = vshrl.u32 %v13740_v1, 16 }
 0xb7a   : > { %v9511_v47 = vsel %vm1691_vm15, %v9508_v33, %v9510_v58  ;;  %v9682_v43 = vor.u32 %v9681_v10, %v9678_v11  ;;  %v9690_v60 = vor.u32 %v9689_v18, %v9686_v21  ;;  %v9890_v62 = vrot.slane %v13737_v51, 2  ;;  %v13745_v11 = vld [vmem:[#allocation3 + $0x10] sm:$0xff]   ;;  %v13748_v21 = vld [vmem:[#allocation3 + $0x8] sm:$0xfc]   ;;  %v13751_v51 = vld [vmem:[#allocation3 + $0x18] sm:$0xff]  }
 0xb7b   : > { %v9894_v30 = vrot.slane %v13741_v37, 2  ;;  %v9896_v42 = vrot.slane %v13743_v19, 2  ;;  %v13749_v18 = vld [vmem:[#allocation3 + $0x10] sm:$0xff]  }
 0xb7c   : > { %v9691_v7 = vsel %vm2038_vm2, %v9682_v43, %v9690_v60  ;;  %v9891_v3 = vsel %vm2254_vm4, %v9889_v27, %v9890_v62  ;;  %v11755_v43 = vld [vmem:[%s16487_s6 + $0x20] sm:$0xf]  ;;  %v10242_v38 = vshrl.u32 %v13749_v18, 16  ;;  %v10251_v27 = vshrl.u32 %v13751_v51, 16 }
 0xb7d   : > { %v9897_v10 = vsel %vm2254_vm4, %v9894_v30, %v9896_v42 }
 0xb80   : > { %13169 = vmatmul.mubr.msk.bf16.gmra.mxu0 %vm696_vm10, %v13718_v8  ;;  %13187 = vmatmul.mubr.msk.bf16.gmra.mxu1 %vm696_vm10, %v9161_v2  ;;  %v9512_v8 = vrot.slane %v13734_v41, 1  ;;  %v9695_v2 = vrot.slane %v9693_v61, 1  ;;  %v10237_v61 = vshll.u32 %v13748_v21, 16 }
 0xb81   : > { %13196 = vmatprep.mubr.msk.bf16.mxu0 %vm13805_vm8, %v13804_v12  ;;  %13190 = vmatprep.mubr.msk.bf16.mxu1 %vm13805_vm8, %v13804_v12 }
 0xb82   : > { %v9513_v59 = vsel %vm1691_vm15, %v9510_v58, %v9512_v8  ;;  %v9699_v44 = vor.u32 %v9698_v9, %v9695_v2  ;;  %v13744_v58 = vld [vmem:[#allocation3 + $0x8] sm:$0xfc]   ;;  %v10245_v8 = vshll.u32 %v13749_v18, 16  ;;  %v13747_v9 = vld [vmem:[#allocation3 + $0x18] sm:$0xff]  }
 0xb83   : > { %v10061_v16 = vrot.slane %v13744_v58, 2 }
 0xb84   : > { %v9700_v4 = vsel %vm2038_vm2, %v9690_v60, %v9699_v44  ;;  %v10234_v60 = vshrl.u32 %v13748_v21, 16  ;;  %v10247_v52 = vrot.slane %v10245_v8, 3 }
 0xb88   : > { %13197 = vmatmul.mubr.msk.bf16.vlgmr.msra.gmra.mxu0 %vm696_vm10, %v9333_v0  ;;  %13191 = vmatmul.mubr.msk.bf16.gmra.mxu1 %vm696_vm10, %v9169_v26  ;;  %v9702_v0 = vshrl.u32 %v13738_v15, 16  ;;  %v11743_v26 = vld [vmem:[%s16487_s6 + $0x1c] sm:$0xf] }
 0xb89   : > { %13239 = vmatpush3.bf16.msra.mxu0 %v9744_v23  ;;  %13200 = vmatprep.mubr.msk.bf16.mxu0 %vm13805_vm8, %v13804_v12  ;;  %v9705_v23 = vshll.u32 %v13738_v15, 16  ;;  %v10302_v31 = vsel %vm1356_vm12, %v11743_v26, 0  ;;  %v10236_v15 = vrot.slane %v10234_v60, 2  ;;  %v13759_v60 = vld [vmem:[#allocation3 + $0x18] sm:$0xff]  }
 0xb8a   : > { %13218 = vmatprep.mubr.msk.bf16.mxu1 %vm13805_vm8, %v13804_v12  ;;  %13282 = vmatprep.subr.bf16.mxu0 %v13804_v12  ;;  %v9704_v55 = vrot.slane %v9702_v0, 1 }
 0xb8b   : > { %v9707_v63 = vrot.slane %v9705_v23, 2 }
 0xb90   : > { %13201 = vmatmul.mubr.msk.bf16.gmra.mxu0 %vm696_vm10, %v9335_v28  ;;  %13219 = vmatmul.mubr.msk.bf16.vlgmr.msra.gmra.mxu1 %vm696_vm10, %v9505_v5  ;;  %v13739_v28 = vld [vmem:[#allocation3 + $0x14] sm:$0xff]   ;;  %v9708_v5 = vor.u32 %v9707_v63, %v9704_v55  ;;  %v10253_v63 = vrot.slane %v10251_v27, 2 }
 0xb91   : > { %13204 = vmatprep.mubr.msk.bf16.mxu0 %vm13805_vm8, %v13804_v12  ;;  %13222 = vmatprep.mubr.msk.bf16.mxu1 %vm13805_vm8, %v13804_v12  ;;  %v9892_v32 = vrot.slane %v13739_v28, 2 }
 0xb92   : > { %13261 = vmatpush3.bf16.msra.mxu1 %v9916_v45  ;;  %v9714_v45 = vshll.u32 %v13740_v1, 16  ;;  %v9709_v56 = vsel %vm2038_vm2, %v9699_v44, %v9708_v5  ;;  %v10064_v44 = vrot.slane %v13747_v9, 2  ;;  %v13761_v9 = vld [vmem:[#allocation3 + $0x28] sm:$0xff]  }
 0xb93   : > { %13304 = vmatprep.subr.bf16.mxu1 %v13804_v12  ;;  %v9893_v36 = vsel %vm2254_vm4, %v9890_v62, %v9892_v32  ;;  %v9895_v39 = vsel %vm2254_vm4, %v9892_v32, %v9894_v30  ;;  %v10254_v62 = vshll.u32 %v13751_v51, 16  ;;  %v13752_v32 = vld [vmem:[#allocation3 + $0x28] sm:$0xff]   ;;  %v13754_v30 = vld [vmem:[#allocation3 + $0x30] ss:$0 sps:$4 sm:$0x33]  }
 0xb94   : > { %v9716_v50 = vrot.slane %v9714_v45, 2  ;;  %v10070_v19 = vrot.slane %v13754_v30, 2 }
 0xb95   : > { %v10256_v1 = vrot.slane %v10254_v62, 3 }
 0xb98   : > { %13205 = vmatmul.mubr.msk.bf16.gmra.mxu0 %vm696_vm10, %v9337_v6  ;;  %13223 = vmatmul.mubr.msk.bf16.gmra.mxu1 %vm696_vm10, %v9507_v53  ;;  %v9713_v6 = vrot.slane %v9711_v24, 1  ;;  %v13742_v53 = vld [vmem:[#allocation3 + $0x2c] ss:$0 sps:$4 sm:$0x33]  }
 0xb99   : > { %13208 = vmatprep.mubr.msk.bf16.mxu0 %vm13805_vm8, %v13804_v12  ;;  %13226 = vmatprep.mubr.msk.bf16.mxu1 %vm13805_vm8, %v13804_v12  ;;  %v9720_v25 = vshrl.u32 %v13742_v53, 16 }
 0xb9a   : > { %v9717_v33 = vor.u32 %v9716_v50, %v9713_v6 }
 0xb9c   : > { %v9718_v35 = vsel %vm2038_vm2, %v9708_v5, %v9717_v33 }
 0xba0   : > { %13209 = vmatmul.mubr.msk.bf16.gmra.mxu0 %vm696_vm10, %v9339_v17  ;;  %13227 = vmatmul.mubr.msk.bf16.gmra.mxu1 %vm696_vm10, %v9509_v20  ;;  %v9723_v17 = vshll.u32 %v13742_v53, 16  ;;  %v9722_v20 = vrot.slane %v9720_v25, 1  ;;  %v13755_v53 = vld [vmem:[#allocation3 + $0x28] sm:$0xff]  }
 0xba1   : > { %13212 = vmatprep.mubr.msk.bf16.mxu0 %vm13805_vm8, %v13804_v12  ;;  %13230 = vmatprep.mubr.msk.bf16.mxu1 %vm13805_vm8, %v13804_v12  ;;  %v10272_v25 = vshll.u32 %v13755_v53, 16 }
 0xba2   : > { %v9725_v34 = vrot.slane %v9723_v17, 2 }
 0xba4   : > { %v9726_v46 = vor.u32 %v9725_v34, %v9722_v20  ;;  %v10274_v34 = vrot.slane %v10272_v25, 3 }
 0xba6   : > { %v9727_v13 = vsel %vm2038_vm2, %v9717_v33, %v9726_v46  ;;  %v10269_v33 = vshrl.u32 %v13755_v53, 16 }
 0xba8   : > { %13213 = vmatmul.mubr.msk.bf16.gmra.mxu0 %vm696_vm10, %v9341_v57  ;;  %13231 = vmatmul.mubr.msk.bf16.gmra.mxu1 %vm696_vm10, %v9511_v47  ;;  %v13746_v57 = vld [vmem:[#allocation3 + $0x2c] ss:$0 sps:$4 sm:$0x33]   ;;  %v10062_v47 = vrot.slane %v13745_v11, 2  ;;  %v10271_v20 = vrot.slane %v10269_v33, 2 }
 0xba9   : > { %13240 = vmatprep.mubr.msk.bf16.mxu0 %vm13805_vm8, %v13804_v12  ;;  %13234 = vmatprep.mubr.msk.bf16.mxu1 %vm13805_vm8, %v13804_v12  ;;  %v9898_v41 = vrot.slane %v13746_v57, 2  ;;  %v13756_v11 = vld [vmem:[#allocation3 + $0x8] sm:$0xf8]   ;;  %v13757_v57 = vld [vmem:[#allocation3 + $0x10] sm:$0xff]  }
 0xbaa   : > { %v10063_v49 = vsel %vm2254_vm4, %v10061_v16, %v10062_v47  ;;  %v10065_v26 = vsel %vm2254_vm4, %v10062_v47, %v10064_v44  ;;  %v10275_v46 = vor.u32 %v10274_v34, %v10271_v20  ;;  %v10447_v16 = vrot.slane %v13756_v11, 3 }
 0xbab   : > { %v9899_v2 = vsel %vm2254_vm4, %v9896_v42, %v9898_v41  ;;  %v10448_v47 = vrot.slane %v13757_v57, 3 }
 0xbb0   : > { %13241 = vmatmul.mubr.msk.bf16.vlgmr.msra.gmra.mxu0 %vm696_vm10, %v9691_v7  ;;  %13235 = vmatmul.mubr.msk.bf16.gmra.mxu1 %vm696_vm10, %v9513_v59  ;;  %v10474_v7 = vsel %vm1356_vm12, %v11755_v43, 0  ;;  %v10244_v59 = vrot.slane %v10242_v38, 2  ;;  %v10449_v43 = vsel %vm2817_vm5, %v10447_v16, %v10448_v47  ;;  %v10450_v38 = vrot.slane %v13759_v60, 3 }
 0xbb1   : > { %13283 = vmatpush3.bf16.msra.mxu0 %v10088_v14  ;;  %13244 = vmatprep.mubr.msk.bf16.mxu0 %vm13805_vm8, %v13804_v12  ;;  %v10239_v14 = vrot.slane %v10237_v61, 3 }
 0xbb2   : > { %13262 = vmatprep.mubr.msk.bf16.mxu1 %vm13805_vm8, %v13804_v12  ;;  %13326 = vmatprep.subr.bf16.mxu0 %v13804_v12  ;;  %v10248_v23 = vor.u32 %v10247_v52, %v10244_v59  ;;  %v10451_v8 = vsel %vm2817_vm5, %v10448_v47, %v10450_v38  ;;  %v13762_v59 = vld [vmem:[#allocation3 + $0x30] ss:$0 sps:$4 sm:$0x77]  }
 0xbb3   : > { %v10240_v0 = vor.u32 %v10239_v14, %v10236_v15  ;;  %v10454_v15 = vrot.slane %v13761_v9, 3  ;;  %v10456_v52 = vrot.slane %v13762_v59, 3 }
 0xbb5   : > { %v10249_v55 = vsel %vm2601_vm6, %v10240_v0, %v10248_v23  ;;  %v10457_v51 = vsel %vm2817_vm5, %v10454_v15, %v10456_v52 }
 0xbb8   : > { %13245 = vmatmul.mubr.msk.bf16.gmra.mxu0 %vm696_vm10, %v9700_v4  ;;  %13263 = vmatmul.mubr.msk.bf16.vlgmr.msra.gmra.mxu1 %vm696_vm10, %v9891_v3  ;;  %v13750_v4 = vld [vmem:[#allocation3 + $0x20] sm:$0xff]  }
 0xbb9   : > { %13248 = vmatprep.mubr.msk.bf16.mxu0 %vm13805_vm8, %v13804_v12  ;;  %13266 = vmatprep.mubr.msk.bf16.mxu1 %vm13805_vm8, %v13804_v12  ;;  %v13753_v3 = vld [vmem:[#allocation3 + $0x20] sm:$0xff]   ;;  %v10066_v28 = vrot.slane %v13750_v4, 2 }
 0xbba   : > { %13305 = vmatpush3.bf16.msra.mxu1 %v10302_v31  ;;  %v10257_v31 = vor.u32 %v10256_v1, %v10253_v63  ;;  %v10260_v5 = vshrl.u32 %v13753_v3, 16  ;;  %v10263_v24 = vshll.u32 %v13753_v3, 16 }
 0xbbb   : > { %13348 = vmatprep.subr.bf16.mxu1 %v13804_v12  ;;  %v10067_v45 = vsel %vm2254_vm4, %v10064_v44, %v10066_v28 }
 0xbbc   : > { %v10262_v6 = vrot.slane %v10260_v5, 2  ;;  %v10265_v50 = vrot.slane %v10263_v24, 3 }
 0xbbe   : > { %v10266_v37 = vor.u32 %v10265_v50, %v10262_v6 }
 0xbc0   : > { %13249 = vmatmul.mubr.msk.bf16.gmra.mxu0 %vm696_vm10, %v9709_v56  ;;  %13267 = vmatmul.mubr.msk.bf16.gmra.mxu1 %vm696_vm10, %v9893_v36  ;;  %v10258_v56 = vsel %vm2601_vm6, %v10248_v23, %v10257_v31  ;;  %v10068_v36 = vrot.slane %v13752_v32, 2  ;;  %v10621_v32 = vld [vmem:[%s16489_s8] sm:$0xf] }
 0xbc1   : > { %13252 = vmatprep.mubr.msk.bf16.mxu0 %vm13805_vm8, %v13804_v12  ;;  %13270 = vmatprep.mubr.msk.bf16.mxu1 %vm13805_vm8, %v13804_v12  ;;  %v10645_v50 = vsel %vm1356_vm12, %v10621_v32, 0 }
 0xbc2   : > { %v10069_v17 = vsel %vm2254_vm4, %v10066_v28, %v10068_v36  ;;  %v10071_v58 = vsel %vm2254_vm4, %v10068_v36, %v10070_v19 }
 0xbc8   : > { %13253 = vmatmul.mubr.msk.bf16.gmra.mxu0 %vm696_vm10, %v9718_v35  ;;  %13271 = vmatmul.mubr.msk.bf16.gmra.mxu1 %vm696_vm10, %v9895_v39  ;;  %v10267_v35 = vsel %vm2601_vm6, %v10257_v31, %v10266_v37  ;;  %v13758_v39 = vld [vmem:[#allocation3 + $0x30] ss:$0 sps:$4 sm:$0x77]  }
 0xbc9   : > { %13256 = vmatprep.mubr.msk.bf16.mxu0 %vm13805_vm8, %v13804_v12  ;;  %13274 = vmatprep.mubr.msk.bf16.mxu1 %vm13805_vm8, %v13804_v12  ;;  %v10278_v42 = vshrl.u32 %v13758_v39, 16 }
 0xbcb   : > { %v10280_v21 = vrot.slane %v10278_v42, 2 }
 0xbd0   : > { %13257 = vmatmul.mubr.msk.bf16.gmra.mxu0 %vm696_vm10, %v9727_v13  ;;  %13275 = vmatmul.mubr.msk.bf16.gmra.mxu1 %vm696_vm10, %v9897_v10  ;;  %v10281_v13 = vshll.u32 %v13758_v39, 16  ;;  %v10276_v10 = vsel %vm2601_vm6, %v10266_v37, %v10275_v46 }
 0xbd1   : > { %13284 = vmatprep.mubr.msk.bf16.mxu0 %vm13805_vm8, %v13804_v12  ;;  %13278 = vmatprep.mubr.msk.bf16.mxu1 %vm13805_vm8, %v13804_v12 }
 0xbd2   : > { %v10283_v18 = vrot.slane %v10281_v13, 3 }
 0xbd4   : > { %v10284_v41 = vor.u32 %v10283_v18, %v10280_v21 }
 0xbd6   : > { %v10285_v61 = vsel %vm2601_vm6, %v10275_v46, %v10284_v41 }
 0xbd8   : > { %13285 = vmatmul.mubr.msk.bf16.vlgmr.msra.gmra.mxu0 %vm696_vm10, %v10063_v49  ;;  %13279 = vmatmul.mubr.msk.bf16.gmra.mxu1 %vm696_vm10, %v9899_v2  ;;  %v13760_v49 = vld [vmem:[#allocation3 + $0x20] sm:$0xff]  }
 0xbd9   : > { %13327 = vmatpush3.bf16.msra.mxu0 %v10474_v7  ;;  %13288 = vmatprep.mubr.msk.bf16.mxu0 %vm13805_vm8, %v13804_v12  ;;  %v10452_v7 = vrot.slane %v13760_v49, 3 }
 0xbda   : > { %13306 = vmatprep.mubr.msk.bf16.mxu1 %vm13805_vm8, %v13804_v12 }
 0xbdb   : > { %v10453_v2 = vsel %vm2817_vm5, %v10450_v38, %v10452_v7  ;;  %v10455_v14 = vsel %vm2817_vm5, %v10452_v7, %v10454_v15 }
 0xbe0   : > { %13289 = vmatmul.mubr.msk.bf16.gmra.mxu0 %vm696_vm10, %v10065_v26  ;;  %13307 = vmatmul.mubr.msk.bf16.vlgmr.msra.gmra.mxu1 %vm696_vm10, %v10249_v55 }
 0xbe1   : > { %13292 = vmatprep.mubr.msk.bf16.mxu0 %vm13805_vm8, %v13804_v12  ;;  %13310 = vmatprep.mubr.msk.bf16.mxu1 %vm13805_vm8, %v13804_v12 }
 0xbe2   : > { %13349 = vmatpush3.bf16.msra.mxu1 %v10645_v50 }
 0xbe8   : > { %13293 = vmatmul.mubr.msk.bf16.gmra.mxu0 %vm696_vm10, %v10067_v45  ;;  %13311 = vmatmul.mubr.msk.bf16.gmra.mxu1 %vm696_vm10, %v10258_v56 }
 0xbe9   : > { %13296 = vmatprep.mubr.msk.bf16.mxu0 %vm13805_vm8, %v13804_v12  ;;  %13314 = vmatprep.mubr.msk.bf16.mxu1 %vm13805_vm8, %v13804_v12 }
 0xbf0   : > { %13297 = vmatmul.mubr.msk.bf16.gmra.mxu0 %vm696_vm10, %v10069_v17  ;;  %13315 = vmatmul.mubr.msk.bf16.gmra.mxu1 %vm696_vm10, %v10267_v35 }
 0xbf1   : > { %13300 = vmatprep.mubr.msk.bf16.mxu0 %vm13805_vm8, %v13804_v12  ;;  %13318 = vmatprep.mubr.msk.bf16.mxu1 %vm13805_vm8, %v13804_v12 }
 0xbf8   : > { %13301 = vmatmul.mubr.msk.bf16.gmra.mxu0 %vm696_vm10, %v10071_v58  ;;  %13319 = vmatmul.mubr.msk.bf16.gmra.mxu1 %vm696_vm10, %v10276_v10 }
 0xbf9   : > { %13328 = vmatprep.mubr.msk.bf16.mxu0 %vm13805_vm8, %v13804_v12  ;;  %13322 = vmatprep.mubr.msk.bf16.mxu1 %vm13805_vm8, %v13804_v12 }
 0xc00   : > { %13329 = vmatmul.mubr.msk.bf16.vlgmr.msra.gmra.mxu0 %vm696_vm10, %v10449_v43  ;;  %13323 = vmatmul.mubr.msk.bf16.gmra.mxu1 %vm696_vm10, %v10285_v61 }
 0xc01   : > { %13332 = vmatprep.mubr.msk.bf16.mxu0 %vm13805_vm8, %v13804_v12  ;;  %13350 = vmatprep.mubr.msk.bf16.mxu1 %vm13805_vm8, %v13804_v12 }
 0xc08   : > { %13333 = vmatmul.mubr.msk.bf16.gmra.mxu0 %vm696_vm10, %v10451_v8 }
 0xc09   : > { %13336 = vmatprep.mubr.msk.bf16.mxu0 %vm13805_vm8, %v13804_v12 }
 0xc10   : > { %13337 = vmatmul.mubr.msk.bf16.gmra.mxu0 %vm696_vm10, %v10453_v2 }
 0xc11   : > { %13340 = vmatprep.mubr.msk.bf16.mxu0 %vm13805_vm8, %v13804_v12 }
 0xc18   : > { %13341 = vmatmul.mubr.msk.bf16.gmra.mxu0 %vm696_vm10, %v10455_v14 }
 0xc19   : > { %13344 = vmatprep.mubr.msk.bf16.mxu0 %vm13805_vm8, %v13804_v12 }
 0xc20   : > { %v9037_v44 = vpop.f32.mrf.mxu0  ;;  %13345 = vmatmul.mubr.msk.bf16.gmra.mxu0 %vm696_vm10, %v10457_v51 }
 0xc21   : > { %9076 = vst.msk [vmem:[#allocation2] sm:$0xff] %vm696_vm10, %v9037_v44 }
 0xc22   : > { %v13154_v0 = vpop.f32.mrf.mxu0 }
 0xc24   : > { %v9040_v23 = vpop.f32.mrf.mxu0 }
 0xc25   : > { %9077 = vst.msk [vmem:[#allocation2 + $0x8] sm:$0xff] %vm696_vm10, %v9040_v23 }
 0xc26   : > { %v13155_v27 = vpop.f32.mrf.mxu0 }
 0xc28   : > { %v9045_v62 = vpop.f32.mrf.mxu0  ;;  %v9261_v26 = vld [vmem:[#allocation2] sm:$0xff]  ;;  %v9222_v4 = vpop.f32.mrf.mxu1 }
 0xc29   : > { %9078 = vst.msk [vmem:[#allocation2 + $0x10] sm:$0xff] %vm696_vm10, %v9045_v62  ;;  %v9271_v55 = vadd.f32 %v9261_v26, %v9222_v4 }
 0xc2a   : > { %v13158_v63 = vpop.f32.mrf.mxu0  ;;  %v13176_v1 = vpop.f32.mrf.mxu1 }
 0xc2b   : > { %9281 = vst.msk [vmem:[#allocation2] sm:$0xff] %vm696_vm10, %v9271_v55 }
 0xc2c   : > { %v9048_v3 = vpop.f32.mrf.mxu0  ;;  %v9262_v28 = vld [vmem:[#allocation2 + $0x8] sm:$0xff]  ;;  %v9225_v31 = vpop.f32.mrf.mxu1 }
 0xc2d   : > { %9079 = vst.msk [vmem:[#allocation2 + $0x18] sm:$0xff] %vm696_vm10, %v9048_v3  ;;  %v9272_v5 = vadd.f32 %v9262_v28, %v9225_v31 }
 0xc2e   : > { %v13159_v24 = vpop.f32.mrf.mxu0  ;;  %v13177_v45 = vpop.f32.mrf.mxu1 }
 0xc2f   : > { %9282 = vst.msk [vmem:[#allocation2 + $0x8] sm:$0xff] %vm696_vm10, %v9272_v5 }
 0xc30   : > { %v9053_v56 = vpop.f32.mrf.mxu0  ;;  %v9263_v6 = vld [vmem:[#allocation2 + $0x10] sm:$0xff]  ;;  %v9230_v53 = vpop.f32.mrf.mxu1 }
 0xc31   : > { %9080 = vst.msk [vmem:[#allocation2 + $0x20] sm:$0xff] %vm696_vm10, %v9053_v56  ;;  %v9273_v36 = vadd.f32 %v9263_v6, %v9230_v53 }
 0xc32   : > { %v13162_v37 = vpop.f32.mrf.mxu0  ;;  %v13180_v33 = vpop.f32.mrf.mxu1  ;;  %v9433_v52 = vld [vmem:[#allocation2] sm:$0xff] }
 0xc33   : > { %9283 = vst.msk [vmem:[#allocation2 + $0x10] sm:$0xff] %vm696_vm10, %v9273_v36 }
 0xc34   : > { %v9056_v25 = vpop.f32.mrf.mxu0  ;;  %v9264_v17 = vld [vmem:[#allocation2 + $0x18] sm:$0xff]  ;;  %v9233_v30 = vpop.f32.mrf.mxu1 }
 0xc35   : > { %9081 = vst.msk [vmem:[#allocation2 + $0x28] sm:$0xff] %vm696_vm10, %v9056_v25  ;;  %v9274_v35 = vadd.f32 %v9264_v17, %v9233_v30 }
 0xc36   : > { %v13163_v20 = vpop.f32.mrf.mxu0  ;;  %v13181_v34 = vpop.f32.mrf.mxu1  ;;  %v9434_v4 = vld [vmem:[#allocation2 + $0x8] sm:$0xff] }
 0xc37   : > { %9284 = vst.msk [vmem:[#allocation2 + $0x18] sm:$0xff] %vm696_vm10, %v9274_v35 }
 0xc38   : > { %v9061_v39 = vpop.f32.mrf.mxu0  ;;  %v9265_v19 = vld [vmem:[#allocation2 + $0x20] sm:$0xff]  ;;  %v9238_v46 = vpop.f32.mrf.mxu1 }
 0xc39   : > { %9082 = vst.msk [vmem:[#allocation2 + $0x30] sm:$0xff] %vm696_vm10, %v9061_v39  ;;  %v9275_v42 = vadd.f32 %v9265_v19, %v9238_v46 }
 0xc3a   : > { %v13166_v13 = vpop.f32.mrf.mxu0  ;;  %v13184_v58 = vpop.f32.mrf.mxu1  ;;  %v9435_v5 = vld [vmem:[#allocation2 + $0x10] sm:$0xff] }
 0xc3b   : > { %9285 = vst.msk [vmem:[#allocation2 + $0x20] sm:$0xff] %vm696_vm10, %v9275_v42 }
 0xc3c   : > { %v9064_v11 = vpop.f32.mrf.mxu0  ;;  %v9266_v57 = vld [vmem:[#allocation2 + $0x28] sm:$0xff]  ;;  %v9241_v10 = vpop.f32.mrf.mxu1 }
 0xc3d   : > { %9083 = vst.msk [vmem:[#allocation2 + $0x38] sm:$0xff] %vm696_vm10, %v9064_v11  ;;  %v9276_v21 = vadd.f32 %v9266_v57, %v9241_v10 }
 0xc3e   : > { %v13167_v18 = vpop.f32.mrf.mxu0  ;;  %v13185_v16 = vpop.f32.mrf.mxu1  ;;  %v9436_v36 = vld [vmem:[#allocation2 + $0x18] sm:$0xff] }
 0xc3f   : > { %9286 = vst.msk [vmem:[#allocation2 + $0x28] sm:$0xff] %vm696_vm10, %v9276_v21 }
 0xc40   : > { %v9069_v47 = vpop.f32.mrf.mxu0  ;;  %v9267_v41 = vld [vmem:[#allocation2 + $0x30] sm:$0xff]  ;;  %v9246_v43 = vpop.f32.mrf.mxu1 }
 0xc41   : > { %9084 = vst.msk [vmem:[#allocation2 + $0x40] sm:$0xff] %vm696_vm10, %v9069_v47  ;;  %v9277_v60 = vadd.f32 %v9267_v41, %v9246_v43 }
 0xc42   : > { %v13170_v61 = vpop.f32.mrf.mxu0  ;;  %v13188_v38 = vpop.f32.mrf.mxu1  ;;  %v9437_v34 = vld [vmem:[#allocation2 + $0x20] sm:$0xff] }
 0xc43   : > { %9287 = vst.msk [vmem:[#allocation2 + $0x30] sm:$0xff] %vm696_vm10, %v9277_v60 }
 0xc44   : > { %v9072_v8 = vpop.f32.mrf.mxu0  ;;  %v9268_v49 = vld [vmem:[#allocation2 + $0x38] sm:$0xff]  ;;  %v9249_v7 = vpop.f32.mrf.mxu1 }
 0xc45   : > { %9085 = vst.msk [vmem:[#allocation2 + $0x48] sm:$0xff] %vm696_vm10, %v9072_v8  ;;  %v9278_v2 = vadd.f32 %v9268_v49, %v9249_v7 }
 0xc46   : > { %v13171_v9 = vpop.f32.mrf.mxu0  ;;  %v13189_v15 = vpop.f32.mrf.mxu1  ;;  %v9438_v57 = vld [vmem:[#allocation2 + $0x28] sm:$0xff] }
 0xc47   : > { %9288 = vst.msk [vmem:[#allocation2 + $0x38] sm:$0xff] %vm696_vm10, %v9278_v2 }
 0xc48   : > { %v9269_v14 = vld [vmem:[#allocation2 + $0x40] sm:$0xff]  ;;  %v9394_v59 = vpop.f32.mrf.mxu0  ;;  %v9254_v51 = vpop.f32.mrf.mxu1 }
 0xc49   : > { %v9443_v44 = vadd.f32 %v9433_v52, %v9394_v59  ;;  %v9279_v0 = vadd.f32 %v9269_v14, %v9254_v51 }
 0xc4a   : > { %v13198_v23 = vpop.f32.mrf.mxu0  ;;  %v13192_v27 = vpop.f32.mrf.mxu1  ;;  %v9439_v60 = vld [vmem:[#allocation2 + $0x30] sm:$0xff] }
 0xc4b   : > { %9453 = vst.msk [vmem:[#allocation2] sm:$0xff] %vm696_vm10, %v9443_v44  ;;  %9289 = vst.msk [vmem:[#allocation2 + $0x40] sm:$0xff] %vm696_vm10, %v9279_v0 }
 0xc4c   : > { %v9270_v62 = vld [vmem:[#allocation2 + $0x48] sm:$0xff]  ;;  %v9397_v26 = vpop.f32.mrf.mxu0  ;;  %v9257_v55 = vpop.f32.mrf.mxu1 }
 0xc4d   : > { %v9444_v63 = vadd.f32 %v9434_v4, %v9397_v26  ;;  %v9280_v1 = vadd.f32 %v9270_v62, %v9257_v55 }
 0xc4e   : > { %v13199_v3 = vpop.f32.mrf.mxu0  ;;  %v13193_v28 = vpop.f32.mrf.mxu1  ;;  %v9440_v15 = vld [vmem:[#allocation2 + $0x38] sm:$0xff] }
 0xc4f   : > { %9454 = vst.msk [vmem:[#allocation2 + $0x8] sm:$0xff] %vm696_vm10, %v9444_v63  ;;  %9290 = vst.msk [vmem:[#allocation2 + $0x48] sm:$0xff] %vm696_vm10, %v9280_v1 }
 0xc50   : > { %v9402_v31 = vpop.f32.mrf.mxu0  ;;  %v9566_v45 = vpop.f32.mrf.mxu1 }
 0xc51   : > { %v9445_v24 = vadd.f32 %v9435_v5, %v9402_v31 }
 0xc52   : > { %v13202_v32 = vpop.f32.mrf.mxu0  ;;  %v9605_v56 = vld [vmem:[#allocation2] sm:$0xff]  ;;  %v13220_v50 = vpop.f32.mrf.mxu1 }
 0xc53   : > { %9455 = vst.msk [vmem:[#allocation2 + $0x10] sm:$0xff] %vm696_vm10, %v9445_v24  ;;  %v9615_v6 = vadd.f32 %v9605_v56, %v9566_v45  ;;  %v9441_v27 = vld [vmem:[#allocation2 + $0x40] sm:$0xff] }
 0xc54   : > { %v9405_v53 = vpop.f32.mrf.mxu0  ;;  %v9569_v33 = vpop.f32.mrf.mxu1 }
 0xc55   : > { %9625 = vst.msk [vmem:[#allocation2] sm:$0xff] %vm696_vm10, %v9615_v6  ;;  %v9446_v37 = vadd.f32 %v9436_v36, %v9405_v53 }
 0xc56   : > { %v13203_v25 = vpop.f32.mrf.mxu0  ;;  %v9606_v17 = vld [vmem:[#allocation2 + $0x8] sm:$0xff]  ;;  %v13221_v35 = vpop.f32.mrf.mxu1 }
 0xc57   : > { %9456 = vst.msk [vmem:[#allocation2 + $0x18] sm:$0xff] %vm696_vm10, %v9446_v37  ;;  %v9616_v30 = vadd.f32 %v9606_v17, %v9569_v33  ;;  %v9442_v28 = vld [vmem:[#allocation2 + $0x48] sm:$0xff] }
 0xc58   : > { %v9410_v20 = vpop.f32.mrf.mxu0  ;;  %v9574_v19 = vpop.f32.mrf.mxu1 }
 0xc59   : > { %9626 = vst.msk [vmem:[#allocation2 + $0x8] sm:$0xff] %vm696_vm10, %v9616_v30  ;;  %v9447_v39 = vadd.f32 %v9437_v34, %v9410_v20 }
 0xc5a   : > { %v13206_v46 = vpop.f32.mrf.mxu0  ;;  %v9607_v42 = vld [vmem:[#allocation2 + $0x10] sm:$0xff]  ;;  %v13224_v58 = vpop.f32.mrf.mxu1 }
 0xc5b   : > { %9457 = vst.msk [vmem:[#allocation2 + $0x20] sm:$0xff] %vm696_vm10, %v9447_v39  ;;  %v9617_v13 = vadd.f32 %v9607_v42, %v9574_v19 }
 0xc5c   : > { %v9413_v11 = vpop.f32.mrf.mxu0  ;;  %v9577_v21 = vpop.f32.mrf.mxu1  ;;  %v9819_v50 = vld [vmem:[#allocation2] sm:$0xff] }
 0xc5d   : > { %9627 = vst.msk [vmem:[#allocation2 + $0x10] sm:$0xff] %vm696_vm10, %v9617_v13  ;;  %v9448_v10 = vadd.f32 %v9438_v57, %v9413_v11 }
 0xc5e   : > { %v13207_v18 = vpop.f32.mrf.mxu0  ;;  %v9608_v16 = vld [vmem:[#allocation2 + $0x18] sm:$0xff]  ;;  %v13225_v41 = vpop.f32.mrf.mxu1 }
 0xc5f   : > { %9458 = vst.msk [vmem:[#allocation2 + $0x28] sm:$0xff] %vm696_vm10, %v9448_v10  ;;  %v9618_v47 = vadd.f32 %v9608_v16, %v9577_v21 }
 0xc60   : > { %v9418_v43 = vpop.f32.mrf.mxu0  ;;  %v9582_v38 = vpop.f32.mrf.mxu1  ;;  %v9820_v35 = vld [vmem:[#allocation2 + $0x8] sm:$0xff] }
 0xc61   : > { %9628 = vst.msk [vmem:[#allocation2 + $0x18] sm:$0xff] %vm696_vm10, %v9618_v47  ;;  %v9449_v61 = vadd.f32 %v9439_v60, %v9418_v43 }
 0xc62   : > { %v13210_v8 = vpop.f32.mrf.mxu0  ;;  %v9609_v49 = vld [vmem:[#allocation2 + $0x20] sm:$0xff]  ;;  %v13228_v2 = vpop.f32.mrf.mxu1 }
 0xc63   : > { %9459 = vst.msk [vmem:[#allocation2 + $0x30] sm:$0xff] %vm696_vm10, %v9449_v61  ;;  %v9619_v7 = vadd.f32 %v9609_v49, %v9582_v38 }
 0xc64   : > { %v9421_v9 = vpop.f32.mrf.mxu0  ;;  %v9585_v59 = vpop.f32.mrf.mxu1  ;;  %v9821_v58 = vld [vmem:[#allocation2 + $0x10] sm:$0xff] }
 0xc65   : > { %9629 = vst.msk [vmem:[#allocation2 + $0x20] sm:$0xff] %vm696_vm10, %v9619_v7  ;;  %v9450_v14 = vadd.f32 %v9440_v15, %v9421_v9 }
 0xc66   : > { %v13211_v52 = vpop.f32.mrf.mxu0  ;;  %v9610_v51 = vld [vmem:[#allocation2 + $0x28] sm:$0xff]  ;;  %v13229_v0 = vpop.f32.mrf.mxu1 }
 0xc67   : > { %9460 = vst.msk [vmem:[#allocation2 + $0x38] sm:$0xff] %vm696_vm10, %v9450_v14  ;;  %v9620_v44 = vadd.f32 %v9610_v51, %v9585_v59 }
 0xc68   : > { %v9426_v23 = vpop.f32.mrf.mxu0  ;;  %v9590_v26 = vpop.f32.mrf.mxu1  ;;  %v9822_v41 = vld [vmem:[#allocation2 + $0x18] sm:$0xff] }
 0xc69   : > { %9630 = vst.msk [vmem:[#allocation2 + $0x28] sm:$0xff] %vm696_vm10, %v9620_v44  ;;  %v9451_v62 = vadd.f32 %v9441_v27, %v9426_v23 }
 0xc6a   : > { %v13214_v4 = vpop.f32.mrf.mxu0  ;;  %v9611_v55 = vld [vmem:[#allocation2 + $0x30] sm:$0xff]  ;;  %v13232_v1 = vpop.f32.mrf.mxu1 }
 0xc6b   : > { %9461 = vst.msk [vmem:[#allocation2 + $0x40] sm:$0xff] %vm696_vm10, %v9451_v62  ;;  %v9621_v63 = vadd.f32 %v9611_v55, %v9590_v26 }
 0xc6c   : > { %v9429_v3 = vpop.f32.mrf.mxu0  ;;  %v9593_v5 = vpop.f32.mrf.mxu1  ;;  %v9823_v2 = vld [vmem:[#allocation2 + $0x20] sm:$0xff] }
 0xc6d   : > { %9631 = vst.msk [vmem:[#allocation2 + $0x30] sm:$0xff] %vm696_vm10, %v9621_v63  ;;  %v9452_v31 = vadd.f32 %v9442_v28, %v9429_v3 }
 0xc6e   : > { %v13215_v24 = vpop.f32.mrf.mxu0  ;;  %v9612_v45 = vld [vmem:[#allocation2 + $0x38] sm:$0xff]  ;;  %v13233_v56 = vpop.f32.mrf.mxu1 }
 0xc6f   : > { %9462 = vst.msk [vmem:[#allocation2 + $0x48] sm:$0xff] %vm696_vm10, %v9452_v31  ;;  %v9622_v32 = vadd.f32 %v9612_v45, %v9593_v5 }
 0xc70   : > { %v9780_v6 = vpop.f32.mrf.mxu0  ;;  %v9598_v36 = vpop.f32.mrf.mxu1  ;;  %v9824_v0 = vld [vmem:[#allocation2 + $0x28] sm:$0xff] }
 0xc71   : > { %9632 = vst.msk [vmem:[#allocation2 + $0x38] sm:$0xff] %vm696_vm10, %v9622_v32  ;;  %v9829_v53 = vadd.f32 %v9819_v50, %v9780_v6 }
 0xc72   : > { %v9613_v37 = vld [vmem:[#allocation2 + $0x40] sm:$0xff]  ;;  %v13242_v33 = vpop.f32.mrf.mxu0  ;;  %v13236_v17 = vpop.f32.mrf.mxu1 }
 0xc73   : > { %9839 = vst.msk [vmem:[#allocation2] sm:$0xff] %vm696_vm10, %v9829_v53  ;;  %v9623_v25 = vadd.f32 %v9613_v37, %v9598_v36 }
 0xc74   : > { %v9783_v30 = vpop.f32.mrf.mxu0  ;;  %v9601_v34 = vpop.f32.mrf.mxu1  ;;  %v9825_v1 = vld [vmem:[#allocation2 + $0x30] sm:$0xff] }
 0xc75   : > { %9633 = vst.msk [vmem:[#allocation2 + $0x40] sm:$0xff] %vm696_vm10, %v9623_v25  ;;  %v9830_v20 = vadd.f32 %v9820_v35, %v9783_v30 }
 0xc76   : > { %v9614_v39 = vld [vmem:[#allocation2 + $0x48] sm:$0xff]  ;;  %v13243_v19 = vpop.f32.mrf.mxu0  ;;  %v13237_v42 = vpop.f32.mrf.mxu1 }
 0xc77   : > { %9840 = vst.msk [vmem:[#allocation2 + $0x8] sm:$0xff] %vm696_vm10, %v9830_v20  ;;  %v9624_v46 = vadd.f32 %v9614_v39, %v9601_v34 }
 0xc78   : > { %v9788_v13 = vpop.f32.mrf.mxu0  ;;  %v9952_v57 = vpop.f32.mrf.mxu1  ;;  %v9826_v56 = vld [vmem:[#allocation2 + $0x38] sm:$0xff] }
 0xc79   : > { %9634 = vst.msk [vmem:[#allocation2 + $0x48] sm:$0xff] %vm696_vm10, %v9624_v46  ;;  %v9831_v11 = vadd.f32 %v9821_v58, %v9788_v13 }
 0xc7a   : > { %v13246_v10 = vpop.f32.mrf.mxu0  ;;  %v9991_v21 = vld [vmem:[#allocation2] sm:$0xff]  ;;  %v13264_v16 = vpop.f32.mrf.mxu1 }
 0xc7b   : > { %9841 = vst.msk [vmem:[#allocation2 + $0x10] sm:$0xff] %vm696_vm10, %v9831_v11  ;;  %v10001_v18 = vadd.f32 %v9991_v21, %v9952_v57 }
 0xc7c   : > { %v9791_v47 = vpop.f32.mrf.mxu0  ;;  %v9955_v60 = vpop.f32.mrf.mxu1  ;;  %v9827_v17 = vld [vmem:[#allocation2 + $0x40] sm:$0xff] }
 0xc7d   : > { %10011 = vst.msk [vmem:[#allocation2] sm:$0xff] %vm696_vm10, %v10001_v18  ;;  %v9832_v43 = vadd.f32 %v9822_v41, %v9791_v47 }
 0xc7e   : > { %v13247_v61 = vpop.f32.mrf.mxu0  ;;  %v9992_v38 = vld [vmem:[#allocation2 + $0x8] sm:$0xff]  ;;  %v13265_v49 = vpop.f32.mrf.mxu1 }
 0xc7f   : > { %9842 = vst.msk [vmem:[#allocation2 + $0x18] sm:$0xff] %vm696_vm10, %v9832_v43  ;;  %v10002_v8 = vadd.f32 %v9992_v38, %v9955_v60 }
 0xc80   : > { %v9796_v7 = vpop.f32.mrf.mxu0  ;;  %v9960_v15 = vpop.f32.mrf.mxu1  ;;  %v9828_v42 = vld [vmem:[#allocation2 + $0x48] sm:$0xff] }
 0xc81   : > { %10012 = vst.msk [vmem:[#allocation2 + $0x8] sm:$0xff] %vm696_vm10, %v10002_v8  ;;  %v9833_v9 = vadd.f32 %v9823_v2, %v9796_v7 }
 0xc82   : > { %v13250_v14 = vpop.f32.mrf.mxu0  ;;  %v9993_v59 = vld [vmem:[#allocation2 + $0x10] sm:$0xff]  ;;  %v13268_v51 = vpop.f32.mrf.mxu1 }
 0xc83   : > { %9843 = vst.msk [vmem:[#allocation2 + $0x20] sm:$0xff] %vm696_vm10, %v9833_v9  ;;  %v10003_v52 = vadd.f32 %v9993_v59, %v9960_v15 }
 0xc84   : > { %v9799_v44 = vpop.f32.mrf.mxu0  ;;  %v9963_v27 = vpop.f32.mrf.mxu1  ;;  %v10163_v16 = vld [vmem:[#allocation2] sm:$0xff] }
 0xc85   : > { %10013 = vst.msk [vmem:[#allocation2 + $0x10] sm:$0xff] %vm696_vm10, %v10003_v52  ;;  %v9834_v23 = vadd.f32 %v9824_v0, %v9799_v44 }
 0xc86   : > { %v13251_v62 = vpop.f32.mrf.mxu0  ;;  %v9994_v26 = vld [vmem:[#allocation2 + $0x18] sm:$0xff]  ;;  %v13269_v55 = vpop.f32.mrf.mxu1 }
 0xc87   : > { %9844 = vst.msk [vmem:[#allocation2 + $0x28] sm:$0xff] %vm696_vm10, %v9834_v23  ;;  %v10004_v4 = vadd.f32 %v9994_v26, %v9963_v27 }
 0xc88   : > { %v9804_v63 = vpop.f32.mrf.mxu0  ;;  %v9968_v28 = vpop.f32.mrf.mxu1  ;;  %v10164_v49 = vld [vmem:[#allocation2 + $0x8] sm:$0xff] }
 0xc89   : > { %10014 = vst.msk [vmem:[#allocation2 + $0x18] sm:$0xff] %vm696_vm10, %v10004_v4  ;;  %v9835_v3 = vadd.f32 %v9825_v1, %v9804_v63 }
 0xc8a   : > { %v13254_v31 = vpop.f32.mrf.mxu0  ;;  %v9995_v5 = vld [vmem:[#allocation2 + $0x20] sm:$0xff]  ;;  %v13272_v45 = vpop.f32.mrf.mxu1 }
 0xc8b   : > { %9845 = vst.msk [vmem:[#allocation2 + $0x30] sm:$0xff] %vm696_vm10, %v9835_v3  ;;  %v10005_v24 = vadd.f32 %v9995_v5, %v9968_v28 }
 0xc8c   : > { %v9807_v32 = vpop.f32.mrf.mxu0  ;;  %v9971_v50 = vpop.f32.mrf.mxu1  ;;  %v10165_v51 = vld [vmem:[#allocation2 + $0x10] sm:$0xff] }
 0xc8d   : > { %10015 = vst.msk [vmem:[#allocation2 + $0x20] sm:$0xff] %vm696_vm10, %v10005_v24  ;;  %v9836_v6 = vadd.f32 %v9826_v56, %v9807_v32 }
 0xc8e   : > { %v13255_v53 = vpop.f32.mrf.mxu0  ;;  %v9996_v36 = vld [vmem:[#allocation2 + $0x28] sm:$0xff]  ;;  %v13273_v33 = vpop.f32.mrf.mxu1 }
 0xc8f   : > { %9846 = vst.msk [vmem:[#allocation2 + $0x38] sm:$0xff] %vm696_vm10, %v9836_v6  ;;  %v10006_v37 = vadd.f32 %v9996_v36, %v9971_v50 }
 0xc90   : > { %v9812_v25 = vpop.f32.mrf.mxu0  ;;  %v9976_v35 = vpop.f32.mrf.mxu1  ;;  %v10166_v55 = vld [vmem:[#allocation2 + $0x18] sm:$0xff] }
 0xc91   : > { %10016 = vst.msk [vmem:[#allocation2 + $0x28] sm:$0xff] %vm696_vm10, %v10006_v37  ;;  %v9837_v30 = vadd.f32 %v9827_v17, %v9812_v25 }
 0xc92   : > { %v13258_v20 = vpop.f32.mrf.mxu0  ;;  %v9997_v34 = vld [vmem:[#allocation2 + $0x30] sm:$0xff]  ;;  %v13276_v19 = vpop.f32.mrf.mxu1 }
 0xc93   : > { %9847 = vst.msk [vmem:[#allocation2 + $0x40] sm:$0xff] %vm696_vm10, %v9837_v30  ;;  %v10007_v39 = vadd.f32 %v9997_v34, %v9976_v35 }
 0xc94   : > { %v9815_v46 = vpop.f32.mrf.mxu0  ;;  %v9979_v58 = vpop.f32.mrf.mxu1  ;;  %v10167_v45 = vld [vmem:[#allocation2 + $0x20] sm:$0xff] }
 0xc95   : > { %10017 = vst.msk [vmem:[#allocation2 + $0x30] sm:$0xff] %vm696_vm10, %v10007_v39  ;;  %v9838_v13 = vadd.f32 %v9828_v42, %v9815_v46 }
 0xc96   : > { %v13259_v11 = vpop.f32.mrf.mxu0  ;;  %v9998_v57 = vld [vmem:[#allocation2 + $0x38] sm:$0xff]  ;;  %v13277_v21 = vpop.f32.mrf.mxu1 }
 0xc97   : > { %9848 = vst.msk [vmem:[#allocation2 + $0x48] sm:$0xff] %vm696_vm10, %v9838_v13  ;;  %v10008_v10 = vadd.f32 %v9998_v57, %v9979_v58 }
 0xc98   : > { %v10124_v18 = vpop.f32.mrf.mxu0  ;;  %v9984_v41 = vpop.f32.mrf.mxu1  ;;  %v10168_v33 = vld [vmem:[#allocation2 + $0x28] sm:$0xff] }
 0xc99   : > { %10018 = vst.msk [vmem:[#allocation2 + $0x38] sm:$0xff] %vm696_vm10, %v10008_v10  ;;  %v10173_v47 = vadd.f32 %v10163_v16, %v10124_v18 }
 0xc9a   : > { %v9999_v43 = vld [vmem:[#allocation2 + $0x40] sm:$0xff]  ;;  %v13286_v60 = vpop.f32.mrf.mxu0  ;;  %v13280_v38 = vpop.f32.mrf.mxu1 }
 0xc9b   : > { %10183 = vst.msk [vmem:[#allocation2] sm:$0xff] %vm696_vm10, %v10173_v47  ;;  %v10009_v61 = vadd.f32 %v9999_v43, %v9984_v41 }
 0xc9c   : > { %v10127_v8 = vpop.f32.mrf.mxu0  ;;  %v9987_v2 = vpop.f32.mrf.mxu1  ;;  %v10169_v19 = vld [vmem:[#allocation2 + $0x30] sm:$0xff] }
 0xc9d   : > { %10019 = vst.msk [vmem:[#allocation2 + $0x40] sm:$0xff] %vm696_vm10, %v10009_v61  ;;  %v10174_v7 = vadd.f32 %v10164_v49, %v10127_v8 }
 0xc9e   : > { %v10000_v9 = vld [vmem:[#allocation2 + $0x48] sm:$0xff]  ;;  %v13287_v15 = vpop.f32.mrf.mxu0  ;;  %v13281_v59 = vpop.f32.mrf.mxu1 }
 0xc9f   : > { %10184 = vst.msk [vmem:[#allocation2 + $0x8] sm:$0xff] %vm696_vm10, %v10174_v7  ;;  %v10010_v14 = vadd.f32 %v10000_v9, %v9987_v2 }
 0xca0   : > { %v10132_v52 = vpop.f32.mrf.mxu0  ;;  %v10338_v0 = vpop.f32.mrf.mxu1  ;;  %v10170_v21 = vld [vmem:[#allocation2 + $0x38] sm:$0xff] }
 0xca1   : > { %10020 = vst.msk [vmem:[#allocation2 + $0x48] sm:$0xff] %vm696_vm10, %v10010_v14  ;;  %v10175_v44 = vadd.f32 %v10165_v51, %v10132_v52 }
 0xca2   : > { %v13290_v23 = vpop.f32.mrf.mxu0  ;;  %v10377_v27 = vld [vmem:[#allocation2] sm:$0xff]  ;;  %v13308_v26 = vpop.f32.mrf.mxu1 }
 0xca3   : > { %10185 = vst.msk [vmem:[#allocation2 + $0x10] sm:$0xff] %vm696_vm10, %v10175_v44  ;;  %v10387_v62 = vadd.f32 %v10377_v27, %v10338_v0 }
 0xca4   : > { %v10135_v4 = vpop.f32.mrf.mxu0  ;;  %v10341_v1 = vpop.f32.mrf.mxu1  ;;  %v10171_v38 = vld [vmem:[#allocation2 + $0x40] sm:$0xff] }
 0xca5   : > { %10397 = vst.msk [vmem:[#allocation2] sm:$0xff] %vm696_vm10, %v10387_v62  ;;  %v10176_v63 = vadd.f32 %v10166_v55, %v10135_v4 }
 0xca6   : > { %v13291_v3 = vpop.f32.mrf.mxu0  ;;  %v10378_v28 = vld [vmem:[#allocation2 + $0x8] sm:$0xff]  ;;  %v13309_v5 = vpop.f32.mrf.mxu1 }
 0xca7   : > { %10186 = vst.msk [vmem:[#allocation2 + $0x18] sm:$0xff] %vm696_vm10, %v10176_v63  ;;  %v10388_v31 = vadd.f32 %v10378_v28, %v10341_v1 }
 0xca8   : > { %v10140_v24 = vpop.f32.mrf.mxu0  ;;  %v10346_v56 = vpop.f32.mrf.mxu1  ;;  %v10172_v59 = vld [vmem:[#allocation2 + $0x48] sm:$0xff] }
 0xca9   : > { %10398 = vst.msk [vmem:[#allocation2 + $0x8] sm:$0xff] %vm696_vm10, %v10388_v31  ;;  %v10177_v32 = vadd.f32 %v10167_v45, %v10140_v24 }
 0xcaa   : > { %v13294_v6 = vpop.f32.mrf.mxu0  ;;  %v10379_v50 = vld [vmem:[#allocation2 + $0x10] sm:$0xff]  ;;  %v13312_v36 = vpop.f32.mrf.mxu1 }
 0xcab   : > { %10187 = vst.msk [vmem:[#allocation2 + $0x20] sm:$0xff] %vm696_vm10, %v10177_v32  ;;  %v10389_v53 = vadd.f32 %v10379_v50, %v10346_v56 }
 0xcac   : > { %v10143_v37 = vpop.f32.mrf.mxu0  ;;  %v10349_v17 = vpop.f32.mrf.mxu1  ;;  %v10549_v26 = vld [vmem:[#allocation2] sm:$0xff] }
 0xcad   : > { %10399 = vst.msk [vmem:[#allocation2 + $0x10] sm:$0xff] %vm696_vm10, %v10389_v53  ;;  %v10178_v25 = vadd.f32 %v10168_v33, %v10143_v37 }
 0xcae   : > { %v13295_v30 = vpop.f32.mrf.mxu0  ;;  %v10380_v35 = vld [vmem:[#allocation2 + $0x18] sm:$0xff]  ;;  %v13313_v34 = vpop.f32.mrf.mxu1 }
 0xcaf   : > { %10188 = vst.msk [vmem:[#allocation2 + $0x28] sm:$0xff] %vm696_vm10, %v10178_v25  ;;  %v10390_v20 = vadd.f32 %v10380_v35, %v10349_v17  ;;  %v16388_v17 = vld [vmem:[%s16488_s7] ss:$0 sm:$0xff] }
 0xcb0   : > { %v10148_v39 = vpop.f32.mrf.mxu0  ;;  %v10354_v42 = vpop.f32.mrf.mxu1  ;;  %v10550_v5 = vld [vmem:[#allocation2 + $0x8] sm:$0xff] }
 0xcb1   : > { %10400 = vst.msk [vmem:[#allocation2 + $0x18] sm:$0xff] %vm696_vm10, %v10390_v20  ;;  %v10179_v46 = vadd.f32 %v10169_v19, %v10148_v39 }
 0xcb2   : > { %v13298_v13 = vpop.f32.mrf.mxu0  ;;  %v10381_v58 = vld [vmem:[#allocation2 + $0x20] sm:$0xff]  ;;  %v13316_v57 = vpop.f32.mrf.mxu1 }
 0xcb3   : > { %10189 = vst.msk [vmem:[#allocation2 + $0x30] sm:$0xff] %vm696_vm10, %v10179_v46  ;;  %v10391_v11 = vadd.f32 %v10381_v58, %v10354_v42 }
 0xcb4   : > { %v10151_v10 = vpop.f32.mrf.mxu0  ;;  %v10357_v16 = vpop.f32.mrf.mxu1  ;;  %v10551_v36 = vld [vmem:[#allocation2 + $0x10] sm:$0xff] }
 0xcb5   : > { %10401 = vst.msk [vmem:[#allocation2 + $0x20] sm:$0xff] %vm696_vm10, %v10391_v11  ;;  %v10180_v18 = vadd.f32 %v10170_v21, %v10151_v10 }
 0xcb6   : > { %v13299_v47 = vpop.f32.mrf.mxu0  ;;  %v10382_v41 = vld [vmem:[#allocation2 + $0x28] sm:$0xff]  ;;  %v13317_v60 = vpop.f32.mrf.mxu1 }
 0xcb7   : > { %10190 = vst.msk [vmem:[#allocation2 + $0x38] sm:$0xff] %vm696_vm10, %v10180_v18  ;;  %v10392_v43 = vadd.f32 %v10382_v41, %v10357_v16 }
 0xcb8   : > { %v10156_v61 = vpop.f32.mrf.mxu0  ;;  %v10362_v49 = vpop.f32.mrf.mxu1  ;;  %v10552_v35 = vld [vmem:[#allocation2 + $0x18] sm:$0xff] }
 0xcb9   : > { %10402 = vst.msk [vmem:[#allocation2 + $0x28] sm:$0xff] %vm696_vm10, %v10392_v43  ;;  %v10181_v8 = vadd.f32 %v10171_v38, %v10156_v61 }
 0xcba   : > { %v13302_v7 = vpop.f32.mrf.mxu0  ;;  %v10383_v2 = vld [vmem:[#allocation2 + $0x30] sm:$0xff]  ;;  %v13320_v15 = vpop.f32.mrf.mxu1 }
 0xcbb   : > { %10191 = vst.msk [vmem:[#allocation2 + $0x40] sm:$0xff] %vm696_vm10, %v10181_v8  ;;  %v10393_v9 = vadd.f32 %v10383_v2, %v10362_v49 }
 0xcbc   : > { %v10159_v14 = vpop.f32.mrf.mxu0  ;;  %v10365_v51 = vpop.f32.mrf.mxu1  ;;  %v10553_v13 = vld [vmem:[#allocation2 + $0x20] sm:$0xff] }
 0xcbd   : > { %10403 = vst.msk [vmem:[#allocation2 + $0x30] sm:$0xff] %vm696_vm10, %v10393_v9  ;;  %v10182_v52 = vadd.f32 %v10172_v59, %v10159_v14 }
 0xcbe   : > { %v13303_v44 = vpop.f32.mrf.mxu0  ;;  %v10384_v0 = vld [vmem:[#allocation2 + $0x38] sm:$0xff]  ;;  %v13321_v27 = vpop.f32.mrf.mxu1 }
 0xcbf   : > { %10192 = vst.msk [vmem:[#allocation2 + $0x48] sm:$0xff] %vm696_vm10, %v10182_v52  ;;  %v10394_v23 = vadd.f32 %v10384_v0, %v10365_v51 }
 0xcc0   : > { %v10510_v62 = vpop.f32.mrf.mxu0  ;;  %v10370_v55 = vpop.f32.mrf.mxu1  ;;  %v10554_v47 = vld [vmem:[#allocation2 + $0x28] sm:$0xff] }
 0xcc1   : > { %10404 = vst.msk [vmem:[#allocation2 + $0x38] sm:$0xff] %vm696_vm10, %v10394_v23  ;;  %v10559_v4 = vadd.f32 %v10549_v26, %v10510_v62 }
 0xcc2   : > { %v10385_v63 = vld [vmem:[#allocation2 + $0x40] sm:$0xff]  ;;  %v13330_v1 = vpop.f32.mrf.mxu0  ;;  %v13324_v28 = vpop.f32.mrf.mxu1 }
 0xcc3   : > { %10569 = vst.msk [vmem:[#allocation2] sm:$0xff] %vm696_vm10, %v10559_v4  ;;  %v10395_v3 = vadd.f32 %v10385_v63, %v10370_v55 }
 0xcc4   : > { %v10513_v31 = vpop.f32.mrf.mxu0  ;;  %v10373_v45 = vpop.f32.mrf.mxu1  ;;  %v10555_v49 = vld [vmem:[#allocation2 + $0x30] sm:$0xff] }
 0xcc5   : > { %10405 = vst.msk [vmem:[#allocation2 + $0x40] sm:$0xff] %vm696_vm10, %v10395_v3  ;;  %v10560_v24 = vadd.f32 %v10550_v5, %v10513_v31 }
 0xcc6   : > { %v10386_v32 = vld [vmem:[#allocation2 + $0x48] sm:$0xff]  ;;  %v13331_v56 = vpop.f32.mrf.mxu0  ;;  %v13325_v50 = vpop.f32.mrf.mxu1 }
 0xcc7   : > { %10570 = vst.msk [vmem:[#allocation2 + $0x8] sm:$0xff] %vm696_vm10, %v10560_v24  ;;  %v10396_v6 = vadd.f32 %v10386_v32, %v10373_v45 }
 0xcc8   : > { %v10518_v53 = vpop.f32.mrf.mxu0  ;;  %v10556_v51 = vld [vmem:[#allocation2 + $0x38] sm:$0xff] }
 0xcc9   : > { %10406 = vst.msk [vmem:[#allocation2 + $0x48] sm:$0xff] %vm696_vm10, %v10396_v6  ;;  %v10561_v37 = vadd.f32 %v10551_v36, %v10518_v53 }
 0xcca   : > { %v13334_v33 = vpop.f32.mrf.mxu0  ;;  %v10579_v25 = vld [vmem:[#allocation2] sm:$0xff] }
 0xccb   : > { %10571 = vst.msk [vmem:[#allocation2 + $0x10] sm:$0xff] %vm696_vm10, %v10561_v37  ;;  %v10596_v34 = vadd.f32 %v16388_v17, %v10579_v25 }
 0xccc   : > { %v10521_v30 = vpop.f32.mrf.mxu0  ;;  %v10557_v4 = vld [vmem:[#allocation2 + $0x40] sm:$0xff] }
 0xccd   : > { %v10562_v20 = vadd.f32 %v10552_v35, %v10521_v30  ;;  %v10606_v11 = vmax.f32 %v10596_v34, 0.0 }
 0xcce   : > { %v13335_v39 = vpop.f32.mrf.mxu0  ;;  %v10580_v19 = vld [vmem:[#allocation2 + $0x8] sm:$0xff] }
 0xccf   : > { %10572 = vst.msk [vmem:[#allocation2 + $0x18] sm:$0xff] %vm696_vm10, %v10562_v20  ;;  %v10597_v46 = vadd.f32 %v16388_v17, %v10580_v19  ;;  %v16424_v19 = vld [vmem:[%s16490_s9] ss:$0 sm:$0xff] }
 0xcd0   : > { %v10526_v42 = vpop.f32.mrf.mxu0  ;;  %v10558_v24 = vld [vmem:[#allocation2 + $0x48] sm:$0xff] }
 0xcd1   : > { %v10563_v58 = vadd.f32 %v10553_v13, %v10526_v42  ;;  %v10607_v57 = vmax.f32 %v10597_v46, 0.0  ;;  %v10720_v46 = vunpack.c.l.bf16 %v15787_v22 }
 0xcd2   : > { %v13338_v10 = vpop.f32.mrf.mxu0  ;;  %v10581_v21 = vld [vmem:[#allocation2 + $0x10] sm:$0xff] }
 0xcd3   : > { %10573 = vst.msk [vmem:[#allocation2 + $0x20] sm:$0xff] %vm696_vm10, %v10563_v58  ;;  %v10616_v18 = vpack.c.bf16 %v10607_v57, %v10606_v11  ;;  %v10598_v43 = vadd.f32 %v16388_v17, %v10581_v21 }
 0xcd4   : > { %v10529_v16 = vpop.f32.mrf.mxu0 }
 0xcd5   : > { %v10564_v41 = vadd.f32 %v10554_v47, %v10529_v16  ;;  %13351 = vmatmul.mubr.msk.bf16.vlgmr.msra.gmra.mxu1 %vm696_vm10, %v10616_v18  ;;  %v10608_v2 = vmax.f32 %v10598_v43, 0.0  ;;  %v10722_v47 = vunpack.c.l.bf16 %v15798_v48 }
 0xcd6   : > { %v13339_v60 = vpop.f32.mrf.mxu0  ;;  %13354 = vmatprep.mubr.msk.bf16.mxu1 %vm13805_vm8, %v13804_v12  ;;  %v10582_v61 = vld [vmem:[#allocation2 + $0x18] sm:$0xff] }
 0xcd7   : > { %10574 = vst.msk [vmem:[#allocation2 + $0x28] sm:$0xff] %vm696_vm10, %v10564_v41  ;;  %v10599_v38 = vadd.f32 %v16388_v17, %v10582_v61 }
 0xcd8   : > { %v10534_v8 = vpop.f32.mrf.mxu0 }
 0xcd9   : > { %v10565_v7 = vadd.f32 %v10555_v49, %v10534_v8  ;;  %v10609_v9 = vmax.f32 %v10599_v38, 0.0  ;;  %v10723_v8 = vunpack.c.h.bf16 %v15798_v48 }
 0xcda   : > { %v13342_v15 = vpop.f32.mrf.mxu0  ;;  %v10583_v14 = vld [vmem:[#allocation2 + $0x20] sm:$0xff] }
 0xcdb   : > { %10575 = vst.msk [vmem:[#allocation2 + $0x30] sm:$0xff] %vm696_vm10, %v10565_v7  ;;  %v10617_v59 = vpack.c.bf16 %v10609_v9, %v10608_v2  ;;  %v10600_v0 = vadd.f32 %v16388_v17, %v10583_v14 }
 0xcdc   : > { %v10537_v52 = vpop.f32.mrf.mxu0 }
 0xcdd   : > { %v10566_v44 = vadd.f32 %v10556_v51, %v10537_v52  ;;  %13355 = vmatmul.mubr.msk.bf16.gmra.mxu1 %vm696_vm10, %v10617_v59  ;;  %v10610_v63 = vmax.f32 %v10600_v0, 0.0  ;;  %v10724_v59 = vunpack.c.l.bf16 %v15809_v40 }
 0xcde   : > { %v13343_v23 = vpop.f32.mrf.mxu0  ;;  %13358 = vmatprep.mubr.msk.bf16.mxu1 %vm13805_vm8, %v13804_v12  ;;  %v10584_v27 = vld [vmem:[#allocation2 + $0x28] sm:$0xff] }
 0xcdf   : > { %10576 = vst.msk [vmem:[#allocation2 + $0x38] sm:$0xff] %vm696_vm10, %v10566_v44  ;;  %v10601_v62 = vadd.f32 %v16388_v17, %v10584_v27  ;;  %v10725_v27 = vunpack.c.h.bf16 %v15809_v40 }
 0xce0   : > { %v10542_v26 = vpop.f32.mrf.mxu0 }
 0xce1   : > { %v10567_v55 = vadd.f32 %v10557_v4, %v10542_v26  ;;  %v10611_v1 = vmax.f32 %v10601_v62, 0.0 }
 0xce2   : > { %v13346_v3 = vpop.f32.mrf.mxu0  ;;  %v10585_v28 = vld [vmem:[#allocation2 + $0x30] sm:$0xff] }
 0xce3   : > { %10577 = vst.msk [vmem:[#allocation2 + $0x40] sm:$0xff] %vm696_vm10, %v10567_v55  ;;  %v10618_v31 = vpack.c.bf16 %v10611_v1, %v10610_v63  ;;  %v10602_v32 = vadd.f32 %v16388_v17, %v10585_v28  ;;  %v10726_v3 = vunpack.c.l.bf16 %v15820_v54 }
 0xce4   : > { %v10545_v5 = vpop.f32.mrf.mxu0 }
 0xce5   : > { %v10568_v45 = vadd.f32 %v10558_v24, %v10545_v5  ;;  %13359 = vmatmul.mubr.msk.bf16.gmra.mxu1 %vm696_vm10, %v10618_v31  ;;  %v10612_v53 = vmax.f32 %v10602_v32, 0.0  ;;  %v10727_v32 = vunpack.c.h.bf16 %v15820_v54 }
 0xce6   : > { %v13347_v56 = vpop.f32.mrf.mxu0  ;;  %13362 = vmatprep.mubr.msk.bf16.mxu1 %vm13805_vm8, %v13804_v12  ;;  %v10586_v6 = vld [vmem:[#allocation2 + $0x38] sm:$0xff] }
 0xce7   : > { %10578 = vst.msk [vmem:[#allocation2 + $0x48] sm:$0xff] %vm696_vm10, %v10568_v45  ;;  %v10603_v50 = vadd.f32 %v16388_v17, %v10586_v6 }
 0xce9   : > { %v10613_v36 = vmax.f32 %v10603_v50, 0.0 }
 0xcea   : > { %v10587_v37 = vld [vmem:[#allocation2 + $0x40] sm:$0xff] }
 0xceb   : > { %v10619_v33 = vpack.c.bf16 %v10613_v36, %v10612_v53  ;;  %v10604_v25 = vadd.f32 %v16388_v17, %v10587_v37 }
 0xced   : > { %13363 = vmatmul.mubr.msk.bf16.gmra.mxu1 %vm696_vm10, %v10619_v33  ;;  %v10614_v20 = vmax.f32 %v10604_v25, 0.0  ;;  %v10728_v33 = vunpack.c.l.bf16 %v15831_v29 }
 0xcee   : > { %13366 = vmatprep.mubr.msk.bf16.mxu1 %vm13805_vm8, %v13804_v12  ;;  %v10588_v30 = vld [vmem:[#allocation2 + $0x48] sm:$0xff] }
 0xcef   : > { %v10605_v35 = vadd.f32 %v16388_v17, %v10588_v30  ;;  %v10721_v17 = vunpack.c.h.bf16 %v15787_v22 }
 0xcf1   : > { %v10615_v34 = vmax.f32 %v10605_v35, 0.0 }
 0xcf3   : > { %v10620_v39 = vpack.c.bf16 %v10615_v34, %v10614_v20 }
 0xcf5   : > { %13367 = vmatmul.mubr.msk.bf16.gmra.mxu1 %vm696_vm10, %v10620_v39  ;;  %v10729_v39 = vunpack.c.h.bf16 %v15831_v29 }
 0xd95   : > { %v10681_v42 = vpop.f32.mrf.mxu1 }
 0xd96   : > { %v10682_v13 = vadd.f32 %v16424_v19, %v10681_v42 }
 0xd97   : > { %v13352_v12 = vpop.f32.mrf.mxu1 }
 0xd98   : > { %v10730_v58 = vadd.f32 %v10720_v46, %v10682_v13 }
 0xd99   : > { %v10684_v11 = vpop.f32.mrf.mxu1 }
 0xd9a   : > { %v10740_v57 = vmax.f32 %v10730_v58, 0.0  ;;  %v10685_v10 = vadd.f32 %v16424_v19, %v10684_v11 }
 0xd9b   : > { %v13353_v21 = vpop.f32.mrf.mxu1 }
 0xd9c   : > { %v11868_v18 = vpack.c.bf16 %v10740_v57, %v10740_v57  ;;  %v10731_v16 = vadd.f32 %v10721_v17, %v10685_v10 }
 0xd9d   : > { %v10689_v41 = vpop.f32.mrf.mxu1 }
 0xd9e   : > { %11784 = vst.msk [vmem:[%s14003_s30 + $0x78] sm:$0xf] %vm3161_vm11, %v11868_v18  ;;  %v10741_v43 = vmax.f32 %v10731_v16, 0.0  ;;  %v10690_v60 = vadd.f32 %v16424_v19, %v10689_v41 }
 0xd9f   : > { %v13356_v61 = vpop.f32.mrf.mxu1 }
 0xda0   : > { %v11869_v38 = vpack.c.bf16 %v10741_v43, %v10741_v43  ;;  %v10732_v22 = vadd.f32 %v10722_v47, %v10690_v60 }
 0xda1   : > { %v10692_v49 = vpop.f32.mrf.mxu1 }
 0xda2   : > { %11785 = vst.msk [vmem:[%s14003_s30 + $0x7c] sm:$0xf] %vm3161_vm11, %v11869_v38  ;;  %v10742_v7 = vmax.f32 %v10732_v22, 0.0  ;;  %v10693_v2 = vadd.f32 %v16424_v19, %v10692_v49 }
 0xda3   : > { %v13357_v9 = vpop.f32.mrf.mxu1 }
 0xda4   : > { %v11870_v15 = vpack.c.bf16 %v10742_v7, %v10742_v7  ;;  %v10733_v14 = vadd.f32 %v10723_v8, %v10693_v2 }
 0xda5   : > { %v10697_v52 = vpop.f32.mrf.mxu1 }
 0xda6   : > { %11786 = vst.msk [vmem:[%s14003_s30 + $0x80] sm:$0xf] %vm3161_vm11, %v11870_v15  ;;  %v10743_v51 = vmax.f32 %v10733_v14, 0.0  ;;  %v10698_v44 = vadd.f32 %v16424_v19, %v10697_v52 }
 0xda7   : > { %v13360_v48 = vpop.f32.mrf.mxu1 }
 0xda8   : > { %v11871_v0 = vpack.c.bf16 %v10743_v51, %v10743_v51  ;;  %v10734_v23 = vadd.f32 %v10724_v59, %v10698_v44 }
 0xda9   : > { %v10700_v62 = vpop.f32.mrf.mxu1 }
 0xdaa   : > { %11787 = vst.msk [vmem:[%s14003_s30 + $0x84] sm:$0xf] %vm3161_vm11, %v11871_v0  ;;  %v10744_v26 = vmax.f32 %v10734_v23, 0.0  ;;  %v10701_v4 = vadd.f32 %v16424_v19, %v10700_v62 }
 0xdab   : > { %v13361_v55 = vpop.f32.mrf.mxu1 }
 0xdac   : > { %v11872_v63 = vpack.c.bf16 %v10744_v26, %v10744_v26  ;;  %v10735_v1 = vadd.f32 %v10725_v27, %v10701_v4 }
 0xdad   : > { %v10705_v28 = vpop.f32.mrf.mxu1 }
 0xdae   : > { %11788 = vst.msk [vmem:[%s14003_s30 + $0x88] sm:$0xf] %vm3161_vm11, %v11872_v63  ;;  %v10745_v31 = vmax.f32 %v10735_v1, 0.0  ;;  %v10706_v5 = vadd.f32 %v16424_v19, %v10705_v28 }
 0xdaf   : > { %v13364_v40 = vpop.f32.mrf.mxu1 }
 0xdb0   : > { %v11873_v24 = vpack.c.bf16 %v10745_v31, %v10745_v31  ;;  %v10736_v45 = vadd.f32 %v10726_v3, %v10706_v5 }
 0xdb1   : > { %v10708_v56 = vpop.f32.mrf.mxu1 }
 0xdb2   : > { %11789 = vst.msk [vmem:[%s14003_s30 + $0x8c] sm:$0xf] %vm3161_vm11, %v11873_v24  ;;  %v10746_v6 = vmax.f32 %v10736_v45, 0.0  ;;  %v10709_v50 = vadd.f32 %v16424_v19, %v10708_v56 }
 0xdb3   : > { %v13365_v53 = vpop.f32.mrf.mxu1 }
 0xdb4   : > { %v11874_v36 = vpack.c.bf16 %v10746_v6, %v10746_v6  ;;  %v10737_v37 = vadd.f32 %v10727_v32, %v10709_v50 }
 0xdb5   : > { %v10713_v25 = vpop.f32.mrf.mxu1 }
 0xdb6   : > { %11790 = vst.msk [vmem:[%s14003_s30 + $0x90] sm:$0xf] %vm3161_vm11, %v11874_v36  ;;  %v10747_v30 = vmax.f32 %v10737_v37, 0.0  ;;  %v10714_v54 = vadd.f32 %v16424_v19, %v10713_v25 }
 0xdb7   : > { %v13368_v35 = vpop.f32.mrf.mxu1 }
 0xdb8   : > { %v11875_v20 = vpack.c.bf16 %v10747_v30, %v10747_v30  ;;  %v10738_v34 = vadd.f32 %v10728_v33, %v10714_v54 }
 0xdb9   : > { %v10716_v46 = vpop.f32.mrf.mxu1 }
 0xdba   : > { %11791 = vst.msk [vmem:[%s14003_s30 + $0x94] sm:$0xf] %vm3161_vm11, %v11875_v20  ;;  %v10748_v42 = vmax.f32 %v10738_v34, 0.0  ;;  %v10717_v13 = vadd.f32 %v16424_v19, %v10716_v46 }
 0xdbb   : > { %v13369_v12 = vpop.f32.mrf.mxu1 }
 0xdbc   : > { %v11876_v58 = vpack.c.bf16 %v10748_v42, %v10748_v42  ;;  %v10739_v17 = vadd.f32 %v10729_v39, %v10717_v13 }
 0xdbe   : > { %11792 = vst.msk [vmem:[%s14003_s30 + $0x98] sm:$0xf] %vm3161_vm11, %v11876_v58  ;;  %v10749_v11 = vmax.f32 %v10739_v17, 0.0 }
 0xdc0   : > { %v11877_v57 = vpack.c.bf16 %v10749_v11, %v10749_v11 }
 0xdc2   : > { %11793 = vst.msk [vmem:[%s14003_s30 + $0x9c] sm:$0xf] %vm3161_vm11, %v11877_v57 }
 0xdc3 PF: > { %s20_s17 = sadd.s32 1, %s13801_s17   ;;  %s16501_s13 = smov %s13793_s15 }
 0xdc4   : > { %p17_p12 = scmp.ge.s32.totalorder %s20_s17, 6   ;;  %s16502_s14 = smov %s13797_s16 }
 0xdc5   : > { %s16503_s15 = smov %s16506_s18  ;;  %s16504_s16 = smov %s16510_s19 }
 0xdc6   :  { %19 = sbr.rel (!%p17_p12) target bundleno = 3 (0x3), region = 120 }

</bundles_post_ra>
